<compile_context>
chip_gen: v7x
topology: tpu7x:2x2x1
jax: 0.10.0
libtpu: 0.0.40
codegen_flags: <defaults>
</compile_context>

<pallas_src>
import jax
import jax.numpy as jnp
import numpy as np
from jax.experimental import pallas as pl
from jax.experimental.pallas import tpu as pltpu


# ----------------------------------------------------------------------------
# Batch-tile selection (generation-aware grid sizing)
# ----------------------------------------------------------------------------
def _pick_bt(B, cap):
    """Largest divisor of B that is <= cap, preferring >= 2 grid steps (v7x)."""
    divs = [d for d in range(1, B + 1) if B % d == 0 and d <= cap]
    multi = [d for d in divs if B // d >= 2]
    if multi:
        return max(multi)
    return max(divs) if divs else B


def _pick_bt_rows8(B, cap):
    """Like _pick_bt, but the tile is a 2-D output's second-minor dim, so it
    must be a multiple of 8 or the full batch (the (8,128) block rule)."""
    divs = [d for d in range(1, B + 1)
            if B % d == 0 and d <= cap and (d % 8 == 0 or d == B)]
    multi = [d for d in divs if B // d >= 2]
    if multi:
        return max(multi)
    if divs:
        return max(divs)
    return B


_VMEM_LIMIT = 32 * 1024 * 1024   # explicit budget; safe on v5e/v6e/v7x


# ----------------------------------------------------------------------------
# Kernel 1: fused conv1(3x3, pad=1) + bias + ReLU + 2x2 maxpool
# ----------------------------------------------------------------------------
def _conv_relu_pool_kernel(p_ref, w_ref, b_ref, o_ref):
    # p_ref: (bt*4*N, K) bf16 im2col patches, rows ordered (batch, pool-offset, n)
    # w_ref: (K, Cout) bf16;  b_ref: (1, Cout) f32;  o_ref: (bt, N, Cout) bf16
    bt, N, Cout = o_ref.shape
    # One merged MXU matmul over all batch elements and pool offsets.
    acc = jnp.dot(p_ref[...], w_ref[...], preferred_element_type=jnp.float32)
    acc = acc.reshape(bt, 4, N, Cout)
    pooled = jnp.max(acc, axis=1)                  # 2x2 max-pool (offset axis)
    y = jnp.maximum(pooled + b_ref[...], 0.0)      # bias + ReLU (commute with max)
    o_ref[...] = y.astype(o_ref.dtype)


def conv_relu_pool(x_nhwc, w_mat, b_row, *, max_bt=16):
    """Fused 3x3 conv (pad=1) + bias + ReLU + 2x2 max-pool.

    x_nhwc: (B, H, W, Cin) bf16; w_mat: (K=Cin*9, Cout) bf16; b_row: (1, Cout) f32.
    Returns (B, (H//2)*(W//2), Cout) bf16 (NHWC-flattened pooled feature map).
    """
    B, H, W, Cin = x_nhwc.shape
    K = Cin * 9
    Cout = w_mat.shape[1]
    Hp, Wp = H // 2, W // 2
    N = Hp * Wp

    # im2col glue (XLA): 3x3 neighborhoods, K index = cin*9 + ky*3 + kx,
    # regrouped by 2x2 pool-window offset -> rows ordered (batch, offset, n).
    xp = jnp.pad(x_nhwc, ((0, 0), (1, 1), (1, 1), (0, 0)))
    cols = [xp[:, ky:ky + H, kx:kx + W, :] for ky in range(3) for kx in range(3)]
    patches = jnp.stack(cols, axis=-1).reshape(B, H, W, K)
    patches = patches.reshape(B, Hp, 2, Wp, 2, K).transpose(0, 2, 4, 1, 3, 5)
    patches = patches.reshape(B * 4 * N, K)

    # bt=1 at B=2 -> grid=(2,), both v7x TensorCores busy; grows to 16 at large B.
    bt = _pick_bt(B, max_bt)
    grid = (B // bt,)

    flops = 2 * B * 4 * N * K * Cout
    bytes_accessed = (patches.size * 2 + w_mat.size * 2 + b_row.size * 4
                      + B * N * Cout * 2)

    return pl.pallas_call(
        _conv_relu_pool_kernel,
        out_shape=jax.ShapeDtypeStruct((B, N, Cout), jnp.bfloat16),
        grid_spec=pltpu.PrefetchScalarGridSpec(
            num_scalar_prefetch=0,
            grid=grid,
            in_specs=[
                pl.BlockSpec((bt * 4 * N, K), lambda i: (i, 0)),
                pl.BlockSpec((K, Cout), lambda i: (0, 0)),
                pl.BlockSpec((1, Cout), lambda i: (0, 0)),
            ],
            out_specs=pl.BlockSpec((bt, N, Cout), lambda i: (i, 0, 0)),
        ),
        compiler_params=pltpu.CompilerParams(
            dimension_semantics=("parallel",),
            vmem_limit_bytes=_VMEM_LIMIT),
        cost_estimate=pl.CostEstimate(flops=flops, transcendentals=0,
                                      bytes_accessed=bytes_accessed),
    )(patches, w_mat, b_row)


# ----------------------------------------------------------------------------
# Kernel 2: fused conv2 + bias + ReLU + pool + fc1 + ReLU + fc2
# ----------------------------------------------------------------------------
def _conv2_mlp_kernel(p_ref, wc_ref, bc_ref, w1_ref, b1_ref, w2_ref, b2_ref,
                      o_ref, y2_scr):
    # p_ref : (bt*4*N2, K) bf16 conv2 patches, rows ordered (batch, offset, n)
    # wc_ref: (K, C2) bf16 ; bc_ref: (1, C2) f32
    # w1_ref: (N2, C2, Hd) bf16 block-row stack of fc1 ; b1_ref: (1, Hd) f32
    # w2_ref: (Hd, O) bf16 ; b2_ref: (1, O) f32 ; o_ref: (bt, O) f32 (lane-dense)
    bt, N2, C2 = y2_scr.shape
    Hd = w1_ref.shape[2]

    # conv2 as one merged MXU matmul, then pool-max / bias / ReLU (commute).
    acc = jnp.dot(p_ref[...], wc_ref[...], preferred_element_type=jnp.float32)
    acc = acc.reshape(bt, 4, N2, C2)
    pooled = jnp.max(acc, axis=1)                       # (bt, N2, C2)
    y2 = jnp.maximum(pooled + bc_ref[...], 0.0)
    y2_scr[...] = y2.astype(y2_scr.dtype)               # stays in VMEM

    # fc1: hidden[b,:] = sum_n y2[b,n,:] @ W1[n]  -- block-row decomposition of
    # the (bt, N2*C2) @ (N2*C2, Hd) matmul; avoids an in-kernel lane-merge
    # reshape of the 64-lane pooled activation.  Static unroll (N2 = 64).
    h = jnp.zeros((bt, Hd), jnp.float32)
    for n in range(N2):
        h = h + jnp.dot(y2_scr[:, n, :], w1_ref[n],
                        preferred_element_type=jnp.float32)
    h = jnp.maximum(h + b1_ref[...], 0.0).astype(w2_ref.dtype)   # ReLU -> bf16

    y = jnp.dot(h, w2_ref[...], preferred_element_type=jnp.float32) + b2_ref[...]
    o_ref[...] = y.astype(o_ref.dtype)                  # (bt, 384): lane-dense


def conv2_mlp(x_nhwc, wc, bc, w1_3d, b1, w2, b2, *, max_bt=32):
    """x_nhwc: (B, 16, 16, 32) bf16 pooled conv1 activation.  Returns (B, O) f32."""
    B, H, W, Cin = x_nhwc.shape
    K = Cin * 9
    C2 = wc.shape[1]
    Hp, Wp = H // 2, W // 2
    N2 = Hp * Wp
    Hd = w1_3d.shape[2]
    O = w2.shape[1]

    # im2col glue (XLA) for conv2, same ordering as conv1.
    # TODO(synk): in-kernel im2col (would cut the 9x patch HBM expansion) needs
    # sublane-offset slicing that is fragile to lower at Cin=32; kept in XLA.
    xp = jnp.pad(x_nhwc, ((0, 0), (1, 1), (1, 1), (0, 0)))
    cols = [xp[:, ky:ky + H, kx:kx + W, :] for ky in range(3) for kx in range(3)]
    patches = jnp.stack(cols, axis=-1).reshape(B, H, W, K)
    patches = patches.reshape(B, Hp, 2, Wp, 2, K).transpose(0, 2, 4, 1, 3, 5)
    patches = patches.reshape(B * 4 * N2, K)

    bt = _pick_bt_rows8(B, max_bt)
    grid = (B // bt,)

    flops = 2 * B * (4 * N2 * K * C2 + N2 * C2 * Hd + Hd * O)
    bytes_accessed = (patches.size * 2
                      + wc.size * 2 + w1_3d.size * 2 + w2.size * 2
                      + (bc.size + b1.size + b2.size) * 4
                      + B * O * 4)

    return pl.pallas_call(
        _conv2_mlp_kernel,
        out_shape=jax.ShapeDtypeStruct((B, O), jnp.float32),
        grid_spec=pltpu.PrefetchScalarGridSpec(
            num_scalar_prefetch=0,
            grid=grid,
            in_specs=[
                pl.BlockSpec((bt * 4 * N2, K), lambda i: (i, 0)),
                pl.BlockSpec((K, C2), lambda i: (0, 0)),
                pl.BlockSpec((1, C2), lambda i: (0, 0)),
                pl.BlockSpec((N2, C2, Hd), lambda i: (0, 0, 0)),
                pl.BlockSpec((1, Hd), lambda i: (0, 0)),
                pl.BlockSpec((Hd, O), lambda i: (0, 0)),
                pl.BlockSpec((1, O), lambda i: (0, 0)),
            ],
            out_specs=pl.BlockSpec((bt, O), lambda i: (i, 0)),
            scratch_shapes=[pltpu.VMEM((bt, N2, C2), jnp.bfloat16)],
        ),
        compiler_params=pltpu.CompilerParams(
            dimension_semantics=("parallel",),
            vmem_limit_bytes=_VMEM_LIMIT),
        cost_estimate=pl.CostEstimate(flops=flops, transcendentals=0,
                                      bytes_accessed=bytes_accessed),
    )(patches, wc, bc, w1_3d, b1, w2, b2)


# ----------------------------------------------------------------------------
# One-time parameter preparation (run OUTSIDE jit, once)
# ----------------------------------------------------------------------------
def prepare_params(params):
    """Convert PyTorch-layout params to kernel-ready matrices (bf16 weights)."""
    f1w = params["fc1_w"]                       # (128, 4096), cols in (C=64,H=8,W=8) order
    f2w = params["fc2_w"]                       # (370, 128)
    pad = (-f2w.shape[0]) % 128                 # 370 -> 384: lane-dense fc2 stores
    # Permute fc1 columns from (C,H,W) to NHWC (H,W,C) order, then stack as
    # (N2=64, C=64, 128) block rows for the in-kernel block-row fc1.
    f1w_nhwc = f1w.reshape(128, 64, 8, 8).transpose(0, 2, 3, 1).reshape(128, 64 * 8 * 8)
    return {
        "c1_w": params["conv1_w"].reshape(32, 9).T.astype(jnp.bfloat16),        # (9, 32)
        "c1_b": params["conv1_b"].reshape(1, 32).astype(jnp.float32),
        "c2_w": params["conv2_w"].reshape(64, 32 * 9).T.astype(jnp.bfloat16),   # (288, 64)
        "c2_b": params["conv2_b"].reshape(1, 64).astype(jnp.float32),
        "fc1_w": f1w_nhwc.T.reshape(64, 64, 128).astype(jnp.bfloat16),          # (64, 64, 128)
        "fc1_b": params["fc1_b"].reshape(1, 128).astype(jnp.float32),
        "fc2_w": jnp.pad(f2w, ((0, pad), (0, 0))).T.astype(jnp.bfloat16),       # (128, 384)
        "fc2_b": jnp.pad(params["fc2_b"], (0, pad)).reshape(1, -1).astype(jnp.float32),
    }


# ----------------------------------------------------------------------------
# Full forward pass (matches PyTorch SimpleCNN.forward)
# ----------------------------------------------------------------------------
def simple_cnn_forward(x, p, num_classes=370):
    """x: (B, 32, 32); fc1 is hard-wired to 64*8*8 features."""
    B, H, W = x.shape
    assert H == 32 and W == 32, "SimpleCNN.fc1 requires a 32x32 input"
    x = x[..., None].astype(jnp.bfloat16)                 # NHWC, Cin=1 (== unsqueeze(1))

    y1 = conv_relu_pool(x, p["c1_w"], p["c1_b"])          # (B, 256, 32)
    y1 = y1.reshape(B, H // 2, W // 2, 32)                # free bitcast in XLA

    # conv2 + pool + ReLU + fc1 + ReLU + fc2 in one fused Pallas kernel.
    y = conv2_mlp(y1, p["c2_w"], p["c2_b"],
                  p["fc1_w"], p["fc1_b"], p["fc2_w"], p["fc2_b"])   # (B, 384)
    return y[:, :num_classes]


# Pure-jnp reference for validation (f32, same math, no Pallas).
def reference_forward(x, params):
    x = x[:, None, :, :].astype(jnp.float32)  # NCHW
    def conv(inp, w, b):
        y = jax.lax.conv_general_dilated(inp, w, (1, 1), ((1, 1), (1, 1)),
                                         dimension_numbers=("NCHW", "OIHW", "NCHW"))
        return y + b[None, :, None, None]
    def pool(inp):
        return jax.lax.reduce_window(inp, -jnp.inf, jax.lax.max,
                                     (1, 1, 2, 2), (1, 1, 2, 2), "VALID")
    h = pool(jax.nn.relu(conv(x, params["conv1_w"], params["conv1_b"])))
    h = pool(jax.nn.relu(conv(h, params["conv2_w"], params["conv2_b"])))
    h = h.reshape(h.shape[0], -1)
    h = jax.nn.relu(h @ params["fc1_w"].T + params["fc1_b"])
    return h @ params["fc2_w"].T + params["fc2_b"]


def init_params(key):
    ks = jax.random.split(key, 8)
    def n(k, shape, scale):
        return (scale * jax.random.normal(k, shape)).astype(jnp.float32)
    return {
        "conv1_w": n(ks[0], (32, 1, 3, 3), 0.10),   # Conv2d(1, 32, 3, padding=1)
        "conv1_b": n(ks[1], (32,), 0.10),
        "conv2_w": n(ks[2], (64, 32, 3, 3), 0.05),  # Conv2d(32, 64, 3, padding=1)
        "conv2_b": n(ks[3], (64,), 0.05),
        "fc1_w":   n(ks[4], (128, 4096), 0.02),     # Linear(64*8*8, 128)
        "fc1_b":   n(ks[5], (128,), 0.02),
        "fc2_w":   n(ks[6], (370, 128), 0.02),      # Linear(128, 370)
        "fc2_b":   n(ks[7], (370,), 0.02),
    }


if __name__ == "__main__":
    key = jax.random.PRNGKey(0)
    pkey, xkey = jax.random.split(key)
    params = init_params(pkey)
    prepped = prepare_params(params)            # one-time weight prep, outside jit

    # Spatial must be 32x32 so that fc1 sees 64*8*8 features (as in the module).
    x = jax.random.normal(xkey, (2, 32, 32), dtype=jnp.float32)

    out = jax.jit(simple_cnn_forward)(x, prepped)
    out = jax.block_until_ready(out)
    assert out.shape == (2, 370), out.shape

    ref = jax.block_until_ready(reference_forward(x, params))
    assert np.allclose(np.asarray(out), np.asarray(ref), rtol=2e-2, atol=2e-2)

    print("KERNEL_OK")
</pallas_src>

<mosaic_0001>
module attributes {stable_mosaic.version = 11 : i64} {
  func.func @_conv_relu_pool_kernel(%arg0: i32, %arg1: memref<1024x9xbf16, #tpu.memory_space<vmem>>, %arg2: memref<9x32xbf16, #tpu.memory_space<vmem>>, %arg3: memref<1x32xf32, #tpu.memory_space<vmem>>, %arg4: memref<1x256x32xbf16, #tpu.memory_space<vmem>>) attributes {dimension_semantics = [#tpu.dimension_semantics<parallel>], iteration_bounds = array<i64: 2>, scalar_prefetch = 0 : i64, scratch_operands = 0 : i64, tpu.core_type = #tpu.core_type<tc>, window_params = [{transform_indices = @transform_0, window_bounds = array<i64: 1024, 9>}, {pipeline_mode = #tpu.pipeline_mode<synchronous>, transform_indices = @transform_1, window_bounds = array<i64: 9, 32>}, {pipeline_mode = #tpu.pipeline_mode<synchronous>, transform_indices = @transform_2, window_bounds = array<i64: 1, 32>}, {transform_indices = @transform_3, window_bounds = array<i64: 1, 256, 32>}]} {
    %c0 = arith.constant 0 : index
    %c0_0 = arith.constant 0 : index
    %0 = vector.load %arg1[%c0, %c0_0] : memref<1024x9xbf16, #tpu.memory_space<vmem>>, vector<1024x9xbf16>
    %c0_1 = arith.constant 0 : index
    %c0_2 = arith.constant 0 : index
    %1 = vector.load %arg2[%c0_1, %c0_2] : memref<9x32xbf16, #tpu.memory_space<vmem>>, vector<9x32xbf16>
    %cst = arith.constant dense<0.000000e+00> : vector<1024x32xf32>
    %2 = tpu.matmul %0, %1, %cst {dimension_numbers = #tpu.dot_dimension_numbers<[1], [0], [0], [1], [0, 0, 1, 1], [], []>} : vector<1024x9xbf16>, vector<9x32xbf16>, vector<1024x32xf32> -> vector<1024x32xf32>
    %3 = vector.shape_cast %2 : vector<1024x32xf32> to vector<1x4x256x32xf32>
    %cst_3 = arith.constant dense<0xFF800000> : vector<1x256x32xf32>
    %4 = vector.multi_reduction <maximumf>, %3, %cst_3 [1] : vector<1x4x256x32xf32> to vector<1x256x32xf32>
    %c0_4 = arith.constant 0 : index
    %c0_5 = arith.constant 0 : index
    %5 = vector.load %arg3[%c0_4, %c0_5] : memref<1x32xf32, #tpu.memory_space<vmem>>, vector<1x32xf32>
    %6 = vector.shape_cast %5 : vector<1x32xf32> to vector<1x1x32xf32>
    %7 = vector.broadcast %6 : vector<1x1x32xf32> to vector<1x256x32xf32>
    %8 = arith.addf %4, %7 : vector<1x256x32xf32>
    %cst_6 = arith.constant 0.000000e+00 : f32
    %9 = vector.broadcast %cst_6 : f32 to vector<1x256x32xf32>
    %10 = arith.maximumf %8, %9 : vector<1x256x32xf32>
    %11 = arith.truncf %10 : vector<1x256x32xf32> to vector<1x256x32xbf16>
    %c0_7 = arith.constant 0 : index
    %c0_8 = arith.constant 0 : index
    %c0_9 = arith.constant 0 : index
    %12 = vector.load %arg4[%c0_7, %c0_8, %c0_9] : memref<1x256x32xbf16, #tpu.memory_space<vmem>>, vector<1x256x32xbf16>
    tpu.vector_store %arg4[%c0_7, %c0_8, %c0_9], %11 {strides = array<i32>} : memref<1x256x32xbf16, #tpu.memory_space<vmem>>, vector<1x256x32xbf16>,
    return
  }
  func.func @transform_0(%arg0: i32) -> (i32, i32) {
    %c0_i32 = arith.constant 0 : i32
    %c0_i32_0 = arith.constant 0 : i32
    return %arg0, %c0_i32 : i32, i32
  }
  func.func @transform_1(%arg0: i32) -> (i32, i32) {
    %c0_i32 = arith.constant 0 : i32
    %c0_i32_0 = arith.constant 0 : i32
    %c0_i32_1 = arith.constant 0 : i32
    return %c0_i32, %c0_i32_0 : i32, i32
  }
  func.func @transform_2(%arg0: i32) -> (i32, i32) {
    %c0_i32 = arith.constant 0 : i32
    %c0_i32_0 = arith.constant 0 : i32
    %c0_i32_1 = arith.constant 0 : i32
    return %c0_i32, %c0_i32_0 : i32, i32
  }
  func.func @transform_3(%arg0: i32) -> (i32, i32, i32) {
    %c0_i32 = arith.constant 0 : i32
    %c0_i32_0 = arith.constant 0 : i32
    %c0_i32_1 = arith.constant 0 : i32
    return %arg0, %c0_i32, %c0_i32_0 : i32, i32, i32
  }
}

module attributes {stable_mosaic.version = 11 : i64} {
  func.func @_conv2_mlp_kernel(%arg0: i32, %arg1: memref<512x288xbf16, #tpu.memory_space<vmem>>, %arg2: memref<288x64xbf16, #tpu.memory_space<vmem>>, %arg3: memref<1x64xf32, #tpu.memory_space<vmem>>, %arg4: memref<64x64x128xbf16, #tpu.memory_space<vmem>>, %arg5: memref<1x128xf32, #tpu.memory_space<vmem>>, %arg6: memref<128x384xbf16, #tpu.memory_space<vmem>>, %arg7: memref<1x384xf32, #tpu.memory_space<vmem>>, %arg8: memref<2x384xf32, #tpu.memory_space<vmem>>, %arg9: memref<2x64x64xbf16, #tpu.memory_space<vmem>>) attributes {dimension_semantics = [#tpu.dimension_semantics<parallel>], iteration_bounds = array<i64: 1>, scalar_prefetch = 0 : i64, scratch_operands = 1 : i64, tpu.core_type = #tpu.core_type<tc>, window_params = [{transform_indices = @transform_0, window_bounds = array<i64: 512, 288>}, {pipeline_mode = #tpu.pipeline_mode<synchronous>, transform_indices = @transform_1, window_bounds = array<i64: 288, 64>}, {pipeline_mode = #tpu.pipeline_mode<synchronous>, transform_indices = @transform_2, window_bounds = array<i64: 1, 64>}, {pipeline_mode = #tpu.pipeline_mode<synchronous>, transform_indices = @transform_3, window_bounds = array<i64: 64, 64, 128>}, {pipeline_mode = #tpu.pipeline_mode<synchronous>, transform_indices = @transform_4, window_bounds = array<i64: 1, 128>}, {pipeline_mode = #tpu.pipeline_mode<synchronous>, transform_indices = @transform_5, window_bounds = array<i64: 128, 384>}, {pipeline_mode = #tpu.pipeline_mode<synchronous>, transform_indices = @transform_6, window_bounds = array<i64: 1, 384>}, {transform_indices = @transform_7, window_bounds = array<i64: 2, 384>}]} {
    %c0 = arith.constant 0 : index
    %c0_0 = arith.constant 0 : index
    %0 = vector.load %arg1[%c0, %c0_0] : memref<512x288xbf16, #tpu.memory_space<vmem>>, vector<512x288xbf16>
    %c0_1 = arith.constant 0 : index
    %c0_2 = arith.constant 0 : index
    %1 = vector.load %arg2[%c0_1, %c0_2] : memref<288x64xbf16, #tpu.memory_space<vmem>>, vector<288x64xbf16>
    %cst = arith.constant dense<0.000000e+00> : vector<512x64xf32>
    %2 = tpu.matmul %0, %1, %cst {dimension_numbers = #tpu.dot_dimension_numbers<[1], [0], [0], [1], [0, 0, 1, 1], [], []>} : vector<512x288xbf16>, vector<288x64xbf16>, vector<512x64xf32> -> vector<512x64xf32>
    %3 = vector.shape_cast %2 : vector<512x64xf32> to vector<2x4x64x64xf32>
    %cst_3 = arith.constant dense<0xFF800000> : vector<2x64x64xf32>
    %4 = vector.multi_reduction <maximumf>, %3, %cst_3 [1] : vector<2x4x64x64xf32> to vector<2x64x64xf32>
    %c0_4 = arith.constant 0 : index
    %c0_5 = arith.constant 0 : index
    %5 = vector.load %arg3[%c0_4, %c0_5] : memref<1x64xf32, #tpu.memory_space<vmem>>, vector<1x64xf32>
    %6 = vector.shape_cast %5 : vector<1x64xf32> to vector<1x1x64xf32>
    %7 = vector.broadcast %6 : vector<1x1x64xf32> to vector<2x64x64xf32>
    %8 = arith.addf %4, %7 : vector<2x64x64xf32>
    %cst_6 = arith.constant 0.000000e+00 : f32
    %9 = vector.broadcast %cst_6 : f32 to vector<2x64x64xf32>
    %10 = arith.maximumf %8, %9 : vector<2x64x64xf32>
    %11 = arith.truncf %10 : vector<2x64x64xf32> to vector<2x64x64xbf16>
    %c0_7 = arith.constant 0 : index
    %c0_8 = arith.constant 0 : index
    %c0_9 = arith.constant 0 : index
    %12 = vector.load %arg9[%c0_7, %c0_8, %c0_9] : memref<2x64x64xbf16, #tpu.memory_space<vmem>>, vector<2x64x64xbf16>
    tpu.vector_store %arg9[%c0_7, %c0_8, %c0_9], %11 {strides = array<i32>} : memref<2x64x64xbf16, #tpu.memory_space<vmem>>, vector<2x64x64xbf16>,
    %cst_10 = arith.constant 0.000000e+00 : f32
    %13 = vector.broadcast %cst_10 : f32 to vector<2x128xf32>
    %c0_11 = arith.constant 0 : index
    %c0_12 = arith.constant 0 : index
    %c0_13 = arith.constant 0 : index
    %14 = vector.load %arg9[%c0_11, %c0_12, %c0_13] : memref<2x64x64xbf16, #tpu.memory_space<vmem>>, vector<2x1x64xbf16>
    %15 = vector.shape_cast %14 : vector<2x1x64xbf16> to vector<2x64xbf16>
    %c0_14 = arith.constant 0 : index
    %c0_15 = arith.constant 0 : index
    %c0_16 = arith.constant 0 : index
    %16 = vector.load %arg4[%c0_14, %c0_15, %c0_16] : memref<64x64x128xbf16, #tpu.memory_space<vmem>>, vector<1x64x128xbf16>
    %17 = vector.shape_cast %16 : vector<1x64x128xbf16> to vector<64x128xbf16>
    %cst_17 = arith.constant dense<0.000000e+00> : vector<2x128xf32>
    %18 = tpu.matmul %15, %17, %cst_17 {dimension_numbers = #tpu.dot_dimension_numbers<[1], [0], [0], [1], [0, 0, 1, 1], [], []>} : vector<2x64xbf16>, vector<64x128xbf16>, vector<2x128xf32> -> vector<2x128xf32>
    %19 = arith.addf %13, %18 : vector<2x128xf32>
    %c0_18 = arith.constant 0 : index
    %c1 = arith.constant 1 : index
    %c0_19 = arith.constant 0 : index
    %20 = vector.load %arg9[%c0_18, %c1, %c0_19] : memref<2x64x64xbf16, #tpu.memory_space<vmem>>, vector<2x1x64xbf16>
    %21 = vector.shape_cast %20 : vector<2x1x64xbf16> to vector<2x64xbf16>
    %c1_20 = arith.constant 1 : index
    %c0_21 = arith.constant 0 : index
    %c0_22 = arith.constant 0 : index
    %22 = vector.load %arg4[%c1_20, %c0_21, %c0_22] : memref<64x64x128xbf16, #tpu.memory_space<vmem>>, vector<1x64x128xbf16>
    %23 = vector.shape_cast %22 : vector<1x64x128xbf16> to vector<64x128xbf16>
    %cst_23 = arith.constant dense<0.000000e+00> : vector<2x128xf32>
    %24 = tpu.matmul %21, %23, %cst_23 {dimension_numbers = #tpu.dot_dimension_numbers<[1], [0], [0], [1], [0, 0, 1, 1], [], []>} : vector<2x64xbf16>, vector<64x128xbf16>, vector<2x128xf32> -> vector<2x128xf32>
    %25 = arith.addf %19, %24 : vector<2x128xf32>
    %c0_24 = arith.constant 0 : index
    %c2 = arith.constant 2 : index
    %c0_25 = arith.constant 0 : index
    %26 = vector.load %arg9[%c0_24, %c2, %c0_25] : memref<2x64x64xbf16, #tpu.memory_space<vmem>>, vector<2x1x64xbf16>
    %27 = vector.shape_cast %26 : vector<2x1x64xbf16> to vector<2x64xbf16>
    %c2_26 = arith.constant 2 : index
    %c0_27 = arith.constant 0 : index
    %c0_28 = arith.constant 0 : index
    %28 = vector.load %arg4[%c2_26, %c0_27, %c0_28] : memref<64x64x128xbf16, #tpu.memory_space<vmem>>, vector<1x64x128xbf16>
    %29 = vector.shape_cast %28 : vector<1x64x128xbf16> to vector<64x128xbf16>
    %cst_29 = arith.constant dense<0.000000e+00> : vector<2x128xf32>
    %30 = tpu.matmul %27, %29, %cst_29 {dimension_numbers = #tpu.dot_dimension_numbers<[1], [0], [0], [1], [0, 0, 1, 1], [], []>} : vector<2x64xbf16>, vector<64x128xbf16>, vector<2x128xf32> -> vector<2x128xf32>
    %31 = arith.addf %25, %30 : vector<2x128xf32>
    %c0_30 = arith.constant 0 : index
    %c3 = arith.constant 3 : index
    %c0_31 = arith.constant 0 : index
    %32 = vector.load %arg9[%c0_30, %c3, %c0_31] : memref<2x64x64xbf16, #tpu.memory_space<vmem>>, vector<2x1x64xbf16>
    %33 = vector.shape_cast %32 : vector<2x1x64xbf16> to vector<2x64xbf16>
    %c3_32 = arith.constant 3 : index
    %c0_33 = arith.constant 0 : index
    %c0_34 = arith.constant 0 : index
    %34 = vector.load %arg4[%c3_32, %c0_33, %c0_34] : memref<64x64x128xbf16, #tpu.memory_space<vmem>>, vector<1x64x128xbf16>
    %35 = vector.shape_cast %34 : vector<1x64x128xbf16> to vector<64x128xbf16>
    %cst_35 = arith.constant dense<0.000000e+00> : vector<2x128xf32>
    %36 = tpu.matmul %33, %35, %cst_35 {dimension_numbers = #tpu.dot_dimension_numbers<[1], [0], [0], [1], [0, 0, 1, 1], [], []>} : vector<2x64xbf16>, vector<64x128xbf16>, vector<2x128xf32> -> vector<2x128xf32>
    %37 = arith.addf %31, %36 : vector<2x128xf32>
    %c0_36 = arith.constant 0 : index
    %c4 = arith.constant 4 : index
    %c0_37 = arith.constant 0 : index
    %38 = vector.load %arg9[%c0_36, %c4, %c0_37] : memref<2x64x64xbf16, #tpu.memory_space<vmem>>, vector<2x1x64xbf16>
    %39 = vector.shape_cast %38 : vector<2x1x64xbf16> to vector<2x64xbf16>
    %c4_38 = arith.constant 4 : index
    %c0_39 = arith.constant 0 : index
    %c0_40 = arith.constant 0 : index
    %40 = vector.load %arg4[%c4_38, %c0_39, %c0_40] : memref<64x64x128xbf16, #tpu.memory_space<vmem>>, vector<1x64x128xbf16>
    %41 = vector.shape_cast %40 : vector<1x64x128xbf16> to vector<64x128xbf16>
    %cst_41 = arith.constant dense<0.000000e+00> : vector<2x128xf32>
    %42 = tpu.matmul %39, %41, %cst_41 {dimension_numbers = #tpu.dot_dimension_numbers<[1], [0], [0], [1], [0, 0, 1, 1], [], []>} : vector<2x64xbf16>, vector<64x128xbf16>, vector<2x128xf32> -> vector<2x128xf32>
    %43 = arith.addf %37, %42 : vector<2x128xf32>
    %c0_42 = arith.constant 0 : index
    %c5 = arith.constant 5 : index
    %c0_43 = arith.constant 0 : index
    %44 = vector.load %arg9[%c0_42, %c5, %c0_43] : memref<2x64x64xbf16, #tpu.memory_space<vmem>>, vector<2x1x64xbf16>
    %45 = vector.shape_cast %44 : vector<2x1x64xbf16> to vector<2x64xbf16>
    %c5_44 = arith.constant 5 : index
    %c0_45 = arith.constant 0 : index
    %c0_46 = arith.constant 0 : index
    %46 = vector.load %arg4[%c5_44, %c0_45, %c0_46] : memref<64x64x128xbf16, #tpu.memory_space<vmem>>, vector<1x64x128xbf16>
    %47 = vector.shape_cast %46 : vector<1x64x128xbf16> to vector<64x128xbf16>
    %cst_47 = arith.constant dense<0.000000e+00> : vector<2x128xf32>
    %48 = tpu.matmul %45, %47, %cst_47 {dimension_numbers = #tpu.dot_dimension_numbers<[1], [0], [0], [1], [0, 0, 1, 1], [], []>} : vector<2x64xbf16>, vector<64x128xbf16>, vector<2x128xf32> -> vector<2x128xf32>
    %49 = arith.addf %43, %48 : vector<2x128xf32>
    %c0_48 = arith.constant 0 : index
    %c6 = arith.constant 6 : index
    %c0_49 = arith.constant 0 : index
    %50 = vector.load %arg9[%c0_48, %c6, %c0_49] : memref<2x64x64xbf16, #tpu.memory_space<vmem>>, vector<2x1x64xbf16>
    %51 = vector.shape_cast %50 : vector<2x1x64xbf16> to vector<2x64xbf16>
    %c6_50 = arith.constant 6 : index
    %c0_51 = arith.constant 0 : index
    %c0_52 = arith.constant 0 : index
    %52 = vector.load %arg4[%c6_50, %c0_51, %c0_52] : memref<64x64x128xbf16, #tpu.memory_space<vmem>>, vector<1x64x128xbf16>
    %53 = vector.shape_cast %52 : vector<1x64x128xbf16> to vector<64x128xbf16>
    %cst_53 = arith.constant dense<0.000000e+00> : vector<2x128xf32>
    %54 = tpu.matmul %51, %53, %cst_53 {dimension_numbers = #tpu.dot_dimension_numbers<[1], [0], [0], [1], [0, 0, 1, 1], [], []>} : vector<2x64xbf16>, vector<64x128xbf16>, vector<2x128xf32> -> vector<2x128xf32>
    %55 = arith.addf %49, %54 : vector<2x128xf32>
    %c0_54 = arith.constant 0 : index
    %c7 = arith.constant 7 : index
    %c0_55 = arith.constant 0 : index
    %56 = vector.load %arg9[%c0_54, %c7, %c0_55] : memref<2x64x64xbf16, #tpu.memory_space<vmem>>, vector<2x1x64xbf16>
    %57 = vector.shape_cast %56 : vector<2x1x64xbf16> to vector<2x64xbf16>
    %c7_56 = arith.constant 7 : index
    %c0_57 = arith.constant 0 : index
    %c0_58 = arith.constant 0 : index
    %58 = vector.load %arg4[%c7_56, %c0_57, %c0_58] : memref<64x64x128xbf16, #tpu.memory_space<vmem>>, vector<1x64x128xbf16>
    %59 = vector.shape_cast %58 : vector<1x64x128xbf16> to vector<64x128xbf16>
    %cst_59 = arith.constant dense<0.000000e+00> : vector<2x128xf32>
    %60 = tpu.matmul %57, %59, %cst_59 {dimension_numbers = #tpu.dot_dimension_numbers<[1], [0], [0], [1], [0, 0, 1, 1], [], []>} : vector<2x64xbf16>, vector<64x128xbf16>, vector<2x128xf32> -> vector<2x128xf32>
    %61 = arith.addf %55, %60 : vector<2x128xf32>
    %c0_60 = arith.constant 0 : index
    %c8 = arith.constant 8 : index
    %c0_61 = arith.constant 0 : index
    %62 = vector.load %arg9[%c0_60, %c8, %c0_61] : memref<2x64x64xbf16, #tpu.memory_space<vmem>>, vector<2x1x64xbf16>
    %63 = vector.shape_cast %62 : vector<2x1x64xbf16> to vector<2x64xbf16>
    %c8_62 = arith.constant 8 : index
    %c0_63 = arith.constant 0 : index
    %c0_64 = arith.constant 0 : index
    %64 = vector.load %arg4[%c8_62, %c0_63, %c0_64] : memref<64x64x128xbf16, #tpu.memory_space<vmem>>, vector<1x64x128xbf16>
    %65 = vector.shape_cast %64 : vector<1x64x128xbf16> to vector<64x128xbf16>
    %cst_65 = arith.constant dense<0.000000e+00> : vector<2x128xf32>
    %66 = tpu.matmul %63, %65, %cst_65 {dimension_numbers = #tpu.dot_dimension_numbers<[1], [0], [0], [1], [0, 0, 1, 1], [], []>} : vector<2x64xbf16>, vector<64x128xbf16>, vector<2x128xf32> -> vector<2x128xf32>
    %67 = arith.addf %61, %66 : vector<2x128xf32>
    %c0_66 = arith.constant 0 : index
    %c9 = arith.constant 9 : index
    %c0_67 = arith.constant 0 : index
    %68 = vector.load %arg9[%c0_66, %c9, %c0_67] : memref<2x64x64xbf16, #tpu.memory_space<vmem>>, vector<2x1x64xbf16>
    %69 = vector.shape_cast %68 : vector<2x1x64xbf16> to vector<2x64xbf16>
    %c9_68 = arith.constant 9 : index
    %c0_69 = arith.constant 0 : index
    %c0_70 = arith.constant 0 : index
    %70 = vector.load %arg4[%c9_68, %c0_69, %c0_70] : memref<64x64x128xbf16, #tpu.memory_space<vmem>>, vector<1x64x128xbf16>
    %71 = vector.shape_cast %70 : vector<1x64x128xbf16> to vector<64x128xbf16>
    %cst_71 = arith.constant dense<0.000000e+00> : vector<2x128xf32>
    %72 = tpu.matmul %69, %71, %cst_71 {dimension_numbers = #tpu.dot_dimension_numbers<[1], [0], [0], [1], [0, 0, 1, 1], [], []>} : vector<2x64xbf16>, vector<64x128xbf16>, vector<2x128xf32> -> vector<2x128xf32>
    %73 = arith.addf %67, %72 : vector<2x128xf32>
    %c0_72 = arith.constant 0 : index
    %c10 = arith.constant 10 : index
    %c0_73 = arith.constant 0 : index
    %74 = vector.load %arg9[%c0_72, %c10, %c0_73] : memref<2x64x64xbf16, #tpu.memory_space<vmem>>, vector<2x1x64xbf16>
    %75 = vector.shape_cast %74 : vector<2x1x64xbf16> to vector<2x64xbf16>
    %c10_74 = arith.constant 10 : index
    %c0_75 = arith.constant 0 : index
    %c0_76 = arith.constant 0 : index
    %76 = vector.load %arg4[%c10_74, %c0_75, %c0_76] : memref<64x64x128xbf16, #tpu.memory_space<vmem>>, vector<1x64x128xbf16>
    %77 = vector.shape_cast %76 : vector<1x64x128xbf16> to vector<64x128xbf16>
    %cst_77 = arith.constant dense<0.000000e+00> : vector<2x128xf32>
    %78 = tpu.matmul %75, %77, %cst_77 {dimension_numbers = #tpu.dot_dimension_numbers<[1], [0], [0], [1], [0, 0, 1, 1], [], []>} : vector<2x64xbf16>, vector<64x128xbf16>, vector<2x128xf32> -> vector<2x128xf32>
    %79 = arith.addf %73, %78 : vector<2x128xf32>
    %c0_78 = arith.constant 0 : index
    %c11 = arith.constant 11 : index
    %c0_79 = arith.constant 0 : index
    %80 = vector.load %arg9[%c0_78, %c11, %c0_79] : memref<2x64x64xbf16, #tpu.memory_space<vmem>>, vector<2x1x64xbf16>
    %81 = vector.shape_cast %80 : vector<2x1x64xbf16> to vector<2x64xbf16>
    %c11_80 = arith.constant 11 : index
    %c0_81 = arith.constant 0 : index
    %c0_82 = arith.constant 0 : index
    %82 = vector.load %arg4[%c11_80, %c0_81, %c0_82] : memref<64x64x128xbf16, #tpu.memory_space<vmem>>, vector<1x64x128xbf16>
    %83 = vector.shape_cast %82 : vector<1x64x128xbf16> to vector<64x128xbf16>
    %cst_83 = arith.constant dense<0.000000e+00> : vector<2x128xf32>
    %84 = tpu.matmul %81, %83, %cst_83 {dimension_numbers = #tpu.dot_dimension_numbers<[1], [0], [0], [1], [0, 0, 1, 1], [], []>} : vector<2x64xbf16>, vector<64x128xbf16>, vector<2x128xf32> -> vector<2x128xf32>
    %85 = arith.addf %79, %84 : vector<2x128xf32>
    %c0_84 = arith.constant 0 : index
    %c12 = arith.constant 12 : index
    %c0_85 = arith.constant 0 : index
    %86 = vector.load %arg9[%c0_84, %c12, %c0_85] : memref<2x64x64xbf16, #tpu.memory_space<vmem>>, vector<2x1x64xbf16>
    %87 = vector.shape_cast %86 : vector<2x1x64xbf16> to vector<2x64xbf16>
    %c12_86 = arith.constant 12 : index
    %c0_87 = arith.constant 0 : index
    %c0_88 = arith.constant 0 : index
    %88 = vector.load %arg4[%c12_86, %c0_87, %c0_88] : memref<64x64x128xbf16, #tpu.memory_space<vmem>>, vector<1x64x128xbf16>
    %89 = vector.shape_cast %88 : vector<1x64x128xbf16> to vector<64x128xbf16>
    %cst_89 = arith.constant dense<0.000000e+00> : vector<2x128xf32>
    %90 = tpu.matmul %87, %89, %cst_89 {dimension_numbers = #tpu.dot_dimension_numbers<[1], [0], [0], [1], [0, 0, 1, 1], [], []>} : vector<2x64xbf16>, vector<64x128xbf16>, vector<2x128xf32> -> vector<2x128xf32>
    %91 = arith.addf %85, %90 : vector<2x128xf32>
    %c0_90 = arith.constant 0 : index
    %c13 = arith.constant 13 : index
    %c0_91 = arith.constant 0 : index
    %92 = vector.load %arg9[%c0_90, %c13, %c0_91] : memref<2x64x64xbf16, #tpu.memory_space<vmem>>, vector<2x1x64xbf16>
    %93 = vector.shape_cast %92 : vector<2x1x64xbf16> to vector<2x64xbf16>
    %c13_92 = arith.constant 13 : index
    %c0_93 = arith.constant 0 : index
    %c0_94 = arith.constant 0 : index
    %94 = vector.load %arg4[%c13_92, %c0_93, %c0_94] : memref<64x64x128xbf16, #tpu.memory_space<vmem>>, vector<1x64x128xbf16>
    %95 = vector.shape_cast %94 : vector<1x64x128xbf16> to vector<64x128xbf16>
    %cst_95 = arith.constant dense<0.000000e+00> : vector<2x128xf32>
    %96 = tpu.matmul %93, %95, %cst_95 {dimension_numbers = #tpu.dot_dimension_numbers<[1], [0], [0], [1], [0, 0, 1, 1], [], []>} : vector<2x64xbf16>, vector<64x128xbf16>, vector<2x128xf32> -> vector<2x128xf32>
    %97 = arith.addf %91, %96 : vector<2x128xf32>
    %c0_96 = arith.constant 0 : index
    %c14 = arith.constant 14 : index
    %c0_97 = arith.constant 0 : index
    %98 = vector.load %arg9[%c0_96, %c14, %c0_97] : memref<2x64x64xbf16, #tpu.memory_space<vmem>>, vector<2x1x64xbf16>
    %99 = vector.shape_cast %98 : vector<2x1x64xbf16> to vector<2x64xbf16>
    %c14_98 = arith.constant 14 : index
    %c0_99 = arith.constant 0 : index
    %c0_100 = arith.constant 0 : index
    %100 = vector.load %arg4[%c14_98, %c0_99, %c0_100] : memref<64x64x128xbf16, #tpu.memory_space<vmem>>, vector<1x64x128xbf16>
    %101 = vector.shape_cast %100 : vector<1x64x128xbf16> to vector<64x128xbf16>
    %cst_101 = arith.constant dense<0.000000e+00> : vector<2x128xf32>
    %102 = tpu.matmul %99, %101, %cst_101 {dimension_numbers = #tpu.dot_dimension_numbers<[1], [0], [0], [1], [0, 0, 1, 1], [], []>} : vector<2x64xbf16>, vector<64x128xbf16>, vector<2x128xf32> -> vector<2x128xf32>
    %103 = arith.addf %97, %102 : vector<2x128xf32>
    %c0_102 = arith.constant 0 : index
    %c15 = arith.constant 15 : index
    %c0_103 = arith.constant 0 : index
    %104 = vector.load %arg9[%c0_102, %c15, %c0_103] : memref<2x64x64xbf16, #tpu.memory_space<vmem>>, vector<2x1x64xbf16>
    %105 = vector.shape_cast %104 : vector<2x1x64xbf16> to vector<2x64xbf16>
    %c15_104 = arith.constant 15 : index
    %c0_105 = arith.constant 0 : index
    %c0_106 = arith.constant 0 : index
    %106 = vector.load %arg4[%c15_104, %c0_105, %c0_106] : memref<64x64x128xbf16, #tpu.memory_space<vmem>>, vector<1x64x128xbf16>
    %107 = vector.shape_cast %106 : vector<1x64x128xbf16> to vector<64x128xbf16>
    %cst_107 = arith.constant dense<0.000000e+00> : vector<2x128xf32>
    %108 = tpu.matmul %105, %107, %cst_107 {dimension_numbers = #tpu.dot_dimension_numbers<[1], [0], [0], [1], [0, 0, 1, 1], [], []>} : vector<2x64xbf16>, vector<64x128xbf16>, vector<2x128xf32> -> vector<2x128xf32>
    %109 = arith.addf %103, %108 : vector<2x128xf32>
    %c0_108 = arith.constant 0 : index
    %c16 = arith.constant 16 : index
    %c0_109 = arith.constant 0 : index
    %110 = vector.load %arg9[%c0_108, %c16, %c0_109] : memref<2x64x64xbf16, #tpu.memory_space<vmem>>, vector<2x1x64xbf16>
    %111 = vector.shape_cast %110 : vector<2x1x64xbf16> to vector<2x64xbf16>
    %c16_110 = arith.constant 16 : index
    %c0_111 = arith.constant 0 : index
    %c0_112 = arith.constant 0 : index
    %112 = vector.load %arg4[%c16_110, %c0_111, %c0_112] : memref<64x64x128xbf16, #tpu.memory_space<vmem>>, vector<1x64x128xbf16>
    %113 = vector.shape_cast %112 : vector<1x64x128xbf16> to vector<64x128xbf16>
    %cst_113 = arith.constant dense<0.000000e+00> : vector<2x128xf32>
    %114 = tpu.matmul %111, %113, %cst_113 {dimension_numbers = #tpu.dot_dimension_numbers<[1], [0], [0], [1], [0, 0, 1, 1], [], []>} : vector<2x64xbf16>, vector<64x128xbf16>, vector<2x128xf32> -> vector<2x128xf32>
    %115 = arith.addf %109, %114 : vector<2x128xf32>
    %c0_114 = arith.constant 0 : index
    %c17 = arith.constant 17 : index
    %c0_115 = arith.constant 0 : index
    %116 = vector.load %arg9[%c0_114, %c17, %c0_115] : memref<2x64x64xbf16, #tpu.memory_space<vmem>>, vector<2x1x64xbf16>
    %117 = vector.shape_cast %116 : vector<2x1x64xbf16> to vector<2x64xbf16>
    %c17_116 = arith.constant 17 : index
    %c0_117 = arith.constant 0 : index
    %c0_118 = arith.constant 0 : index
    %118 = vector.load %arg4[%c17_116, %c0_117, %c0_118] : memref<64x64x128xbf16, #tpu.memory_space<vmem>>, vector<1x64x128xbf16>
    %119 = vector.shape_cast %118 : vector<1x64x128xbf16> to vector<64x128xbf16>
    %cst_119 = arith.constant dense<0.000000e+00> : vector<2x128xf32>
    %120 = tpu.matmul %117, %119, %cst_119 {dimension_numbers = #tpu.dot_dimension_numbers<[1], [0], [0], [1], [0, 0, 1, 1], [], []>} : vector<2x64xbf16>, vector<64x128xbf16>, vector<2x128xf32> -> vector<2x128xf32>
    %121 = arith.addf %115, %120 : vector<2x128xf32>
    %c0_120 = arith.constant 0 : index
    %c18 = arith.constant 18 : index
    %c0_121 = arith.constant 0 : index
    %122 = vector.load %arg9[%c0_120, %c18, %c0_121] : memref<2x64x64xbf16, #tpu.memory_space<vmem>>, vector<2x1x64xbf16>
    %123 = vector.shape_cast %122 : vector<2x1x64xbf16> to vector<2x64xbf16>
    %c18_122 = arith.constant 18 : index
    %c0_123 = arith.constant 0 : index
    %c0_124 = arith.constant 0 : index
    %124 = vector.load %arg4[%c18_122, %c0_123, %c0_124] : memref<64x64x128xbf16, #tpu.memory_space<vmem>>, vector<1x64x128xbf16>
    %125 = vector.shape_cast %124 : vector<1x64x128xbf16> to vector<64x128xbf16>
    %cst_125 = arith.constant dense<0.000000e+00> : vector<2x128xf32>
    %126 = tpu.matmul %123, %125, %cst_125 {dimension_numbers = #tpu.dot_dimension_numbers<[1], [0], [0], [1], [0, 0, 1, 1], [], []>} : vector<2x64xbf16>, vector<64x128xbf16>, vector<2x128xf32> -> vector<2x128xf32>
    %127 = arith.addf %121, %126 : vector<2x128xf32>
    %c0_126 = arith.constant 0 : index
    %c19 = arith.constant 19 : index
    %c0_127 = arith.constant 0 : index
    %128 = vector.load %arg9[%c0_126, %c19, %c0_127] : memref<2x64x64xbf16, #tpu.memory_space<vmem>>, vector<2x1x64xbf16>
    %129 = vector.shape_cast %128 : vector<2x1x64xbf16> to vector<2x64xbf16>
    %c19_128 = arith.constant 19 : index
    %c0_129 = arith.constant 0 : index
    %c0_130 = arith.constant 0 : index
    %130 = vector.load %arg4[%c19_128, %c0_129, %c0_130] : memref<64x64x128xbf16, #tpu.memory_space<vmem>>, vector<1x64x128xbf16>
    %131 = vector.shape_cast %130 : vector<1x64x128xbf16> to vector<64x128xbf16>
    %cst_131 = arith.constant dense<0.000000e+00> : vector<2x128xf32>
    %132 = tpu.matmul %129, %131, %cst_131 {dimension_numbers = #tpu.dot_dimension_numbers<[1], [0], [0], [1], [0, 0, 1, 1], [], []>} : vector<2x64xbf16>, vector<64x128xbf16>, vector<2x128xf32> -> vector<2x128xf32>
    %133 = arith.addf %127, %132 : vector<2x128xf32>
    %c0_132 = arith.constant 0 : index
    %c20 = arith.constant 20 : index
    %c0_133 = arith.constant 0 : index
    %134 = vector.load %arg9[%c0_132, %c20, %c0_133] : memref<2x64x64xbf16, #tpu.memory_space<vmem>>, vector<2x1x64xbf16>
    %135 = vector.shape_cast %134 : vector<2x1x64xbf16> to vector<2x64xbf16>
    %c20_134 = arith.constant 20 : index
    %c0_135 = arith.constant 0 : index
    %c0_136 = arith.constant 0 : index
    %136 = vector.load %arg4[%c20_134, %c0_135, %c0_136] : memref<64x64x128xbf16, #tpu.memory_space<vmem>>, vector<1x64x128xbf16>
    %137 = vector.shape_cast %136 : vector<1x64x128xbf16> to vector<64x128xbf16>
    %cst_137 = arith.constant dense<0.000000e+00> : vector<2x128xf32>
    %138 = tpu.matmul %135, %137, %cst_137 {dimension_numbers = #tpu.dot_dimension_numbers<[1], [0], [0], [1], [0, 0, 1, 1], [], []>} : vector<2x64xbf16>, vector<64x128xbf16>, vector<2x128xf32> -> vector<2x128xf32>
    %139 = arith.addf %133, %138 : vector<2x128xf32>
    %c0_138 = arith.constant 0 : index
    %c21 = arith.constant 21 : index
    %c0_139 = arith.constant 0 : index
    %140 = vector.load %arg9[%c0_138, %c21, %c0_139] : memref<2x64x64xbf16, #tpu.memory_space<vmem>>, vector<2x1x64xbf16>
    %141 = vector.shape_cast %140 : vector<2x1x64xbf16> to vector<2x64xbf16>
    %c21_140 = arith.constant 21 : index
    %c0_141 = arith.constant 0 : index
    %c0_142 = arith.constant 0 : index
    %142 = vector.load %arg4[%c21_140, %c0_141, %c0_142] : memref<64x64x128xbf16, #tpu.memory_space<vmem>>, vector<1x64x128xbf16>
    %143 = vector.shape_cast %142 : vector<1x64x128xbf16> to vector<64x128xbf16>
    %cst_143 = arith.constant dense<0.000000e+00> : vector<2x128xf32>
    %144 = tpu.matmul %141, %143, %cst_143 {dimension_numbers = #tpu.dot_dimension_numbers<[1], [0], [0], [1], [0, 0, 1, 1], [], []>} : vector<2x64xbf16>, vector<64x128xbf16>, vector<2x128xf32> -> vector<2x128xf32>
    %145 = arith.addf %139, %144 : vector<2x128xf32>
    %c0_144 = arith.constant 0 : index
    %c22 = arith.constant 22 : index
    %c0_145 = arith.constant 0 : index
    %146 = vector.load %arg9[%c0_144, %c22, %c0_145] : memref<2x64x64xbf16, #tpu.memory_space<vmem>>, vector<2x1x64xbf16>
    %147 = vector.shape_cast %146 : vector<2x1x64xbf16> to vector<2x64xbf16>
    %c22_146 = arith.constant 22 : index
    %c0_147 = arith.constant 0 : index
    %c0_148 = arith.constant 0 : index
    %148 = vector.load %arg4[%c22_146, %c0_147, %c0_148] : memref<64x64x128xbf16, #tpu.memory_space<vmem>>, vector<1x64x128xbf16>
    %149 = vector.shape_cast %148 : vector<1x64x128xbf16> to vector<64x128xbf16>
    %cst_149 = arith.constant dense<0.000000e+00> : vector<2x128xf32>
    %150 = tpu.matmul %147, %149, %cst_149 {dimension_numbers = #tpu.dot_dimension_numbers<[1], [0], [0], [1], [0, 0, 1, 1], [], []>} : vector<2x64xbf16>, vector<64x128xbf16>, vector<2x128xf32> -> vector<2x128xf32>
    %151 = arith.addf %145, %150 : vector<2x128xf32>
    %c0_150 = arith.constant 0 : index
    %c23 = arith.constant 23 : index
    %c0_151 = arith.constant 0 : index
    %152 = vector.load %arg9[%c0_150, %c23, %c0_151] : memref<2x64x64xbf16, #tpu.memory_space<vmem>>, vector<2x1x64xbf16>
    %153 = vector.shape_cast %152 : vector<2x1x64xbf16> to vector<2x64xbf16>
    %c23_152 = arith.constant 23 : index
    %c0_153 = arith.constant 0 : index
    %c0_154 = arith.constant 0 : index
    %154 = vector.load %arg4[%c23_152, %c0_153, %c0_154] : memref<64x64x128xbf16, #tpu.memory_space<vmem>>, vector<1x64x128xbf16>
    %155 = vector.shape_cast %154 : vector<1x64x128xbf16> to vector<64x128xbf16>
    %cst_155 = arith.constant dense<0.000000e+00> : vector<2x128xf32>
    %156 = tpu.matmul %153, %155, %cst_155 {dimension_numbers = #tpu.dot_dimension_numbers<[1], [0], [0], [1], [0, 0, 1, 1], [], []>} : vector<2x64xbf16>, vector<64x128xbf16>, vector<2x128xf32> -> vector<2x128xf32>
    %157 = arith.addf %151, %156 : vector<2x128xf32>
    %c0_156 = arith.constant 0 : index
    %c24 = arith.constant 24 : index
    %c0_157 = arith.constant 0 : index
    %158 = vector.load %arg9[%c0_156, %c24, %c0_157] : memref<2x64x64xbf16, #tpu.memory_space<vmem>>, vector<2x1x64xbf16>
    %159 = vector.shape_cast %158 : vector<2x1x64xbf16> to vector<2x64xbf16>
    %c24_158 = arith.constant 24 : index
    %c0_159 = arith.constant 0 : index
    %c0_160 = arith.constant 0 : index
    %160 = vector.load %arg4[%c24_158, %c0_159, %c0_160] : memref<64x64x128xbf16, #tpu.memory_space<vmem>>, vector<1x64x128xbf16>
    %161 = vector.shape_cast %160 : vector<1x64x128xbf16> to vector<64x128xbf16>
    %cst_161 = arith.constant dense<0.000000e+00> : vector<2x128xf32>
    %162 = tpu.matmul %159, %161, %cst_161 {dimension_numbers = #tpu.dot_dimension_numbers<[1], [0], [0], [1], [0, 0, 1, 1], [], []>} : vector<2x64xbf16>, vector<64x128xbf16>, vector<2x128xf32> -> vector<2x128xf32>
    %163 = arith.addf %157, %162 : vector<2x128xf32>
    %c0_162 = arith.constant 0 : index
    %c25 = arith.constant 25 : index
    %c0_163 = arith.constant 0 : index
    %164 = vector.load %arg9[%c0_162, %c25, %c0_163] : memref<2x64x64xbf16, #tpu.memory_space<vmem>>, vector<2x1x64xbf16>
    %165 = vector.shape_cast %164 : vector<2x1x64xbf16> to vector<2x64xbf16>
    %c25_164 = arith.constant 25 : index
    %c0_165 = arith.constant 0 : index
    %c0_166 = arith.constant 0 : index
    %166 = vector.load %arg4[%c25_164, %c0_165, %c0_166] : memref<64x64x128xbf16, #tpu.memory_space<vmem>>, vector<1x64x128xbf16>
    %167 = vector.shape_cast %166 : vector<1x64x128xbf16> to vector<64x128xbf16>
    %cst_167 = arith.constant dense<0.000000e+00> : vector<2x128xf32>
    %168 = tpu.matmul %165, %167, %cst_167 {dimension_numbers = #tpu.dot_dimension_numbers<[1], [0], [0], [1], [0, 0, 1, 1], [], []>} : vector<2x64xbf16>, vector<64x128xbf16>, vector<2x128xf32> -> vector<2x128xf32>
    %169 = arith.addf %163, %168 : vector<2x128xf32>
    %c0_168 = arith.constant 0 : index
    %c26 = arith.constant 26 : index
    %c0_169 = arith.constant 0 : index
    %170 = vector.load %arg9[%c0_168, %c26, %c0_169] : memref<2x64x64xbf16, #tpu.memory_space<vmem>>, vector<2x1x64xbf16>
    %171 = vector.shape_cast %170 : vector<2x1x64xbf16> to vector<2x64xbf16>
    %c26_170 = arith.constant 26 : index
    %c0_171 = arith.constant 0 : index
    %c0_172 = arith.constant 0 : index
    %172 = vector.load %arg4[%c26_170, %c0_171, %c0_172] : memref<64x64x128xbf16, #tpu.memory_space<vmem>>, vector<1x64x128xbf16>
    %173 = vector.shape_cast %172 : vector<1x64x128xbf16> to vector<64x128xbf16>
    %cst_173 = arith.constant dense<0.000000e+00> : vector<2x128xf32>
    %174 = tpu.matmul %171, %173, %cst_173 {dimension_numbers = #tpu.dot_dimension_numbers<[1], [0], [0], [1], [0, 0, 1, 1], [], []>} : vector<2x64xbf16>, vector<64x128xbf16>, vector<2x128xf32> -> vector<2x128xf32>
    %175 = arith.addf %169, %174 : vector<2x128xf32>
    %c0_174 = arith.constant 0 : index
    %c27 = arith.constant 27 : index
    %c0_175 = arith.constant 0 : index
    %176 = vector.load %arg9[%c0_174, %c27, %c0_175] : memref<2x64x64xbf16, #tpu.memory_space<vmem>>, vector<2x1x64xbf16>
    %177 = vector.shape_cast %176 : vector<2x1x64xbf16> to vector<2x64xbf16>
    %c27_176 = arith.constant 27 : index
    %c0_177 = arith.constant 0 : index
    %c0_178 = arith.constant 0 : index
    %178 = vector.load %arg4[%c27_176, %c0_177, %c0_178] : memref<64x64x128xbf16, #tpu.memory_space<vmem>>, vector<1x64x128xbf16>
    %179 = vector.shape_cast %178 : vector<1x64x128xbf16> to vector<64x128xbf16>
    %cst_179 = arith.constant dense<0.000000e+00> : vector<2x128xf32>
    %180 = tpu.matmul %177, %179, %cst_179 {dimension_numbers = #tpu.dot_dimension_numbers<[1], [0], [0], [1], [0, 0, 1, 1], [], []>} : vector<2x64xbf16>, vector<64x128xbf16>, vector<2x128xf32> -> vector<2x128xf32>
    %181 = arith.addf %175, %180 : vector<2x128xf32>
    %c0_180 = arith.constant 0 : index
    %c28 = arith.constant 28 : index
    %c0_181 = arith.constant 0 : index
    %182 = vector.load %arg9[%c0_180, %c28, %c0_181] : memref<2x64x64xbf16, #tpu.memory_space<vmem>>, vector<2x1x64xbf16>
    %183 = vector.shape_cast %182 : vector<2x1x64xbf16> to vector<2x64xbf16>
    %c28_182 = arith.constant 28 : index
    %c0_183 = arith.constant 0 : index
    %c0_184 = arith.constant 0 : index
    %184 = vector.load %arg4[%c28_182, %c0_183, %c0_184] : memref<64x64x128xbf16, #tpu.memory_space<vmem>>, vector<1x64x128xbf16>
    %185 = vector.shape_cast %184 : vector<1x64x128xbf16> to vector<64x128xbf16>
    %cst_185 = arith.constant dense<0.000000e+00> : vector<2x128xf32>
    %186 = tpu.matmul %183, %185, %cst_185 {dimension_numbers = #tpu.dot_dimension_numbers<[1], [0], [0], [1], [0, 0, 1, 1], [], []>} : vector<2x64xbf16>, vector<64x128xbf16>, vector<2x128xf32> -> vector<2x128xf32>
    %187 = arith.addf %181, %186 : vector<2x128xf32>
    %c0_186 = arith.constant 0 : index
    %c29 = arith.constant 29 : index
    %c0_187 = arith.constant 0 : index
    %188 = vector.load %arg9[%c0_186, %c29, %c0_187] : memref<2x64x64xbf16, #tpu.memory_space<vmem>>, vector<2x1x64xbf16>
    %189 = vector.shape_cast %188 : vector<2x1x64xbf16> to vector<2x64xbf16>
    %c29_188 = arith.constant 29 : index
    %c0_189 = arith.constant 0 : index
    %c0_190 = arith.constant 0 : index
    %190 = vector.load %arg4[%c29_188, %c0_189, %c0_190] : memref<64x64x128xbf16, #tpu.memory_space<vmem>>, vector<1x64x128xbf16>
    %191 = vector.shape_cast %190 : vector<1x64x128xbf16> to vector<64x128xbf16>
    %cst_191 = arith.constant dense<0.000000e+00> : vector<2x128xf32>
    %192 = tpu.matmul %189, %191, %cst_191 {dimension_numbers = #tpu.dot_dimension_numbers<[1], [0], [0], [1], [0, 0, 1, 1], [], []>} : vector<2x64xbf16>, vector<64x128xbf16>, vector<2x128xf32> -> vector<2x128xf32>
    %193 = arith.addf %187, %192 : vector<2x128xf32>
    %c0_192 = arith.constant 0 : index
    %c30 = arith.constant 30 : index
    %c0_193 = arith.constant 0 : index
    %194 = vector.load %arg9[%c0_192, %c30, %c0_193] : memref<2x64x64xbf16, #tpu.memory_space<vmem>>, vector<2x1x64xbf16>
    %195 = vector.shape_cast %194 : vector<2x1x64xbf16> to vector<2x64xbf16>
    %c30_194 = arith.constant 30 : index
    %c0_195 = arith.constant 0 : index
    %c0_196 = arith.constant 0 : index
    %196 = vector.load %arg4[%c30_194, %c0_195, %c0_196] : memref<64x64x128xbf16, #tpu.memory_space<vmem>>, vector<1x64x128xbf16>
    %197 = vector.shape_cast %196 : vector<1x64x128xbf16> to vector<64x128xbf16>
    %cst_197 = arith.constant dense<0.000000e+00> : vector<2x128xf32>
    %198 = tpu.matmul %195, %197, %cst_197 {dimension_numbers = #tpu.dot_dimension_numbers<[1], [0], [0], [1], [0, 0, 1, 1], [], []>} : vector<2x64xbf16>, vector<64x128xbf16>, vector<2x128xf32> -> vector<2x128xf32>
    %199 = arith.addf %193, %198 : vector<2x128xf32>
    %c0_198 = arith.constant 0 : index
    %c31 = arith.constant 31 : index
    %c0_199 = arith.constant 0 : index
    %200 = vector.load %arg9[%c0_198, %c31, %c0_199] : memref<2x64x64xbf16, #tpu.memory_space<vmem>>, vector<2x1x64xbf16>
    %201 = vector.shape_cast %200 : vector<2x1x64xbf16> to vector<2x64xbf16>
    %c31_200 = arith.constant 31 : index
    %c0_201 = arith.constant 0 : index
    %c0_202 = arith.constant 0 : index
    %202 = vector.load %arg4[%c31_200, %c0_201, %c0_202] : memref<64x64x128xbf16, #tpu.memory_space<vmem>>, vector<1x64x128xbf16>
    %203 = vector.shape_cast %202 : vector<1x64x128xbf16> to vector<64x128xbf16>
    %cst_203 = arith.constant dense<0.000000e+00> : vector<2x128xf32>
    %204 = tpu.matmul %201, %203, %cst_203 {dimension_numbers = #tpu.dot_dimension_numbers<[1], [0], [0], [1], [0, 0, 1, 1], [], []>} : vector<2x64xbf16>, vector<64x128xbf16>, vector<2x128xf32> -> vector<2x128xf32>
    %205 = arith.addf %199, %204 : vector<2x128xf32>
    %c0_204 = arith.constant 0 : index
    %c32 = arith.constant 32 : index
    %c0_205 = arith.constant 0 : index
    %206 = vector.load %arg9[%c0_204, %c32, %c0_205] : memref<2x64x64xbf16, #tpu.memory_space<vmem>>, vector<2x1x64xbf16>
    %207 = vector.shape_cast %206 : vector<2x1x64xbf16> to vector<2x64xbf16>
    %c32_206 = arith.constant 32 : index
    %c0_207 = arith.constant 0 : index
    %c0_208 = arith.constant 0 : index
    %208 = vector.load %arg4[%c32_206, %c0_207, %c0_208] : memref<64x64x128xbf16, #tpu.memory_space<vmem>>, vector<1x64x128xbf16>
    %209 = vector.shape_cast %208 : vector<1x64x128xbf16> to vector<64x128xbf16>
    %cst_209 = arith.constant dense<0.000000e+00> : vector<2x128xf32>
    %210 = tpu.matmul %207, %209, %cst_209 {dimension_numbers = #tpu.dot_dimension_numbers<[1], [0], [0], [1], [0, 0, 1, 1], [], []>} : vector<2x64xbf16>, vector<64x128xbf16>, vector<2x128xf32> -> vector<2x128xf32>
    %211 = arith.addf %205, %210 : vector<2x128xf32>
    %c0_210 = arith.constant 0 : index
    %c33 = arith.constant 33 : index
    %c0_211 = arith.constant 0 : index
    %212 = vector.load %arg9[%c0_210, %c33, %c0_211] : memref<2x64x64xbf16, #tpu.memory_space<vmem>>, vector<2x1x64xbf16>
    %213 = vector.shape_cast %212 : vector<2x1x64xbf16> to vector<2x64xbf16>
    %c33_212 = arith.constant 33 : index
    %c0_213 = arith.constant 0 : index
    %c0_214 = arith.constant 0 : index
    %214 = vector.load %arg4[%c33_212, %c0_213, %c0_214] : memref<64x64x128xbf16, #tpu.memory_space<vmem>>, vector<1x64x128xbf16>
    %215 = vector.shape_cast %214 : vector<1x64x128xbf16> to vector<64x128xbf16>
    %cst_215 = arith.constant dense<0.000000e+00> : vector<2x128xf32>
    %216 = tpu.matmul %213, %215, %cst_215 {dimension_numbers = #tpu.dot_dimension_numbers<[1], [0], [0], [1], [0, 0, 1, 1], [], []>} : vector<2x64xbf16>, vector<64x128xbf16>, vector<2x128xf32> -> vector<2x128xf32>
    %217 = arith.addf %211, %216 : vector<2x128xf32>
    %c0_216 = arith.constant 0 : index
    %c34 = arith.constant 34 : index
    %c0_217 = arith.constant 0 : index
    %218 = vector.load %arg9[%c0_216, %c34, %c0_217] : memref<2x64x64xbf16, #tpu.memory_space<vmem>>, vector<2x1x64xbf16>
    %219 = vector.shape_cast %218 : vector<2x1x64xbf16> to vector<2x64xbf16>
    %c34_218 = arith.constant 34 : index
    %c0_219 = arith.constant 0 : index
    %c0_220 = arith.constant 0 : index
    %220 = vector.load %arg4[%c34_218, %c0_219, %c0_220] : memref<64x64x128xbf16, #tpu.memory_space<vmem>>, vector<1x64x128xbf16>
    %221 = vector.shape_cast %220 : vector<1x64x128xbf16> to vector<64x128xbf16>
    %cst_221 = arith.constant dense<0.000000e+00> : vector<2x128xf32>
    %222 = tpu.matmul %219, %221, %cst_221 {dimension_numbers = #tpu.dot_dimension_numbers<[1], [0], [0], [1], [0, 0, 1, 1], [], []>} : vector<2x64xbf16>, vector<64x128xbf16>, vector<2x128xf32> -> vector<2x128xf32>
    %223 = arith.addf %217, %222 : vector<2x128xf32>
    %c0_222 = arith.constant 0 : index
    %c35 = arith.constant 35 : index
    %c0_223 = arith.constant 0 : index
    %224 = vector.load %arg9[%c0_222, %c35, %c0_223] : memref<2x64x64xbf16, #tpu.memory_space<vmem>>, vector<2x1x64xbf16>
    %225 = vector.shape_cast %224 : vector<2x1x64xbf16> to vector<2x64xbf16>
    %c35_224 = arith.constant 35 : index
    %c0_225 = arith.constant 0 : index
    %c0_226 = arith.constant 0 : index
    %226 = vector.load %arg4[%c35_224, %c0_225, %c0_226] : memref<64x64x128xbf16, #tpu.memory_space<vmem>>, vector<1x64x128xbf16>
    %227 = vector.shape_cast %226 : vector<1x64x128xbf16> to vector<64x128xbf16>
    %cst_227 = arith.constant dense<0.000000e+00> : vector<2x128xf32>
    %228 = tpu.matmul %225, %227, %cst_227 {dimension_numbers = #tpu.dot_dimension_numbers<[1], [0], [0], [1], [0, 0, 1, 1], [], []>} : vector<2x64xbf16>, vector<64x128xbf16>, vector<2x128xf32> -> vector<2x128xf32>
    %229 = arith.addf %223, %228 : vector<2x128xf32>
    %c0_228 = arith.constant 0 : index
    %c36 = arith.constant 36 : index
    %c0_229 = arith.constant 0 : index
    %230 = vector.load %arg9[%c0_228, %c36, %c0_229] : memref<2x64x64xbf16, #tpu.memory_space<vmem>>, vector<2x1x64xbf16>
    %231 = vector.shape_cast %230 : vector<2x1x64xbf16> to vector<2x64xbf16>
    %c36_230 = arith.constant 36 : index
    %c0_231 = arith.constant 0 : index
    %c0_232 = arith.constant 0 : index
    %232 = vector.load %arg4[%c36_230, %c0_231, %c0_232] : memref<64x64x128xbf16, #tpu.memory_space<vmem>>, vector<1x64x128xbf16>
    %233 = vector.shape_cast %232 : vector<1x64x128xbf16> to vector<64x128xbf16>
    %cst_233 = arith.constant dense<0.000000e+00> : vector<2x128xf32>
    %234 = tpu.matmul %231, %233, %cst_233 {dimension_numbers = #tpu.dot_dimension_numbers<[1], [0], [0], [1], [0, 0, 1, 1], [], []>} : vector<2x64xbf16>, vector<64x128xbf16>, vector<2x128xf32> -> vector<2x128xf32>
    %235 = arith.addf %229, %234 : vector<2x128xf32>
    %c0_234 = arith.constant 0 : index
    %c37 = arith.constant 37 : index
    %c0_235 = arith.constant 0 : index
    %236 = vector.load %arg9[%c0_234, %c37, %c0_235] : memref<2x64x64xbf16, #tpu.memory_space<vmem>>, vector<2x1x64xbf16>
    %237 = vector.shape_cast %236 : vector<2x1x64xbf16> to vector<2x64xbf16>
    %c37_236 = arith.constant 37 : index
    %c0_237 = arith.constant 0 : index
    %c0_238 = arith.constant 0 : index
    %238 = vector.load %arg4[%c37_236, %c0_237, %c0_238] : memref<64x64x128xbf16, #tpu.memory_space<vmem>>, vector<1x64x128xbf16>
    %239 = vector.shape_cast %238 : vector<1x64x128xbf16> to vector<64x128xbf16>
    %cst_239 = arith.constant dense<0.000000e+00> : vector<2x128xf32>
    %240 = tpu.matmul %237, %239, %cst_239 {dimension_numbers = #tpu.dot_dimension_numbers<[1], [0], [0], [1], [0, 0, 1, 1], [], []>} : vector<2x64xbf16>, vector<64x128xbf16>, vector<2x128xf32> -> vector<2x128xf32>
    %241 = arith.addf %235, %240 : vector<2x128xf32>
    %c0_240 = arith.constant 0 : index
    %c38 = arith.constant 38 : index
    %c0_241 = arith.constant 0 : index
    %242 = vector.load %arg9[%c0_240, %c38, %c0_241] : memref<2x64x64xbf16, #tpu.memory_space<vmem>>, vector<2x1x64xbf16>
    %243 = vector.shape_cast %242 : vector<2x1x64xbf16> to vector<2x64xbf16>
    %c38_242 = arith.constant 38 : index
    %c0_243 = arith.constant 0 : index
    %c0_244 = arith.constant 0 : index
    %244 = vector.load %arg4[%c38_242, %c0_243, %c0_244] : memref<64x64x128xbf16, #tpu.memory_space<vmem>>, vector<1x64x128xbf16>
    %245 = vector.shape_cast %244 : vector<1x64x128xbf16> to vector<64x128xbf16>
    %cst_245 = arith.constant dense<0.000000e+00> : vector<2x128xf32>
    %246 = tpu.matmul %243, %245, %cst_245 {dimension_numbers = #tpu.dot_dimension_numbers<[1], [0], [0], [1], [0, 0, 1, 1], [], []>} : vector<2x64xbf16>, vector<64x128xbf16>, vector<2x128xf32> -> vector<2x128xf32>
    %247 = arith.addf %241, %246 : vector<2x128xf32>
    %c0_246 = arith.constant 0 : index
    %c39 = arith.constant 39 : index
    %c0_247 = arith.constant 0 : index
    %248 = vector.load %arg9[%c0_246, %c39, %c0_247] : memref<2x64x64xbf16, #tpu.memory_space<vmem>>, vector<2x1x64xbf16>
    %249 = vector.shape_cast %248 : vector<2x1x64xbf16> to vector<2x64xbf16>
    %c39_248 = arith.constant 39 : index
    %c0_249 = arith.constant 0 : index
    %c0_250 = arith.constant 0 : index
    %250 = vector.load %arg4[%c39_248, %c0_249, %c0_250] : memref<64x64x128xbf16, #tpu.memory_space<vmem>>, vector<1x64x128xbf16>
    %251 = vector.shape_cast %250 : vector<1x64x128xbf16> to vector<64x128xbf16>
    %cst_251 = arith.constant dense<0.000000e+00> : vector<2x128xf32>
    %252 = tpu.matmul %249, %251, %cst_251 {dimension_numbers = #tpu.dot_dimension_numbers<[1], [0], [0], [1], [0, 0, 1, 1], [], []>} : vector<2x64xbf16>, vector<64x128xbf16>, vector<2x128xf32> -> vector<2x128xf32>
    %253 = arith.addf %247, %252 : vector<2x128xf32>
    %c0_252 = arith.constant 0 : index
    %c40 = arith.constant 40 : index
    %c0_253 = arith.constant 0 : index
    %254 = vector.load %arg9[%c0_252, %c40, %c0_253] : memref<2x64x64xbf16, #tpu.memory_space<vmem>>, vector<2x1x64xbf16>
    %255 = vector.shape_cast %254 : vector<2x1x64xbf16> to vector<2x64xbf16>
    %c40_254 = arith.constant 40 : index
    %c0_255 = arith.constant 0 : index
    %c0_256 = arith.constant 0 : index
    %256 = vector.load %arg4[%c40_254, %c0_255, %c0_256] : memref<64x64x128xbf16, #tpu.memory_space<vmem>>, vector<1x64x128xbf16>
    %257 = vector.shape_cast %256 : vector<1x64x128xbf16> to vector<64x128xbf16>
    %cst_257 = arith.constant dense<0.000000e+00> : vector<2x128xf32>
    %258 = tpu.matmul %255, %257, %cst_257 {dimension_numbers = #tpu.dot_dimension_numbers<[1], [0], [0], [1], [0, 0, 1, 1], [], []>} : vector<2x64xbf16>, vector<64x128xbf16>, vector<2x128xf32> -> vector<2x128xf32>
    %259 = arith.addf %253, %258 : vector<2x128xf32>
    %c0_258 = arith.constant 0 : index
    %c41 = arith.constant 41 : index
    %c0_259 = arith.constant 0 : index
    %260 = vector.load %arg9[%c0_258, %c41, %c0_259] : memref<2x64x64xbf16, #tpu.memory_space<vmem>>, vector<2x1x64xbf16>
    %261 = vector.shape_cast %260 : vector<2x1x64xbf16> to vector<2x64xbf16>
    %c41_260 = arith.constant 41 : index
    %c0_261 = arith.constant 0 : index
    %c0_262 = arith.constant 0 : index
    %262 = vector.load %arg4[%c41_260, %c0_261, %c0_262] : memref<64x64x128xbf16, #tpu.memory_space<vmem>>, vector<1x64x128xbf16>
    %263 = vector.shape_cast %262 : vector<1x64x128xbf16> to vector<64x128xbf16>
    %cst_263 = arith.constant dense<0.000000e+00> : vector<2x128xf32>
    %264 = tpu.matmul %261, %263, %cst_263 {dimension_numbers = #tpu.dot_dimension_numbers<[1], [0], [0], [1], [0, 0, 1, 1], [], []>} : vector<2x64xbf16>, vector<64x128xbf16>, vector<2x128xf32> -> vector<2x128xf32>
    %265 = arith.addf %259, %264 : vector<2x128xf32>
    %c0_264 = arith.constant 0 : index
    %c42 = arith.constant 42 : index
    %c0_265 = arith.constant 0 : index
    %266 = vector.load %arg9[%c0_264, %c42, %c0_265] : memref<2x64x64xbf16, #tpu.memory_space<vmem>>, vector<2x1x64xbf16>
    %267 = vector.shape_cast %266 : vector<2x1x64xbf16> to vector<2x64xbf16>
    %c42_266 = arith.constant 42 : index
    %c0_267 = arith.constant 0 : index
    %c0_268 = arith.constant 0 : index
    %268 = vector.load %arg4[%c42_266, %c0_267, %c0_268] : memref<64x64x128xbf16, #tpu.memory_space<vmem>>, vector<1x64x128xbf16>
    %269 = vector.shape_cast %268 : vector<1x64x128xbf16> to vector<64x128xbf16>
    %cst_269 = arith.constant dense<0.000000e+00> : vector<2x128xf32>
    %270 = tpu.matmul %267, %269, %cst_269 {dimension_numbers = #tpu.dot_dimension_numbers<[1], [0], [0], [1], [0, 0, 1, 1], [], []>} : vector<2x64xbf16>, vector<64x128xbf16>, vector<2x128xf32> -> vector<2x128xf32>
    %271 = arith.addf %265, %270 : vector<2x128xf32>
    %c0_270 = arith.constant 0 : index
    %c43 = arith.constant 43 : index
    %c0_271 = arith.constant 0 : index
    %272 = vector.load %arg9[%c0_270, %c43, %c0_271] : memref<2x64x64xbf16, #tpu.memory_space<vmem>>, vector<2x1x64xbf16>
    %273 = vector.shape_cast %272 : vector<2x1x64xbf16> to vector<2x64xbf16>
    %c43_272 = arith.constant 43 : index
    %c0_273 = arith.constant 0 : index
    %c0_274 = arith.constant 0 : index
    %274 = vector.load %arg4[%c43_272, %c0_273, %c0_274] : memref<64x64x128xbf16, #tpu.memory_space<vmem>>, vector<1x64x128xbf16>
    %275 = vector.shape_cast %274 : vector<1x64x128xbf16> to vector<64x128xbf16>
    %cst_275 = arith.constant dense<0.000000e+00> : vector<2x128xf32>
    %276 = tpu.matmul %273, %275, %cst_275 {dimension_numbers = #tpu.dot_dimension_numbers<[1], [0], [0], [1], [0, 0, 1, 1], [], []>} : vector<2x64xbf16>, vector<64x128xbf16>, vector<2x128xf32> -> vector<2x128xf32>
    %277 = arith.addf %271, %276 : vector<2x128xf32>
    %c0_276 = arith.constant 0 : index
    %c44 = arith.constant 44 : index
    %c0_277 = arith.constant 0 : index
    %278 = vector.load %arg9[%c0_276, %c44, %c0_277] : memref<2x64x64xbf16, #tpu.memory_space<vmem>>, vector<2x1x64xbf16>
    %279 = vector.shape_cast %278 : vector<2x1x64xbf16> to vector<2x64xbf16>
    %c44_278 = arith.constant 44 : index
    %c0_279 = arith.constant 0 : index
    %c0_280 = arith.constant 0 : index
    %280 = vector.load %arg4[%c44_278, %c0_279, %c0_280] : memref<64x64x128xbf16, #tpu.memory_space<vmem>>, vector<1x64x128xbf16>
    %281 = vector.shape_cast %280 : vector<1x64x128xbf16> to vector<64x128xbf16>
    %cst_281 = arith.constant dense<0.000000e+00> : vector<2x128xf32>
    %282 = tpu.matmul %279, %281, %cst_281 {dimension_numbers = #tpu.dot_dimension_numbers<[1], [0], [0], [1], [0, 0, 1, 1], [], []>} : vector<2x64xbf16>, vector<64x128xbf16>, vector<2x128xf32> -> vector<2x128xf32>
    %283 = arith.addf %277, %282 : vector<2x128xf32>
    %c0_282 = arith.constant 0 : index
    %c45 = arith.constant 45 : index
    %c0_283 = arith.constant 0 : index
    %284 = vector.load %arg9[%c0_282, %c45, %c0_283] : memref<2x64x64xbf16, #tpu.memory_space<vmem>>, vector<2x1x64xbf16>
    %285 = vector.shape_cast %284 : vector<2x1x64xbf16> to vector<2x64xbf16>
    %c45_284 = arith.constant 45 : index
    %c0_285 = arith.constant 0 : index
    %c0_286 = arith.constant 0 : index
    %286 = vector.load %arg4[%c45_284, %c0_285, %c0_286] : memref<64x64x128xbf16, #tpu.memory_space<vmem>>, vector<1x64x128xbf16>
    %287 = vector.shape_cast %286 : vector<1x64x128xbf16> to vector<64x128xbf16>
    %cst_287 = arith.constant dense<0.000000e+00> : vector<2x128xf32>
    %288 = tpu.matmul %285, %287, %cst_287 {dimension_numbers = #tpu.dot_dimension_numbers<[1], [0], [0], [1], [0, 0, 1, 1], [], []>} : vector<2x64xbf16>, vector<64x128xbf16>, vector<2x128xf32> -> vector<2x128xf32>
    %289 = arith.addf %283, %288 : vector<2x128xf32>
    %c0_288 = arith.constant 0 : index
    %c46 = arith.constant 46 : index
    %c0_289 = arith.constant 0 : index
    %290 = vector.load %arg9[%c0_288, %c46, %c0_289] : memref<2x64x64xbf16, #tpu.memory_space<vmem>>, vector<2x1x64xbf16>
    %291 = vector.shape_cast %290 : vector<2x1x64xbf16> to vector<2x64xbf16>
    %c46_290 = arith.constant 46 : index
    %c0_291 = arith.constant 0 : index
    %c0_292 = arith.constant 0 : index
    %292 = vector.load %arg4[%c46_290, %c0_291, %c0_292] : memref<64x64x128xbf16, #tpu.memory_space<vmem>>, vector<1x64x128xbf16>
    %293 = vector.shape_cast %292 : vector<1x64x128xbf16> to vector<64x128xbf16>
    %cst_293 = arith.constant dense<0.000000e+00> : vector<2x128xf32>
    %294 = tpu.matmul %291, %293, %cst_293 {dimension_numbers = #tpu.dot_dimension_numbers<[1], [0], [0], [1], [0, 0, 1, 1], [], []>} : vector<2x64xbf16>, vector<64x128xbf16>, vector<2x128xf32> -> vector<2x128xf32>
    %295 = arith.addf %289, %294 : vector<2x128xf32>
    %c0_294 = arith.constant 0 : index
    %c47 = arith.constant 47 : index
    %c0_295 = arith.constant 0 : index
    %296 = vector.load %arg9[%c0_294, %c47, %c0_295] : memref<2x64x64xbf16, #tpu.memory_space<vmem>>, vector<2x1x64xbf16>
    %297 = vector.shape_cast %296 : vector<2x1x64xbf16> to vector<2x64xbf16>
    %c47_296 = arith.constant 47 : index
    %c0_297 = arith.constant 0 : index
    %c0_298 = arith.constant 0 : index
    %298 = vector.load %arg4[%c47_296, %c0_297, %c0_298] : memref<64x64x128xbf16, #tpu.memory_space<vmem>>, vector<1x64x128xbf16>
    %299 = vector.shape_cast %298 : vector<1x64x128xbf16> to vector<64x128xbf16>
    %cst_299 = arith.constant dense<0.000000e+00> : vector<2x128xf32>
    %300 = tpu.matmul %297, %299, %cst_299 {dimension_numbers = #tpu.dot_dimension_numbers<[1], [0], [0], [1], [0, 0, 1, 1], [], []>} : vector<2x64xbf16>, vector<64x128xbf16>, vector<2x128xf32> -> vector<2x128xf32>
    %301 = arith.addf %295, %300 : vector<2x128xf32>
    %c0_300 = arith.constant 0 : index
    %c48 = arith.constant 48 : index
    %c0_301 = arith.constant 0 : index
    %302 = vector.load %arg9[%c0_300, %c48, %c0_301] : memref<2x64x64xbf16, #tpu.memory_space<vmem>>, vector<2x1x64xbf16>
    %303 = vector.shape_cast %302 : vector<2x1x64xbf16> to vector<2x64xbf16>
    %c48_302 = arith.constant 48 : index
    %c0_303 = arith.constant 0 : index
    %c0_304 = arith.constant 0 : index
    %304 = vector.load %arg4[%c48_302, %c0_303, %c0_304] : memref<64x64x128xbf16, #tpu.memory_space<vmem>>, vector<1x64x128xbf16>
    %305 = vector.shape_cast %304 : vector<1x64x128xbf16> to vector<64x128xbf16>
    %cst_305 = arith.constant dense<0.000000e+00> : vector<2x128xf32>
    %306 = tpu.matmul %303, %305, %cst_305 {dimension_numbers = #tpu.dot_dimension_numbers<[1], [0], [0], [1], [0, 0, 1, 1], [], []>} : vector<2x64xbf16>, vector<64x128xbf16>, vector<2x128xf32> -> vector<2x128xf32>
    %307 = arith.addf %301, %306 : vector<2x128xf32>
    %c0_306 = arith.constant 0 : index
    %c49 = arith.constant 49 : index
    %c0_307 = arith.constant 0 : index
    %308 = vector.load %arg9[%c0_306, %c49, %c0_307] : memref<2x64x64xbf16, #tpu.memory_space<vmem>>, vector<2x1x64xbf16>
    %309 = vector.shape_cast %308 : vector<2x1x64xbf16> to vector<2x64xbf16>
    %c49_308 = arith.constant 49 : index
    %c0_309 = arith.constant 0 : index
    %c0_310 = arith.constant 0 : index
    %310 = vector.load %arg4[%c49_308, %c0_309, %c0_310] : memref<64x64x128xbf16, #tpu.memory_space<vmem>>, vector<1x64x128xbf16>
    %311 = vector.shape_cast %310 : vector<1x64x128xbf16> to vector<64x128xbf16>
    %cst_311 = arith.constant dense<0.000000e+00> : vector<2x128xf32>
    %312 = tpu.matmul %309, %311, %cst_311 {dimension_numbers = #tpu.dot_dimension_numbers<[1], [0], [0], [1], [0, 0, 1, 1], [], []>} : vector<2x64xbf16>, vector<64x128xbf16>, vector<2x128xf32> -> vector<2x128xf32>
    %313 = arith.addf %307, %312 : vector<2x128xf32>
    %c0_312 = arith.constant 0 : index
    %c50 = arith.constant 50 : index
    %c0_313 = arith.constant 0 : index
    %314 = vector.load %arg9[%c0_312, %c50, %c0_313] : memref<2x64x64xbf16, #tpu.memory_space<vmem>>, vector<2x1x64xbf16>
    %315 = vector.shape_cast %314 : vector<2x1x64xbf16> to vector<2x64xbf16>
    %c50_314 = arith.constant 50 : index
    %c0_315 = arith.constant 0 : index
    %c0_316 = arith.constant 0 : index
    %316 = vector.load %arg4[%c50_314, %c0_315, %c0_316] : memref<64x64x128xbf16, #tpu.memory_space<vmem>>, vector<1x64x128xbf16>
    %317 = vector.shape_cast %316 : vector<1x64x128xbf16> to vector<64x128xbf16>
    %cst_317 = arith.constant dense<0.000000e+00> : vector<2x128xf32>
    %318 = tpu.matmul %315, %317, %cst_317 {dimension_numbers = #tpu.dot_dimension_numbers<[1], [0], [0], [1], [0, 0, 1, 1], [], []>} : vector<2x64xbf16>, vector<64x128xbf16>, vector<2x128xf32> -> vector<2x128xf32>
    %319 = arith.addf %313, %318 : vector<2x128xf32>
    %c0_318 = arith.constant 0 : index
    %c51 = arith.constant 51 : index
    %c0_319 = arith.constant 0 : index
    %320 = vector.load %arg9[%c0_318, %c51, %c0_319] : memref<2x64x64xbf16, #tpu.memory_space<vmem>>, vector<2x1x64xbf16>
    %321 = vector.shape_cast %320 : vector<2x1x64xbf16> to vector<2x64xbf16>
    %c51_320 = arith.constant 51 : index
    %c0_321 = arith.constant 0 : index
    %c0_322 = arith.constant 0 : index
    %322 = vector.load %arg4[%c51_320, %c0_321, %c0_322] : memref<64x64x128xbf16, #tpu.memory_space<vmem>>, vector<1x64x128xbf16>
    %323 = vector.shape_cast %322 : vector<1x64x128xbf16> to vector<64x128xbf16>
    %cst_323 = arith.constant dense<0.000000e+00> : vector<2x128xf32>
    %324 = tpu.matmul %321, %323, %cst_323 {dimension_numbers = #tpu.dot_dimension_numbers<[1], [0], [0], [1], [0, 0, 1, 1], [], []>} : vector<2x64xbf16>, vector<64x128xbf16>, vector<2x128xf32> -> vector<2x128xf32>
    %325 = arith.addf %319, %324 : vector<2x128xf32>
    %c0_324 = arith.constant 0 : index
    %c52 = arith.constant 52 : index
    %c0_325 = arith.constant 0 : index
    %326 = vector.load %arg9[%c0_324, %c52, %c0_325] : memref<2x64x64xbf16, #tpu.memory_space<vmem>>, vector<2x1x64xbf16>
    %327 = vector.shape_cast %326 : vector<2x1x64xbf16> to vector<2x64xbf16>
    %c52_326 = arith.constant 52 : index
    %c0_327 = arith.constant 0 : index
    %c0_328 = arith.constant 0 : index
    %328 = vector.load %arg4[%c52_326, %c0_327, %c0_328] : memref<64x64x128xbf16, #tpu.memory_space<vmem>>, vector<1x64x128xbf16>
    %329 = vector.shape_cast %328 : vector<1x64x128xbf16> to vector<64x128xbf16>
    %cst_329 = arith.constant dense<0.000000e+00> : vector<2x128xf32>
    %330 = tpu.matmul %327, %329, %cst_329 {dimension_numbers = #tpu.dot_dimension_numbers<[1], [0], [0], [1], [0, 0, 1, 1], [], []>} : vector<2x64xbf16>, vector<64x128xbf16>, vector<2x128xf32> -> vector<2x128xf32>
    %331 = arith.addf %325, %330 : vector<2x128xf32>
    %c0_330 = arith.constant 0 : index
    %c53 = arith.constant 53 : index
    %c0_331 = arith.constant 0 : index
    %332 = vector.load %arg9[%c0_330, %c53, %c0_331] : memref<2x64x64xbf16, #tpu.memory_space<vmem>>, vector<2x1x64xbf16>
    %333 = vector.shape_cast %332 : vector<2x1x64xbf16> to vector<2x64xbf16>
    %c53_332 = arith.constant 53 : index
    %c0_333 = arith.constant 0 : index
    %c0_334 = arith.constant 0 : index
    %334 = vector.load %arg4[%c53_332, %c0_333, %c0_334] : memref<64x64x128xbf16, #tpu.memory_space<vmem>>, vector<1x64x128xbf16>
    %335 = vector.shape_cast %334 : vector<1x64x128xbf16> to vector<64x128xbf16>
    %cst_335 = arith.constant dense<0.000000e+00> : vector<2x128xf32>
    %336 = tpu.matmul %333, %335, %cst_335 {dimension_numbers = #tpu.dot_dimension_numbers<[1], [0], [0], [1], [0, 0, 1, 1], [], []>} : vector<2x64xbf16>, vector<64x128xbf16>, vector<2x128xf32> -> vector<2x128xf32>
    %337 = arith.addf %331, %336 : vector<2x128xf32>
    %c0_336 = arith.constant 0 : index
    %c54 = arith.constant 54 : index
    %c0_337 = arith.constant 0 : index
    %338 = vector.load %arg9[%c0_336, %c54, %c0_337] : memref<2x64x64xbf16, #tpu.memory_space<vmem>>, vector<2x1x64xbf16>
    %339 = vector.shape_cast %338 : vector<2x1x64xbf16> to vector<2x64xbf16>
    %c54_338 = arith.constant 54 : index
    %c0_339 = arith.constant 0 : index
    %c0_340 = arith.constant 0 : index
    %340 = vector.load %arg4[%c54_338, %c0_339, %c0_340] : memref<64x64x128xbf16, #tpu.memory_space<vmem>>, vector<1x64x128xbf16>
    %341 = vector.shape_cast %340 : vector<1x64x128xbf16> to vector<64x128xbf16>
    %cst_341 = arith.constant dense<0.000000e+00> : vector<2x128xf32>
    %342 = tpu.matmul %339, %341, %cst_341 {dimension_numbers = #tpu.dot_dimension_numbers<[1], [0], [0], [1], [0, 0, 1, 1], [], []>} : vector<2x64xbf16>, vector<64x128xbf16>, vector<2x128xf32> -> vector<2x128xf32>
    %343 = arith.addf %337, %342 : vector<2x128xf32>
    %c0_342 = arith.constant 0 : index
    %c55 = arith.constant 55 : index
    %c0_343 = arith.constant 0 : index
    %344 = vector.load %arg9[%c0_342, %c55, %c0_343] : memref<2x64x64xbf16, #tpu.memory_space<vmem>>, vector<2x1x64xbf16>
    %345 = vector.shape_cast %344 : vector<2x1x64xbf16> to vector<2x64xbf16>
    %c55_344 = arith.constant 55 : index
    %c0_345 = arith.constant 0 : index
    %c0_346 = arith.constant 0 : index
    %346 = vector.load %arg4[%c55_344, %c0_345, %c0_346] : memref<64x64x128xbf16, #tpu.memory_space<vmem>>, vector<1x64x128xbf16>
    %347 = vector.shape_cast %346 : vector<1x64x128xbf16> to vector<64x128xbf16>
    %cst_347 = arith.constant dense<0.000000e+00> : vector<2x128xf32>
    %348 = tpu.matmul %345, %347, %cst_347 {dimension_numbers = #tpu.dot_dimension_numbers<[1], [0], [0], [1], [0, 0, 1, 1], [], []>} : vector<2x64xbf16>, vector<64x128xbf16>, vector<2x128xf32> -> vector<2x128xf32>
    %349 = arith.addf %343, %348 : vector<2x128xf32>
    %c0_348 = arith.constant 0 : index
    %c56 = arith.constant 56 : index
    %c0_349 = arith.constant 0 : index
    %350 = vector.load %arg9[%c0_348, %c56, %c0_349] : memref<2x64x64xbf16, #tpu.memory_space<vmem>>, vector<2x1x64xbf16>
    %351 = vector.shape_cast %350 : vector<2x1x64xbf16> to vector<2x64xbf16>
    %c56_350 = arith.constant 56 : index
    %c0_351 = arith.constant 0 : index
    %c0_352 = arith.constant 0 : index
    %352 = vector.load %arg4[%c56_350, %c0_351, %c0_352] : memref<64x64x128xbf16, #tpu.memory_space<vmem>>, vector<1x64x128xbf16>
    %353 = vector.shape_cast %352 : vector<1x64x128xbf16> to vector<64x128xbf16>
    %cst_353 = arith.constant dense<0.000000e+00> : vector<2x128xf32>
    %354 = tpu.matmul %351, %353, %cst_353 {dimension_numbers = #tpu.dot_dimension_numbers<[1], [0], [0], [1], [0, 0, 1, 1], [], []>} : vector<2x64xbf16>, vector<64x128xbf16>, vector<2x128xf32> -> vector<2x128xf32>
    %355 = arith.addf %349, %354 : vector<2x128xf32>
    %c0_354 = arith.constant 0 : index
    %c57 = arith.constant 57 : index
    %c0_355 = arith.constant 0 : index
    %356 = vector.load %arg9[%c0_354, %c57, %c0_355] : memref<2x64x64xbf16, #tpu.memory_space<vmem>>, vector<2x1x64xbf16>
    %357 = vector.shape_cast %356 : vector<2x1x64xbf16> to vector<2x64xbf16>
    %c57_356 = arith.constant 57 : index
    %c0_357 = arith.constant 0 : index
    %c0_358 = arith.constant 0 : index
    %358 = vector.load %arg4[%c57_356, %c0_357, %c0_358] : memref<64x64x128xbf16, #tpu.memory_space<vmem>>, vector<1x64x128xbf16>
    %359 = vector.shape_cast %358 : vector<1x64x128xbf16> to vector<64x128xbf16>
    %cst_359 = arith.constant dense<0.000000e+00> : vector<2x128xf32>
    %360 = tpu.matmul %357, %359, %cst_359 {dimension_numbers = #tpu.dot_dimension_numbers<[1], [0], [0], [1], [0, 0, 1, 1], [], []>} : vector<2x64xbf16>, vector<64x128xbf16>, vector<2x128xf32> -> vector<2x128xf32>
    %361 = arith.addf %355, %360 : vector<2x128xf32>
    %c0_360 = arith.constant 0 : index
    %c58 = arith.constant 58 : index
    %c0_361 = arith.constant 0 : index
    %362 = vector.load %arg9[%c0_360, %c58, %c0_361] : memref<2x64x64xbf16, #tpu.memory_space<vmem>>, vector<2x1x64xbf16>
    %363 = vector.shape_cast %362 : vector<2x1x64xbf16> to vector<2x64xbf16>
    %c58_362 = arith.constant 58 : index
    %c0_363 = arith.constant 0 : index
    %c0_364 = arith.constant 0 : index
    %364 = vector.load %arg4[%c58_362, %c0_363, %c0_364] : memref<64x64x128xbf16, #tpu.memory_space<vmem>>, vector<1x64x128xbf16>
    %365 = vector.shape_cast %364 : vector<1x64x128xbf16> to vector<64x128xbf16>
    %cst_365 = arith.constant dense<0.000000e+00> : vector<2x128xf32>
    %366 = tpu.matmul %363, %365, %cst_365 {dimension_numbers = #tpu.dot_dimension_numbers<[1], [0], [0], [1], [0, 0, 1, 1], [], []>} : vector<2x64xbf16>, vector<64x128xbf16>, vector<2x128xf32> -> vector<2x128xf32>
    %367 = arith.addf %361, %366 : vector<2x128xf32>
    %c0_366 = arith.constant 0 : index
    %c59 = arith.constant 59 : index
    %c0_367 = arith.constant 0 : index
    %368 = vector.load %arg9[%c0_366, %c59, %c0_367] : memref<2x64x64xbf16, #tpu.memory_space<vmem>>, vector<2x1x64xbf16>
    %369 = vector.shape_cast %368 : vector<2x1x64xbf16> to vector<2x64xbf16>
    %c59_368 = arith.constant 59 : index
    %c0_369 = arith.constant 0 : index
    %c0_370 = arith.constant 0 : index
    %370 = vector.load %arg4[%c59_368, %c0_369, %c0_370] : memref<64x64x128xbf16, #tpu.memory_space<vmem>>, vector<1x64x128xbf16>
    %371 = vector.shape_cast %370 : vector<1x64x128xbf16> to vector<64x128xbf16>
    %cst_371 = arith.constant dense<0.000000e+00> : vector<2x128xf32>
    %372 = tpu.matmul %369, %371, %cst_371 {dimension_numbers = #tpu.dot_dimension_numbers<[1], [0], [0], [1], [0, 0, 1, 1], [], []>} : vector<2x64xbf16>, vector<64x128xbf16>, vector<2x128xf32> -> vector<2x128xf32>
    %373 = arith.addf %367, %372 : vector<2x128xf32>
    %c0_372 = arith.constant 0 : index
    %c60 = arith.constant 60 : index
    %c0_373 = arith.constant 0 : index
    %374 = vector.load %arg9[%c0_372, %c60, %c0_373] : memref<2x64x64xbf16, #tpu.memory_space<vmem>>, vector<2x1x64xbf16>
    %375 = vector.shape_cast %374 : vector<2x1x64xbf16> to vector<2x64xbf16>
    %c60_374 = arith.constant 60 : index
    %c0_375 = arith.constant 0 : index
    %c0_376 = arith.constant 0 : index
    %376 = vector.load %arg4[%c60_374, %c0_375, %c0_376] : memref<64x64x128xbf16, #tpu.memory_space<vmem>>, vector<1x64x128xbf16>
    %377 = vector.shape_cast %376 : vector<1x64x128xbf16> to vector<64x128xbf16>
    %cst_377 = arith.constant dense<0.000000e+00> : vector<2x128xf32>
    %378 = tpu.matmul %375, %377, %cst_377 {dimension_numbers = #tpu.dot_dimension_numbers<[1], [0], [0], [1], [0, 0, 1, 1], [], []>} : vector<2x64xbf16>, vector<64x128xbf16>, vector<2x128xf32> -> vector<2x128xf32>
    %379 = arith.addf %373, %378 : vector<2x128xf32>
    %c0_378 = arith.constant 0 : index
    %c61 = arith.constant 61 : index
    %c0_379 = arith.constant 0 : index
    %380 = vector.load %arg9[%c0_378, %c61, %c0_379] : memref<2x64x64xbf16, #tpu.memory_space<vmem>>, vector<2x1x64xbf16>
    %381 = vector.shape_cast %380 : vector<2x1x64xbf16> to vector<2x64xbf16>
    %c61_380 = arith.constant 61 : index
    %c0_381 = arith.constant 0 : index
    %c0_382 = arith.constant 0 : index
    %382 = vector.load %arg4[%c61_380, %c0_381, %c0_382] : memref<64x64x128xbf16, #tpu.memory_space<vmem>>, vector<1x64x128xbf16>
    %383 = vector.shape_cast %382 : vector<1x64x128xbf16> to vector<64x128xbf16>
    %cst_383 = arith.constant dense<0.000000e+00> : vector<2x128xf32>
    %384 = tpu.matmul %381, %383, %cst_383 {dimension_numbers = #tpu.dot_dimension_numbers<[1], [0], [0], [1], [0, 0, 1, 1], [], []>} : vector<2x64xbf16>, vector<64x128xbf16>, vector<2x128xf32> -> vector<2x128xf32>
    %385 = arith.addf %379, %384 : vector<2x128xf32>
    %c0_384 = arith.constant 0 : index
    %c62 = arith.constant 62 : index
    %c0_385 = arith.constant 0 : index
    %386 = vector.load %arg9[%c0_384, %c62, %c0_385] : memref<2x64x64xbf16, #tpu.memory_space<vmem>>, vector<2x1x64xbf16>
    %387 = vector.shape_cast %386 : vector<2x1x64xbf16> to vector<2x64xbf16>
    %c62_386 = arith.constant 62 : index
    %c0_387 = arith.constant 0 : index
    %c0_388 = arith.constant 0 : index
    %388 = vector.load %arg4[%c62_386, %c0_387, %c0_388] : memref<64x64x128xbf16, #tpu.memory_space<vmem>>, vector<1x64x128xbf16>
    %389 = vector.shape_cast %388 : vector<1x64x128xbf16> to vector<64x128xbf16>
    %cst_389 = arith.constant dense<0.000000e+00> : vector<2x128xf32>
    %390 = tpu.matmul %387, %389, %cst_389 {dimension_numbers = #tpu.dot_dimension_numbers<[1], [0], [0], [1], [0, 0, 1, 1], [], []>} : vector<2x64xbf16>, vector<64x128xbf16>, vector<2x128xf32> -> vector<2x128xf32>
    %391 = arith.addf %385, %390 : vector<2x128xf32>
    %c0_390 = arith.constant 0 : index
    %c63 = arith.constant 63 : index
    %c0_391 = arith.constant 0 : index
    %392 = vector.load %arg9[%c0_390, %c63, %c0_391] : memref<2x64x64xbf16, #tpu.memory_space<vmem>>, vector<2x1x64xbf16>
    %393 = vector.shape_cast %392 : vector<2x1x64xbf16> to vector<2x64xbf16>
    %c63_392 = arith.constant 63 : index
    %c0_393 = arith.constant 0 : index
    %c0_394 = arith.constant 0 : index
    %394 = vector.load %arg4[%c63_392, %c0_393, %c0_394] : memref<64x64x128xbf16, #tpu.memory_space<vmem>>, vector<1x64x128xbf16>
    %395 = vector.shape_cast %394 : vector<1x64x128xbf16> to vector<64x128xbf16>
    %cst_395 = arith.constant dense<0.000000e+00> : vector<2x128xf32>
    %396 = tpu.matmul %393, %395, %cst_395 {dimension_numbers = #tpu.dot_dimension_numbers<[1], [0], [0], [1], [0, 0, 1, 1], [], []>} : vector<2x64xbf16>, vector<64x128xbf16>, vector<2x128xf32> -> vector<2x128xf32>
    %397 = arith.addf %391, %396 : vector<2x128xf32>
    %c0_396 = arith.constant 0 : index
    %c0_397 = arith.constant 0 : index
    %398 = vector.load %arg5[%c0_396, %c0_397] : memref<1x128xf32, #tpu.memory_space<vmem>>, vector<1x128xf32>
    %399 = vector.broadcast %398 : vector<1x128xf32> to vector<2x128xf32>
    %400 = arith.addf %397, %399 : vector<2x128xf32>
    %cst_398 = arith.constant 0.000000e+00 : f32
    %401 = vector.broadcast %cst_398 : f32 to vector<2x128xf32>
    %402 = arith.maximumf %400, %401 : vector<2x128xf32>
    %403 = arith.truncf %402 : vector<2x128xf32> to vector<2x128xbf16>
    %c0_399 = arith.constant 0 : index
    %c0_400 = arith.constant 0 : index
    %404 = vector.load %arg6[%c0_399, %c0_400] : memref<128x384xbf16, #tpu.memory_space<vmem>>, vector<128x384xbf16>
    %cst_401 = arith.constant dense<0.000000e+00> : vector<2x384xf32>
    %405 = tpu.matmul %403, %404, %cst_401 {dimension_numbers = #tpu.dot_dimension_numbers<[1], [0], [0], [1], [0, 0, 1, 1], [], []>} : vector<2x128xbf16>, vector<128x384xbf16>, vector<2x384xf32> -> vector<2x384xf32>
    %c0_402 = arith.constant 0 : index
    %c0_403 = arith.constant 0 : index
    %406 = vector.load %arg7[%c0_402, %c0_403] : memref<1x384xf32, #tpu.memory_space<vmem>>, vector<1x384xf32>
    %407 = vector.broadcast %406 : vector<1x384xf32> to vector<2x384xf32>
    %408 = arith.addf %405, %407 : vector<2x384xf32>
    %c0_404 = arith.constant 0 : index
    %c0_405 = arith.constant 0 : index
    %409 = vector.load %arg8[%c0_404, %c0_405] : memref<2x384xf32, #tpu.memory_space<vmem>>, vector<2x384xf32>
    tpu.vector_store %arg8[%c0_404, %c0_405], %408 {strides = array<i32>} : memref<2x384xf32, #tpu.memory_space<vmem>>, vector<2x384xf32>,
    return
  }
  func.func @transform_0(%arg0: i32) -> (i32, i32) {
    %c0_i32 = arith.constant 0 : i32
    %c0_i32_0 = arith.constant 0 : i32
    return %arg0, %c0_i32 : i32, i32
  }
  func.func @transform_1(%arg0: i32) -> (i32, i32) {
    %c0_i32 = arith.constant 0 : i32
    %c0_i32_0 = arith.constant 0 : i32
    %c0_i32_1 = arith.constant 0 : i32
    return %c0_i32, %c0_i32_0 : i32, i32
  }
  func.func @transform_2(%arg0: i32) -> (i32, i32) {
    %c0_i32 = arith.constant 0 : i32
    %c0_i32_0 = arith.constant 0 : i32
    %c0_i32_1 = arith.constant 0 : i32
    return %c0_i32, %c0_i32_0 : i32, i32
  }
  func.func @transform_3(%arg0: i32) -> (i32, i32, i32) {
    %c0_i32 = arith.constant 0 : i32
    %c0_i32_0 = arith.constant 0 : i32
    %c0_i32_1 = arith.constant 0 : i32
    %c0_i32_2 = arith.constant 0 : i32
    return %c0_i32, %c0_i32_0, %c0_i32_1 : i32, i32, i32
  }
  func.func @transform_4(%arg0: i32) -> (i32, i32) {
    %c0_i32 = arith.constant 0 : i32
    %c0_i32_0 = arith.constant 0 : i32
    %c0_i32_1 = arith.constant 0 : i32
    return %c0_i32, %c0_i32_0 : i32, i32
  }
  func.func @transform_5(%arg0: i32) -> (i32, i32) {
    %c0_i32 = arith.constant 0 : i32
    %c0_i32_0 = arith.constant 0 : i32
    %c0_i32_1 = arith.constant 0 : i32
    return %c0_i32, %c0_i32_0 : i32, i32
  }
  func.func @transform_6(%arg0: i32) -> (i32, i32) {
    %c0_i32 = arith.constant 0 : i32
    %c0_i32_0 = arith.constant 0 : i32
    %c0_i32_1 = arith.constant 0 : i32
    return %c0_i32, %c0_i32_0 : i32, i32
  }
  func.func @transform_7(%arg0: i32) -> (i32, i32) {
    %c0_i32 = arith.constant 0 : i32
    %c0_i32_0 = arith.constant 0 : i32
    return %arg0, %c0_i32 : i32, i32
  }
}

</mosaic_0001>

<bundles_post_ra>
// kernel: simple_cnn_forward.2
= control target key start
LH: loop header
LB: loop body
LE: loop exit
PB: predicated region body
PF: predicated region fallthrough
CT: control target
= control target key end

     0   :  { %s2392_s12 = smov 0   ;;  %s3083_s0 = inlined_call_operand.vmem [shape: bf16[2048,9], index: 0, kind: input, shape index: {}]   ;;  %s3084_s1 = inlined_call_operand.vmem [shape: bf16[9,32], index: 1, kind: input, shape index: {}]   ;;  %s3085_s2 = inlined_call_operand.vmem [shape: f32[1,32], index: 2, kind: input, shape index: {}]   ;;  %s3086_s3 = inlined_call_operand.vmem [shape: bf16[2,256,32], index: 3, kind: output, shape index: {}]  }
   0x1 LB: > { %s2398_s13 = sadd.s32 4294967295, %s2369_s12   ;;  %p1890_p0 = scmp.ge.s32.totalorder %s2369_s12, 1  ;;  %s2369_s12 = sphi %s2392_s12, %s13_s12  }
   0x2   : > { %p138_p1 = scmp.lt.s32.totalorder %s2369_s12, 3 }
   0x4   : > { %p139_p2 = pnand %p1890_p0, %p138_p1 }
   0x6   : > { %142 = sbr.rel (%p139_p2) target bundleno = 373 (0x175), region = 32 }
   0xd   : > { %v2298_v0 = vld [vmem:[%s3084_s1] sm:$0x1f]   ;;  %vm822_vm0 = vcmask 1043456   ;;  %vm823_vm1 = vcmask 1044480   ;;  %s1891_s16 = sshll.u32 %s2398_s13, 7  ;;  %v2371_v1 = vmov 65535  }
   0xe   : > { %v824_v2 = vsel %vm822_vm0, 4294967295, %v2371_v1  ;;  %p163_p3 = scmp.lt.s32.totalorder %s1891_s16, 255  ;;  %vm629_vm2 = vcmask 72704   ;;  %vm1374_vm3 = vcmask 261120   ;;  %p168_p4 = scmp.lt.s32.totalorder %s2398_s13, 1  ;;  %vm1798_vm4 = vcmask 257024  }
   0xf   : > { %v825_v3 = vsel %vm823_vm1, %v824_v2, 0 }
  0x10   : > { %v827_v4 = vand.u32 %v2298_v0, %v825_v3  ;;  %s3114_s16 = smov (!%p163_p3, %s1891_s16), 255  ;;  %s3116_s13 = smov (!%p168_p4, %s2398_s13), 1 }
  0x11   : > { %s1892_s17 = sshll.u32 %s3114_s16, 2  ;;  %s2059_s23 = sshll.u32 %s3116_s13, 7 }
  0x12   : > { %2157 = vmatprep.subr.bf16.mxu0 %v827_v4  ;;  %2287 = vmatprep.subr.bf16.mxu1 %v827_v4  ;;  %s2409_s20 = scalar_lea.vmem %s3083_s0, %s1892_s17  ;;  %s2863_s26 = scalar_lea.vmem %s3086_s3, %s2059_s23 }
  0x13   : > { %2158 = vmatpush3.bf16.msra.mxu0 %v827_v4  ;;  %2288 = vmatpush3.bf16.msra.mxu1 %v827_v4  ;;  %v2299_v5 = vld [vmem:[%s2409_s20] sm:$0xff]   ;;  %v2300_v6 = vld [vmem:[%s2409_s20 + $0x8] sm:$0xff]   ;;  %v2303_v9 = vld [vmem:[%s2409_s20 + $0x10] sm:$0xff]  }
  0x14   : > { %2159 = vmatprep.mubr.msk.bf16.mxu0 %vm629_vm2, %v2299_v5  ;;  %v2301_v7 = vld [vmem:[%s2409_s20 + $0x100] sm:$0xff]   ;;  %v2302_v8 = vld [vmem:[%s2409_s20 + $0x108] sm:$0xff]   ;;  %v2305_v10 = vld [vmem:[%s2409_s20 + $0x110] sm:$0xff]  }
  0x15   : > { %2223 = vmatprep.mubr.msk.bf16.mxu1 %vm629_vm2, %v2301_v7  ;;  %v2304_v11 = vld [vmem:[%s2409_s20 + $0x18] sm:$0xff]   ;;  %v2307_v12 = vld [vmem:[%s2409_s20 + $0x20] sm:$0xff]   ;;  %v2308_v15 = vld [vmem:[%s2409_s20 + $0x28] sm:$0xff]  }
  0x16   : > { %2160 = vmatmul.mubr.msk.bf16.vlgmr.msra.gmra.mrb[0].mxu0 %vm629_vm2, %v2300_v6  ;;  %2224 = vmatmul.mubr.msk.bf16.vlgmr.msra.gmra.mrb[0].mxu1 %vm629_vm2, %v2302_v8  ;;  %v2306_v13 = vld [vmem:[%s2409_s20 + $0x118] sm:$0xff]   ;;  %v2309_v14 = vld [vmem:[%s2409_s20 + $0x120] sm:$0xff]   ;;  %v2311_v16 = vld [vmem:[%s2409_s20 + $0x30] sm:$0xff]  }
  0x17   : > { %2163 = vmatprep.mubr.msk.bf16.mxu0 %vm629_vm2, %v2303_v9  ;;  %2227 = vmatprep.mubr.msk.bf16.mxu1 %vm629_vm2, %v2305_v10  ;;  %v2310_v17 = vld [vmem:[%s2409_s20 + $0x128] sm:$0xff]   ;;  %v2313_v18 = vld [vmem:[%s2409_s20 + $0x130] sm:$0xff]   ;;  %v2312_v19 = vld [vmem:[%s2409_s20 + $0x38] sm:$0xff]  }
  0x18   : > { %v2315_v20 = vld [vmem:[%s2409_s20 + $0x40] sm:$0xff]   ;;  %v2314_v21 = vld [vmem:[%s2409_s20 + $0x138] sm:$0xff]   ;;  %v2316_v23 = vld [vmem:[%s2409_s20 + $0x48] sm:$0xff]  }
  0x19   : > { %v2317_v22 = vld [vmem:[%s2409_s20 + $0x140] sm:$0xff]   ;;  %v2319_v24 = vld [vmem:[%s2409_s20 + $0x50] sm:$0xff]   ;;  %v2318_v25 = vld [vmem:[%s2409_s20 + $0x148] sm:$0xff]  }
  0x1a   : > { %v2321_v26 = vld [vmem:[%s2409_s20 + $0x150] sm:$0xff]   ;;  %v2320_v27 = vld [vmem:[%s2409_s20 + $0x58] sm:$0xff]   ;;  %v2323_v28 = vld [vmem:[%s2409_s20 + $0x60] sm:$0xff]  }
  0x1b   : > { %v2322_v29 = vld [vmem:[%s2409_s20 + $0x158] sm:$0xff]   ;;  %v2325_v30 = vld [vmem:[%s2409_s20 + $0x160] sm:$0xff]   ;;  %v2324_v31 = vld [vmem:[%s2409_s20 + $0x68] sm:$0xff]  }
  0x1c   : > { %v2327_v32 = vld [vmem:[%s2409_s20 + $0x70] sm:$0xff]   ;;  %v2326_v33 = vld [vmem:[%s2409_s20 + $0x168] sm:$0xff]   ;;  %v2328_v35 = vld [vmem:[%s2409_s20 + $0x78] sm:$0xff]  }
  0x1d   : > { %v2329_v34 = vld [vmem:[%s2409_s20 + $0x170] sm:$0xff]   ;;  %v2331_v36 = vld [vmem:[%s2409_s20 + $0x80] sm:$0xff]   ;;  %v2330_v37 = vld [vmem:[%s2409_s20 + $0x178] sm:$0xff]  }
  0x1e   : > { %2164 = vmatmul.mubr.msk.bf16.gmra.mrb[4].mxu0 %vm629_vm2, %v2304_v11  ;;  %2228 = vmatmul.mubr.msk.bf16.gmra.mrb[4].mxu1 %vm629_vm2, %v2306_v13  ;;  %v2333_v38 = vld [vmem:[%s2409_s20 + $0x180] sm:$0xff]   ;;  %v2332_v39 = vld [vmem:[%s2409_s20 + $0x88] sm:$0xff]   ;;  %v2335_v40 = vld [vmem:[%s2409_s20 + $0x90] sm:$0xff]  }
  0x1f   : > { %2167 = vmatprep.mubr.msk.bf16.mxu0 %vm629_vm2, %v2307_v12  ;;  %2231 = vmatprep.mubr.msk.bf16.mxu1 %vm629_vm2, %v2309_v14  ;;  %v2334_v41 = vld [vmem:[%s2409_s20 + $0x188] sm:$0xff]   ;;  %v2337_v42 = vld [vmem:[%s2409_s20 + $0x190] sm:$0xff]   ;;  %v2336_v43 = vld [vmem:[%s2409_s20 + $0x98] sm:$0xff]  }
  0x20   : > { %v2339_v44 = vld [vmem:[%s2409_s20 + $0xa0] sm:$0xff]   ;;  %v2338_v45 = vld [vmem:[%s2409_s20 + $0x198] sm:$0xff]   ;;  %v2340_v47 = vld [vmem:[%s2409_s20 + $0xa8] sm:$0xff]  }
  0x21   : > { %v2341_v46 = vld [vmem:[%s2409_s20 + $0x1a0] sm:$0xff]   ;;  %v2343_v48 = vld [vmem:[%s2409_s20 + $0xb0] sm:$0xff]   ;;  %v2342_v49 = vld [vmem:[%s2409_s20 + $0x1a8] sm:$0xff]  }
  0x22   : > { %v2345_v50 = vld [vmem:[%s2409_s20 + $0x1b0] sm:$0xff]   ;;  %v2344_v51 = vld [vmem:[%s2409_s20 + $0xb8] sm:$0xff]   ;;  %v2347_v52 = vld [vmem:[%s2409_s20 + $0xc0] sm:$0xff]  }
  0x23   : > { %v2346_v53 = vld [vmem:[%s2409_s20 + $0x1b8] sm:$0xff]   ;;  %v2349_v54 = vld [vmem:[%s2409_s20 + $0x1c0] sm:$0xff]   ;;  %v2348_v55 = vld [vmem:[%s2409_s20 + $0xc8] sm:$0xff]  }
  0x24   : > { %v2351_v56 = vld [vmem:[%s2409_s20 + $0xd0] sm:$0xff]   ;;  %v2350_v57 = vld [vmem:[%s2409_s20 + $0x1c8] sm:$0xff]   ;;  %v2352_v59 = vld [vmem:[%s2409_s20 + $0xd8] sm:$0xff]  }
  0x25   : > { %v2353_v58 = vld [vmem:[%s2409_s20 + $0x1d0] sm:$0xff]   ;;  %v2355_v60 = vld [vmem:[%s2409_s20 + $0xe0] sm:$0xff]   ;;  %v2354_v61 = vld [vmem:[%s2409_s20 + $0x1d8] sm:$0xff]  }
  0x26   : > { %2168 = vmatmul.mubr.msk.bf16.gmra.mrb[8].mxu0 %vm629_vm2, %v2308_v15  ;;  %2232 = vmatmul.mubr.msk.bf16.gmra.mrb[8].mxu1 %vm629_vm2, %v2310_v17  ;;  %v2357_v62 = vld [vmem:[%s2409_s20 + $0x1e0] sm:$0xff]   ;;  %v2356_v63 = vld [vmem:[%s2409_s20 + $0xe8] sm:$0xff]   ;;  %v2359_v0 = vld [vmem:[%s2409_s20 + $0xf0] sm:$0xff]  }
  0x27   : > { %2171 = vmatprep.mubr.msk.bf16.mxu0 %vm629_vm2, %v2311_v16  ;;  %2235 = vmatprep.mubr.msk.bf16.mxu1 %vm629_vm2, %v2313_v18  ;;  %v2358_v1 = vld [vmem:[%s2409_s20 + $0x1e8] sm:$0xff]   ;;  %v2361_v2 = vld [vmem:[%s2409_s20 + $0x1f0] sm:$0xff]   ;;  %v2360_v3 = vld [vmem:[%s2409_s20 + $0xf8] sm:$0xff]  }
  0x28   : > { %v2362_v4 = vld [vmem:[%s2409_s20 + $0x1f8] sm:$0xff]  }
  0x2e   : > { %2172 = vmatmul.mubr.msk.bf16.gmra.mrb[12].mxu0 %vm629_vm2, %v2312_v19  ;;  %2236 = vmatmul.mubr.msk.bf16.gmra.mrb[12].mxu1 %vm629_vm2, %v2314_v21 }
  0x2f   : > { %2175 = vmatprep.mubr.msk.bf16.mxu0 %vm629_vm2, %v2315_v20  ;;  %2239 = vmatprep.mubr.msk.bf16.mxu1 %vm629_vm2, %v2317_v22 }
  0x36   : > { %2176 = vmatmul.mubr.msk.bf16.gmra.mrb[16].mxu0 %vm629_vm2, %v2316_v23  ;;  %2240 = vmatmul.mubr.msk.bf16.gmra.mrb[16].mxu1 %vm629_vm2, %v2318_v25 }
  0x37   : > { %2179 = vmatprep.mubr.msk.bf16.mxu0 %vm629_vm2, %v2319_v24  ;;  %2243 = vmatprep.mubr.msk.bf16.mxu1 %vm629_vm2, %v2321_v26 }
  0x3e   : > { %2180 = vmatmul.mubr.msk.bf16.gmra.mrb[20].mxu0 %vm629_vm2, %v2320_v27  ;;  %2244 = vmatmul.mubr.msk.bf16.gmra.mrb[20].mxu1 %vm629_vm2, %v2322_v29 }
  0x3f   : > { %2183 = vmatprep.mubr.msk.bf16.mxu0 %vm629_vm2, %v2323_v28  ;;  %2247 = vmatprep.mubr.msk.bf16.mxu1 %vm629_vm2, %v2325_v30 }
  0x46   : > { %2184 = vmatmul.mubr.msk.bf16.gmra.mrb[24].mxu0 %vm629_vm2, %v2324_v31  ;;  %2248 = vmatmul.mubr.msk.bf16.gmra.mrb[24].mxu1 %vm629_vm2, %v2326_v33 }
  0x47   : > { %2187 = vmatprep.mubr.msk.bf16.mxu0 %vm629_vm2, %v2327_v32  ;;  %2251 = vmatprep.mubr.msk.bf16.mxu1 %vm629_vm2, %v2329_v34 }
  0x4e   : > { %2188 = vmatmul.mubr.msk.bf16.gmra.mrb[28].mxu0 %vm629_vm2, %v2328_v35  ;;  %2252 = vmatmul.mubr.msk.bf16.gmra.mrb[28].mxu1 %vm629_vm2, %v2330_v37 }
  0x4f   : > { %2191 = vmatprep.mubr.msk.bf16.mxu0 %vm629_vm2, %v2331_v36  ;;  %2255 = vmatprep.mubr.msk.bf16.mxu1 %vm629_vm2, %v2333_v38 }
  0x56   : > { %2192 = vmatmul.mubr.msk.bf16.gmra.mrb[32].mxu0 %vm629_vm2, %v2332_v39  ;;  %2256 = vmatmul.mubr.msk.bf16.gmra.mrb[32].mxu1 %vm629_vm2, %v2334_v41 }
  0x57   : > { %2195 = vmatprep.mubr.msk.bf16.mxu0 %vm629_vm2, %v2335_v40  ;;  %2259 = vmatprep.mubr.msk.bf16.mxu1 %vm629_vm2, %v2337_v42 }
  0x5e   : > { %2196 = vmatmul.mubr.msk.bf16.gmra.mrb[36].mxu0 %vm629_vm2, %v2336_v43  ;;  %2260 = vmatmul.mubr.msk.bf16.gmra.mrb[36].mxu1 %vm629_vm2, %v2338_v45 }
  0x5f   : > { %2199 = vmatprep.mubr.msk.bf16.mxu0 %vm629_vm2, %v2339_v44  ;;  %2263 = vmatprep.mubr.msk.bf16.mxu1 %vm629_vm2, %v2341_v46 }
  0x66   : > { %2200 = vmatmul.mubr.msk.bf16.gmra.mrb[40].mxu0 %vm629_vm2, %v2340_v47  ;;  %2264 = vmatmul.mubr.msk.bf16.gmra.mrb[40].mxu1 %vm629_vm2, %v2342_v49 }
  0x67   : > { %2203 = vmatprep.mubr.msk.bf16.mxu0 %vm629_vm2, %v2343_v48  ;;  %2267 = vmatprep.mubr.msk.bf16.mxu1 %vm629_vm2, %v2345_v50 }
  0x6e   : > { %2204 = vmatmul.mubr.msk.bf16.gmra.mrb[44].mxu0 %vm629_vm2, %v2344_v51  ;;  %2268 = vmatmul.mubr.msk.bf16.gmra.mrb[44].mxu1 %vm629_vm2, %v2346_v53 }
  0x6f   : > { %2207 = vmatprep.mubr.msk.bf16.mxu0 %vm629_vm2, %v2347_v52  ;;  %2271 = vmatprep.mubr.msk.bf16.mxu1 %vm629_vm2, %v2349_v54 }
  0x76   : > { %2208 = vmatmul.mubr.msk.bf16.gmra.mrb[48].mxu0 %vm629_vm2, %v2348_v55  ;;  %2272 = vmatmul.mubr.msk.bf16.gmra.mrb[48].mxu1 %vm629_vm2, %v2350_v57 }
  0x77   : > { %2211 = vmatprep.mubr.msk.bf16.mxu0 %vm629_vm2, %v2351_v56  ;;  %2275 = vmatprep.mubr.msk.bf16.mxu1 %vm629_vm2, %v2353_v58 }
  0x7e   : > { %2212 = vmatmul.mubr.msk.bf16.gmra.mrb[52].mxu0 %vm629_vm2, %v2352_v59  ;;  %2276 = vmatmul.mubr.msk.bf16.gmra.mrb[52].mxu1 %vm629_vm2, %v2354_v61 }
  0x7f   : > { %2215 = vmatprep.mubr.msk.bf16.mxu0 %vm629_vm2, %v2355_v60  ;;  %2279 = vmatprep.mubr.msk.bf16.mxu1 %vm629_vm2, %v2357_v62 }
  0x86   : > { %2216 = vmatmul.mubr.msk.bf16.gmra.mrb[56].mxu0 %vm629_vm2, %v2356_v63  ;;  %2280 = vmatmul.mubr.msk.bf16.gmra.mrb[56].mxu1 %vm629_vm2, %v2358_v1 }
  0x87   : > { %2219 = vmatprep.mubr.msk.bf16.mxu0 %vm629_vm2, %v2359_v0  ;;  %2283 = vmatprep.mubr.msk.bf16.mxu1 %vm629_vm2, %v2361_v2 }
  0x8e   : > { %2220 = vmatmul.mubr.msk.bf16.gmra.mrb[60].mxu0 %vm629_vm2, %v2360_v3  ;;  %2284 = vmatmul.mubr.msk.bf16.gmra.mrb[60].mxu1 %vm629_vm2, %v2362_v4 }
  0xe9   : > { %v2161_v5 = vpop.f32.mrb[0].mxu0  ;;  %v2225_v7 = vpop.f32.mrb[0].mxu1 }
  0xea   : > { %v863_v6 = vpop.f32.mrb[1].mxu0  ;;  %v1119_v9 = vpop.f32.mrb[1].mxu1  ;;  %v2596_v60 = vsel %vm1374_vm3, %v2161_v5, -inf  ;;  %v2602_v62 = vsel %vm1374_vm3, %v2225_v7, -inf }
  0xeb   : > { %v2162_v8 = vpop.f32.mrb[2].mxu0  ;;  %v2226_v11 = vpop.f32.mrb[2].mxu1  ;;  %v2599_v61 = vsel %vm1374_vm3, %v863_v6, -inf  ;;  %v2610_v1 = vsel %vm1374_vm3, %v1119_v9, -inf }
  0xec   : > { %v866_v10 = vpop.f32.mrb[3].mxu0  ;;  %v1122_v12 = vpop.f32.mrb[3].mxu1  ;;  %v2607_v0 = vsel %vm1374_vm3, %v2162_v8, -inf  ;;  %v2616_v3 = vsel %vm1374_vm3, %v2226_v11, -inf }
  0xed   : > { %v2613_v2 = vsel %vm1374_vm3, %v866_v10, -inf  ;;  %v2619_v4 = vsel %vm1374_vm3, %v1122_v12, -inf }
  0xf1   : > { %v2165_v13 = vpop.f32.mrb[4].mxu0  ;;  %v2229_v15 = vpop.f32.mrb[4].mxu1 }
  0xf2   : > { %v879_v14 = vpop.f32.mrb[5].mxu0  ;;  %v1135_v17 = vpop.f32.mrb[5].mxu1  ;;  %v2622_v5 = vsel %vm1374_vm3, %v2165_v13, -inf  ;;  %v2628_v7 = vsel %vm1374_vm3, %v2229_v15, -inf }
  0xf3   : > { %v2166_v16 = vpop.f32.mrb[6].mxu0  ;;  %v2230_v19 = vpop.f32.mrb[6].mxu1  ;;  %v2625_v6 = vsel %vm1374_vm3, %v879_v14, -inf  ;;  %v2634_v9 = vsel %vm1374_vm3, %v1135_v17, -inf }
  0xf4   : > { %v882_v18 = vpop.f32.mrb[7].mxu0  ;;  %v1138_v20 = vpop.f32.mrb[7].mxu1  ;;  %v2631_v8 = vsel %vm1374_vm3, %v2166_v16, -inf  ;;  %v2640_v11 = vsel %vm1374_vm3, %v2230_v19, -inf }
  0xf5   : > { %v2637_v10 = vsel %vm1374_vm3, %v882_v18, -inf  ;;  %v2645_v13 = vsel %vm1374_vm3, %v1138_v20, -inf }
  0xf9   : > { %v2169_v21 = vpop.f32.mrb[8].mxu0  ;;  %v2233_v23 = vpop.f32.mrb[8].mxu1 }
  0xfa   : > { %v895_v22 = vpop.f32.mrb[9].mxu0  ;;  %v1151_v25 = vpop.f32.mrb[9].mxu1  ;;  %v2648_v14 = vsel %vm1374_vm3, %v2169_v21, -inf  ;;  %v2654_v16 = vsel %vm1374_vm3, %v2233_v23, -inf }
  0xfb   : > { %v2170_v24 = vpop.f32.mrb[10].mxu0  ;;  %v2234_v27 = vpop.f32.mrb[10].mxu1  ;;  %3087 = vst [vmem:[#allocation2_spill] sm:$0xff] %v2648_v14  ;;  %v2651_v15 = vsel %vm1374_vm3, %v895_v22, -inf  ;;  %3088 = vst [vmem:[#allocation3_spill] sm:$0xff] %v2654_v16  ;;  %v2662_v19 = vsel %vm1374_vm3, %v1151_v25, -inf }
  0xfc   : > { %v898_v26 = vpop.f32.mrb[11].mxu0  ;;  %v1154_v28 = vpop.f32.mrb[11].mxu1  ;;  %v2659_v18 = vsel %vm1374_vm3, %v2170_v24, -inf  ;;  %v2668_v21 = vsel %vm1374_vm3, %v2234_v27, -inf }
  0xfd   : > { %v2665_v20 = vsel %vm1374_vm3, %v898_v26, -inf  ;;  %3089 = vst [vmem:[#allocation4_spill] sm:$0xff] %v2668_v21  ;;  %v2675_v23 = vsel %vm1374_vm3, %v1154_v28, -inf }
 0x101   : > { %v2173_v29 = vpop.f32.mrb[12].mxu0  ;;  %v2237_v31 = vpop.f32.mrb[12].mxu1 }
 0x102   : > { %v911_v30 = vpop.f32.mrb[13].mxu0  ;;  %v2541_v33 = vpop.f32.mrb[13].mxu1  ;;  %v2678_v16 = vsel %vm1374_vm3, %v2173_v29, -inf  ;;  %v2684_v25 = vsel %vm1374_vm3, %v2237_v31, -inf }
 0x103   : > { %v2539_v32 = vpop.f32.mrb[14].mxu0  ;;  %v2545_v35 = vpop.f32.mrb[14].mxu1  ;;  %v2681_v24 = vsel %vm1374_vm3, %v911_v30, -inf  ;;  %3090 = vst [vmem:[#allocation5_spill] sm:$0xff] %v2684_v25  ;;  %v2696_v28 = vsel %vm1374_vm3, %v2541_v33, -inf }
 0x104   : > { %v2543_v34 = vpop.f32.mrb[15].mxu0  ;;  %v2547_v36 = vpop.f32.mrb[15].mxu1  ;;  %v2692_v21 = vsel %vm1374_vm3, %v2539_v32, -inf  ;;  %v2704_v30 = vsel %vm1374_vm3, %v2545_v35, -inf }
 0x105   : > { %v2700_v29 = vsel %vm1374_vm3, %v2543_v34, -inf  ;;  %v2710_v25 = vsel %vm1374_vm3, %v2547_v36, -inf }
 0x109   : > { %v2549_v37 = vpop.f32.mrb[16].mxu0  ;;  %v2553_v39 = vpop.f32.mrb[16].mxu1 }
 0x10a   : > { %v2551_v38 = vpop.f32.mrb[17].mxu0  ;;  %v2557_v41 = vpop.f32.mrb[17].mxu1  ;;  %v2714_v32 = vsel %vm1374_vm3, %v2549_v37, -inf  ;;  %v2722_v34 = vsel %vm1374_vm3, %v2553_v39, -inf }
 0x10b   : > { %v2555_v40 = vpop.f32.mrb[18].mxu0  ;;  %v2561_v43 = vpop.f32.mrb[18].mxu1  ;;  %v2718_v33 = vsel %vm1374_vm3, %v2551_v38, -inf  ;;  %v2732_v36 = vsel %vm1374_vm3, %v2557_v41, -inf }
 0x10c   : > { %v2559_v42 = vpop.f32.mrb[19].mxu0  ;;  %v2563_v44 = vpop.f32.mrb[19].mxu1  ;;  %v2740_v38 = vsel %vm1374_vm3, %v2561_v43, -inf }
 0x10d   : > { %v2736_v37 = vsel %vm1374_vm3, %v2559_v42, -inf  ;;  %v2744_v39 = vsel %vm1374_vm3, %v2563_v44, -inf }
 0x111   : > { %v2565_v45 = vpop.f32.mrb[20].mxu0  ;;  %v2569_v47 = vpop.f32.mrb[20].mxu1 }
 0x112   : > { %v2567_v46 = vpop.f32.mrb[21].mxu0  ;;  %v2573_v49 = vpop.f32.mrb[21].mxu1  ;;  %v2756_v42 = vsel %vm1374_vm3, %v2569_v47, -inf }
 0x113   : > { %v2571_v48 = vpop.f32.mrb[22].mxu0  ;;  %v2577_v51 = vpop.f32.mrb[22].mxu1  ;;  %v2752_v41 = vsel %vm1374_vm3, %v2567_v46, -inf  ;;  %v2764_v44 = vsel %vm1374_vm3, %v2573_v49, -inf }
 0x114   : > { %v2575_v50 = vpop.f32.mrb[23].mxu0  ;;  %v2579_v52 = vpop.f32.mrb[23].mxu1  ;;  %v2760_v43 = vsel %vm1374_vm3, %v2571_v48, -inf  ;;  %v2772_v46 = vsel %vm1374_vm3, %v2577_v51, -inf }
 0x115   : > { %3094 = vst [vmem:[#allocation9_spill] sm:$0xff] %v2772_v46  ;;  %v2777_v47 = vsel %vm1374_vm3, %v2579_v52, -inf }
 0x116   : > { %3095 = vst [vmem:[#allocation10_spill] sm:$0xff] %v2777_v47 }
 0x119   : > { %v2581_v53 = vpop.f32.mrb[24].mxu0  ;;  %v2585_v55 = vpop.f32.mrb[24].mxu1 }
 0x11a   : > { %v2583_v54 = vpop.f32.mrb[25].mxu0  ;;  %v2589_v57 = vpop.f32.mrb[25].mxu1  ;;  %v2781_v48 = vsel %vm1374_vm3, %v2581_v53, -inf  ;;  %v2790_v46 = vsel %vm1374_vm3, %v2585_v55, -inf }
 0x11b   : > { %v2587_v56 = vpop.f32.mrb[26].mxu0  ;;  %v2593_v59 = vpop.f32.mrb[26].mxu1  ;;  %3096 = vst [vmem:[#allocation11_spill] sm:$0xff] %v2781_v48  ;;  %v2785_v49 = vsel %vm1374_vm3, %v2583_v54, -inf  ;;  %3098 = vst [vmem:[#allocation13_spill] sm:$0xff] %v2790_v46 }
 0x11c   : > { %v2591_v58 = vpop.f32.mrb[27].mxu0  ;;  %v2604_v63 = vpop.f32.mrb[27].mxu1  ;;  %3097 = vst [vmem:[#allocation12_spill] sm:$0xff] %v2785_v49  ;;  %v2794_v52 = vsel %vm1374_vm3, %v2587_v56, -inf  ;;  %v2800_v49 = vsel %vm1374_vm3, %v2589_v57, -inf }
 0x11d   : > { %3099 = vst [vmem:[#allocation14_spill] sm:$0xff] %v2800_v49 }
 0x121   : > { %v2642_v12 = vpop.f32.mrb[28].mxu0  ;;  %v2670_v14 = vpop.f32.mrb[28].mxu1 }
 0x122   : > { %v2656_v17 = vpop.f32.mrb[29].mxu0  ;;  %v2686_v26 = vpop.f32.mrb[29].mxu1 }
 0x123   : > { %v2672_v22 = vpop.f32.mrb[30].mxu0  ;;  %v2706_v31 = vpop.f32.mrb[30].mxu1 }
 0x124   : > { %v2688_v27 = vpop.f32.mrb[31].mxu0  ;;  %3091 = vst [vmem:[#allocation6_spill] sm:$0xff] %v2706_v31  ;;  %v2724_v35 = vpop.f32.mrb[31].mxu1  ;;  %v2728_v31 = vsel %vm1374_vm3, %v2555_v40, -inf  ;;  %v2748_v40 = vsel %vm1374_vm3, %v2565_v45, -inf  ;;  %v2768_v45 = vsel %vm1374_vm3, %v2575_v50, -inf }
 0x125   : > { %3092 = vst [vmem:[#allocation7_spill] sm:$0xff] %v2724_v35  ;;  %3093 = vst [vmem:[#allocation8_spill] sm:$0xff] %v2768_v45 }
 0x129   : > { %v2193_v35 = vpop.f32.mrb[32].mxu0  ;;  %v2257_v47 = vpop.f32.mrb[32].mxu1 }
 0x12a   : > { %v1390_v50 = vsel %vm1374_vm3, %v2193_v35, -inf  ;;  %v991_v51 = vpop.f32.mrb[33].mxu0  ;;  %v1394_v45 = vsel %vm1374_vm3, %v2257_v47, -inf  ;;  %v1247_v46 = vpop.f32.mrb[33].mxu1  ;;  %v2820_v47 = vsel %vm1374_vm3, %v2593_v59, -inf }
 0x12b   : > { %v1391_v53 = vmax.f32 %v2596_v60, %v1390_v50  ;;  %v1376_v48 = vsel %vm1374_vm3, %v991_v51, -inf  ;;  %v2194_v54 = vpop.f32.mrb[34].mxu0  ;;  %v1380_v51 = vsel %vm1374_vm3, %v1247_v46, -inf  ;;  %v2258_v49 = vpop.f32.mrb[34].mxu1 }
 0x12c   : > { %v1377_v35 = vmax.f32 %v2599_v61, %v1376_v48  ;;  %v1397_v55 = vsel %vm1374_vm3, %v2194_v54, -inf  ;;  %v994_v56 = vpop.f32.mrb[35].mxu0  ;;  %v2816_v61 = vsel %vm1374_vm3, %v2591_v58, -inf  ;;  %v1250_v48 = vpop.f32.mrb[35].mxu1  ;;  %v2835_v58 = vsel %vm1374_vm3, %v2642_v12, -inf }
 0x12d   : > { %v1393_v60 = vmax.f32 %v1391_v53, %v2602_v62  ;;  %v1398_v50 = vmax.f32 %v2607_v0, %v1397_v55  ;;  %v1383_v57 = vsel %vm1374_vm3, %v994_v56, -inf  ;;  %v2825_v62 = vld [vmem:[%s3085_s2] ss:$0 sm:$0xff]  ;;  %v2831_v53 = vsel %vm1374_vm3, %v2604_v63, -inf }
 0x12e   : > { %v1379_v0 = vmax.f32 %v1377_v35, %v2610_v1  ;;  %v1384_v46 = vmax.f32 %v2613_v2, %v1383_v57  ;;  %v2840_v55 = vsel %vm1374_vm3, %v2656_v17, -inf  ;;  %v1401_v1 = vsel %vm1374_vm3, %v2258_v49, -inf }
 0x12f   : > { %v1395_v59 = vmax.f32 %v1393_v60, %v1394_v45  ;;  %v1400_v54 = vmax.f32 %v1398_v50, %v2616_v3  ;;  %v2846_v63 = vsel %vm1374_vm3, %v2670_v14, -inf  ;;  %v1387_v45 = vsel %vm1374_vm3, %v1250_v48, -inf }
 0x130   : > { %v1381_v56 = vmax.f32 %v1379_v0, %v1380_v51  ;;  %v1386_v2 = vmax.f32 %v1384_v46, %v2619_v4  ;;  %v2853_v17 = vsel %vm1374_vm3, %v2672_v22, -inf }
 0x131   : > { %v1608_v12 = vadd.f32 %v2825_v62, %v1395_v59  ;;  %v1402_v35 = vmax.f32 %v1400_v54, %v1401_v1  ;;  %v2197_v3 = vpop.f32.mrb[36].mxu0  ;;  %v2261_v46 = vpop.f32.mrb[36].mxu1 }
 0x132   : > { %v1606_v60 = vadd.f32 %v2825_v62, %v1381_v56  ;;  %v1388_v49 = vmax.f32 %v1386_v2, %v1387_v45  ;;  %v1418_v4 = vsel %vm1374_vm3, %v2197_v3, -inf  ;;  %v1007_v50 = vpop.f32.mrb[37].mxu0  ;;  %v1422_v56 = vsel %vm1374_vm3, %v2261_v46, -inf  ;;  %v1263_v1 = vpop.f32.mrb[37].mxu1 }
 0x133   : > { %v1640_v51 = vmax.f32 %v1608_v12, 0.0  ;;  %v1609_v14 = vadd.f32 %v2825_v62, %v1402_v35  ;;  %v1419_v57 = vmax.f32 %v2622_v5, %v1418_v4  ;;  %v1404_v0 = vsel %vm1374_vm3, %v1007_v50, -inf  ;;  %v2198_v48 = vpop.f32.mrb[38].mxu0  ;;  %v2262_v3 = vpop.f32.mrb[38].mxu1 }
 0x134   : > { %v1638_v22 = vmax.f32 %v1606_v60, 0.0  ;;  %v1607_v59 = vadd.f32 %v2825_v62, %v1388_v49  ;;  %v1405_v54 = vmax.f32 %v2625_v6, %v1404_v0  ;;  %v1010_v2 = vpop.f32.mrb[39].mxu0  ;;  %v1425_v45 = vsel %vm1374_vm3, %v2198_v48, -inf  ;;  %v1266_v6 = vpop.f32.mrb[39].mxu1 }
 0x135   : > { %v2062_v5 = vpack.c.bf16 %v1640_v51, %v1640_v51  ;;  %v1641_v12 = vmax.f32 %v1609_v14, 0.0  ;;  %v1421_v35 = vmax.f32 %v1419_v57, %v2628_v7  ;;  %v1426_v60 = vmax.f32 %v2631_v8, %v1425_v45 }
 0x136   : > { %v2060_v4 = vpack.c.bf16 %v1638_v22, %v1638_v22  ;;  %v1639_v50 = vmax.f32 %v1607_v59, 0.0  ;;  %v1407_v49 = vmax.f32 %v1405_v54, %v2634_v9  ;;  %v1408_v51 = vsel %vm1374_vm3, %v1263_v1, -inf }
 0x137   : > { %1801 = vst.msk [vmem:[%s2863_s26 + $0x8] sm:$0xf] %vm1798_vm4, %v2062_v5  ;;  %v2063_v0 = vpack.c.bf16 %v1641_v12, %v1641_v12  ;;  %v1423_v46 = vmax.f32 %v1421_v35, %v1422_v56  ;;  %v1411_v7 = vsel %vm1374_vm3, %v1010_v2, -inf  ;;  %v1428_v8 = vmax.f32 %v1426_v60, %v2640_v11  ;;  %v3100_v12 = vld [vmem:[#allocation2_spill] sm:$0xff] }
 0x138   : > { %1799 = vst.msk [vmem:[%s2863_s26] sm:$0xf] %vm1798_vm4, %v2060_v4  ;;  %v2061_v14 = vpack.c.bf16 %v1639_v50, %v1639_v50  ;;  %v1409_v57 = vmax.f32 %v1407_v49, %v1408_v51  ;;  %v1412_v48 = vmax.f32 %v2637_v10, %v1411_v7  ;;  %v2882_v9 = vsel %vm1374_vm3, %v2686_v26, -inf  ;;  %v3101_v7 = vld [vmem:[#allocation3_spill] sm:$0xff] }
 0x139   : > { %v2886_v22 = vsel %vm1374_vm3, %v2688_v27, -inf  ;;  %1802 = vst.msk [vmem:[%s2863_s26 + $0xc] sm:$0xf] %vm1798_vm4, %v2063_v0  ;;  %v1612_v59 = vadd.f32 %v2825_v62, %v1423_v46  ;;  %v1429_v54 = vsel %vm1374_vm3, %v2262_v3, -inf  ;;  %v2201_v56 = vpop.f32.mrb[40].mxu0  ;;  %v1415_v27 = vsel %vm1374_vm3, %v1266_v6, -inf }
 0x13a   : > { %1800 = vst.msk [vmem:[%s2863_s26 + $0x4] sm:$0xf] %vm1798_vm4, %v2061_v14  ;;  %v1610_v10 = vadd.f32 %v2825_v62, %v1409_v57  ;;  %v1430_v11 = vmax.f32 %v1428_v8, %v1429_v54  ;;  %v1414_v1 = vmax.f32 %v1412_v48, %v2645_v13  ;;  %v1446_v26 = vsel %vm1374_vm3, %v2201_v56, -inf  ;;  %v1023_v2 = vpop.f32.mrb[41].mxu0  ;;  %v2265_v4 = vpop.f32.mrb[40].mxu1 }
 0x13b   : > { %v1644_v5 = vmax.f32 %v1612_v59, 0.0  ;;  %v1447_v35 = vmax.f32 %v3100_v12, %v1446_v26  ;;  %v1432_v45 = vsel %vm1374_vm3, %v1023_v2, -inf  ;;  %v2202_v3 = vpop.f32.mrb[42].mxu0  ;;  %v1279_v13 = vpop.f32.mrb[41].mxu1  ;;  %v1450_v6 = vsel %vm1374_vm3, %v2265_v4, -inf  ;;  %v3102_v12 = vld [vmem:[#allocation4_spill] sm:$0xff] }
 0x13c   : > { %v1642_v50 = vmax.f32 %v1610_v10, 0.0  ;;  %v1613_v60 = vadd.f32 %v2825_v62, %v1430_v11  ;;  %v1416_v49 = vmax.f32 %v1414_v1, %v1415_v27  ;;  %v1433_v0 = vmax.f32 %v2651_v15, %v1432_v45  ;;  %v1026_v46 = vpop.f32.mrb[43].mxu0  ;;  %v2266_v48 = vpop.f32.mrb[42].mxu1 }
 0x13d   : > { %v2066_v51 = vpack.c.bf16 %v1644_v5, %v1644_v5  ;;  %v1449_v14 = vmax.f32 %v1447_v35, %v3101_v7  ;;  %v1453_v57 = vsel %vm1374_vm3, %v2202_v3, -inf  ;;  %v1282_v10 = vpop.f32.mrb[43].mxu1  ;;  %v1436_v1 = vsel %vm1374_vm3, %v1279_v13, -inf }
 0x13e   : > { %v2064_v8 = vpack.c.bf16 %v1642_v50, %v1642_v50  ;;  %v1645_v59 = vmax.f32 %v1613_v60, 0.0  ;;  %v1611_v54 = vadd.f32 %v2825_v62, %v1416_v49  ;;  %v1454_v56 = vmax.f32 %v2659_v18, %v1453_v57 }
 0x13f   : > { %1805 = vst.msk [vmem:[%s2863_s26 + $0x18] sm:$0xf] %vm1798_vm4, %v2066_v51  ;;  %v1451_v15 = vmax.f32 %v1449_v14, %v1450_v6  ;;  %v1435_v11 = vmax.f32 %v1433_v0, %v2662_v19  ;;  %v1439_v26 = vsel %vm1374_vm3, %v1026_v46, -inf  ;;  %v1457_v4 = vsel %vm1374_vm3, %v2266_v48, -inf }
 0x140   : > { %1803 = vst.msk [vmem:[%s2863_s26 + $0x10] sm:$0xf] %vm1798_vm4, %v2064_v8  ;;  %v2067_v2 = vpack.c.bf16 %v1645_v59, %v1645_v59  ;;  %v1643_v5 = vmax.f32 %v1611_v54, 0.0  ;;  %v1440_v27 = vmax.f32 %v2665_v20, %v1439_v26  ;;  %v1456_v35 = vmax.f32 %v1454_v56, %v3102_v12 }
 0x141   : > { %v1616_v18 = vadd.f32 %v2825_v62, %v1451_v15  ;;  %v1437_v45 = vmax.f32 %v1435_v11, %v1436_v1  ;;  %v1443_v19 = vsel %vm1374_vm3, %v1282_v10, -inf  ;;  %v2205_v3 = vpop.f32.mrb[44].mxu0  ;;  %v2269_v14 = vpop.f32.mrb[44].mxu1  ;;  %v3103_v15 = vld [vmem:[#allocation5_spill] sm:$0xff] }
 0x142   : > { %1806 = vst.msk [vmem:[%s2863_s26 + $0x1c] sm:$0xf] %vm1798_vm4, %v2067_v2  ;;  %v2065_v50 = vpack.c.bf16 %v1643_v5, %v1643_v5  ;;  %v1458_v60 = vmax.f32 %v1456_v35, %v1457_v4  ;;  %v1442_v49 = vmax.f32 %v1440_v27, %v2675_v23  ;;  %v1474_v0 = vsel %vm1374_vm3, %v2205_v3, -inf  ;;  %v1039_v20 = vpop.f32.mrb[45].mxu0  ;;  %v1295_v59 = vpop.f32.mrb[45].mxu1 }
 0x143   : > { %v1648_v13 = vmax.f32 %v1616_v18, 0.0  ;;  %v1614_v46 = vadd.f32 %v2825_v62, %v1437_v45  ;;  %v1475_v51 = vmax.f32 %v2678_v16, %v1474_v0  ;;  %v1460_v7 = vsel %vm1374_vm3, %v1039_v20, -inf  ;;  %v2206_v6 = vpop.f32.mrb[46].mxu0  ;;  %v2270_v1 = vpop.f32.mrb[46].mxu1 }
 0x144   : > { %1804 = vst.msk [vmem:[%s2863_s26 + $0x14] sm:$0xf] %vm1798_vm4, %v2065_v50  ;;  %v1617_v57 = vadd.f32 %v2825_v62, %v1458_v60  ;;  %v1444_v48 = vmax.f32 %v1442_v49, %v1443_v19  ;;  %v1461_v23 = vmax.f32 %v2681_v24, %v1460_v7  ;;  %v1478_v8 = vsel %vm1374_vm3, %v2269_v14, -inf  ;;  %v1042_v54 = vpop.f32.mrb[47].mxu0  ;;  %v1298_v24 = vpop.f32.mrb[47].mxu1 }
 0x145   : > { %v2070_v56 = vpack.c.bf16 %v1648_v13, %v1648_v13  ;;  %v1646_v10 = vmax.f32 %v1614_v46, 0.0  ;;  %v1477_v16 = vmax.f32 %v1475_v51, %v3103_v15  ;;  %v1481_v11 = vsel %vm1374_vm3, %v2206_v6, -inf }
 0x146   : > { %v1649_v26 = vmax.f32 %v1617_v57, 0.0  ;;  %v1615_v2 = vadd.f32 %v2825_v62, %v1444_v48  ;;  %v1482_v5 = vmax.f32 %v2692_v21, %v1481_v11  ;;  %v1463_v27 = vmax.f32 %v1461_v23, %v2696_v28 }
 0x147   : > { %1809 = vst.msk [vmem:[%s2863_s26 + $0x28] sm:$0xf] %vm1798_vm4, %v2070_v56  ;;  %v2068_v12 = vpack.c.bf16 %v1646_v10, %v1646_v10  ;;  %v1479_v35 = vmax.f32 %v1477_v16, %v1478_v8  ;;  %v1464_v18 = vsel %vm1374_vm3, %v1295_v59, -inf  ;;  %v1467_v45 = vsel %vm1374_vm3, %v1042_v54, -inf }
 0x148   : > { %v2071_v4 = vpack.c.bf16 %v1649_v26, %v1649_v26  ;;  %v1647_v19 = vmax.f32 %v1615_v2, 0.0  ;;  %v1465_v3 = vmax.f32 %v1463_v27, %v1464_v18  ;;  %v1468_v50 = vmax.f32 %v2700_v29, %v1467_v45 }
 0x149   : > { %1807 = vst.msk [vmem:[%s2863_s26 + $0x20] sm:$0xf] %vm1798_vm4, %v2068_v12  ;;  %v1620_v21 = vadd.f32 %v2825_v62, %v1479_v35  ;;  %v1484_v28 = vmax.f32 %v1482_v5, %v2704_v30  ;;  %v1485_v60 = vsel %vm1374_vm3, %v2270_v1, -inf  ;;  %v1471_v49 = vsel %vm1374_vm3, %v1298_v24, -inf  ;;  %v2209_v0 = vpop.f32.mrb[48].mxu0  ;;  %v2273_v57 = vpop.f32.mrb[48].mxu1 }
 0x14a   : > { %1810 = vst.msk [vmem:[%s2863_s26 + $0x2c] sm:$0xf] %vm1798_vm4, %v2071_v4  ;;  %v2069_v20 = vpack.c.bf16 %v1647_v19, %v1647_v19  ;;  %v1618_v13 = vadd.f32 %v2825_v62, %v1465_v3  ;;  %v1470_v46 = vmax.f32 %v1468_v50, %v2710_v25  ;;  %v1502_v29 = vsel %vm1374_vm3, %v2209_v0, -inf  ;;  %v1055_v51 = vpop.f32.mrb[49].mxu0  ;;  %v1311_v54 = vpop.f32.mrb[49].mxu1  ;;  %v3104_v4 = vld [vmem:[#allocation6_spill] sm:$0xff] }
 0x14b   : > { %v1652_v7 = vmax.f32 %v1620_v21, 0.0  ;;  %v1486_v14 = vmax.f32 %v1484_v28, %v1485_v60  ;;  %v1503_v30 = vmax.f32 %v2714_v32, %v1502_v29  ;;  %v1488_v6 = vsel %vm1374_vm3, %v1055_v51, -inf  ;;  %v2210_v48 = vpop.f32.mrb[50].mxu0  ;;  %v2274_v11 = vpop.f32.mrb[50].mxu1 }
 0x14c   : > { %1808 = vst.msk [vmem:[%s2863_s26 + $0x24] sm:$0xf] %vm1798_vm4, %v2069_v20  ;;  %v1650_v23 = vmax.f32 %v1618_v13, 0.0  ;;  %v1472_v8 = vmax.f32 %v1470_v46, %v1471_v49  ;;  %v1489_v59 = vmax.f32 %v2718_v33, %v1488_v6  ;;  %v1506_v25 = vsel %vm1374_vm3, %v2273_v57, -inf  ;;  %v1058_v56 = vpop.f32.mrb[51].mxu0  ;;  %v1314_v5 = vpop.f32.mrb[51].mxu1 }
 0x14d   : > { %v2074_v10 = vpack.c.bf16 %v1652_v7, %v1652_v7  ;;  %v1621_v15 = vadd.f32 %v2825_v62, %v1486_v14  ;;  %v1505_v32 = vmax.f32 %v1503_v30, %v2722_v34  ;;  %v1509_v16 = vsel %vm1374_vm3, %v2210_v48, -inf }
 0x14e   : > { %v2072_v1 = vpack.c.bf16 %v1650_v23, %v1650_v23  ;;  %v1619_v26 = vadd.f32 %v2825_v62, %v1472_v8  ;;  %v1510_v2 = vmax.f32 %v2728_v31, %v1509_v16  ;;  %v1491_v33 = vmax.f32 %v1489_v59, %v2732_v36 }
 0x14f   : > { %1813 = vst.msk [vmem:[%s2863_s26 + $0x38] sm:$0xf] %vm1798_vm4, %v2074_v10  ;;  %v1653_v27 = vmax.f32 %v1621_v15, 0.0  ;;  %v1507_v24 = vmax.f32 %v1505_v32, %v1506_v25  ;;  %v1492_v12 = vsel %vm1374_vm3, %v1311_v54, -inf  ;;  %v1495_v35 = vsel %vm1374_vm3, %v1058_v56, -inf }
 0x150   : > { %1811 = vst.msk [vmem:[%s2863_s26 + $0x30] sm:$0xf] %vm1798_vm4, %v2072_v1  ;;  %v1651_v34 = vmax.f32 %v1619_v26, 0.0  ;;  %v1493_v18 = vmax.f32 %v1491_v33, %v1492_v12  ;;  %v1496_v45 = vmax.f32 %v2736_v37, %v1495_v35  ;;  %v1512_v31 = vmax.f32 %v1510_v2, %v2740_v38  ;;  %v3105_v33 = vld [vmem:[#allocation8_spill] sm:$0xff] }
 0x151   : > { %v2974_v36 = vsel %vm1374_vm3, %v3104_v4, -inf  ;;  %v2075_v19 = vpack.c.bf16 %v1653_v27, %v1653_v27  ;;  %v1624_v3 = vadd.f32 %v2825_v62, %v1507_v24  ;;  %v1513_v50 = vsel %vm1374_vm3, %v2274_v11, -inf  ;;  %v2213_v21 = vpop.f32.mrb[52].mxu0  ;;  %v2277_v29 = vpop.f32.mrb[52].mxu1  ;;  %v3106_v27 = vld [vmem:[#allocation9_spill] sm:$0xff] }
 0x152   : > { %v2073_v28 = vpack.c.bf16 %v1651_v34, %v1651_v34  ;;  %v1622_v60 = vadd.f32 %v2825_v62, %v1493_v18  ;;  %v1514_v49 = vmax.f32 %v1512_v31, %v1513_v50  ;;  %v1498_v0 = vmax.f32 %v1496_v45, %v2744_v39  ;;  %v1071_v37 = vpop.f32.mrb[53].mxu0  ;;  %v1327_v6 = vpop.f32.mrb[53].mxu1  ;;  %v3107_v18 = vld [vmem:[#allocation10_spill] sm:$0xff]  ;;  %v3108_v50 = vld [vmem:[#allocation11_spill] sm:$0xff] }
 0x153   : > { %1814 = vst.msk [vmem:[%s2863_s26 + $0x3c] sm:$0xf] %vm1798_vm4, %v2075_v19  ;;  %v1656_v38 = vmax.f32 %v1624_v3, 0.0  ;;  %v1499_v20 = vsel %vm1374_vm3, %v1314_v5, -inf  ;;  %v1530_v13 = vsel %vm1374_vm3, %v2213_v21, -inf  ;;  %v1516_v46 = vsel %vm1374_vm3, %v1071_v37, -inf }
 0x154   : > { %v2214_v51 = vpop.f32.mrb[54].mxu0  ;;  %1812 = vst.msk [vmem:[%s2863_s26 + $0x34] sm:$0xf] %vm1798_vm4, %v2073_v28  ;;  %v1654_v7 = vmax.f32 %v1622_v60, 0.0  ;;  %v1625_v14 = vadd.f32 %v2825_v62, %v1514_v49  ;;  %v1500_v30 = vmax.f32 %v1498_v0, %v1499_v20  ;;  %v1531_v39 = vmax.f32 %v2748_v40, %v1530_v13  ;;  %v2278_v25 = vpop.f32.mrb[54].mxu1 }
 0x155   : > { %v1074_v57 = vpop.f32.mrb[55].mxu0  ;;  %v2078_v48 = vpack.c.bf16 %v1656_v38, %v1656_v38  ;;  %v1517_v23 = vmax.f32 %v2752_v41, %v1516_v46  ;;  %v1534_v8 = vsel %vm1374_vm3, %v2277_v29, -inf  ;;  %v1537_v59 = vsel %vm1374_vm3, %v2214_v51, -inf  ;;  %v1330_v32 = vpop.f32.mrb[55].mxu1  ;;  %v3109_v38 = vld [vmem:[#allocation12_spill] sm:$0xff] }
 0x156   : > { %v2076_v54 = vpack.c.bf16 %v1654_v7, %v1654_v7  ;;  %v1657_v56 = vmax.f32 %v1625_v14, 0.0  ;;  %v1623_v10 = vadd.f32 %v2825_v62, %v1500_v30  ;;  %v1533_v15 = vmax.f32 %v1531_v39, %v2756_v42  ;;  %v3110_v14 = vld [vmem:[#allocation13_spill] sm:$0xff] }
 0x157   : > { %1817 = vst.msk [vmem:[%s2863_s26 + $0x48] sm:$0xf] %vm1798_vm4, %v2078_v48  ;;  %v1538_v40 = vmax.f32 %v2760_v43, %v1537_v59  ;;  %v1519_v16 = vmax.f32 %v1517_v23, %v2764_v44  ;;  %v1520_v41 = vsel %vm1374_vm3, %v1327_v6, -inf  ;;  %v1523_v11 = vsel %vm1374_vm3, %v1074_v57, -inf }
 0x158   : > { %1815 = vst.msk [vmem:[%s2863_s26 + $0x40] sm:$0xf] %vm1798_vm4, %v2076_v54  ;;  %v2079_v1 = vpack.c.bf16 %v1657_v56, %v1657_v56  ;;  %v1655_v26 = vmax.f32 %v1623_v10, 0.0  ;;  %v1535_v2 = vmax.f32 %v1533_v15, %v1534_v8  ;;  %v1524_v5 = vmax.f32 %v3105_v33, %v1523_v11  ;;  %v3111_v8 = vld [vmem:[#allocation14_spill] sm:$0xff] }
 0x159   : > { %v1521_v42 = vmax.f32 %v1519_v16, %v1520_v41  ;;  %v1540_v24 = vmax.f32 %v1538_v40, %v3106_v27  ;;  %v1541_v12 = vsel %vm1374_vm3, %v2278_v25, -inf  ;;  %v1527_v43 = vsel %vm1374_vm3, %v1330_v32, -inf  ;;  %v2217_v44 = vpop.f32.mrb[56].mxu0  ;;  %v2281_v60 = vpop.f32.mrb[56].mxu1 }
 0x15a   : > { %1818 = vst.msk [vmem:[%s2863_s26 + $0x4c] sm:$0xf] %vm1798_vm4, %v2079_v1  ;;  %v2077_v35 = vpack.c.bf16 %v1655_v26, %v1655_v26  ;;  %v1628_v34 = vadd.f32 %v2825_v62, %v1535_v2  ;;  %v1526_v45 = vmax.f32 %v1524_v5, %v3107_v18  ;;  %v1558_v31 = vsel %vm1374_vm3, %v2217_v44, -inf  ;;  %v1087_v4 = vpop.f32.mrb[57].mxu0  ;;  %v1343_v46 = vpop.f32.mrb[57].mxu1 }
 0x15b   : > { %v1626_v19 = vadd.f32 %v2825_v62, %v1521_v42  ;;  %v1542_v3 = vmax.f32 %v1540_v24, %v1541_v12  ;;  %v1559_v21 = vmax.f32 %v3108_v50, %v1558_v31  ;;  %v1544_v28 = vsel %vm1374_vm3, %v1087_v4, -inf  ;;  %v2218_v49 = vpop.f32.mrb[58].mxu0  ;;  %v2282_v6 = vpop.f32.mrb[58].mxu1 }
 0x15c   : > { %1816 = vst.msk [vmem:[%s2863_s26 + $0x44] sm:$0xf] %vm1798_vm4, %v2077_v35  ;;  %v1660_v0 = vmax.f32 %v1628_v34, 0.0  ;;  %v1528_v37 = vmax.f32 %v1526_v45, %v1527_v43  ;;  %v1545_v20 = vmax.f32 %v3109_v38, %v1544_v28  ;;  %v1562_v13 = vsel %vm1374_vm3, %v2281_v60, -inf  ;;  %v1090_v29 = vpop.f32.mrb[59].mxu0  ;;  %v1346_v25 = vpop.f32.mrb[59].mxu1 }
 0x15d   : > { %v1658_v51 = vmax.f32 %v1626_v19, 0.0  ;;  %v1629_v7 = vadd.f32 %v2825_v62, %v1542_v3  ;;  %v1561_v30 = vmax.f32 %v1559_v21, %v3110_v14  ;;  %v1565_v39 = vsel %vm1374_vm3, %v2218_v49, -inf }
 0x15e   : > { %v2082_v57 = vpack.c.bf16 %v1660_v0, %v1660_v0  ;;  %v1627_v48 = vadd.f32 %v2825_v62, %v1528_v37  ;;  %v1566_v23 = vmax.f32 %v2794_v52, %v1565_v39  ;;  %v1547_v59 = vmax.f32 %v1545_v20, %v3111_v8 }
 0x15f   : > { %v2080_v54 = vpack.c.bf16 %v1658_v51, %v1658_v51  ;;  %v1661_v56 = vmax.f32 %v1629_v7, 0.0  ;;  %v1563_v10 = vmax.f32 %v1561_v30, %v1562_v13  ;;  %v1548_v15 = vsel %vm1374_vm3, %v1343_v46, -inf  ;;  %v3112_v51 = vld [vmem:[#allocation7_spill] sm:$0xff] }
 0x160   : > { %1821 = vst.msk [vmem:[%s2863_s26 + $0x58] sm:$0xf] %vm1798_vm4, %v2082_v57  ;;  %v1659_v32 = vmax.f32 %v1627_v48, 0.0  ;;  %v1549_v40 = vmax.f32 %v1547_v59, %v1548_v15  ;;  %v1551_v16 = vsel %vm1374_vm3, %v1090_v29, -inf  ;;  %v1568_v41 = vmax.f32 %v1566_v23, %v2820_v47 }
 0x161   : > { %1819 = vst.msk [vmem:[%s2863_s26 + $0x50] sm:$0xf] %vm1798_vm4, %v2080_v54  ;;  %v2083_v52 = vpack.c.bf16 %v1661_v56, %v1661_v56  ;;  %v1632_v11 = vadd.f32 %v2825_v62, %v1563_v10  ;;  %v1552_v1 = vmax.f32 %v2816_v61, %v1551_v16  ;;  %v1569_v26 = vsel %vm1374_vm3, %v2282_v6, -inf  ;;  %v2221_v2 = vpop.f32.mrb[60].mxu0  ;;  %v2285_v61 = vpop.f32.mrb[60].mxu1 }
 0x162   : > { %v2081_v33 = vpack.c.bf16 %v1659_v32, %v1659_v32  ;;  %v1630_v5 = vadd.f32 %v2825_v62, %v1549_v40  ;;  %v1570_v42 = vmax.f32 %v1568_v41, %v1569_v26  ;;  %v1555_v27 = vsel %vm1374_vm3, %v1346_v25, -inf  ;;  %v1103_v24 = vpop.f32.mrb[61].mxu0  ;;  %v1359_v4 = vpop.f32.mrb[61].mxu1 }
 0x163   : > { %1822 = vst.msk [vmem:[%s2863_s26 + $0x5c] sm:$0xf] %vm1798_vm4, %v2083_v52  ;;  %v1664_v47 = vmax.f32 %v1632_v11, 0.0  ;;  %v1554_v12 = vmax.f32 %v1552_v1, %v2831_v53  ;;  %v1586_v43 = vsel %vm1374_vm3, %v2221_v2, -inf  ;;  %v1572_v44 = vsel %vm1374_vm3, %v1103_v24, -inf  ;;  %v2222_v35 = vpop.f32.mrb[62].mxu0 }
 0x164   : > { %1820 = vst.msk [vmem:[%s2863_s26 + $0x54] sm:$0xf] %vm1798_vm4, %v2081_v33  ;;  %v1662_v34 = vmax.f32 %v1630_v5, 0.0  ;;  %v1633_v18 = vadd.f32 %v2825_v62, %v1570_v42  ;;  %v1587_v45 = vmax.f32 %v2835_v58, %v1586_v43  ;;  %v1573_v31 = vmax.f32 %v2840_v55, %v1572_v44  ;;  %v1106_v19 = vpop.f32.mrb[63].mxu0  ;;  %v2286_v28 = vpop.f32.mrb[62].mxu1 }
 0x165   : > { %v2086_v53 = vpack.c.bf16 %v1664_v47, %v1664_v47  ;;  %v1556_v3 = vmax.f32 %v1554_v12, %v1555_v27  ;;  %v1590_v50 = vsel %vm1374_vm3, %v2285_v61, -inf  ;;  %v1593_v21 = vsel %vm1374_vm3, %v2222_v35, -inf  ;;  %v1362_v58 = vpop.f32.mrb[63].mxu1 }
 0x166   : > { %v2084_v60 = vpack.c.bf16 %v1662_v34, %v1662_v34  ;;  %v1665_v49 = vmax.f32 %v1633_v18, 0.0  ;;  %v1589_v0 = vmax.f32 %v1587_v45, %v2846_v63  ;;  %v1594_v37 = vmax.f32 %v2853_v17, %v1593_v21 }
 0x167   : > { %1825 = vst.msk [vmem:[%s2863_s26 + $0x68] sm:$0xf] %vm1798_vm4, %v2086_v53  ;;  %v1631_v55 = vadd.f32 %v2825_v62, %v1556_v3  ;;  %v1575_v38 = vmax.f32 %v1573_v31, %v2882_v9  ;;  %v1576_v20 = vsel %vm1374_vm3, %v1359_v4, -inf  ;;  %v1579_v13 = vsel %vm1374_vm3, %v1106_v19, -inf }
 0x168   : > { %1823 = vst.msk [vmem:[%s2863_s26 + $0x60] sm:$0xf] %vm1798_vm4, %v2084_v60  ;;  %v2087_v46 = vpack.c.bf16 %v1665_v49, %v1665_v49  ;;  %v1591_v29 = vmax.f32 %v1589_v0, %v1590_v50  ;;  %v1580_v63 = vmax.f32 %v2886_v22, %v1579_v13  ;;  %v1596_v17 = vmax.f32 %v1594_v37, %v2974_v36 }
 0x169   : > { %v1581_v7 = vsel %vm1374_vm3, %v3112_v51, -inf  ;;  %v1663_v14 = vmax.f32 %v1631_v55, 0.0  ;;  %v1577_v30 = vmax.f32 %v1575_v38, %v1576_v20  ;;  %v1597_v9 = vsel %vm1374_vm3, %v2286_v28, -inf }
 0x16a   : > { %1826 = vst.msk [vmem:[%s2863_s26 + $0x6c] sm:$0xf] %vm1798_vm4, %v2087_v46  ;;  %v1636_v39 = vadd.f32 %v2825_v62, %v1591_v29  ;;  %v1598_v6 = vmax.f32 %v1596_v17, %v1597_v9  ;;  %v1582_v57 = vmax.f32 %v1580_v63, %v1581_v7  ;;  %v1583_v36 = vsel %vm1374_vm3, %v1362_v58, -inf }
 0x16b   : > { %v2085_v48 = vpack.c.bf16 %v1663_v14, %v1663_v14  ;;  %v1634_v22 = vadd.f32 %v2825_v62, %v1577_v30 }
 0x16c   : > { %v1668_v23 = vmax.f32 %v1636_v39, 0.0  ;;  %v1637_v8 = vadd.f32 %v2825_v62, %v1598_v6  ;;  %v1584_v59 = vmax.f32 %v1582_v57, %v1583_v36 }
 0x16d   : > { %1824 = vst.msk [vmem:[%s2863_s26 + $0x64] sm:$0xf] %vm1798_vm4, %v2085_v48  ;;  %v1666_v25 = vmax.f32 %v1634_v22, 0.0 }
 0x16e   : > { %v2090_v54 = vpack.c.bf16 %v1668_v23, %v1668_v23  ;;  %v1669_v56 = vmax.f32 %v1637_v8, 0.0  ;;  %v1635_v10 = vadd.f32 %v2825_v62, %v1584_v59 }
 0x16f   : > { %v2088_v15 = vpack.c.bf16 %v1666_v25, %v1666_v25 }
 0x170   : > { %1829 = vst.msk [vmem:[%s2863_s26 + $0x78] sm:$0xf] %vm1798_vm4, %v2090_v54  ;;  %v2091_v32 = vpack.c.bf16 %v1669_v56, %v1669_v56  ;;  %v1667_v40 = vmax.f32 %v1635_v10, 0.0 }
 0x171   : > { %1827 = vst.msk [vmem:[%s2863_s26 + $0x70] sm:$0xf] %vm1798_vm4, %v2088_v15 }
 0x172   : > { %1830 = vst.msk [vmem:[%s2863_s26 + $0x7c] sm:$0xf] %vm1798_vm4, %v2091_v32  ;;  %v2089_v16 = vpack.c.bf16 %v1667_v40, %v1667_v40 }
 0x174   : > { %1828 = vst.msk [vmem:[%s2863_s26 + $0x74] sm:$0xf] %vm1798_vm4, %v2089_v16 }
 0x175 PF: > { %s13_s12 = sadd.s32 1, %s2369_s12  }
 0x176   : > { %p10_p5 = scmp.ge.s32.totalorder %s13_s12, 4  }
 0x178   :  { %12 = sbr.rel (!%p10_p5) target bundleno = 1 (0x1), region = 62 }

// kernel: simple_cnn_forward.3
= control target key start
LH: loop header
LB: loop body
LE: loop exit
PB: predicated region body
PF: predicated region fallthrough
CT: control target
= control target key end

     0   :  { %v12710_v1 = vmov 0   ;;  %vm780_vm0 = vcmask 261120   ;;  %s12702_s0 = inlined_call_operand.vmem [shape: bf16[512,288], index: 0, kind: input, shape index: {}]   ;;  %s12703_s1 = inlined_call_operand.vmem [shape: bf16[288,64], index: 1, kind: input, shape index: {}]   ;;  %s12704_s2 = inlined_call_operand.vmem [shape: f32[1,64], index: 2, kind: input, shape index: {}]   ;;  %s12705_s3 = inlined_call_operand.vmem [shape: bf16[64,64,128], index: 3, kind: input, shape index: {}]   ;;  %s12706_s4 = inlined_call_operand.vmem [shape: f32[1,128], index: 4, kind: input, shape index: {}]   ;;  %s12707_s5 = inlined_call_operand.vmem [shape: bf16[128,384], index: 5, kind: input, shape index: {}]   ;;  %s12708_s6 = inlined_call_operand.vmem [shape: f32[1,384], index: 6, kind: input, shape index: {}]   ;;  %s12709_s7 = inlined_call_operand.hbm [shape: f32[2,384], index: 7, kind: output, shape index: {}]  }
   0x1   :  { %v9504_v0 = vld [vmem:[%s12703_s1] sm:$0xff]   ;;  %877 = vmatprep.subr.bf16.mxu0 %v12710_v1  ;;  %v9505_v2 = vld [vmem:[%s12703_s1 + $0x8] sm:$0xff]   ;;  %v9506_v3 = vld [vmem:[%s12703_s1 + $0x10] sm:$0xff]  }
   0x2   :  { %878 = vmatpush1.bf16.msra.mxu0 %v9504_v0  ;;  %v9507_v4 = vld [vmem:[%s12703_s1 + $0x18] sm:$0xff]   ;;  %v9508_v5 = vld [vmem:[%s12703_s1 + $0x20] sm:$0xff]   ;;  %v9520_v7 = vld [vmem:[%s12703_s1 + $0x88] sm:$0xff]  }
   0x3   :  { %879 = vmatprep.subr.bf16.mxu0 %v12710_v1  ;;  %v9518_v6 = vld [vmem:[%s12703_s1 + $0x80] sm:$0xff]   ;;  %v9509_v8 = vld [vmem:[%s12703_s1 + $0x28] sm:$0xff]   ;;  %v9510_v12 = vld [vmem:[%s12703_s1 + $0x30] sm:$0xff]  }
   0x4   :  { %8643 = vmatprep.subr.bf16.mxu1 %v9518_v6  ;;  %v9522_v9 = vld [vmem:[%s12702_s0 + $0x8] ss:$12 sps:$4 sm:$0xff]   ;;  %v9525_v10 = vld [vmem:[%s12702_s0 + $0x4] ss:$12 sps:$4 sm:$0xff]   ;;  %v9526_v11 = vld [vmem:[%s12702_s0 + $0x20] ss:$12 sps:$4 sm:$0xff]  }
   0x5   :  { %8644 = vmatpush3.bf16.msra.mxu1 %v9518_v6  ;;  %8647 = vmatprep.mubr.msk.bf16.mxu1 %vm780_vm0, %v9522_v9  ;;  %v9530_v13 = vld [vmem:[%s12702_s0 + $0x38] ss:$12 sps:$4 sm:$0xff]   ;;  %v9533_v15 = vld [vmem:[%s12702_s0 + $0x50] ss:$12 sps:$4 sm:$0xff]   ;;  %v9538_v16 = vld [vmem:[%s12702_s0 + $0x68] ss:$12 sps:$4 sm:$0xff]  }
   0x6   :  { %880 = vmatpush1.bf16.msra.mxu0 %v9505_v2  ;;  %8645 = vmatprep.subr.bf16.mxu1 %v9520_v7  ;;  %v9511_v14 = vld [vmem:[%s12703_s1 + $0x38] sm:$0xff]   ;;  %v9512_v17 = vld [vmem:[%s12703_s1 + $0x40] sm:$0xff]   ;;  %v9513_v18 = vld [vmem:[%s12703_s1 + $0x48] sm:$0xff]  }
   0x7   :  { %881 = vmatprep.subr.bf16.mxu0 %v12710_v1  ;;  %909 = vmatprep.mubr.bf16.mxu0 %v9525_v10  ;;  %v9541_v19 = vld [vmem:[%s12702_s0 + $0x80] ss:$12 sps:$4 sm:$0xff]   ;;  %v9546_v20 = vld [vmem:[%s12702_s0 + $0x98] ss:$12 sps:$4 sm:$0xff]   ;;  %v9514_v21 = vld [vmem:[%s12703_s1 + $0x50] sm:$0xff]  }
   0x8   :  { %v9515_v22 = vld [vmem:[%s12703_s1 + $0x58] sm:$0xff]   ;;  %v9554_v24 = vld [vmem:[%s12702_s0 + $0xc8] ss:$12 sps:$4 sm:$0xff]   ;;  %v9516_v25 = vld [vmem:[%s12703_s1 + $0x60] sm:$0xff]  }
   0x9   :  { %8646 = vmatpush3.bf16.msra.mxu1 %v9520_v7  ;;  %v9549_v23 = vld [vmem:[%s12702_s0 + $0xb0] ss:$12 sps:$4 sm:$0xff]   ;;  %v9517_v26 = vld [vmem:[%s12703_s1 + $0x68] sm:$0xff]   ;;  %v9562_v28 = vld [vmem:[%s12702_s0 + $0xf8] ss:$12 sps:$4 sm:$0xff]  }
   0xa   :  { %882 = vmatpush1.bf16.msra.mxu0 %v9506_v3  ;;  %v9557_v27 = vld [vmem:[%s12702_s0 + $0xe0] ss:$12 sps:$4 sm:$0xff]   ;;  %v9519_v29 = vld [vmem:[%s12703_s1 + $0x70] sm:$0xff]   ;;  %v9521_v30 = vld [vmem:[%s12703_s1 + $0x78] sm:$0xff]  }
   0xb   :  { %883 = vmatprep.subr.bf16.mxu0 %v12710_v1  ;;  %v9565_v31 = vld [vmem:[%s12702_s0 + $0x110] ss:$12 sps:$4 sm:$0xff]   ;;  %v9523_v32 = vld [vmem:[%s12702_s0] ss:$12 sps:$4 sm:$0xff]   ;;  %v9570_v33 = vld [vmem:[%s12702_s0 + $0x128] ss:$12 sps:$4 sm:$0xff]  }
   0xc   :  { %8648 = vmatmul.mubr.msk.bf16.vlgmr.msra.gmra.mrb[0].mxu1 %vm780_vm0, %v9526_v11  ;;  %v9527_v34 = vld [vmem:[%s12702_s0 + $0x1c] ss:$12 sps:$4 sm:$0xff]   ;;  %v9573_v35 = vld [vmem:[%s12702_s0 + $0x140] ss:$12 sps:$4 sm:$0xff]   ;;  %v9529_v36 = vld [vmem:[%s12702_s0 + $0x18] ss:$12 sps:$4 sm:$0xff]  }
   0xd   :  { %8651 = vmatprep.mubr.msk.bf16.mxu1 %vm780_vm0, %v9530_v13  ;;  %v9578_v37 = vld [vmem:[%s12702_s0 + $0x158] ss:$12 sps:$4 sm:$0xff]   ;;  %v9531_v38 = vld [vmem:[%s12702_s0 + $0x34] ss:$12 sps:$4 sm:$0xff]   ;;  %v9581_v39 = vld [vmem:[%s12702_s0 + $0x170] ss:$12 sps:$4 sm:$0xff]  }
   0xe   :  { %884 = vmatpush1.bf16.msra.mxu0 %v9507_v4  ;;  %v9534_v40 = vld [vmem:[%s12702_s0 + $0x30] ss:$12 sps:$4 sm:$0xff]   ;;  %v9586_v41 = vld [vmem:[%s12702_s0 + $0x188] ss:$12 sps:$4 sm:$0xff]   ;;  %v9535_v42 = vld [vmem:[%s12702_s0 + $0x4c] ss:$12 sps:$4 sm:$0xff]  }
   0xf   :  { %885 = vmatprep.subr.bf16.mxu0 %v12710_v1  ;;  %v9589_v43 = vld [vmem:[%s12702_s0 + $0x1a0] ss:$12 sps:$4 sm:$0xff]   ;;  %v9537_v44 = vld [vmem:[%s12702_s0 + $0x48] ss:$12 sps:$4 sm:$0xff]   ;;  %v9594_v45 = vld [vmem:[%s12702_s0 + $0x1b8] ss:$12 sps:$4 sm:$0xff]  }
  0x10   :  { %v9539_v46 = vld [vmem:[%s12702_s0 + $0x64] ss:$12 sps:$4 sm:$0xff]   ;;  %v9542_v48 = vld [vmem:[%s12702_s0 + $0x60] ss:$12 sps:$4 sm:$0xff]   ;;  %v9602_v49 = vld [vmem:[%s12702_s0 + $0x1e8] ss:$12 sps:$4 sm:$0xff]  }
  0x11   :  { %v9597_v47 = vld [vmem:[%s12702_s0 + $0x1d0] ss:$12 sps:$4 sm:$0xff]   ;;  %v9605_v51 = vld [vmem:[%s12702_s0 + $0x200] ss:$12 sps:$4 sm:$0xff]   ;;  %v9545_v52 = vld [vmem:[%s12702_s0 + $0x78] ss:$12 sps:$4 sm:$0xff]  }
  0x12   :  { %886 = vmatpush1.bf16.msra.mxu0 %v9508_v5  ;;  %v9543_v50 = vld [vmem:[%s12702_s0 + $0x7c] ss:$12 sps:$4 sm:$0xff]   ;;  %v9547_v53 = vld [vmem:[%s12702_s0 + $0x94] ss:$12 sps:$4 sm:$0xff]   ;;  %v9610_v54 = vld [vmem:[%s12702_s0 + $0x218] ss:$12 sps:$4 sm:$0xff]  }
  0x13   :  { %887 = vmatprep.subr.bf16.mxu0 %v12710_v1  ;;  %v9613_v55 = vld [vmem:[%s12702_s0 + $0x230] ss:$12 sps:$4 sm:$0xff]   ;;  %v9551_v57 = vld [vmem:[%s12702_s0 + $0xac] ss:$12 sps:$4 sm:$0xff]   ;;  %v9553_v58 = vld [vmem:[%s12702_s0 + $0xa8] ss:$12 sps:$4 sm:$0xff]  }
  0x14   :  { %8652 = vmatmul.mubr.msk.bf16.gmra.mrb[4].mxu1 %vm780_vm0, %v9533_v15  ;;  %v9550_v56 = vld [vmem:[%s12702_s0 + $0x90] ss:$12 sps:$4 sm:$0xff]   ;;  %v9618_v60 = vld [vmem:[%s12702_s0 + $0x248] ss:$12 sps:$4 sm:$0xff]   ;;  %v9621_v61 = vld [vmem:[%s12702_s0 + $0x260] ss:$12 sps:$4 sm:$0xff]  }
  0x15   :  { %8655 = vmatprep.mubr.msk.bf16.mxu1 %vm780_vm0, %v9538_v16  ;;  %v9555_v59 = vld [vmem:[%s12702_s0 + $0xc4] ss:$12 sps:$4 sm:$0xff]   ;;  %v9558_v62 = vld [vmem:[%s12702_s0 + $0xc0] ss:$12 sps:$4 sm:$0xff]   ;;  %v9559_v63 = vld [vmem:[%s12702_s0 + $0xdc] ss:$12 sps:$4 sm:$0xff]  }
  0x16   :  { %888 = vmatpush1.bf16.msra.mxu0 %v9509_v8  ;;  %v9561_v0 = vld [vmem:[%s12702_s0 + $0xd8] ss:$12 sps:$4 sm:$0xff]   ;;  %v9563_v2 = vld [vmem:[%s12702_s0 + $0xf4] ss:$12 sps:$4 sm:$0xff]   ;;  %v9629_v4 = vld [vmem:[%s12702_s0 + $0x290] ss:$12 sps:$4 sm:$0xff]  }
  0x17   :  { %889 = vmatprep.subr.bf16.mxu0 %v12710_v1  ;;  %v9626_v3 = vld [vmem:[%s12702_s0 + $0x278] ss:$12 sps:$4 sm:$0xff]   ;;  %v9566_v5 = vld [vmem:[%s12702_s0 + $0xf0] ss:$12 sps:$4 sm:$0xff]   ;;  %v9569_v7 = vld [vmem:[%s12702_s0 + $0x108] ss:$12 sps:$4 sm:$0xff]  }
  0x18   :  { %v9567_v6 = vld [vmem:[%s12702_s0 + $0x10c] ss:$12 sps:$4 sm:$0xff]   ;;  %v9571_v8 = vld [vmem:[%s12702_s0 + $0x124] ss:$12 sps:$4 sm:$0xff]   ;;  %v9634_v9 = vld [vmem:[%s12702_s0 + $0x2a8] ss:$12 sps:$4 sm:$0xff]  }
  0x19   :  { %v9574_v10 = vld [vmem:[%s12702_s0 + $0x120] ss:$12 sps:$4 sm:$0xff]   ;;  %v9577_v13 = vld [vmem:[%s12702_s0 + $0x138] ss:$12 sps:$4 sm:$0xff]   ;;  %v9582_v15 = vld [vmem:[%s12702_s0 + $0x150] ss:$12 sps:$4 sm:$0xff]  }
  0x1a   :  { %890 = vmatpush1.bf16.msra.mxu0 %v9510_v12  ;;  %v9635_v11 = vld [vmem:[%s12702_s0 + $0x2c0] ss:$12 sps:$4 sm:$0xff]   ;;  %v9575_v12 = vld [vmem:[%s12702_s0 + $0x13c] ss:$12 sps:$4 sm:$0xff]   ;;  %v9642_v16 = vld [vmem:[%s12702_s0 + $0x2d8] ss:$12 sps:$4 sm:$0xff]  }
  0x1b   :  { %891 = vmatprep.subr.bf16.mxu0 %v12710_v1 }
  0x1c   :  { %8656 = vmatmul.mubr.msk.bf16.gmra.mrb[8].mxu1 %vm780_vm0, %v9541_v19  ;;  %v9585_v19 = vld [vmem:[%s12702_s0 + $0x168] ss:$12 sps:$4 sm:$0xff]  }
  0x1d   :  { %8659 = vmatprep.mubr.msk.bf16.mxu1 %vm780_vm0, %v9546_v20  ;;  %v9587_v20 = vld [vmem:[%s12702_s0 + $0x184] ss:$12 sps:$4 sm:$0xff]  }
  0x1e   :  { %892 = vmatpush1.bf16.msra.mxu0 %v9511_v14  ;;  %v9579_v14 = vld [vmem:[%s12702_s0 + $0x154] ss:$12 sps:$4 sm:$0xff]  }
  0x1f   :  { %893 = vmatprep.subr.bf16.mxu0 %v12710_v1 }
  0x22   :  { %894 = vmatpush1.bf16.msra.mxu0 %v9512_v17  ;;  %v9583_v17 = vld [vmem:[%s12702_s0 + $0x16c] ss:$12 sps:$4 sm:$0xff]  }
  0x23   :  { %895 = vmatprep.subr.bf16.mxu0 %v12710_v1 }
  0x24   :  { %8660 = vmatmul.mubr.msk.bf16.gmra.mrb[12].mxu1 %vm780_vm0, %v9549_v23  ;;  %v9593_v23 = vld [vmem:[%s12702_s0 + $0x198] ss:$12 sps:$4 sm:$0xff]  }
  0x25   :  { %8663 = vmatprep.mubr.msk.bf16.mxu1 %vm780_vm0, %v9554_v24  ;;  %v9595_v24 = vld [vmem:[%s12702_s0 + $0x1b4] ss:$12 sps:$4 sm:$0xff]  }
  0x26   :  { %896 = vmatpush1.bf16.msra.mxu0 %v9513_v18  ;;  %v9645_v18 = vld [vmem:[%s12702_s0 + $0x2f0] ss:$12 sps:$4 sm:$0xff]  }
  0x27   :  { %897 = vmatprep.subr.bf16.mxu0 %v12710_v1 }
  0x2a   :  { %898 = vmatpush1.bf16.msra.mxu0 %v9514_v21  ;;  %v9590_v21 = vld [vmem:[%s12702_s0 + $0x180] ss:$12 sps:$4 sm:$0xff]  }
  0x2b   :  { %899 = vmatprep.subr.bf16.mxu0 %v12710_v1 }
  0x2c   :  { %8664 = vmatmul.mubr.msk.bf16.gmra.mrb[16].mxu1 %vm780_vm0, %v9557_v27  ;;  %v9601_v27 = vld [vmem:[%s12702_s0 + $0x1c8] ss:$12 sps:$4 sm:$0xff]  }
  0x2d   :  { %8667 = vmatprep.mubr.msk.bf16.mxu1 %vm780_vm0, %v9562_v28  ;;  %v9603_v28 = vld [vmem:[%s12702_s0 + $0x1e4] ss:$12 sps:$4 sm:$0xff]  }
  0x2e   :  { %900 = vmatpush1.bf16.msra.mxu0 %v9515_v22  ;;  %v9591_v22 = vld [vmem:[%s12702_s0 + $0x19c] ss:$12 sps:$4 sm:$0xff]  }
  0x2f   :  { %901 = vmatprep.subr.bf16.mxu0 %v12710_v1 }
  0x32   :  { %902 = vmatpush1.bf16.msra.mxu0 %v9516_v25  ;;  %v9598_v25 = vld [vmem:[%s12702_s0 + $0x1b0] ss:$12 sps:$4 sm:$0xff]  }
  0x33   :  { %903 = vmatprep.subr.bf16.mxu0 %v12710_v1 }
  0x34   :  { %8668 = vmatmul.mubr.msk.bf16.gmra.mrb[20].mxu1 %vm780_vm0, %v9565_v31  ;;  %v9609_v31 = vld [vmem:[%s12702_s0 + $0x1f8] ss:$12 sps:$4 sm:$0xff]  }
  0x35   :  { %8671 = vmatprep.mubr.msk.bf16.mxu1 %vm780_vm0, %v9570_v33  ;;  %v9614_v33 = vld [vmem:[%s12702_s0 + $0x210] ss:$12 sps:$4 sm:$0xff]  }
  0x36   :  { %904 = vmatpush1.bf16.msra.mxu0 %v9517_v26  ;;  %v9599_v26 = vld [vmem:[%s12702_s0 + $0x1cc] ss:$12 sps:$4 sm:$0xff]  }
  0x37   :  { %905 = vmatprep.subr.bf16.mxu0 %v12710_v1 }
  0x3a   :  { %906 = vmatpush1.bf16.msra.mxu0 %v9519_v29  ;;  %v9606_v29 = vld [vmem:[%s12702_s0 + $0x1e0] ss:$12 sps:$4 sm:$0xff]  }
  0x3b   :  { %907 = vmatprep.subr.bf16.mxu0 %v12710_v1 }
  0x3c   :  { %8672 = vmatmul.mubr.msk.bf16.gmra.mrb[24].mxu1 %vm780_vm0, %v9573_v35  ;;  %v9615_v35 = vld [vmem:[%s12702_s0 + $0x22c] ss:$12 sps:$4 sm:$0xff]  }
  0x3d   :  { %8675 = vmatprep.mubr.msk.bf16.mxu1 %vm780_vm0, %v9578_v37 }
  0x3e   :  { %908 = vmatpush1.bf16.msra.mxu0 %v9521_v30  ;;  %v9607_v30 = vld [vmem:[%s12702_s0 + $0x1fc] ss:$12 sps:$4 sm:$0xff]  }
  0x41   :  { %910 = vmatmul.mubr.bf16.vlgmr.msra.gmra.mrb[0].mxu0 %v9523_v32  ;;  %v9611_v32 = vld [vmem:[%s12702_s0 + $0x214] ss:$12 sps:$4 sm:$0xff]  }
  0x42   :  { %917 = vmatprep.mubr.bf16.mxu0 %v9527_v34 }
  0x44   :  { %8676 = vmatmul.mubr.msk.bf16.gmra.mrb[28].mxu1 %vm780_vm0, %v9581_v39  ;;  %v9617_v39 = vld [vmem:[%s12702_s0 + $0x228] ss:$12 sps:$4 sm:$0xff]  }
  0x45   :  { %8679 = vmatprep.mubr.msk.bf16.mxu1 %vm780_vm0, %v9586_v41  ;;  %v9619_v41 = vld [vmem:[%s12702_s0 + $0x244] ss:$12 sps:$4 sm:$0xff]  }
  0x49   :  { %918 = vmatmul.mubr.bf16.gmra.mrb[4].mxu0 %v9529_v36 }
  0x4a   :  { %925 = vmatprep.mubr.bf16.mxu0 %v9531_v38 }
  0x4c   :  { %8680 = vmatmul.mubr.msk.bf16.gmra.mrb[32].mxu1 %vm780_vm0, %v9589_v43 }
  0x4d   :  { %8683 = vmatprep.mubr.msk.bf16.mxu1 %vm780_vm0, %v9594_v45  ;;  %v9622_v45 = vld [vmem:[%s12702_s0 + $0x240] ss:$12 sps:$4 sm:$0xff]  }
  0x51   :  { %926 = vmatmul.mubr.bf16.gmra.mrb[8].mxu0 %v9534_v40 }
  0x52   :  { %933 = vmatprep.mubr.bf16.mxu0 %v9535_v42 }
  0x54   :  { %8684 = vmatmul.mubr.msk.bf16.gmra.mrb[36].mxu1 %vm780_vm0, %v9597_v47  ;;  %v9623_v47 = vld [vmem:[%s12702_s0 + $0x25c] ss:$12 sps:$4 sm:$0xff]  }
  0x55   :  { %8687 = vmatprep.mubr.msk.bf16.mxu1 %vm780_vm0, %v9602_v49 }
  0x59   :  { %934 = vmatmul.mubr.bf16.gmra.mrb[12].mxu0 %v9537_v44 }
  0x5a   :  { %941 = vmatprep.mubr.bf16.mxu0 %v9539_v46 }
  0x5c   :  { %8688 = vmatmul.mubr.msk.bf16.gmra.mrb[40].mxu1 %vm780_vm0, %v9605_v51  ;;  %v9625_v51 = vld [vmem:[%s12702_s0 + $0x258] ss:$12 sps:$4 sm:$0xff]  }
  0x5d   :  { %8691 = vmatprep.mubr.msk.bf16.mxu1 %vm780_vm0, %v9610_v54 }
  0x61   :  { %942 = vmatmul.mubr.bf16.gmra.mrb[16].mxu0 %v9542_v48 }
  0x62   :  { %949 = vmatprep.mubr.bf16.mxu0 %v9543_v50 }
  0x64   :  { %8692 = vmatmul.mubr.msk.bf16.gmra.mrb[44].mxu1 %vm780_vm0, %v9613_v55 }
  0x65   :  { %8695 = vmatprep.mubr.msk.bf16.mxu1 %vm780_vm0, %v9618_v60 }
  0x69   :  { %950 = vmatmul.mubr.bf16.gmra.mrb[20].mxu0 %v9545_v52 }
  0x6a   :  { %957 = vmatprep.mubr.bf16.mxu0 %v9547_v53  ;;  %v9627_v53 = vld [vmem:[%s12702_s0 + $0x274] ss:$12 sps:$4 sm:$0xff]  }
  0x6c   :  { %8696 = vmatmul.mubr.msk.bf16.gmra.mrb[48].mxu1 %vm780_vm0, %v9621_v61 }
  0x6d   :  { %8699 = vmatprep.mubr.msk.bf16.mxu1 %vm780_vm0, %v9626_v3 }
  0x71   :  { %958 = vmatmul.mubr.bf16.gmra.mrb[24].mxu0 %v9550_v56 }
  0x72   :  { %965 = vmatprep.mubr.bf16.mxu0 %v9551_v57  ;;  %v9630_v57 = vld [vmem:[%s12702_s0 + $0x270] ss:$12 sps:$4 sm:$0xff]  }
  0x74   :  { %8700 = vmatmul.mubr.msk.bf16.gmra.mrb[52].mxu1 %vm780_vm0, %v9629_v4 }
  0x75   :  { %8703 = vmatprep.mubr.msk.bf16.mxu1 %vm780_vm0, %v9634_v9 }
  0x79   :  { %966 = vmatmul.mubr.bf16.gmra.mrb[28].mxu0 %v9553_v58 }
  0x7a   :  { %973 = vmatprep.mubr.bf16.mxu0 %v9555_v59  ;;  %v9631_v59 = vld [vmem:[%s12702_s0 + $0x28c] ss:$12 sps:$4 sm:$0xff]  }
  0x7c   :  { %8704 = vmatmul.mubr.msk.bf16.gmra.mrb[56].mxu1 %vm780_vm0, %v9635_v11 }
  0x7d   :  { %8707 = vmatprep.mubr.msk.bf16.mxu1 %vm780_vm0, %v9642_v16 }
  0x81   :  { %974 = vmatmul.mubr.bf16.gmra.mrb[32].mxu0 %v9558_v62 }
  0x82   :  { %981 = vmatprep.mubr.bf16.mxu0 %v9559_v63 }
  0x84   :  { %8708 = vmatmul.mubr.msk.bf16.gmra.mrb[60].mxu1 %vm780_vm0, %v9645_v18 }
  0x89   :  { %982 = vmatmul.mubr.bf16.gmra.mrb[36].mxu0 %v9561_v0 }
  0x8a   :  { %989 = vmatprep.mubr.bf16.mxu0 %v9563_v2 }
  0x91   :  { %990 = vmatmul.mubr.bf16.gmra.mrb[40].mxu0 %v9566_v5 }
  0x92   :  { %997 = vmatprep.mubr.bf16.mxu0 %v9567_v6 }
  0x99   :  { %998 = vmatmul.mubr.bf16.gmra.mrb[44].mxu0 %v9569_v7 }
  0x9a   :  { %1005 = vmatprep.mubr.bf16.mxu0 %v9571_v8 }
  0xa1   :  { %1006 = vmatmul.mubr.bf16.gmra.mrb[48].mxu0 %v9574_v10 }
  0xa2   :  { %1013 = vmatprep.mubr.bf16.mxu0 %v9575_v12 }
  0xa9   :  { %1014 = vmatmul.mubr.bf16.gmra.mrb[52].mxu0 %v9577_v13 }
  0xaa   :  { %1021 = vmatprep.mubr.bf16.mxu0 %v9579_v14 }
  0xb1   :  { %1022 = vmatmul.mubr.bf16.gmra.mrb[56].mxu0 %v9582_v15 }
  0xb2   :  { %1029 = vmatprep.mubr.bf16.mxu0 %v9583_v17 }
  0xb9   :  { %1030 = vmatmul.mubr.bf16.gmra.mrb[60].mxu0 %v9585_v19 }
  0xba   :  { %1037 = vmatprep.mubr.bf16.mxu0 %v9587_v20 }
  0xc1   :  { %1038 = vmatmul.mubr.bf16.gmra.mrb[64].mxu0 %v9590_v21 }
  0xc2   :  { %1045 = vmatprep.mubr.bf16.mxu0 %v9591_v22 }
  0xc9   :  { %1046 = vmatmul.mubr.bf16.gmra.mrb[68].mxu0 %v9593_v23 }
  0xca   :  { %1053 = vmatprep.mubr.bf16.mxu0 %v9595_v24 }
  0xd1   :  { %1054 = vmatmul.mubr.bf16.gmra.mrb[72].mxu0 %v9598_v25 }
  0xd2   :  { %1061 = vmatprep.mubr.bf16.mxu0 %v9599_v26 }
  0xd9   :  { %1062 = vmatmul.mubr.bf16.gmra.mrb[76].mxu0 %v9601_v27 }
  0xda   :  { %1069 = vmatprep.mubr.bf16.mxu0 %v9603_v28 }
  0xdf   :  { %v8649_v34 = vpop.f32.mrb[0].mxu1 }
  0xe0   :  { %v1200_v36 = vpop.f32.mrb[1].mxu1 }
  0xe1   :  { %1070 = vmatmul.mubr.bf16.gmra.mrb[80].mxu0 %v9606_v29  ;;  %v10346_v37 = vpop.f32.mrb[2].mxu1 }
  0xe2   :  { %1077 = vmatprep.mubr.bf16.mxu0 %v9607_v30  ;;  %v1203_v38 = vpop.f32.mrb[3].mxu1 }
  0xe7   :  { %v10351_v40 = vpop.f32.mrb[4].mxu1 }
  0xe8   :  { %v10356_v42 = vpop.f32.mrb[5].mxu1 }
  0xe9   :  { %1078 = vmatmul.mubr.bf16.gmra.mrb[84].mxu0 %v9609_v31  ;;  %v10358_v43 = vpop.f32.mrb[6].mxu1 }
  0xea   :  { %1085 = vmatprep.mubr.bf16.mxu0 %v9611_v32  ;;  %v10360_v44 = vpop.f32.mrb[7].mxu1 }
  0xef   :  { %v10365_v46 = vpop.f32.mrb[8].mxu1 }
  0xf0   :  { %v10370_v48 = vpop.f32.mrb[9].mxu1 }
  0xf1   :  { %1086 = vmatmul.mubr.bf16.gmra.mrb[88].mxu0 %v9614_v33  ;;  %v10372_v49 = vpop.f32.mrb[10].mxu1 }
  0xf2   :  { %1093 = vmatprep.mubr.bf16.mxu0 %v9615_v35  ;;  %v10374_v50 = vpop.f32.mrb[11].mxu1 }
  0xf7   :  { %v10379_v52 = vpop.f32.mrb[12].mxu1 }
  0xf8   :  { %v10384_v54 = vpop.f32.mrb[13].mxu1 }
  0xf9   :  { %1094 = vmatmul.mubr.bf16.gmra.mrb[92].mxu0 %v9617_v39  ;;  %v10386_v55 = vpop.f32.mrb[14].mxu1 }
  0xfa   :  { %1101 = vmatprep.mubr.bf16.mxu0 %v9619_v41  ;;  %v10388_v56 = vpop.f32.mrb[15].mxu1 }
  0xff   :  { %v10393_v58 = vpop.f32.mrb[16].mxu1 }
 0x100   :  { %v10398_v60 = vpop.f32.mrb[17].mxu1 }
 0x101   :  { %1102 = vmatmul.mubr.bf16.gmra.mrb[96].mxu0 %v9622_v45  ;;  %v10400_v61 = vpop.f32.mrb[18].mxu1 }
 0x102   :  { %1109 = vmatprep.mubr.bf16.mxu0 %v9623_v47  ;;  %v10402_v62 = vpop.f32.mrb[19].mxu1 }
 0x107   :  { %v10404_v63 = vpop.f32.mrb[20].mxu1 }
 0x108   :  { %v10406_v2 = vpop.f32.mrb[21].mxu1 }
 0x109   :  { %1110 = vmatmul.mubr.bf16.gmra.mrb[100].mxu0 %v9625_v51 }
 0x10a   :  { %1117 = vmatprep.mubr.bf16.mxu0 %v9627_v53 }
 0x111   :  { %1118 = vmatmul.mubr.bf16.gmra.mrb[104].mxu0 %v9630_v57 }
 0x112   :  { %1125 = vmatprep.mubr.bf16.mxu0 %v9631_v59 }
 0x114   :  { %v911_v0 = vpop.f32.mrb[0].mxu0 }
 0x115   :  { %12 = vsyncpa [#allocation4], 0  ;;  %v10408_v3 = vadd.f32 %v1200_v36, %v911_v0  ;;  %v913_v4 = vpop.f32.mrb[1].mxu0  ;;  %v9633_v5 = vld [vmem:[%s12702_s0 + $0x288] ss:$12 sps:$4 sm:$0xff]   ;;  %v10413_v6 = vpop.f32.mrb[22].mxu1 }
 0x116   :  { %v914_v7 = vpop.f32.mrb[2].mxu0  ;;  %v9636_v8 = vld [vmem:[%s12702_s0 + $0x2a4] ss:$12 sps:$4 sm:$0xff]   ;;  %v10418_v9 = vpop.f32.mrb[23].mxu1  ;;  %v12731_v14 = vmov 0.0   ;;  %vm1455_vm1 = vcmask 523264  }
 0x117   :  { %v10420_v10 = vadd.f32 %v1203_v38, %v914_v7  ;;  %v916_v11 = vpop.f32.mrb[3].mxu0  ;;  %v9650_v12 = vld [vmem:[%s12705_s3 + $0x20] sm:$0xff]   ;;  %v10425_v13 = vpop.f32.mrb[24].mxu1  ;;  %8711 = vmatprep.subr.bf16.mxu1 %v12731_v14  ;;  %8855 = vmatprep.subr.bf16.mxu0 %v12731_v14  ;;  %v9639_v22 = vld [vmem:[%s12702_s0 + $0x2bc] ss:$12 sps:$4 sm:$0xff]   ;;  %vm9964_vm2 = vmmov 0  }
 0x118   :  { %v10429_v16 = vpop.f32.mrb[25].mxu1  ;;  %8712 = vmatpush3.bf16.msra.mxu1 %v9650_v12  ;;  %v9638_v19 = vld [vmem:[%s12702_s0 + $0x2a0] ss:$12 sps:$4 sm:$0xff]   ;;  %v9641_v31 = vld [vmem:[%s12702_s0 + $0x2b8] ss:$12 sps:$4 sm:$0xff]   ;;  %8719 = vmatprep.mubr.msk.bf16.mxu1 %vm9964_vm2, %v12731_v14  ;;  %vm1647_vm3 = vcmask 1041409  }
 0x119   :  { %1126 = vmatmul.mubr.bf16.gmra.mrb[108].mxu0 %v9633_v5  ;;  %v10436_v20 = vpop.f32.mrb[26].mxu1  ;;  %8713 = vmatprep.subr.bf16.mxu1 %v12731_v14  ;;  %v9646_v47 = vld [vmem:[%s12702_s0 + $0x2d0] ss:$12 sps:$4 sm:$0xff]   ;;  %v9647_v53 = vld [vmem:[%s12702_s0 + $0x2ec] ss:$12 sps:$4 sm:$0xff]  }
 0x11a   :  { %1133 = vmatprep.mubr.bf16.mxu0 %v9636_v8  ;;  %v10442_v23 = vpop.f32.mrb[27].mxu1  ;;  %v9649_v11 = vld [vmem:[%s12702_s0 + $0x2e8] ss:$12 sps:$4 sm:$0xff]  }
 0x11b   :  { %v10447_v26 = vpop.f32.mrb[28].mxu1 }
 0x11c   :  { %v919_v15 = vpop.f32.mrb[4].mxu0  ;;  %v10449_v28 = vpop.f32.mrb[29].mxu1 }
 0x11d   :  { %v10431_v17 = vadd.f32 %v8649_v34, %v919_v15  ;;  %v921_v18 = vpop.f32.mrb[5].mxu0  ;;  %v10457_v32 = vpop.f32.mrb[30].mxu1  ;;  %v9643_v34 = vld [vmem:[%s12702_s0 + $0x2d4] ss:$12 sps:$4 sm:$0xff]  }
 0x11e   :  { %v922_v21 = vpop.f32.mrb[6].mxu0  ;;  %v10462_v35 = vpop.f32.mrb[31].mxu1 }
 0x11f   :  { %v10445_v24 = vadd.f32 %v10346_v37, %v922_v21  ;;  %v924_v25 = vpop.f32.mrb[7].mxu0  ;;  %v10467_v38 = vpop.f32.mrb[32].mxu1 }
 0x120   :  { %v10469_v41 = vpop.f32.mrb[33].mxu1 }
 0x121   :  { %1134 = vmatmul.mubr.bf16.gmra.mrb[112].mxu0 %v9638_v19  ;;  %v10477_v51 = vpop.f32.mrb[34].mxu1  ;;  %v10505_v19 = vsel %vm1455_vm1, %v10408_v3, -inf }
 0x122   :  { %1141 = vmatprep.mubr.bf16.mxu0 %v9639_v22  ;;  %v10482_v57 = vpop.f32.mrb[35].mxu1 }
 0x124   :  { %v927_v27 = vpop.f32.mrb[8].mxu0 }
 0x125   :  { %v10452_v29 = vadd.f32 %v10356_v42, %v927_v27  ;;  %v929_v30 = vpop.f32.mrb[9].mxu0  ;;  %v10515_v27 = vsel %vm1455_vm1, %v10420_v10, -inf }
 0x126   :  { %v930_v33 = vpop.f32.mrb[10].mxu0 }
 0x127   :  { %v10465_v36 = vadd.f32 %v10360_v44, %v930_v33  ;;  %v932_v37 = vpop.f32.mrb[11].mxu0  ;;  %v10490_v4 = vpop.f32.mrb[36].mxu1 }
 0x128   :  { %v10492_v7 = vpop.f32.mrb[37].mxu1 }
 0x129   :  { %1142 = vmatmul.mubr.bf16.gmra.mrb[116].mxu0 %v9641_v31  ;;  %v10499_v12 = vpop.f32.mrb[38].mxu1 }
 0x12a   :  { %1149 = vmatprep.mubr.bf16.mxu0 %v9643_v34  ;;  %v10501_v18 = vpop.f32.mrb[39].mxu1 }
 0x12c   :  { %v935_v39 = vpop.f32.mrb[12].mxu0 }
 0x12d   :  { %v10472_v42 = vadd.f32 %v10351_v40, %v935_v39  ;;  %v937_v45 = vpop.f32.mrb[13].mxu0  ;;  %v9651_v40 = vld [vmem:[%s12705_s3 + $0x28] sm:$0xff]  }
 0x12e   :  { %v938_v44 = vpop.f32.mrb[14].mxu0  ;;  %8714 = vmatpush3.bf16.msra.mxu1 %v9651_v40 }
 0x12f   :  { %v10485_v59 = vadd.f32 %v10358_v43, %v938_v44  ;;  %v940_v0 = vpop.f32.mrb[15].mxu0  ;;  %8715 = vmatprep.subr.bf16.mxu1 %v12731_v14  ;;  %v10522_v31 = vpop.f32.mrb[40].mxu1 }
 0x130   :  { %v10524_v34 = vpop.f32.mrb[41].mxu1 }
 0x131   :  { %1150 = vmatmul.mubr.bf16.gmra.mrb[120].mxu0 %v9646_v47  ;;  %v10527_v39 = vpop.f32.mrb[42].mxu1  ;;  %v10533_v47 = vsel %vm1455_vm1, %v10431_v17, -inf }
 0x132   :  { %1157 = vmatprep.mubr.bf16.mxu0 %v9647_v53  ;;  %v10529_v10 = vpop.f32.mrb[43].mxu1 }
 0x134   :  { %v943_v5 = vpop.f32.mrb[16].mxu0 }
 0x135   :  { %v1233_v8 = vadd.f32 %v10370_v48, %v943_v5  ;;  %v945_v43 = vpop.f32.mrb[17].mxu0 }
 0x136   :  { %v946_v15 = vpop.f32.mrb[18].mxu0 }
 0x137   :  { %v10508_v21 = vsel %vm1455_vm1, %v1233_v8, -inf  ;;  %v1236_v22 = vadd.f32 %v10374_v50, %v946_v15  ;;  %v948_v48 = vpop.f32.mrb[19].mxu0  ;;  %v10544_v43 = vpop.f32.mrb[44].mxu1 }
 0x138   :  { %v1458_v25 = vmax.f32 %v10505_v19, %v10508_v21  ;;  %v10546_v17 = vpop.f32.mrb[45].mxu1 }
 0x139   :  { %v10518_v30 = vsel %vm1455_vm1, %v1236_v22, -inf  ;;  %1158 = vmatmul.mubr.bf16.gmra.mrb[124].mxu0 %v9649_v11  ;;  %v10549_v48 = vpop.f32.mrb[46].mxu1 }
 0x13a   :  { %v1465_v3 = vmax.f32 %v10515_v27, %v10518_v30  ;;  %8863 = vmatprep.mubr.msk.bf16.mxu0 %vm9964_vm2, %v12731_v14 }
 0x13c   :  { %v951_v33 = vpop.f32.mrb[20].mxu0 }
 0x13d   :  { %v1241_v50 = vadd.f32 %v10365_v46, %v951_v33  ;;  %v953_v37 = vpop.f32.mrb[21].mxu0  ;;  %v1477_v46 = vsel %vm1455_vm1, %v10445_v24, -inf  ;;  %v10551_v33 = vpop.f32.mrb[47].mxu1 }
 0x13e   :  { %v954_v45 = vpop.f32.mrb[22].mxu0 }
 0x13f   :  { %v10536_v44 = vsel %vm1455_vm1, %v1241_v50, -inf  ;;  %v1244_v53 = vadd.f32 %v10372_v49, %v954_v45  ;;  %v956_v0 = vpop.f32.mrb[23].mxu0  ;;  %v1484_v50 = vsel %vm1455_vm1, %v10452_v29, -inf  ;;  %v1498_v29 = vsel %vm1455_vm1, %v10472_v42, -inf  ;;  %v9653_v42 = vld [vmem:[%s12705_s3 + $0x30] sm:$0xff]  }
 0x140   :  { %v1472_v40 = vmax.f32 %v10533_v47, %v10536_v44  ;;  %v1491_v44 = vsel %vm1455_vm1, %v10465_v36, -inf  ;;  %v9652_v36 = vld [vmem:[%s12705_s3 + $0x180] sm:$0xff]   ;;  %8716 = vmatpush3.bf16.msra.mxu1 %v9653_v42 }
 0x141   :  { %v1478_v5 = vsel %vm1455_vm1, %v1244_v53, -inf  ;;  %8856 = vmatpush3.bf16.msra.mxu0 %v9652_v36  ;;  %8717 = vmatprep.subr.bf16.mxu1 %v12731_v14 }
 0x142   :  { %v1479_v8 = vmax.f32 %v1477_v46, %v1478_v5  ;;  %8857 = vmatprep.subr.bf16.mxu0 %v12731_v14 }
 0x144   :  { %v959_v11 = vpop.f32.mrb[24].mxu0 }
 0x145   :  { %v1249_v15 = vadd.f32 %v10384_v54, %v959_v11  ;;  %v961_v22 = vpop.f32.mrb[25].mxu0 }
 0x146   :  { %v962_v49 = vpop.f32.mrb[26].mxu0 }
 0x147   :  { %v1485_v24 = vsel %vm1455_vm1, %v1249_v15, -inf  ;;  %v1252_v37 = vadd.f32 %v10388_v56, %v962_v49  ;;  %v964_v45 = vpop.f32.mrb[27].mxu0 }
 0x148   :  { %v1486_v47 = vmax.f32 %v1484_v50, %v1485_v24  ;;  %v1505_v50 = vsel %vm1455_vm1, %v10485_v59, -inf }
 0x149   :  { %v1492_v54 = vsel %vm1455_vm1, %v1252_v37, -inf  ;;  %v10574_v37 = vpop.f32.mrb[48].mxu1 }
 0x14a   :  { %v1493_v53 = vmax.f32 %v1491_v44, %v1492_v54  ;;  %v10577_v45 = vpop.f32.mrb[49].mxu1 }
 0x14b   :  { %v10580_v59 = vpop.f32.mrb[50].mxu1 }
 0x14c   :  { %v967_v0 = vpop.f32.mrb[28].mxu0 }
 0x14d   :  { %v1257_v46 = vadd.f32 %v10379_v52, %v967_v0  ;;  %v969_v5 = vpop.f32.mrb[29].mxu0 }
 0x14e   :  { %v970_v11 = vpop.f32.mrb[30].mxu0 }
 0x14f   :  { %v1499_v15 = vsel %vm1455_vm1, %v1257_v46, -inf  ;;  %v1260_v56 = vadd.f32 %v10386_v55, %v970_v11  ;;  %v972_v22 = vpop.f32.mrb[31].mxu0  ;;  %v10583_v46 = vpop.f32.mrb[51].mxu1 }
 0x150   :  { %v1500_v49 = vmax.f32 %v1498_v29, %v1499_v15 }
 0x151   :  { %v1506_v52 = vsel %vm1455_vm1, %v1260_v56, -inf }
 0x152   :  { %v1507_v24 = vmax.f32 %v1505_v50, %v1506_v52 }
 0x154   :  { %v975_v55 = vpop.f32.mrb[32].mxu0 }
 0x155   :  { %v1265_v44 = vadd.f32 %v10398_v60, %v975_v55  ;;  %v977_v54 = vpop.f32.mrb[33].mxu0 }
 0x156   :  { %v978_v0 = vpop.f32.mrb[34].mxu0 }
 0x157   :  { %v1459_v5 = vsel %vm1455_vm1, %v1265_v44, -inf  ;;  %v1268_v11 = vadd.f32 %v10402_v62, %v978_v0  ;;  %v980_v29 = vpop.f32.mrb[35].mxu0 }
 0x158   :  { %v1460_v15 = vmax.f32 %v1458_v25, %v1459_v5  ;;  %v10600_v25 = vpop.f32.mrb[52].mxu1 }
 0x159   :  { %v1466_v56 = vsel %vm1455_vm1, %v1268_v11, -inf  ;;  %v10602_v27 = vpop.f32.mrb[53].mxu1 }
 0x15a   :  { %v1467_v60 = vmax.f32 %v1465_v3, %v1466_v56  ;;  %v10605_v3 = vpop.f32.mrb[54].mxu1 }
 0x15b   :  { %v10607_v5 = vpop.f32.mrb[55].mxu1 }
 0x15c   :  { %v983_v22 = vpop.f32.mrb[36].mxu0 }
 0x15d   :  { %v1273_v36 = vadd.f32 %v10393_v58, %v983_v22  ;;  %v985_v50 = vpop.f32.mrb[37].mxu0 }
 0x15e   :  { %v986_v52 = vpop.f32.mrb[38].mxu0 }
 0x15f   :  { %v1473_v42 = vsel %vm1455_vm1, %v1273_v36, -inf  ;;  %v1276_v62 = vadd.f32 %v10400_v61, %v986_v52  ;;  %v988_v55 = vpop.f32.mrb[39].mxu0 }
 0x160   :  { %v1474_v44 = vmax.f32 %v1472_v40, %v1473_v42 }
 0x161   :  { %v1480_v19 = vsel %vm1455_vm1, %v1276_v62, -inf }
 0x162   :  { %v10598_v21 = vmax.f32 %v1479_v8, %v1480_v19 }
 0x164   :  { %v991_v54 = vpop.f32.mrb[40].mxu0 }
 0x165   :  { %v1281_v30 = vadd.f32 %v10406_v2, %v991_v54  ;;  %v993_v58 = vpop.f32.mrb[41].mxu0 }
 0x166   :  { %v994_v0 = vpop.f32.mrb[42].mxu0 }
 0x167   :  { %v1487_v61 = vsel %vm1455_vm1, %v1281_v30, -inf  ;;  %v1284_v40 = vadd.f32 %v10418_v9, %v994_v0  ;;  %v996_v11 = vpop.f32.mrb[43].mxu0  ;;  %v10621_v9 = vpop.f32.mrb[56].mxu1 }
 0x168   :  { %v10611_v8 = vmax.f32 %v1486_v47, %v1487_v61  ;;  %v10624_v19 = vpop.f32.mrb[57].mxu1 }
 0x169   :  { %v1494_v29 = vsel %vm1455_vm1, %v1284_v40, -inf  ;;  %v10631_v54 = vpop.f32.mrb[58].mxu1 }
 0x16a   :  { %v10614_v56 = vmax.f32 %v1493_v53, %v1494_v29  ;;  %v10633_v30 = vpop.f32.mrb[59].mxu1 }
 0x16c   :  { %v999_v22 = vpop.f32.mrb[44].mxu0 }
 0x16d   :  { %v1289_v2 = vadd.f32 %v10404_v63, %v999_v22  ;;  %v1001_v36 = vpop.f32.mrb[45].mxu0  ;;  %v9654_v63 = vld [vmem:[%s12705_s3 + $0x38] sm:$0xff]  }
 0x16e   :  { %v1002_v50 = vpop.f32.mrb[46].mxu0  ;;  %8718 = vmatpush3.bf16.msra.mxu1 %v9654_v63 }
 0x16f   :  { %v1501_v52 = vsel %vm1455_vm1, %v1289_v2, -inf  ;;  %v1292_v42 = vadd.f32 %v10413_v6, %v1002_v50  ;;  %v1004_v62 = vpop.f32.mrb[47].mxu0  ;;  %8723 = vmatprep.subr.bf16.mxu1 %v12731_v14 }
 0x170   :  { %v10619_v55 = vmax.f32 %v1500_v49, %v1501_v52 }
 0x171   :  { %v1508_v47 = vsel %vm1455_vm1, %v1292_v42, -inf }
 0x172   :  { %v10626_v53 = vmax.f32 %v1507_v24, %v1508_v47  ;;  %v10641_v24 = vld [vmem:[%s12704_s2] ss:$0 sm:$0xff] }
 0x174   :  { %v1007_v6 = vpop.f32.mrb[48].mxu0 }
 0x175   :  { %v1297_v49 = vadd.f32 %v10429_v16, %v1007_v6  ;;  %v1009_v58 = vpop.f32.mrb[49].mxu0 }
 0x176   :  { %v1010_v0 = vpop.f32.mrb[50].mxu0 }
 0x177   :  { %v1461_v61 = vsel %vm1455_vm1, %v1297_v49, -inf  ;;  %v1300_v40 = vadd.f32 %v10442_v23, %v1010_v0  ;;  %v1012_v11 = vpop.f32.mrb[51].mxu0 }
 0x178   :  { %v1462_v29 = vmax.f32 %v1460_v15, %v1461_v61 }
 0x179   :  { %v1468_v22 = vsel %vm1455_vm1, %v1300_v40, -inf  ;;  %v9655_v40 = vld [vmem:[%s12705_s3 + $0x188] sm:$0xff]  }
 0x17a   :  { %v1575_v2 = vadd.f32 %v10641_v24, %v1462_v29  ;;  %v1469_v16 = vmax.f32 %v1467_v60, %v1468_v22  ;;  %8858 = vmatpush3.bf16.msra.mxu0 %v9655_v40 }
 0x17b   :  { %8859 = vmatprep.subr.bf16.mxu0 %v12731_v14 }
 0x17c   :  { %v1576_v36 = vadd.f32 %v10641_v24, %v1469_v16  ;;  %v1015_v50 = vpop.f32.mrb[52].mxu0  ;;  %v1591_v62 = vmax.f32 %v1575_v2, 0.0 }
 0x17d   :  { %v1305_v52 = vadd.f32 %v10425_v13, %v1015_v50  ;;  %v1017_v42 = vpop.f32.mrb[53].mxu0  ;;  %v10654_v13 = vpop.f32.mrb[60].mxu1 }
 0x17e   :  { %v1592_v47 = vmax.f32 %v1576_v36, 0.0  ;;  %v1018_v63 = vpop.f32.mrb[54].mxu0  ;;  %v10660_v29 = vpop.f32.mrb[61].mxu1 }
 0x17f   :  { %v1475_v6 = vsel %vm1455_vm1, %v1305_v52, -inf  ;;  %v1308_v23 = vadd.f32 %v10436_v20, %v1018_v63  ;;  %v1020_v49 = vpop.f32.mrb[55].mxu0  ;;  %v10663_v2 = vpop.f32.mrb[62].mxu1 }
 0x180   :  { %v1607_v15 = vpack.c.bf16 %v1592_v47, %v1591_v62  ;;  %v1476_v58 = vmax.f32 %v1474_v44, %v1475_v6  ;;  %v10665_v50 = vpop.f32.mrb[63].mxu1 }
 0x181   :  { %v1482_v0 = vsel %vm1455_vm1, %v1308_v23, -inf }
 0x182   :  { %1615 = vst.msk [vmem:[#allocation2] sm:$0xff] %vm1455_vm1, %v1607_v15  ;;  %v1577_v60 = vadd.f32 %v10641_v24, %v1476_v58  ;;  %v1483_v61 = vmax.f32 %v10598_v21, %v1482_v0 }
 0x184   :  { %v1578_v11 = vadd.f32 %v10641_v24, %v1483_v61  ;;  %v1023_v20 = vpop.f32.mrb[56].mxu0  ;;  %v1593_v16 = vmax.f32 %v1577_v60, 0.0 }
 0x185   :  { %v1313_v44 = vadd.f32 %v10449_v28, %v1023_v20  ;;  %v1025_v22 = vpop.f32.mrb[57].mxu0  ;;  %v9656_v28 = vld [vmem:[%s12705_s3 + $0x190] sm:$0xff]  }
 0x186   :  { %v1594_v36 = vmax.f32 %v1578_v11, 0.0  ;;  %v1026_v21 = vpop.f32.mrb[58].mxu0  ;;  %8860 = vmatpush3.bf16.msra.mxu0 %v9656_v28 }
 0x187   :  { %v1489_v52 = vsel %vm1455_vm1, %v1313_v44, -inf  ;;  %v1316_v42 = vadd.f32 %v10462_v35, %v1026_v21  ;;  %v1028_v62 = vpop.f32.mrb[59].mxu0  ;;  %8861 = vmatprep.subr.bf16.mxu0 %v12731_v14  ;;  %v9657_v35 = vld [vmem:[%s12705_s3 + $0x198] sm:$0xff]  }
 0x188   :  { %v1608_v47 = vpack.c.bf16 %v1594_v36, %v1593_v16  ;;  %v1490_v63 = vmax.f32 %v10611_v8, %v1489_v52 }
 0x189   :  { %v1496_v6 = vsel %vm1455_vm1, %v1316_v42, -inf }
 0x18a   :  { %1616 = vst.msk [vmem:[#allocation2 + $0x8] sm:$0xff] %vm1455_vm1, %v1608_v47  ;;  %v1579_v23 = vadd.f32 %v10641_v24, %v1490_v63  ;;  %v1497_v49 = vmax.f32 %v10614_v56, %v1496_v6  ;;  %8862 = vmatpush3.bf16.msra.mxu0 %v9657_v35 }
 0x18b   :  { %8879 = vmatprep.subr.bf16.mxu0 %v12731_v14 }
 0x18c   :  { %v1580_v15 = vadd.f32 %v10641_v24, %v1497_v49  ;;  %v1031_v58 = vpop.f32.mrb[60].mxu0  ;;  %v1595_v60 = vmax.f32 %v1579_v23, 0.0 }
 0x18d   :  { %v1321_v8 = vadd.f32 %v10447_v26, %v1031_v58  ;;  %v1033_v0 = vpop.f32.mrb[61].mxu0 }
 0x18e   :  { %v1596_v61 = vmax.f32 %v1580_v15, 0.0  ;;  %v1034_v40 = vpop.f32.mrb[62].mxu0 }
 0x18f   :  { %v1503_v56 = vsel %vm1455_vm1, %v1321_v8, -inf  ;;  %v1324_v11 = vadd.f32 %v10457_v32, %v1034_v40  ;;  %v1036_v20 = vpop.f32.mrb[63].mxu0 }
 0x190   :  { %v1609_v26 = vpack.c.bf16 %v1596_v61, %v1595_v60  ;;  %v1504_v44 = vmax.f32 %v10619_v55, %v1503_v56 }
 0x191   :  { %v1510_v22 = vsel %vm1455_vm1, %v1324_v11, -inf }
 0x192   :  { %1617 = vst.msk [vmem:[#allocation2 + $0x10] sm:$0xff] %vm1455_vm1, %v1609_v26  ;;  %v1581_v16 = vadd.f32 %v10641_v24, %v1504_v44  ;;  %v1511_v36 = vmax.f32 %v10626_v53, %v1510_v22 }
 0x194   :  { %v1582_v21 = vadd.f32 %v10641_v24, %v1511_v36  ;;  %v1039_v52 = vpop.f32.mrb[64].mxu0  ;;  %v1597_v62 = vmax.f32 %v1581_v16, 0.0 }
 0x195   :  { %v1329_v42 = vadd.f32 %v10469_v41, %v1039_v52  ;;  %v1041_v32 = vpop.f32.mrb[65].mxu0 }
 0x196   :  { %v1598_v28 = vmax.f32 %v1582_v21, 0.0  ;;  %v1042_v47 = vpop.f32.mrb[66].mxu0 }
 0x197   :  { %v1332_v63 = vadd.f32 %v10482_v57, %v1042_v47  ;;  %v1044_v55 = vpop.f32.mrb[67].mxu0 }
 0x198   :  { %v1610_v6 = vpack.c.bf16 %v1598_v28, %v1597_v62 }
 0x19a   :  { %1618 = vst.msk [vmem:[#allocation2 + $0x18] sm:$0xff] %vm1455_vm1, %v1610_v6 }
 0x19c   :  { %v1047_v23 = vpop.f32.mrb[68].mxu0 }
 0x19d   :  { %v1337_v49 = vadd.f32 %v10467_v38, %v1047_v23  ;;  %v1049_v35 = vpop.f32.mrb[69].mxu0 }
 0x19e   :  { %v1050_v53 = vpop.f32.mrb[70].mxu0 }
 0x19f   :  { %v1340_v15 = vadd.f32 %v10477_v51, %v1050_v53  ;;  %v1052_v58 = vpop.f32.mrb[71].mxu0  ;;  %v1526_v55 = vsel %vm1455_vm1, %v1337_v49, -inf }
 0x1a1   :  { %v1533_v35 = vsel %vm1455_vm1, %v1340_v15, -inf  ;;  %v11037_v1 = vld [vmem:[#allocation2 + $0x18] sm:$0x2] }
 0x1a4   :  { %v1055_v8 = vpop.f32.mrb[72].mxu0 }
 0x1a5   :  { %v1345_v41 = vadd.f32 %v10492_v7, %v1055_v8  ;;  %v1057_v0 = vpop.f32.mrb[73].mxu0  ;;  %v1512_v7 = vsel %vm1455_vm1, %v1329_v42, -inf }
 0x1a6   :  { %v1058_v60 = vpop.f32.mrb[74].mxu0 }
 0x1a7   :  { %v1348_v61 = vadd.f32 %v10501_v18, %v1058_v60  ;;  %v1060_v57 = vpop.f32.mrb[75].mxu0  ;;  %v1540_v60 = vsel %vm1455_vm1, %v1345_v41, -inf }
 0x1ac   :  { %v1063_v40 = vpop.f32.mrb[76].mxu0 }
 0x1ad   :  { %v1353_v56 = vadd.f32 %v10490_v4, %v1063_v40  ;;  %v1065_v11 = vpop.f32.mrb[77].mxu0  ;;  %v1519_v4 = vsel %vm1455_vm1, %v1332_v63, -inf }
 0x1ae   :  { %v1066_v20 = vpop.f32.mrb[78].mxu0  ;;  %v1547_v11 = vsel %vm1455_vm1, %v1348_v61, -inf }
 0x1af   :  { %v1356_v38 = vadd.f32 %v10499_v12, %v1066_v20  ;;  %v1068_v26 = vpop.f32.mrb[79].mxu0 }
 0x1b4   :  { %v1071_v44 = vpop.f32.mrb[80].mxu0 }
 0x1b5   :  { %v1361_v51 = vadd.f32 %v10524_v34, %v1071_v44  ;;  %v1073_v22 = vpop.f32.mrb[81].mxu0 }
 0x1b6   :  { %v1074_v16 = vpop.f32.mrb[82].mxu0  ;;  %v1554_v22 = vsel %vm1455_vm1, %v1353_v56, -inf }
 0x1b7   :  { %v1513_v36 = vsel %vm1455_vm1, %v1361_v51, -inf  ;;  %v1364_v18 = vadd.f32 %v10529_v10, %v1074_v16  ;;  %v1076_v21 = vpop.f32.mrb[83].mxu0 }
 0x1b8   :  { %v1514_v52 = vmax.f32 %v1512_v7, %v1513_v36  ;;  %v1561_v36 = vsel %vm1455_vm1, %v1356_v38, -inf }
 0x1b9   :  { %v1520_v32 = vsel %vm1455_vm1, %v1364_v18, -inf }
 0x1ba   :  { %v1521_v62 = vmax.f32 %v1519_v4, %v1520_v32 }
 0x1bc   :  { %v1079_v12 = vpop.f32.mrb[84].mxu0 }
 0x1bd   :  { %v1369_v28 = vadd.f32 %v10522_v31, %v1079_v12  ;;  %v1081_v47 = vpop.f32.mrb[85].mxu0 }
 0x1be   :  { %v1082_v34 = vpop.f32.mrb[86].mxu0 }
 0x1bf   :  { %v1527_v42 = vsel %vm1455_vm1, %v1369_v28, -inf  ;;  %v1372_v6 = vadd.f32 %v10527_v39, %v1082_v34  ;;  %v1084_v23 = vpop.f32.mrb[87].mxu0 }
 0x1c0   :  { %v1528_v10 = vmax.f32 %v1526_v55, %v1527_v42 }
 0x1c1   :  { %v1534_v63 = vsel %vm1455_vm1, %v1372_v6, -inf }
 0x1c2   :  { %v1535_v53 = vmax.f32 %v1533_v35, %v1534_v63 }
 0x1c4   :  { %v1087_v58 = vpop.f32.mrb[88].mxu0 }
 0x1c5   :  { %v1377_v8 = vadd.f32 %v10546_v17, %v1087_v58  ;;  %v1089_v0 = vpop.f32.mrb[89].mxu0 }
 0x1c6   :  { %v1090_v31 = vpop.f32.mrb[90].mxu0 }
 0x1c7   :  { %v1541_v49 = vsel %vm1455_vm1, %v1377_v8, -inf  ;;  %v1380_v57 = vadd.f32 %v10551_v33, %v1090_v31  ;;  %v1092_v40 = vpop.f32.mrb[91].mxu0 }
 0x1c8   :  { %v1542_v39 = vmax.f32 %v1540_v60, %v1541_v49 }
 0x1c9   :  { %v1548_v15 = vsel %vm1455_vm1, %v1380_v57, -inf }
 0x1ca   :  { %v1549_v20 = vmax.f32 %v1547_v11, %v1548_v15 }
 0x1cc   :  { %v1095_v26 = vpop.f32.mrb[92].mxu0 }
 0x1cd   :  { %v1385_v44 = vadd.f32 %v10544_v43, %v1095_v26  ;;  %v1097_v51 = vpop.f32.mrb[93].mxu0 }
 0x1ce   :  { %v1098_v17 = vpop.f32.mrb[94].mxu0 }
 0x1cf   :  { %v1555_v41 = vsel %vm1455_vm1, %v1385_v44, -inf  ;;  %v1388_v16 = vadd.f32 %v10549_v48, %v1098_v17  ;;  %v1100_v7 = vpop.f32.mrb[95].mxu0 }
 0x1d0   :  { %v1556_v33 = vmax.f32 %v1554_v22, %v1555_v41 }
 0x1d1   :  { %v1562_v61 = vsel %vm1455_vm1, %v1388_v16, -inf }
 0x1d2   :  { %v1563_v18 = vmax.f32 %v1561_v36, %v1562_v61 }
 0x1d4   :  { %v1103_v21 = vpop.f32.mrb[96].mxu0 }
 0x1d5   :  { %v1393_v4 = vadd.f32 %v10577_v45, %v1103_v21  ;;  %v1105_v32 = vpop.f32.mrb[97].mxu0 }
 0x1d6   :  { %v1106_v43 = vpop.f32.mrb[98].mxu0 }
 0x1d7   :  { %v1515_v12 = vsel %vm1455_vm1, %v1393_v4, -inf  ;;  %v1396_v56 = vadd.f32 %v10583_v46, %v1106_v43  ;;  %v1108_v28 = vpop.f32.mrb[99].mxu0 }
 0x1d8   :  { %v1516_v47 = vmax.f32 %v1514_v52, %v1515_v12 }
 0x1d9   :  { %v1522_v48 = vsel %vm1455_vm1, %v1396_v56, -inf }
 0x1da   :  { %v1523_v34 = vmax.f32 %v1521_v62, %v1522_v48 }
 0x1dc   :  { %v1111_v55 = vpop.f32.mrb[100].mxu0 }
 0x1dd   :  { %v1401_v38 = vadd.f32 %v10574_v37, %v1111_v55  ;;  %v1113_v42 = vpop.f32.mrb[101].mxu0 }
 0x1de   :  { %v1114_v6 = vpop.f32.mrb[102].mxu0 }
 0x1df   :  { %v1529_v23 = vsel %vm1455_vm1, %v1401_v38, -inf  ;;  %v1404_v45 = vadd.f32 %v10580_v59, %v1114_v6  ;;  %v1116_v35 = vpop.f32.mrb[103].mxu0  ;;  %v10766_v38 = vld [vmem:[#allocation2] sm:$0x1] }
 0x1e0   :  { %v1530_v63 = vmax.f32 %v1528_v10, %v1529_v23 }
 0x1e1   :  { %v1536_v58 = vsel %vm1455_vm1, %v1404_v45, -inf  ;;  %v10771_v45 = vld [vmem:[#allocation2] sm:$0x40] }
 0x1e2   :  { %v1537_v8 = vmax.f32 %v1535_v53, %v1536_v58 }
 0x1e4   :  { %v1119_v46 = vpop.f32.mrb[104].mxu0 }
 0x1e5   :  { %v1409_v52 = vadd.f32 %v10602_v27, %v1119_v46  ;;  %v1121_v0 = vpop.f32.mrb[105].mxu0 }
 0x1e6   :  { %v1122_v31 = vpop.f32.mrb[106].mxu0 }
 0x1e7   :  { %v1543_v62 = vsel %vm1455_vm1, %v1409_v52, -inf  ;;  %v1412_v37 = vadd.f32 %v10607_v5, %v1122_v31  ;;  %v1124_v60 = vpop.f32.mrb[107].mxu0 }
 0x1e8   :  { %v10741_v49 = vmax.f32 %v1542_v39, %v1543_v62  ;;  %v2638_v62 = vunpack.c.h.b16 %v10771_v45  ;;  %v9670_v45 = vld [vmem:[%s12705_s3 + $0x50] sm:$0xff]  }
 0x1e9   :  { %v1550_v57 = vsel %vm1455_vm1, %v1412_v37, -inf }
 0x1ea   :  { %v10744_v59 = vmax.f32 %v1549_v20, %v1550_v57 }
 0x1ec   :  { %v1127_v10 = vpop.f32.mrb[108].mxu0 }
 0x1ed   :  { %v1417_v40 = vadd.f32 %v10600_v25, %v1127_v10  ;;  %v1129_v53 = vpop.f32.mrb[109].mxu0 }
 0x1ee   :  { %v1130_v11 = vpop.f32.mrb[110].mxu0 }
 0x1ef   :  { %v1557_v27 = vsel %vm1455_vm1, %v1417_v40, -inf  ;;  %v1420_v15 = vadd.f32 %v10605_v3, %v1130_v11  ;;  %v1132_v26 = vpop.f32.mrb[111].mxu0 }
 0x1f0   :  { %v10749_v44 = vmax.f32 %v1556_v33, %v1557_v27  ;;  %v2640_v26 = vrot.slane %v2638_v62, 4 }
 0x1f1   :  { %v1564_v5 = vsel %vm1455_vm1, %v1420_v15, -inf  ;;  %v9658_v15 = vld [vmem:[%s12705_s3] sm:$0xff]  }
 0x1f2   :  { %v10752_v39 = vmax.f32 %v1563_v18, %v1564_v5 }
 0x1f4   :  { %v1135_v51 = vpop.f32.mrb[112].mxu0 }
 0x1f5   :  { %v1425_v20 = vadd.f32 %v10624_v19, %v1135_v51  ;;  %v1137_v17 = vpop.f32.mrb[113].mxu0 }
 0x1f6   :  { %v1138_v22 = vpop.f32.mrb[114].mxu0 }
 0x1f7   :  { %v1517_v25 = vsel %vm1455_vm1, %v1425_v20, -inf  ;;  %v1428_v41 = vadd.f32 %v10633_v30, %v1138_v22  ;;  %v1140_v16 = vpop.f32.mrb[115].mxu0 }
 0x1f8   :  { %v1518_v7 = vmax.f32 %v1516_v47, %v1517_v25  ;;  %v9659_v16 = vld [vmem:[%s12705_s3 + $0x1c0] sm:$0xff]  }
 0x1f9   :  { %v1524_v3 = vsel %vm1455_vm1, %v1428_v41, -inf }
 0x1fa   :  { %v1583_v33 = vadd.f32 %v10641_v24, %v1518_v7  ;;  %v1525_v36 = vmax.f32 %v1523_v34, %v1524_v3 }
 0x1fc   :  { %v1584_v61 = vadd.f32 %v10641_v24, %v1525_v36  ;;  %v1143_v18 = vpop.f32.mrb[116].mxu0  ;;  %v1599_v19 = vmax.f32 %v1583_v33, 0.0 }
 0x1fd   :  { %v1433_v21 = vadd.f32 %v10621_v9, %v1143_v18  ;;  %v1145_v4 = vpop.f32.mrb[117].mxu0  ;;  %v9660_v18 = vld [vmem:[%s12705_s3 + $0x8] sm:$0xff]  }
 0x1fe   :  { %v1600_v32 = vmax.f32 %v1584_v61, 0.0  ;;  %v1146_v43 = vpop.f32.mrb[118].mxu0 }
 0x1ff   :  { %v1531_v12 = vsel %vm1455_vm1, %v1433_v21, -inf  ;;  %v1436_v30 = vadd.f32 %v10631_v54, %v1146_v43  ;;  %v1148_v56 = vpop.f32.mrb[119].mxu0  ;;  %v1644_v54 = vunpack.c.l.b16 %v10766_v38 }
 0x200   :  { %v1611_v28 = vpack.c.bf16 %v1600_v32, %v1599_v19  ;;  %v1532_v47 = vmax.f32 %v1530_v63, %v1531_v12  ;;  %v9661_v19 = vld [vmem:[%s12705_s3 + $0x1c8] sm:$0xff]   ;;  %v10823_v32 = vld [vmem:[#allocation2] sm:$0x80]  ;;  %v9662_v12 = vld [vmem:[%s12705_s3 + $0x10] sm:$0xff]  }
 0x201   :  { %v1538_v48 = vsel %vm1455_vm1, %v1436_v30, -inf  ;;  %v1646_v60 = vrot.slane %v1644_v54, 1 }
 0x202   :  { %1619 = vst.msk [vmem:[#allocation2 + $0x20] sm:$0xff] %vm1455_vm1, %v1611_v28  ;;  %v1585_v34 = vadd.f32 %v10641_v24, %v1532_v47  ;;  %v1539_v55 = vmax.f32 %v1537_v8, %v1538_v48  ;;  %v9663_v28 = vld [vmem:[%s12705_s3 + $0x1d0] sm:$0xff]   ;;  %v2806_v48 = vunpack.c.h.b16 %v10823_v32 }
 0x204   :  { %v1586_v9 = vadd.f32 %v10641_v24, %v1539_v55  ;;  %v1151_v42 = vpop.f32.mrb[120].mxu0  ;;  %v1601_v35 = vmax.f32 %v1585_v34, 0.0  ;;  %v9664_v34 = vld [vmem:[%s12705_s3 + $0x18] sm:$0xff]  }
 0x205   :  { %v1441_v6 = vadd.f32 %v10660_v29, %v1151_v42  ;;  %v1153_v23 = vpop.f32.mrb[121].mxu0 }
 0x206   :  { %v1602_v63 = vmax.f32 %v1586_v9, 0.0  ;;  %v1154_v58 = vpop.f32.mrb[122].mxu0  ;;  %v9665_v9 = vld [vmem:[%s12705_s3 + $0x1d8] sm:$0xff]   ;;  %v1787_v23 = vld [vmem:[#allocation2] sm:$0x2] }
 0x207   :  { %v1545_v46 = vsel %vm1455_vm1, %v1441_v6, -inf  ;;  %v1444_v52 = vadd.f32 %v10665_v50, %v1154_v58  ;;  %v1156_v8 = vpop.f32.mrb[123].mxu0  ;;  %v2808_v6 = vrot.slane %v2806_v48, 6  ;;  %v10856_v58 = vld [vmem:[#allocation2 + $0x8] sm:$0x2]  ;;  %v1800_v38 = vunpack.c.l.b16 %v1787_v23 }
 0x208   :  { %v1612_v0 = vpack.c.bf16 %v1602_v63, %v1601_v35  ;;  %v1546_v31 = vmax.f32 %v10741_v49, %v1545_v46  ;;  %v9666_v35 = vld [vmem:[%s12705_s3 + $0x40] sm:$0xff]  }
 0x209   :  { %v1552_v29 = vsel %vm1455_vm1, %v1444_v52, -inf  ;;  %v1624_v37 = vld [vmem:[#allocation2 + $0x20] sm:$0x1]  ;;  %v10780_v57 = vld [vmem:[#allocation2 + $0x20] sm:$0x40] }
 0x20a   :  { %1620 = vst.msk [vmem:[#allocation2 + $0x28] sm:$0xff] %vm1455_vm1, %v1612_v0  ;;  %v1587_v10 = vadd.f32 %v10641_v24, %v1546_v31  ;;  %v1553_v50 = vmax.f32 %v10744_v59, %v1552_v29  ;;  %v1645_v40 = vunpack.c.l.b16 %v1624_v37  ;;  %v2639_v49 = vunpack.c.h.b16 %v10780_v57  ;;  %v9667_v52 = vld [vmem:[%s12705_s3 + $0x200] sm:$0xff]   ;;  %v9668_v37 = vld [vmem:[%s12705_s3 + $0x48] sm:$0xff]  }
 0x20b   :  { %v10866_v0 = vld [vmem:[#allocation2 + $0x20] sm:$0x2]  ;;  %v3140_v29 = vunpack.c.l.b16 %v10856_v58  ;;  %v10902_v57 = vrot.slane %v1800_v38, 3 }
 0x20c   :  { %v1588_v53 = vadd.f32 %v10641_v24, %v1553_v50  ;;  %v1159_v11 = vpop.f32.mrb[124].mxu0  ;;  %v1648_v27 = vsel %vm1647_vm3, %v1645_v40, %v1646_v60  ;;  %v2641_v5 = vrot.slane %v2639_v49, 3  ;;  %v1603_v17 = vmax.f32 %v1587_v10, 0.0  ;;  %v10875_v10 = vld [vmem:[#allocation2 + $0x8] sm:$0x4] }
 0x20d   :  { %v1449_v59 = vadd.f32 %v10654_v13, %v1159_v11  ;;  %v1161_v51 = vpop.f32.mrb[125].mxu0  ;;  %v1649_v20 = vpack.c.b16 %v1648_v27, %v1648_v27  ;;  %v1717_v47 = vrot.slane %v1645_v40, 7  ;;  %v10877_v50 = vld [vmem:[#allocation2 + $0x8] sm:$0x8]  ;;  %v10881_v40 = vrot.slane %v1800_v38, 2 }
 0x20e   :  { %v1604_v22 = vmax.f32 %v1588_v53, 0.0  ;;  %v1162_v25 = vpop.f32.mrb[126].mxu0  ;;  %v2642_v41 = vsel %vm1647_vm3, %v2641_v5, %v2640_v26  ;;  %v10885_v11 = vld [vmem:[#allocation2 + $0x8] sm:$0x10]  ;;  %v2722_v27 = vrot.slane %v2639_v49, 4  ;;  %v1801_v26 = vunpack.c.l.b16 %v10866_v0  ;;  %v9679_v0 = vld [vmem:[%s12705_s3 + $0x250] sm:$0xff]  }
 0x20f   :  { %v1559_v7 = vsel %vm1455_vm1, %v1449_v59, -inf  ;;  %v1452_v3 = vadd.f32 %v10663_v2, %v1162_v25  ;;  %8720 = vmatmul.mubr.msk.bf16.vlgmr.msra.gmra.mrb[64].mxu1 %vm1455_vm1, %v1649_v20  ;;  %v2643_v33 = vpack.c.b16 %v2642_v41, %v2642_v41  ;;  %v1164_v36 = vpop.f32.mrb[127].mxu0  ;;  %v10812_v2 = vld [vmem:[#allocation2 + $0x20] sm:$0x80]  ;;  %v1718_v42 = vsel %vm1647_vm3, %v1717_v47, %v1644_v54  ;;  %v10859_v54 = vld [vmem:[#allocation2 + $0x8] sm:$0x1] }
 0x210   :  { %v1613_v13 = vpack.c.bf16 %v1604_v22, %v1603_v17  ;;  %v1560_v61 = vmax.f32 %v10749_v44, %v1559_v7  ;;  %8724 = vmatpush3.bf16.msra.mxu1 %v9658_v15  ;;  %8731 = vmatprep.mubr.msk.bf16.mxu1 %vm9964_vm2, %v12731_v14  ;;  %v1719_v46 = vpack.c.b16 %v1718_v42, %v1718_v42  ;;  %v2974_v60 = vunpack.c.l.b16 %v10859_v54  ;;  %v9669_v15 = vld [vmem:[%s12705_s3 + $0x208] sm:$0xff]  }
 0x211   :  { %v1566_v21 = vsel %vm1455_vm1, %v1452_v3, -inf  ;;  %8864 = vmatmul.mubr.msk.bf16.vlgmr.msra.gmra.mrb[128].mxu0 %vm1455_vm1, %v2643_v33  ;;  %8725 = vmatprep.subr.bf16.mxu1 %v12731_v14  ;;  %v2962_v31 = vld [vmem:[#allocation2 + $0x28] sm:$0x1]  ;;  %v10883_v53 = vld [vmem:[#allocation2 + $0x28] sm:$0x2]  ;;  %v2721_v20 = vrot.slane %v2638_v62, 5  ;;  %v12719_v17 = vunpack.c.l.b16 %v10875_v10  ;;  %v12716_v22 = vunpack.c.l.b16 %v10877_v50 }
 0x212   :  { %1621 = vst.msk [vmem:[#allocation2 + $0x30] sm:$0xff] %vm1455_vm1, %v1613_v13  ;;  %v1589_v44 = vadd.f32 %v10641_v24, %v1560_v61  ;;  %v1567_v4 = vmax.f32 %v10752_v39, %v1566_v21  ;;  %8880 = vmatpush3.bf16.msra.mxu0 %v9659_v16  ;;  %8887 = vmatprep.mubr.msk.bf16.mxu0 %vm9964_vm2, %v12731_v14  ;;  %v2807_v39 = vunpack.c.h.b16 %v10812_v2  ;;  %v2975_v5 = vunpack.c.l.b16 %v2962_v31  ;;  %v10895_v59 = vld [vmem:[#allocation2 + $0x28] sm:$0x4]  ;;  %v10897_v51 = vld [vmem:[#allocation2 + $0x28] sm:$0x8]  ;;  %v9672_v2 = vld [vmem:[%s12705_s3 + $0x58] sm:$0xff]  }
 0x213   :  { %8881 = vmatprep.subr.bf16.mxu0 %v12731_v14  ;;  %v10904_v49 = vrot.slane %v3140_v29, 2  ;;  %v10908_v25 = vld [vmem:[#allocation2 + $0x8] sm:$0x20]  ;;  %v10910_v41 = vld [vmem:[#allocation2 + $0x8] sm:$0x40]  ;;  %v12723_v62 = vunpack.c.l.b16 %v10883_v53  ;;  %v12714_v16 = vunpack.c.h.b16 %v10885_v11  ;;  %v10922_v33 = vsel %vm1647_vm3, %v2722_v27, %v2721_v20 }
 0x214   :  { %v1590_v43 = vadd.f32 %v10641_v24, %v1567_v4  ;;  %8726 = vmatpush3.bf16.msra.mxu1 %v9660_v18  ;;  %v1605_v30 = vmax.f32 %v1589_v44, 0.0  ;;  %v2809_v55 = vrot.slane %v2807_v39, 5  ;;  %v10917_v7 = vld [vmem:[#allocation2 + $0x8] sm:$0x80]  ;;  %v10919_v3 = vld [vmem:[#allocation2 + $0x10] sm:$0x1]  ;;  %v12722_v13 = vunpack.c.l.b16 %v10895_v59 }
 0x215   :  { %8727 = vmatprep.subr.bf16.mxu1 %v12731_v14  ;;  %v3056_v36 = vrot.slane %v2974_v60, 1  ;;  %v12717_v61 = vunpack.c.l.b16 %v10897_v51  ;;  %v10929_v18 = vld [vmem:[#allocation2 + $0x10] sm:$0x2]  ;;  %v10931_v21 = vld [vmem:[#allocation2 + $0x10] sm:$0x4]  ;;  %v2889_v44 = vrot.slane %v2806_v48, 7 }
 0x216   :  { %v1606_v56 = vmax.f32 %v1590_v43, 0.0  ;;  %8882 = vmatpush3.bf16.msra.mxu0 %v9661_v19  ;;  %v2810_v63 = vsel %vm1647_vm3, %v2809_v55, %v2808_v6  ;;  %v2890_v4 = vrot.slane %v2807_v39, 6  ;;  %v9671_v19 = vld [vmem:[%s12705_s3 + $0x210] sm:$0xff]   ;;  %v1803_v43 = vrot.slane %v1801_v26, 1  ;;  %v10960_v55 = vld [vmem:[#allocation2 + $0x28] sm:$0x20] }
 0x217   :  { %8883 = vmatprep.subr.bf16.mxu0 %v12731_v14  ;;  %v2811_v8 = vpack.c.b16 %v2810_v63, %v2810_v63  ;;  %v10947_v32 = vsel %vm1647_vm3, %v2975_v5, %v3056_v36  ;;  %v12713_v39 = vunpack.c.h.b16 %v10917_v7  ;;  %v10958_v48 = vld [vmem:[#allocation2 + $0x10] sm:$0x8]  ;;  %v12725_v42 = vunpack.c.l.b16 %v10929_v18  ;;  %v10970_v63 = vld [vmem:[#allocation2 + $0x28] sm:$0x80]  ;;  %v10994_v20 = vld [vmem:[#allocation2 + $0x10] sm:$0x20] }
 0x218   :  { %v1614_v24 = vpack.c.bf16 %v1606_v56, %v1605_v30  ;;  %8728 = vmatpush3.bf16.msra.mxu1 %v9662_v12  ;;  %v10942_v12 = vld [vmem:[#allocation2 + $0x28] sm:$0x10]  ;;  %v12711_v30 = vunpack.c.h.b16 %v10908_v25  ;;  %v12712_v56 = vunpack.c.h.b16 %v10910_v41  ;;  %v10956_v47 = vsel %vm1647_vm3, %v2890_v4, %v2889_v44  ;;  %12740 = vst [vmem:[#allocation7_spill] sm:$0xff] %v10994_v20  ;;  %v9674_v44 = vld [vmem:[%s12705_s3 + $0x60] sm:$0xff]  }
 0x219   :  { %8729 = vmatprep.subr.bf16.mxu1 %v12731_v14  ;;  %v12726_v6 = vunpack.c.l.b16 %v10931_v21  ;;  %v3224_v23 = vrot.slane %v12723_v62, 2  ;;  %v3391_v58 = vrot.slane %v12719_v17, 5  ;;  %v3560_v38 = vrot.slane %v12717_v61, 6 }
 0x21a   :  { %1622 = vst.msk [vmem:[#allocation2 + $0x38] sm:$0xff] %vm1455_vm1, %v1614_v24  ;;  %8884 = vmatpush3.bf16.msra.mxu0 %v9663_v28  ;;  %v12718_v28 = vunpack.c.l.b16 %v10919_v3  ;;  %v3223_v24 = vrot.slane %v3140_v29, 3  ;;  %v12727_v31 = vunpack.c.l.b16 %v10958_v48  ;;  %v10984_v29 = vld [vmem:[#allocation2 + $0x10] sm:$0x10]  ;;  %v3559_v27 = vrot.slane %v12716_v22, 7 }
 0x21b   :  { %8885 = vmatprep.subr.bf16.mxu0 %v12731_v14  ;;  %v3726_v36 = vrot.slane %v12714_v16, 1  ;;  %v11047_v16 = vld [vmem:[#allocation2 + $0x30] sm:$0x4] }
 0x21c   :  { %8730 = vmatpush3.bf16.msra.mxu1 %v9664_v34  ;;  %v2976_v34 = vrot.slane %v2975_v5, 7 }
 0x21d   :  { %8735 = vmatprep.subr.bf16.mxu1 %v12731_v14 }
 0x21e   :  { %8886 = vmatpush3.bf16.msra.mxu0 %v9665_v9  ;;  %v10962_v9 = vld [vmem:[#allocation2 + $0x28] sm:$0x40]  ;;  %v2977_v4 = vsel %vm1647_vm3, %v2976_v34, %v2974_v60  ;;  %v11025_v60 = vld [vmem:[#allocation2 + $0x18] sm:$0x1]  ;;  %v4061_v34 = vrot.slane %v12712_v56, 5  ;;  %v4396_v56 = vrot.slane %v12718_v28, 1 }
 0x21f   :  { %8732 = vmatmul.mubr.msk.bf16.vlgmr.msra.gmra.mrb[68].mxu1 %vm1455_vm1, %v1719_v46  ;;  %8903 = vmatprep.subr.bf16.mxu0 %v12731_v14  ;;  %v3392_v46 = vrot.slane %v12722_v13, 4  ;;  %v12721_v5 = vunpack.c.h.b16 %v10962_v9  ;;  %12746 = vst [vmem:[#allocation13_spill] sm:$0xff] %v11025_v60  ;;  %v11060_v28 = vld [vmem:[#allocation2 + $0x30] sm:$0x8]  ;;  %v11132_v13 = vld [vmem:[#allocation2 + $0x30] sm:$0x40] }
 0x220   :  { %8736 = vmatpush3.bf16.msra.mxu1 %v9666_v35  ;;  %8743 = vmatprep.mubr.msk.bf16.mxu1 %vm9964_vm2, %v12731_v14  ;;  %v12715_v35 = vunpack.c.h.b16 %v10942_v12 }
 0x221   :  { %8888 = vmatmul.mubr.msk.bf16.vlgmr.msra.gmra.mrb[132].mxu0 %vm1455_vm1, %v2811_v8  ;;  %8737 = vmatprep.subr.bf16.mxu1 %v12731_v14  ;;  %v1804_v8 = vsel %vm1647_vm3, %v1803_v43, %v10881_v40  ;;  %v10997_v40 = vsel %vm1647_vm3, %v3392_v46, %v3391_v58  ;;  %v11011_v43 = vsel %vm1647_vm3, %v3560_v38, %v3559_v27  ;;  %v4229_v46 = vrot.slane %v12713_v39, 7  ;;  %v9675_v38 = vld [vmem:[%s12705_s3 + $0x240] sm:$0xff]   ;;  %v11045_v39 = vld [vmem:[#allocation2 + $0x30] sm:$0x2] }
 0x222   :  { %8904 = vmatpush3.bf16.msra.mxu0 %v9667_v52  ;;  %8911 = vmatprep.mubr.msk.bf16.mxu0 %vm9964_vm2, %v12731_v14  ;;  %v9673_v52 = vld [vmem:[%s12705_s3 + $0x218] sm:$0xff]   ;;  %12741 = vst [vmem:[#allocation8_spill] sm:$0xff] %v10997_v40  ;;  %12743 = vst [vmem:[#allocation10_spill] sm:$0xff] %v11011_v43  ;;  %v1805_v58 = vpack.c.b16 %v1804_v8, %v1804_v8  ;;  %v11023_v54 = vsel %vm1647_vm3, %v12715_v35, %v3726_v36  ;;  %v12728_v8 = vunpack.c.h.b16 %v10984_v29 }
 0x223   :  { %8905 = vmatprep.subr.bf16.mxu0 %v12731_v14  ;;  %12745 = vst [vmem:[#allocation12_spill] sm:$0xff] %v11023_v54  ;;  %v12730_v27 = vunpack.c.h.b16 %v10994_v20  ;;  %v4062_v61 = vrot.slane %v12721_v5, 4  ;;  %v11070_v5 = vld [vmem:[#allocation2 + $0x30] sm:$0x10]  ;;  %v11090_v35 = vld [vmem:[#allocation2 + $0x18] sm:$0x10]  ;;  %v12756_v43 = vunpack.c.l.b16 %v11047_v16 }
 0x224   :  { %8738 = vmatpush3.bf16.msra.mxu1 %v9668_v37  ;;  %v10987_v37 = vsel %vm1647_vm3, %v3224_v23, %v3223_v24  ;;  %v11013_v24 = vld [vmem:[#allocation2 + $0x10] sm:$0x80]  ;;  %v3893_v23 = vrot.slane %v12711_v30, 3  ;;  %v11039_v30 = vld [vmem:[#allocation2 + $0x18] sm:$0x4]  ;;  %v5066_v36 = vrot.slane %v12728_v8, 1 }
 0x225   :  { %8739 = vmatprep.subr.bf16.mxu1 %v12731_v14  ;;  %12739 = vst [vmem:[#allocation6_spill] sm:$0xff] %v10987_v37  ;;  %12744 = vst [vmem:[#allocation11_spill] sm:$0xff] %v11013_v24  ;;  %v4732_v40 = vrot.slane %v12756_v43, 4  ;;  %v11159_v37 = vld [vmem:[#allocation2 + $0x38] sm:$0x4] }
 0x226   :  { %8906 = vmatpush3.bf16.msra.mxu0 %v9669_v15  ;;  %v12720_v15 = vunpack.c.h.b16 %v10960_v55  ;;  %12747 = vst [vmem:[#allocation14_spill] sm:$0xff] %v11039_v30  ;;  %v9680_v43 = vld [vmem:[%s12705_s3 + $0x78] sm:$0xff]  }
 0x227   :  { %8907 = vmatprep.subr.bf16.mxu0 %v12731_v14 }
 0x228   :  { %8740 = vmatpush3.bf16.msra.mxu1 %v9670_v45  ;;  %v10999_v45 = vld [vmem:[#allocation2 + $0x10] sm:$0x40]  ;;  %v3894_v22 = vrot.slane %v12720_v15, 2  ;;  %v4563_v15 = vrot.slane %v12725_v42, 3  ;;  %v11080_v42 = vld [vmem:[#allocation2 + $0x18] sm:$0x8] }
 0x229   :  { %8741 = vmatprep.subr.bf16.mxu1 %v12731_v14  ;;  %12742 = vst [vmem:[#allocation9_spill] sm:$0xff] %v10999_v45  ;;  %12750 = vst [vmem:[#allocation17_spill] sm:$0xff] %v11080_v42  ;;  %v12753_v8 = vunpack.c.h.b16 %v10999_v45  ;;  %v11184_v45 = vld [vmem:[#allocation2 + $0x38] sm:$0x10] }
 0x22a   :  { %8908 = vmatpush3.bf16.msra.mxu0 %v9671_v19  ;;  %v12724_v19 = vunpack.c.h.b16 %v10970_v63  ;;  %v11074_v62 = vsel %vm1647_vm3, %v3894_v22, %v3893_v23  ;;  %v11103_v22 = vld [vmem:[#allocation2 + $0x18] sm:$0x40]  ;;  %v11105_v23 = vld [vmem:[#allocation2 + $0x18] sm:$0x80] }
 0x22b   :  { %8909 = vmatprep.subr.bf16.mxu0 %v12731_v14  ;;  %12748 = vst [vmem:[#allocation15_spill] sm:$0xff] %v11074_v62  ;;  %v12755_v62 = vunpack.c.l.b16 %v11045_v39 }
 0x22c   :  { %8742 = vmatpush3.bf16.msra.mxu1 %v9672_v2  ;;  %v11018_v2 = vld [vmem:[#allocation2 + $0x30] sm:$0x1]  ;;  %v4230_v17 = vrot.slane %v12724_v19, 6  ;;  %v11078_v19 = vsel %vm1647_vm3, %v4062_v61, %v4061_v34  ;;  %v11092_v61 = vld [vmem:[#allocation2 + $0x18] sm:$0x20]  ;;  %v4899_v34 = vrot.slane %v12727_v31, 7 }
 0x22d   :  { %8747 = vmatprep.subr.bf16.mxu1 %v12731_v14  ;;  %12749 = vst [vmem:[#allocation16_spill] sm:$0xff] %v11078_v19  ;;  %v9678_v31 = vld [vmem:[%s12705_s3 + $0x70] sm:$0xff]   ;;  %v11145_v19 = vld [vmem:[#allocation2 + $0x38] sm:$0x2]  ;;  %v4564_v54 = vrot.slane %v12755_v62, 2  ;;  %v12759_v62 = vunpack.c.l.b16 %v11060_v28 }
 0x22e   :  { %8910 = vmatpush3.bf16.msra.mxu0 %v9673_v52  ;;  %v2978_v52 = vpack.c.b16 %v2977_v4, %v2977_v4  ;;  %v12729_v4 = vunpack.c.l.b16 %v11018_v2 }
 0x22f   :  { %8744 = vmatmul.mubr.msk.bf16.vlgmr.msra.gmra.mrb[72].mxu1 %vm1455_vm1, %v1805_v58  ;;  %8927 = vmatprep.subr.bf16.mxu0 %v12731_v14  ;;  %v9676_v58 = vld [vmem:[%s12705_s3 + $0x68] sm:$0xff]   ;;  %v4900_v20 = vrot.slane %v12759_v62, 6 }
 0x230   :  { %8748 = vmatpush3.bf16.msra.mxu1 %v9674_v44  ;;  %8755 = vmatprep.mubr.msk.bf16.mxu1 %vm9964_vm2, %v12731_v14  ;;  %v4731_v44 = vrot.slane %v12726_v6, 5  ;;  %v11101_v6 = vsel %vm1647_vm3, %v4230_v17, %v4229_v46  ;;  %v11118_v17 = vsel %vm1647_vm3, %v12729_v4, %v4396_v56  ;;  %v11122_v46 = vrot.slane %v12730_v27, 3  ;;  %v11167_v56 = vld [vmem:[#allocation2 + $0x38] sm:$0x8] }
 0x231   :  { %8912 = vmatmul.mubr.msk.bf16.vlgmr.msra.gmra.mrb[136].mxu0 %vm1455_vm1, %v2978_v52  ;;  %8749 = vmatprep.subr.bf16.mxu1 %v12731_v14  ;;  %v9677_v52 = vld [vmem:[%s12705_s3 + $0x248] sm:$0xff]   ;;  %12751 = vst [vmem:[#allocation18_spill] sm:$0xff] %v11101_v6  ;;  %12752 = vst [vmem:[#allocation19_spill] sm:$0xff] %v11118_v17  ;;  %v11134_v6 = vld [vmem:[#allocation2 + $0x30] sm:$0x80]  ;;  %v12754_v17 = vunpack.c.h.b16 %v11013_v24  ;;  %v12757_v27 = vmov 0.0   ;;  %v11197_v62 = vsel %vm1647_vm3, %v4900_v20, %v4899_v34  ;;  %v12766_v4 = vunpack.c.l.b16 %v11037_v1 }
 0x232   :  { %8928 = vmatpush3.bf16.msra.mxu0 %v9675_v38  ;;  %8935 = vmatprep.mubr.msk.bf16.mxu0 %vm9964_vm2, %v12731_v14  ;;  %v1884_v38 = vrot.slane %v1801_v26, 2  ;;  %v11113_v26 = vld [vmem:[#allocation2 + $0x30] sm:$0x20]  ;;  %12765 = vst [vmem:[#allocation23_spill] sm:$0xff] %v11197_v62  ;;  %v12774_v34 = vunpack.c.l.b16 %v11145_v19 }
 0x233   :  { %8929 = vmatprep.subr.bf16.mxu0 %v12731_v14 }
 0x234   :  { %8750 = vmatpush3.bf16.msra.mxu1 %v9676_v58  ;;  %v11126_v58 = vrot.slane %v12753_v8, 5  ;;  %v11141_v8 = vrot.slane %v12754_v17, 7  ;;  %v1885_v17 = vsel %vm1647_vm3, %v1884_v38, %v10902_v57  ;;  %v11170_v57 = vsel %vm1647_vm3, %v4564_v54, %v4563_v15  ;;  %v11186_v15 = vld [vmem:[#allocation2 + $0x38] sm:$0x20] }
 0x235   :  { %8751 = vmatprep.subr.bf16.mxu1 %v12731_v14  ;;  %v11143_v14 = vld [vmem:[#allocation2 + $0x38] sm:$0x1]  ;;  %12760 = vst [vmem:[#allocation20_spill] sm:$0xff] %v11170_v57  ;;  %v12762_v38 = vunpack.c.h.b16 %v11070_v5 }
 0x236   :  { %8930 = vmatpush3.bf16.msra.mxu0 %v9677_v52  ;;  %v12758_v52 = vunpack.c.l.b16 %v10883_v53  ;;  %v11173_v53 = vsel %vm1647_vm3, %v4732_v40, %v4731_v44  ;;  %v12764_v40 = vunpack.c.l.b16 %v11025_v60  ;;  %v11207_v44 = vld [vmem:[#allocation2 + $0x38] sm:$0x80]  ;;  %v12768_v60 = vunpack.c.l.b16 %v11080_v42 }
 0x237   :  { %8931 = vmatprep.subr.bf16.mxu0 %v12757_v27  ;;  %12761 = vst [vmem:[#allocation21_spill] sm:$0xff] %v11173_v53  ;;  %v12772_v42 = vunpack.c.l.b16 %v11143_v14 }
 0x238   :  { %v3143_v24 = vrot.slane %v12758_v52, 1  ;;  %8752 = vmatpush3.bf16.msra.mxu1 %v9678_v31  ;;  %v11178_v52 = vsel %vm1647_vm3, %v12762_v38, %v5066_v36  ;;  %v5736_v54 = vrot.slane %v12764_v40, 1  ;;  %v9681_v36 = vld [vmem:[%s12705_s3 + $0x258] sm:$0xff]   ;;  %v5903_v31 = vrot.slane %v12766_v4, 3  ;;  %v9682_v4 = vld [vmem:[%s12705_s3 + $0x80] sm:$0xff]  }
 0x239   :  { %12763 = vst [vmem:[#allocation22_spill] sm:$0xff] %v11178_v52  ;;  %8753 = vmatprep.subr.bf16.mxu1 %v12757_v27  ;;  %v11194_v38 = vld [vmem:[#allocation2 + $0x38] sm:$0x40]  ;;  %v12767_v52 = vunpack.c.l.b16 %v11039_v30  ;;  %v6239_v20 = vrot.slane %v12768_v60, 7  ;;  %v12771_v60 = vunpack.c.h.b16 %v11134_v6 }
 0x23a   :  { %8932 = vmatpush3.bf16.msra.mxu0 %v9679_v0  ;;  %v1886_v0 = vpack.c.b16 %v1885_v17, %v1885_v17  ;;  %v3144_v40 = vsel %vm1647_vm3, %v3143_v24, %v10904_v49  ;;  %v12769_v17 = vunpack.c.h.b16 %v11113_v26  ;;  %v12770_v49 = vunpack.c.h.b16 %v11132_v13 }
 0x23b   :  { %v6071_v53 = vrot.slane %v12767_v52, 5  ;;  %8933 = vmatprep.subr.bf16.mxu0 %v12757_v27  ;;  %v11227_v30 = vsel %vm1647_vm3, %v12772_v42, %v5736_v54  ;;  %v5904_v52 = vrot.slane %v12774_v34, 2  ;;  %v12775_v42 = vunpack.c.l.b16 %v11159_v37  ;;  %v11247_v34 = vld [vmem:[#allocation2 + $0x20] sm:$0x4] }
 0x23c   :  { %8754 = vmatpush3.bf16.msra.mxu1 %v9680_v43  ;;  %v5234_v62 = vrot.slane %v12769_v17, 2  ;;  %v5402_v24 = vrot.slane %v12770_v49, 4  ;;  %v5570_v43 = vrot.slane %v12771_v60, 6  ;;  %12773 = vst [vmem:[#allocation24_spill] sm:$0xff] %v11227_v30  ;;  %v9683_v17 = vld [vmem:[%s12705_s3 + $0x280] sm:$0xff]  }
 0x23d   :  { %8759 = vmatprep.subr.bf16.mxu1 %v12757_v27  ;;  %v6072_v54 = vrot.slane %v12775_v42, 4 }
 0x23e   :  { %8934 = vmatpush3.bf16.msra.mxu0 %v9681_v36  ;;  %v11237_v57 = vsel %vm1647_vm3, %v5234_v62, %v11122_v46  ;;  %v11241_v60 = vsel %vm1647_vm3, %v5402_v24, %v11126_v58  ;;  %v3145_v36 = vpack.c.b16 %v3144_v40, %v3144_v40  ;;  %v11251_v49 = vsel %vm1647_vm3, %v5570_v43, %v11141_v8 }
 0x23f   :  { %8756 = vmatmul.mubr.msk.bf16.vlgmr.msra.gmra.mrb[76].mxu1 %vm1455_vm1, %v1886_v0  ;;  %8951 = vmatprep.subr.bf16.mxu0 %v12757_v27  ;;  %v12776_v46 = vunpack.c.l.b16 %v11167_v56  ;;  %v12777_v58 = vunpack.c.h.b16 %v11090_v35  ;;  %v9684_v0 = vld [vmem:[%s12705_s3 + $0x88] sm:$0xff]   ;;  %v11263_v40 = vsel %vm1647_vm3, %v5904_v52, %v5903_v31  ;;  %v11266_v8 = vsel %vm1647_vm3, %v6072_v54, %v6071_v53 }
 0x240   :  { %8760 = vmatpush3.bf16.msra.mxu1 %v9682_v4  ;;  %8767 = vmatprep.mubr.msk.bf16.mxu1 %vm9964_vm2, %v12757_v27  ;;  %12778 = vst [vmem:[#allocation25_spill] sm:$0xff] %v11266_v8  ;;  %v12779_v43 = vunpack.c.h.b16 %v11092_v61  ;;  %v1955_v4 = vld [vmem:[#allocation2] sm:$0x4]  ;;  %v12782_v31 = vunpack.c.h.b16 %v11103_v22  ;;  %v12783_v53 = vunpack.c.h.b16 %v11194_v38  ;;  %v12784_v8 = vunpack.c.h.b16 %v11105_v23 }
 0x241   :  { %v6240_v62 = vrot.slane %v12776_v46, 6  ;;  %v6406_v24 = vrot.slane %v12777_v58, 1  ;;  %v12780_v46 = vunpack.c.h.b16 %v11186_v15  ;;  %8936 = vmatmul.mubr.msk.bf16.vlgmr.msra.gmra.mrb[140].mxu0 %vm1455_vm1, %v3145_v36  ;;  %8761 = vmatprep.subr.bf16.mxu1 %v12757_v27  ;;  %v9685_v36 = vld [vmem:[%s12705_s3 + $0x288] sm:$0xff]  }
 0x242   :  { %v6573_v42 = vrot.slane %v12779_v43, 3  ;;  %v6741_v52 = vrot.slane %v12782_v31, 5  ;;  %v6742_v54 = vrot.slane %v12783_v53, 4  ;;  %v6909_v43 = vrot.slane %v12784_v8, 7  ;;  %8952 = vmatpush3.bf16.msra.mxu0 %v9683_v17  ;;  %8959 = vmatprep.mubr.msk.bf16.mxu0 %vm9964_vm2, %v12757_v27 }
 0x243   :  { %v6574_v58 = vrot.slane %v12780_v46, 2  ;;  %v11275_v30 = vsel %vm1647_vm3, %v6240_v62, %v6239_v20  ;;  %v1969_v46 = vunpack.c.l.b16 %v11247_v34  ;;  %v12785_v20 = vunpack.c.h.b16 %v11184_v45  ;;  %8953 = vmatprep.subr.bf16.mxu0 %v12757_v27  ;;  %v9686_v34 = vld [vmem:[%s12705_s3 + $0x90] sm:$0xff]  }
 0x244   :  { %12781 = vst [vmem:[#allocation26_spill] sm:$0xff] %v11275_v30  ;;  %v12786_v8 = vunpack.c.h.b16 %v11207_v44  ;;  %v11301_v53 = vsel %vm1647_vm3, %v6742_v54, %v6741_v52  ;;  %8762 = vmatpush3.bf16.msra.mxu1 %v9684_v0  ;;  %v1968_v30 = vunpack.c.l.b16 %v1955_v4  ;;  %v9688_v0 = vld [vmem:[%s12705_s3 + $0x98] sm:$0xff]   ;;  %v12787_v4 = vunpack.c.l.b16 %v10895_v59  ;;  %v9690_v59 = vld [vmem:[%s12705_s3 + $0xa0] sm:$0xff]  }
 0x245   :  { %v11292_v62 = vsel %vm1647_vm3, %v12785_v20, %v6406_v24  ;;  %v11295_v31 = vsel %vm1647_vm3, %v6574_v58, %v6573_v42  ;;  %8763 = vmatprep.subr.bf16.mxu1 %v12757_v27  ;;  %v9687_v42 = vld [vmem:[%s12705_s3 + $0x290] sm:$0xff]   ;;  %v1971_v58 = vrot.slane %v1969_v46, 3  ;;  %v12788_v20 = vunpack.c.l.b16 %v10875_v10 }
 0x246   :  { %v6910_v17 = vrot.slane %v12786_v8, 6  ;;  %8954 = vmatpush3.bf16.msra.mxu0 %v9685_v36  ;;  %v1970_v52 = vrot.slane %v1968_v30, 4  ;;  %v3311_v54 = vrot.slane %v12787_v4, 3  ;;  %v9695_v4 = vld [vmem:[%s12705_s3 + $0x2d0] sm:$0xff]  }
 0x247   :  { %8955 = vmatprep.subr.bf16.mxu0 %v12757_v27  ;;  %v3310_v8 = vrot.slane %v12788_v20, 4  ;;  %v12789_v20 = vunpack.c.l.b16 %v10897_v51  ;;  %v9698_v51 = vld [vmem:[%s12705_s3 + $0xc0] sm:$0xff]  }
 0x248   :  { %v11307_v24 = vsel %vm1647_vm3, %v6910_v17, %v6909_v43  ;;  %8764 = vmatpush3.bf16.msra.mxu1 %v9686_v34  ;;  %v9689_v43 = vld [vmem:[%s12705_s3 + $0x298] sm:$0xff]   ;;  %v1972_v36 = vsel %vm1647_vm3, %v1971_v58, %v1970_v52  ;;  %v9692_v58 = vld [vmem:[%s12705_s3 + $0xa8] sm:$0xff]   ;;  %v9694_v52 = vld [vmem:[%s12705_s3 + $0xb0] sm:$0xff]  }
 0x249   :  { %8765 = vmatprep.subr.bf16.mxu1 %v12757_v27  ;;  %v3312_v17 = vsel %vm1647_vm3, %v3311_v54, %v3310_v8  ;;  %v1973_v34 = vpack.c.b16 %v1972_v36, %v1972_v36  ;;  %v2052_v54 = vrot.slane %v1969_v46, 4  ;;  %v2051_v36 = vrot.slane %v1968_v30, 5 }
 0x24a   :  { %8956 = vmatpush3.bf16.msra.mxu0 %v9687_v42  ;;  %v9691_v42 = vld [vmem:[%s12705_s3 + $0x2c0] sm:$0xff]   ;;  %v3313_v10 = vpack.c.b16 %v3312_v17, %v3312_v17  ;;  %v3479_v8 = vrot.slane %v12789_v20, 5  ;;  %v12790_v17 = vunpack.c.l.b16 %v10877_v50  ;;  %v9703_v20 = vld [vmem:[%s12705_s3 + $0x310] sm:$0xff]  }
 0x24b   :  { %8957 = vmatprep.subr.bf16.mxu0 %v12757_v27  ;;  %v2053_v46 = vsel %vm1647_vm3, %v2052_v54, %v2051_v36 }
 0x24c   :  { %8766 = vmatpush3.bf16.msra.mxu1 %v9688_v0  ;;  %v9693_v0 = vld [vmem:[%s12705_s3 + $0x2c8] sm:$0xff]  }
 0x24d   :  { %8771 = vmatprep.subr.bf16.mxu1 %v12757_v27 }
 0x24e   :  { %8958 = vmatpush3.bf16.msra.mxu0 %v9689_v43  ;;  %v9696_v43 = vld [vmem:[%s12705_s3 + $0xb8] sm:$0xff]  }
 0x24f   :  { %8768 = vmatmul.mubr.msk.bf16.vlgmr.msra.gmra.mrb[80].mxu1 %vm1455_vm1, %v1973_v34  ;;  %8975 = vmatprep.subr.bf16.mxu0 %v12757_v27  ;;  %v3478_v34 = vrot.slane %v12790_v17, 6  ;;  %v12791_v17 = vunpack.c.h.b16 %v10942_v12 }
 0x250   :  { %8772 = vmatpush3.bf16.msra.mxu1 %v9690_v59  ;;  %8779 = vmatprep.mubr.msk.bf16.mxu1 %vm9964_vm2, %v12757_v27  ;;  %v9697_v59 = vld [vmem:[%s12705_s3 + $0x2d8] sm:$0xff]  }
 0x251   :  { %8960 = vmatmul.mubr.msk.bf16.vlgmr.msra.gmra.mrb[144].mxu0 %vm1455_vm1, %v3313_v10  ;;  %8773 = vmatprep.subr.bf16.mxu1 %v12757_v27  ;;  %v3480_v30 = vsel %vm1647_vm3, %v3479_v8, %v3478_v34  ;;  %v9699_v10 = vld [vmem:[%s12705_s3 + $0x300] sm:$0xff]   ;;  %v3646_v34 = vrot.slane %v12791_v17, 7 }
 0x252   :  { %8976 = vmatpush3.bf16.msra.mxu0 %v9691_v42  ;;  %8983 = vmatprep.mubr.msk.bf16.mxu0 %vm9964_vm2, %v12757_v27  ;;  %v2054_v42 = vpack.c.b16 %v2053_v46, %v2053_v46  ;;  %v3481_v50 = vpack.c.b16 %v3480_v30, %v3480_v30 }
 0x253   :  { %8977 = vmatprep.subr.bf16.mxu0 %v12757_v27 }
 0x254   :  { %8774 = vmatpush3.bf16.msra.mxu1 %v9692_v58  ;;  %v2124_v58 = vld [vmem:[#allocation2 + $0x20] sm:$0x8] }
 0x255   :  { %8775 = vmatprep.subr.bf16.mxu1 %v12757_v27  ;;  %v2137_v54 = vunpack.c.l.b16 %v2124_v58  ;;  %v9707_v58 = vld [vmem:[%s12705_s3 + $0x340] sm:$0xff]  }
 0x256   :  { %8978 = vmatpush3.bf16.msra.mxu0 %v9693_v0  ;;  %v9700_v0 = vld [vmem:[%s12705_s3 + $0xc8] sm:$0xff]  }
 0x257   :  { %8979 = vmatprep.subr.bf16.mxu0 %v12757_v27  ;;  %v2139_v8 = vrot.slane %v2137_v54, 5 }
 0x258   :  { %8776 = vmatpush3.bf16.msra.mxu1 %v9694_v52  ;;  %v2123_v52 = vld [vmem:[#allocation2] sm:$0x8] }
 0x259   :  { %8777 = vmatprep.subr.bf16.mxu1 %v12757_v27  ;;  %v2136_v36 = vunpack.c.l.b16 %v2123_v52  ;;  %v9709_v52 = vld [vmem:[%s12705_s3 + $0x348] sm:$0xff]  }
 0x25a   :  { %8980 = vmatpush3.bf16.msra.mxu0 %v9695_v4  ;;  %v9701_v4 = vld [vmem:[%s12705_s3 + $0x308] sm:$0xff]  }
 0x25b   :  { %8981 = vmatprep.subr.bf16.mxu0 %v12757_v27  ;;  %v2138_v46 = vrot.slane %v2136_v36, 6 }
 0x25c   :  { %8778 = vmatpush3.bf16.msra.mxu1 %v9696_v43  ;;  %v9702_v43 = vld [vmem:[%s12705_s3 + $0xd0] sm:$0xff]  }
 0x25d   :  { %8783 = vmatprep.subr.bf16.mxu1 %v12757_v27  ;;  %v2140_v30 = vsel %vm1647_vm3, %v2139_v8, %v2138_v46  ;;  %v9712_v8 = vld [vmem:[%s12705_s3 + $0xf8] sm:$0xff]   ;;  %v12793_v46 = vunpack.c.h.b16 %v10960_v55  ;;  %v9714_v55 = vld [vmem:[%s12705_s3 + $0x100] sm:$0xff]  }
 0x25e   :  { %8982 = vmatpush3.bf16.msra.mxu0 %v9697_v59  ;;  %v9704_v59 = vld [vmem:[%s12705_s3 + $0xd8] sm:$0xff]  }
 0x25f   :  { %8780 = vmatmul.mubr.msk.bf16.vlgmr.msra.gmra.mrb[84].mxu1 %vm1455_vm1, %v2054_v42  ;;  %8999 = vmatprep.subr.bf16.mxu0 %v12757_v27  ;;  %v9706_v42 = vld [vmem:[%s12705_s3 + $0xe0] sm:$0xff]   ;;  %v3813_v17 = vrot.slane %v12793_v46, 1 }
 0x260   :  { %8784 = vmatpush3.bf16.msra.mxu1 %v9698_v51  ;;  %8791 = vmatprep.mubr.msk.bf16.mxu1 %vm9964_vm2, %v12757_v27  ;;  %v9705_v51 = vld [vmem:[%s12705_s3 + $0x318] sm:$0xff]  }
 0x261   :  { %8984 = vmatmul.mubr.msk.bf16.vlgmr.msra.gmra.mrb[148].mxu0 %vm1455_vm1, %v3481_v50  ;;  %8785 = vmatprep.subr.bf16.mxu1 %v12757_v27  ;;  %v2141_v50 = vpack.c.b16 %v2140_v30, %v2140_v30 }
 0x262   :  { %9000 = vmatpush3.bf16.msra.mxu0 %v9699_v10  ;;  %9007 = vmatprep.mubr.msk.bf16.mxu0 %vm9964_vm2, %v12757_v27  ;;  %v12792_v10 = vunpack.c.h.b16 %v10885_v11  ;;  %v9708_v11 = vld [vmem:[%s12705_s3 + $0xe8] sm:$0xff]  }
 0x263   :  { %9001 = vmatprep.subr.bf16.mxu0 %v12757_v27 }
 0x264   :  { %8786 = vmatpush3.bf16.msra.mxu1 %v9700_v0  ;;  %v3647_v12 = vsel %vm1647_vm3, %v3646_v34, %v12792_v10  ;;  %v9713_v34 = vld [vmem:[%s12705_s3 + $0x358] sm:$0xff]   ;;  %v9715_v10 = vld [vmem:[%s12705_s3 + $0x380] sm:$0xff]  }
 0x265   :  { %8787 = vmatprep.subr.bf16.mxu1 %v12757_v27  ;;  %v3648_v0 = vpack.c.b16 %v3647_v12, %v3647_v12  ;;  %v11469_v12 = vld [vmem:[#allocation2 + $0x20] sm:$0x10] }
 0x266   :  { %9002 = vmatpush3.bf16.msra.mxu0 %v9701_v4  ;;  %v9710_v4 = vld [vmem:[%s12705_s3 + $0xf0] sm:$0xff]  }
 0x267   :  { %9003 = vmatprep.subr.bf16.mxu0 %v12757_v27 }
 0x268   :  { %8788 = vmatpush3.bf16.msra.mxu1 %v9702_v43  ;;  %v9711_v43 = vld [vmem:[%s12705_s3 + $0x350] sm:$0xff]  }
 0x269   :  { %8789 = vmatprep.subr.bf16.mxu1 %v12757_v27 }
 0x26a   :  { %9004 = vmatpush3.bf16.msra.mxu0 %v9703_v20  ;;  %v2220_v20 = vrot.slane %v2137_v54, 6 }
 0x26b   :  { %9005 = vmatprep.subr.bf16.mxu0 %v12757_v27 }
 0x26c   :  { %8790 = vmatpush3.bf16.msra.mxu1 %v9704_v59  ;;  %v2219_v59 = vrot.slane %v2136_v36, 7 }
 0x26d   :  { %8795 = vmatprep.subr.bf16.mxu1 %v12757_v27 }
 0x26e   :  { %9006 = vmatpush3.bf16.msra.mxu0 %v9705_v51  ;;  %v2221_v54 = vsel %vm1647_vm3, %v2220_v20, %v2219_v59  ;;  %v12794_v51 = vunpack.c.h.b16 %v10908_v25  ;;  %v9720_v20 = vld [vmem:[%s12705_s3 + $0x118] sm:$0xff]   ;;  %v12795_v59 = vunpack.c.h.b16 %v10962_v9  ;;  %v9722_v9 = vld [vmem:[%s12705_s3 + $0x120] sm:$0xff]  }
 0x26f   :  { %8792 = vmatmul.mubr.msk.bf16.vlgmr.msra.gmra.mrb[88].mxu1 %vm1455_vm1, %v2141_v50  ;;  %9023 = vmatprep.subr.bf16.mxu0 %v12757_v27  ;;  %v9716_v50 = vld [vmem:[%s12705_s3 + $0x108] sm:$0xff]  }
 0x270   :  { %8796 = vmatpush3.bf16.msra.mxu1 %v9706_v42  ;;  %8803 = vmatprep.mubr.msk.bf16.mxu1 %vm9964_vm2, %v12757_v27  ;;  %v3812_v30 = vrot.slane %v12794_v51, 2  ;;  %v2222_v42 = vpack.c.b16 %v2221_v54, %v2221_v54  ;;  %v3981_v46 = vrot.slane %v12795_v59, 3  ;;  %v12796_v54 = vunpack.c.h.b16 %v10910_v41 }
 0x271   :  { %9008 = vmatmul.mubr.msk.bf16.vlgmr.msra.gmra.mrb[152].mxu0 %vm1455_vm1, %v3648_v0  ;;  %8797 = vmatprep.subr.bf16.mxu1 %v12757_v27  ;;  %v2305_v0 = vunpack.c.h.b16 %v11469_v12  ;;  %v9727_v12 = vld [vmem:[%s12705_s3 + $0x3d0] sm:$0xff]  }
 0x272   :  { %9024 = vmatpush3.bf16.msra.mxu0 %v9707_v58  ;;  %9031 = vmatprep.mubr.msk.bf16.mxu0 %vm9964_vm2, %v12757_v27  ;;  %v3814_v36 = vsel %vm1647_vm3, %v3813_v17, %v3812_v30  ;;  %v9717_v58 = vld [vmem:[%s12705_s3 + $0x388] sm:$0xff]   ;;  %v9721_v17 = vld [vmem:[%s12705_s3 + $0x398] sm:$0xff]   ;;  %v3980_v51 = vrot.slane %v12796_v54, 4  ;;  %v2457_v54 = vld [vmem:[#allocation2] sm:$0x20] }
 0x273   :  { %9025 = vmatprep.subr.bf16.mxu0 %v12757_v27  ;;  %v3815_v25 = vpack.c.b16 %v3814_v36, %v3814_v36  ;;  %v9723_v36 = vld [vmem:[%s12705_s3 + $0x3c0] sm:$0xff]  }
 0x274   :  { %8798 = vmatpush3.bf16.msra.mxu1 %v9708_v11  ;;  %v9718_v11 = vld [vmem:[%s12705_s3 + $0x110] sm:$0xff]   ;;  %v3982_v30 = vsel %vm1647_vm3, %v3981_v46, %v3980_v51  ;;  %v9733_v51 = vld [vmem:[%s12705_s3 + $0x408] sm:$0xff]  }
 0x275   :  { %8799 = vmatprep.subr.bf16.mxu1 %v12757_v27  ;;  %v3983_v41 = vpack.c.b16 %v3982_v30, %v3982_v30  ;;  %v9734_v30 = vld [vmem:[%s12705_s3 + $0x150] sm:$0xff]  }
 0x276   :  { %9026 = vmatpush3.bf16.msra.mxu0 %v9709_v52  ;;  %v2291_v52 = vld [vmem:[#allocation2] sm:$0x10] }
 0x277   :  { %9027 = vmatprep.subr.bf16.mxu0 %v12757_v27 }
 0x278   :  { %8800 = vmatpush3.bf16.msra.mxu1 %v9710_v4  ;;  %v9719_v4 = vld [vmem:[%s12705_s3 + $0x390] sm:$0xff]  }
 0x279   :  { %8801 = vmatprep.subr.bf16.mxu1 %v12757_v27 }
 0x27a   :  { %9028 = vmatpush3.bf16.msra.mxu0 %v9711_v43  ;;  %v2306_v43 = vrot.slane %v2305_v0, 7 }
 0x27b   :  { %9029 = vmatprep.subr.bf16.mxu0 %v12757_v27 }
 0x27c   :  { %8802 = vmatpush3.bf16.msra.mxu1 %v9712_v8  ;;  %v2304_v8 = vunpack.c.h.b16 %v2291_v52 }
 0x27d   :  { %8807 = vmatprep.subr.bf16.mxu1 %v12757_v27 }
 0x27e   :  { %9030 = vmatpush3.bf16.msra.mxu0 %v9713_v34  ;;  %v2307_v34 = vsel %vm1647_vm3, %v2306_v43, %v2304_v8 }
 0x27f   :  { %8804 = vmatmul.mubr.msk.bf16.vlgmr.msra.gmra.mrb[92].mxu1 %vm1455_vm1, %v2222_v42  ;;  %9047 = vmatprep.subr.bf16.mxu0 %v12757_v27  ;;  %v9724_v42 = vld [vmem:[%s12705_s3 + $0x128] sm:$0xff]  }
 0x280   :  { %8808 = vmatpush3.bf16.msra.mxu1 %v9714_v55  ;;  %8815 = vmatprep.mubr.msk.bf16.mxu1 %vm9964_vm2, %v12757_v27  ;;  %v2308_v55 = vpack.c.b16 %v2307_v34, %v2307_v34  ;;  %v9732_v34 = vld [vmem:[%s12705_s3 + $0x148] sm:$0xff]  }
 0x281   :  { %9032 = vmatmul.mubr.msk.bf16.vlgmr.msra.gmra.mrb[156].mxu0 %vm1455_vm1, %v3815_v25  ;;  %8809 = vmatprep.subr.bf16.mxu1 %v12757_v27  ;;  %v9726_v25 = vld [vmem:[%s12705_s3 + $0x130] sm:$0xff]  }
 0x282   :  { %9048 = vmatpush3.bf16.msra.mxu0 %v9715_v10  ;;  %9055 = vmatprep.mubr.msk.bf16.mxu0 %vm9964_vm2, %v12757_v27  ;;  %v9725_v10 = vld [vmem:[%s12705_s3 + $0x3c8] sm:$0xff]  }
 0x283   :  { %9049 = vmatprep.subr.bf16.mxu0 %v12757_v27 }
 0x284   :  { %8810 = vmatpush3.bf16.msra.mxu1 %v9716_v50  ;;  %v9728_v50 = vld [vmem:[%s12705_s3 + $0x138] sm:$0xff]  }
 0x285   :  { %8811 = vmatprep.subr.bf16.mxu1 %v12757_v27 }
 0x286   :  { %9050 = vmatpush3.bf16.msra.mxu0 %v9717_v58  ;;  %v2386_v58 = vrot.slane %v2304_v8, 1 }
 0x287   :  { %9051 = vmatprep.subr.bf16.mxu0 %v12757_v27 }
 0x288   :  { %8812 = vmatpush3.bf16.msra.mxu1 %v9718_v11  ;;  %v12797_v11 = vunpack.c.h.b16 %v10970_v63  ;;  %v2387_v43 = vsel %vm1647_vm3, %v2305_v0, %v2386_v58  ;;  %v9730_v63 = vld [vmem:[%s12705_s3 + $0x140] sm:$0xff]  }
 0x289   :  { %8813 = vmatprep.subr.bf16.mxu1 %v12757_v27  ;;  %v2388_v46 = vpack.c.b16 %v2387_v43, %v2387_v43  ;;  %v9731_v0 = vld [vmem:[%s12705_s3 + $0x400] sm:$0xff]  }
 0x28a   :  { %9052 = vmatpush3.bf16.msra.mxu0 %v9719_v4  ;;  %v4149_v52 = vrot.slane %v12797_v11, 5  ;;  %v9729_v4 = vld [vmem:[%s12705_s3 + $0x3d8] sm:$0xff]   ;;  %v9738_v11 = vld [vmem:[%s12705_s3 + $0x160] sm:$0xff]  }
 0x28b   :  { %9053 = vmatprep.subr.bf16.mxu0 %v12757_v27  ;;  %v9739_v43 = vld [vmem:[%s12705_s3 + $0x440] sm:$0xff]  }
 0x28c   :  { %8814 = vmatpush3.bf16.msra.mxu1 %v9720_v20  ;;  %v12798_v20 = vunpack.c.h.b16 %v10917_v7 }
 0x28d   :  { %8819 = vmatprep.subr.bf16.mxu1 %v12757_v27 }
 0x28e   :  { %9054 = vmatpush3.bf16.msra.mxu0 %v9721_v17  ;;  %v4148_v59 = vrot.slane %v12798_v20, 6  ;;  %v2458_v17 = vld [vmem:[#allocation2 + $0x20] sm:$0x20] }
 0x28f   :  { %8816 = vmatmul.mubr.msk.bf16.vlgmr.msra.gmra.mrb[96].mxu1 %vm1455_vm1, %v2308_v55  ;;  %9071 = vmatprep.subr.bf16.mxu0 %v12757_v27  ;;  %v2470_v55 = vunpack.c.h.b16 %v2457_v54  ;;  %v9745_v54 = vld [vmem:[%s12705_s3 + $0x458] sm:$0xff]  }
 0x290   :  { %8820 = vmatpush3.bf16.msra.mxu1 %v9722_v9  ;;  %8827 = vmatprep.mubr.msk.bf16.mxu1 %vm9964_vm2, %v12757_v27  ;;  %v4150_v8 = vsel %vm1647_vm3, %v4149_v52, %v4148_v59  ;;  %v2471_v9 = vunpack.c.h.b16 %v2458_v17  ;;  %v12800_v52 = vunpack.c.l.b16 %v10919_v3  ;;  %v9740_v3 = vld [vmem:[%s12705_s3 + $0x168] sm:$0xff]   ;;  %v12801_v17 = vunpack.c.l.b16 %v11045_v39  ;;  %v9746_v39 = vld [vmem:[%s12705_s3 + $0x1a0] sm:$0xff]  }
 0x291   :  { %9056 = vmatmul.mubr.msk.bf16.vlgmr.msra.gmra.mrb[160].mxu0 %vm1455_vm1, %v3983_v41  ;;  %8821 = vmatprep.subr.bf16.mxu1 %v12757_v27  ;;  %v4151_v7 = vpack.c.b16 %v4150_v8, %v4150_v8  ;;  %v9741_v59 = vld [vmem:[%s12705_s3 + $0x448] sm:$0xff]   ;;  %v9743_v8 = vld [vmem:[%s12705_s3 + $0x450] sm:$0xff]  }
 0x292   :  { %9072 = vmatpush3.bf16.msra.mxu0 %v9723_v36  ;;  %9079 = vmatprep.mubr.msk.bf16.mxu0 %vm9964_vm2, %v12757_v27  ;;  %v9735_v36 = vld [vmem:[%s12705_s3 + $0x410] sm:$0xff]   ;;  %v2473_v41 = vrot.slane %v2471_v9, 1 }
 0x293   :  { %9073 = vmatprep.subr.bf16.mxu0 %v12757_v27 }
 0x294   :  { %8822 = vmatpush3.bf16.msra.mxu1 %v9724_v42  ;;  %v9736_v42 = vld [vmem:[%s12705_s3 + $0x158] sm:$0xff]  }
 0x295   :  { %8823 = vmatprep.subr.bf16.mxu1 %v12757_v27 }
 0x296   :  { %9074 = vmatpush3.bf16.msra.mxu0 %v9725_v10  ;;  %v2472_v10 = vrot.slane %v2470_v55, 2 }
 0x297   :  { %9075 = vmatprep.subr.bf16.mxu0 %v12757_v27 }
 0x298   :  { %8824 = vmatpush3.bf16.msra.mxu1 %v9726_v25  ;;  %v12799_v25 = vunpack.c.l.b16 %v11018_v2  ;;  %v2474_v58 = vsel %vm1647_vm3, %v2473_v41, %v2472_v10  ;;  %v9747_v41 = vld [vmem:[%s12705_s3 + $0x480] sm:$0xff]   ;;  %v9749_v10 = vld [vmem:[%s12705_s3 + $0x488] sm:$0xff]  }
 0x299   :  { %8825 = vmatprep.subr.bf16.mxu1 %v12757_v27 }
 0x29a   :  { %9076 = vmatpush3.bf16.msra.mxu0 %v9727_v12  ;;  %v4316_v12 = vrot.slane %v12799_v25, 7  ;;  %v9750_v25 = vld [vmem:[%s12705_s3 + $0x1b0] sm:$0xff]  }
 0x29b   :  { %9077 = vmatprep.subr.bf16.mxu0 %v12757_v27 }
 0x29c   :  { %8826 = vmatpush3.bf16.msra.mxu1 %v9728_v50  ;;  %v9737_v50 = vld [vmem:[%s12705_s3 + $0x418] sm:$0xff]   ;;  %v4317_v2 = vsel %vm1647_vm3, %v4316_v12, %v12800_v52  ;;  %v9751_v12 = vld [vmem:[%s12705_s3 + $0x490] sm:$0xff]  }
 0x29d   :  { %8831 = vmatprep.subr.bf16.mxu1 %v12757_v27  ;;  %v4318_v20 = vpack.c.b16 %v4317_v2, %v4317_v2  ;;  %v9753_v52 = vld [vmem:[%s12705_s3 + $0x498] sm:$0xff]   ;;  %v12804_v2 = vunpack.c.l.b16 %v10931_v21  ;;  %v9755_v21 = vld [vmem:[%s12705_s3 + $0x4c0] sm:$0xff]  }
 0x29e   :  { %9078 = vmatpush3.bf16.msra.mxu0 %v9729_v4  ;;  %v2475_v4 = vpack.c.b16 %v2474_v58, %v2474_v58  ;;  %v12803_v58 = vunpack.c.l.b16 %v11047_v16 }
 0x29f   :  { %8828 = vmatmul.mubr.msk.bf16.vlgmr.msra.gmra.mrb[100].mxu1 %vm1455_vm1, %v2388_v46  ;;  %9095 = vmatprep.subr.bf16.mxu0 %v12757_v27  ;;  %v2554_v46 = vrot.slane %v2471_v9, 2  ;;  %v12802_v9 = vunpack.c.l.b16 %v10929_v18 }
 0x2a0   :  { %8832 = vmatpush3.bf16.msra.mxu1 %v9730_v63  ;;  %8839 = vmatprep.mubr.msk.bf16.mxu1 %vm9964_vm2, %v12757_v27  ;;  %v9742_v63 = vld [vmem:[%s12705_s3 + $0x170] sm:$0xff]  }
 0x2a1   :  { %9080 = vmatmul.mubr.msk.bf16.vlgmr.msra.gmra.mrb[164].mxu0 %vm1455_vm1, %v4151_v7  ;;  %8833 = vmatprep.subr.bf16.mxu1 %v12757_v27  ;;  %v2553_v7 = vrot.slane %v2470_v55, 3 }
 0x2a2   :  { %9096 = vmatpush3.bf16.msra.mxu0 %v9731_v0  ;;  %9103 = vmatprep.mubr.msk.bf16.mxu0 %vm9964_vm2, %v12757_v27  ;;  %v9744_v0 = vld [vmem:[%s12705_s3 + $0x178] sm:$0xff]  }
 0x2a3   :  { %9097 = vmatprep.subr.bf16.mxu0 %v12757_v27 }
 0x2a4   :  { %8834 = vmatpush3.bf16.msra.mxu1 %v9732_v34  ;;  %v4483_v34 = vrot.slane %v12801_v17, 1  ;;  %v9761_v17 = vld [vmem:[%s12705_s3 + $0x4d8] sm:$0xff]  }
 0x2a5   :  { %8835 = vmatprep.subr.bf16.mxu1 %v12757_v27 }
 0x2a6   :  { %9098 = vmatpush3.bf16.msra.mxu0 %v9733_v51  ;;  %v2555_v51 = vsel %vm1647_vm3, %v2554_v46, %v2553_v7  ;;  %v9760_v46 = vld [vmem:[%s12705_s3 + $0x1f8] sm:$0xff]  }
 0x2a7   :  { %9099 = vmatprep.subr.bf16.mxu0 %v12757_v27 }
 0x2a8   :  { %8836 = vmatpush3.bf16.msra.mxu1 %v9734_v30  ;;  %v4482_v30 = vrot.slane %v12802_v9, 2  ;;  %v2892_v9 = vpack.c.b16 %v10956_v47, %v10956_v47 }
 0x2a9   :  { %8837 = vmatprep.subr.bf16.mxu1 %v12757_v27 }
 0x2aa   :  { %9100 = vmatpush3.bf16.msra.mxu0 %v9735_v36  ;;  %v4484_v55 = vsel %vm1647_vm3, %v4483_v34, %v4482_v30  ;;  %v2556_v36 = vpack.c.b16 %v2555_v51, %v2555_v51  ;;  %v12806_v34 = vunpack.c.l.b16 %v10958_v48  ;;  %v9762_v51 = vld [vmem:[%s12705_s3 + $0x220] sm:$0xff]  }
 0x2ab   :  { %9101 = vmatprep.subr.bf16.mxu0 %v12757_v27  ;;  %v4485_v18 = vpack.c.b16 %v4484_v55, %v4484_v55  ;;  %v9763_v48 = vld [vmem:[%s12705_s3 + $0x500] sm:$0xff]   ;;  %v9765_v55 = vld [vmem:[%s12705_s3 + $0x508] sm:$0xff]  }
 0x2ac   :  { %8838 = vmatpush3.bf16.msra.mxu1 %v9736_v42  ;;  %v9748_v42 = vld [vmem:[%s12705_s3 + $0x1a8] sm:$0xff]  }
 0x2ad   :  { %8843 = vmatprep.subr.bf16.mxu1 %v12757_v27 }
 0x2ae   :  { %9102 = vmatpush3.bf16.msra.mxu0 %v9737_v50  ;;  %v9752_v50 = vld [vmem:[%s12705_s3 + $0x1b8] sm:$0xff]  }
 0x2af   :  { %8840 = vmatmul.mubr.msk.bf16.vlgmr.msra.gmra.mrb[104].mxu1 %vm1455_vm1, %v2475_v4  ;;  %9119 = vmatprep.subr.bf16.mxu0 %v12757_v27  ;;  %v4650_v4 = vrot.slane %v12804_v2, 4 }
 0x2b0   :  { %8844 = vmatpush3.bf16.msra.mxu1 %v9738_v11  ;;  %8851 = vmatprep.mubr.msk.bf16.mxu1 %vm9964_vm2, %v12757_v27  ;;  %v4651_v11 = vrot.slane %v12803_v58, 3 }
 0x2b1   :  { %9104 = vmatmul.mubr.msk.bf16.vlgmr.msra.gmra.mrb[168].mxu0 %vm1455_vm1, %v4318_v20  ;;  %8845 = vmatprep.subr.bf16.mxu1 %v12757_v27  ;;  %v2724_v20 = vpack.c.b16 %v10922_v33, %v10922_v33  ;;  %v9757_v33 = vld [vmem:[%s12705_s3 + $0x4c8] sm:$0xff]  }
 0x2b2   :  { %9120 = vmatpush3.bf16.msra.mxu0 %v9739_v43  ;;  %9127 = vmatprep.mubr.msk.bf16.mxu0 %vm9964_vm2, %v12757_v27  ;;  %v9754_v43 = vld [vmem:[%s12705_s3 + $0x1e0] sm:$0xff]   ;;  %v4652_v16 = vsel %vm1647_vm3, %v4651_v11, %v4650_v4  ;;  %v9768_v11 = vld [vmem:[%s12705_s3 + $0x238] sm:$0xff]  }
 0x2b3   :  { %9121 = vmatprep.subr.bf16.mxu0 %v12757_v27  ;;  %v9769_v4 = vld [vmem:[%s12705_s3 + $0x518] sm:$0xff]  }
 0x2b4   :  { %8846 = vmatpush3.bf16.msra.mxu1 %v9740_v3  ;;  %v4653_v3 = vpack.c.b16 %v4652_v16, %v4652_v16  ;;  %v12808_v16 = vunpack.c.h.b16 %v10984_v29  ;;  %v9772_v29 = vld [vmem:[%s12705_s3 + $0x268] sm:$0xff]  }
 0x2b5   :  { %8847 = vmatprep.subr.bf16.mxu1 %v12757_v27 }
 0x2b6   :  { %9122 = vmatpush3.bf16.msra.mxu0 %v9741_v59  ;;  %v9756_v59 = vld [vmem:[%s12705_s3 + $0x1e8] sm:$0xff]  }
 0x2b7   :  { %9123 = vmatprep.subr.bf16.mxu0 %v12757_v27 }
 0x2b8   :  { %8848 = vmatpush3.bf16.msra.mxu1 %v9742_v63  ;;  %v9758_v63 = vld [vmem:[%s12705_s3 + $0x1f0] sm:$0xff]  }
 0x2b9   :  { %8849 = vmatprep.subr.bf16.mxu1 %v12757_v27 }
 0x2ba   :  { %9124 = vmatpush3.bf16.msra.mxu0 %v9743_v8  ;;  %v9759_v8 = vld [vmem:[%s12705_s3 + $0x4d0] sm:$0xff]  }
 0x2bb   :  { %9125 = vmatprep.subr.bf16.mxu0 %v12757_v27 }
 0x2bc   :  { %8850 = vmatpush3.bf16.msra.mxu1 %v9744_v0  ;;  %v12805_v0 = vunpack.c.l.b16 %v11060_v28 }
 0x2bd   :  { %8867 = vmatprep.subr.bf16.mxu1 %v12757_v27 }
 0x2be   :  { %9126 = vmatpush3.bf16.msra.mxu0 %v9745_v54  ;;  %v4819_v7 = vrot.slane %v12805_v0, 5  ;;  %v4818_v54 = vrot.slane %v12806_v34, 6  ;;  %v9774_v0 = vld [vmem:[%s12705_s3 + $0x270] sm:$0xff]  }
 0x2bf   :  { %8852 = vmatmul.mubr.msk.bf16.vlgmr.msra.gmra.mrb[108].mxu1 %vm1455_vm1, %v2556_v36  ;;  %9143 = vmatprep.subr.bf16.mxu0 %v12757_v27 }
 0x2c0   :  { %8868 = vmatpush3.bf16.msra.mxu1 %v9746_v39  ;;  %8875 = vmatprep.mubr.msk.bf16.mxu1 %vm9964_vm2, %v12757_v27  ;;  %v4820_v28 = vsel %vm1647_vm3, %v4819_v7, %v4818_v54  ;;  %v9764_v39 = vld [vmem:[%s12705_s3 + $0x228] sm:$0xff]   ;;  %v9775_v54 = vld [vmem:[%s12705_s3 + $0x550] sm:$0xff]  }
 0x2c1   :  { %9128 = vmatmul.mubr.msk.bf16.vlgmr.msra.gmra.mrb[172].mxu0 %vm1455_vm1, %v4485_v18  ;;  %8869 = vmatprep.subr.bf16.mxu1 %v12757_v27  ;;  %v4821_v30 = vpack.c.b16 %v4820_v28, %v4820_v28  ;;  %v9776_v28 = vld [vmem:[%s12705_s3 + $0x278] sm:$0xff]  }
 0x2c2   :  { %9144 = vmatpush3.bf16.msra.mxu0 %v9747_v41  ;;  %9151 = vmatprep.mubr.msk.bf16.mxu0 %vm9964_vm2, %v12757_v27 }
 0x2c3   :  { %9145 = vmatprep.subr.bf16.mxu0 %v12757_v27 }
 0x2c4   :  { %8870 = vmatpush3.bf16.msra.mxu1 %v9748_v42  ;;  %v9766_v42 = vld [vmem:[%s12705_s3 + $0x230] sm:$0xff]  }
 0x2c5   :  { %8871 = vmatprep.subr.bf16.mxu1 %v12757_v27 }
 0x2c6   :  { %9146 = vmatpush3.bf16.msra.mxu0 %v9749_v10 }
 0x2c7   :  { %9147 = vmatprep.subr.bf16.mxu0 %v12757_v27 }
 0x2c8   :  { %8872 = vmatpush3.bf16.msra.mxu1 %v9750_v25 }
 0x2c9   :  { %8873 = vmatprep.subr.bf16.mxu1 %v12757_v27 }
 0x2ca   :  { %9148 = vmatpush3.bf16.msra.mxu0 %v9751_v12 }
 0x2cb   :  { %9149 = vmatprep.subr.bf16.mxu0 %v12757_v27 }
 0x2cc   :  { %8874 = vmatpush3.bf16.msra.mxu1 %v9752_v50  ;;  %v9767_v50 = vld [vmem:[%s12705_s3 + $0x510] sm:$0xff]  }
 0x2cd   :  { %8891 = vmatprep.subr.bf16.mxu1 %v12757_v27 }
 0x2ce   :  { %9150 = vmatpush3.bf16.msra.mxu0 %v9753_v52  ;;  %v12807_v52 = vunpack.c.h.b16 %v11070_v5  ;;  %v3058_v5 = vpack.c.b16 %v10947_v32, %v10947_v32 }
 0x2cf   :  { %8876 = vmatmul.mubr.msk.bf16.vlgmr.msra.gmra.mrb[112].mxu1 %vm1455_vm1, %v2724_v20  ;;  %9167 = vmatprep.subr.bf16.mxu0 %v12757_v27 }
 0x2d0   :  { %8892 = vmatpush3.bf16.msra.mxu1 %v9754_v43  ;;  %8899 = vmatprep.mubr.msk.bf16.mxu1 %vm9964_vm2, %v12757_v27  ;;  %v4986_v2 = vrot.slane %v12807_v52, 7  ;;  %v9770_v43 = vld [vmem:[%s12705_s3 + $0x260] sm:$0xff]  }
 0x2d1   :  { %9152 = vmatmul.mubr.msk.bf16.vlgmr.msra.gmra.mrb[176].mxu0 %vm1455_vm1, %v4653_v3  ;;  %8893 = vmatprep.subr.bf16.mxu1 %v12757_v27 }
 0x2d2   :  { %9168 = vmatpush3.bf16.msra.mxu0 %v9755_v21  ;;  %9175 = vmatprep.mubr.msk.bf16.mxu0 %vm9964_vm2, %v12757_v27  ;;  %v4987_v20 = vsel %vm1647_vm3, %v4986_v2, %v12808_v16  ;;  %v9771_v21 = vld [vmem:[%s12705_s3 + $0x540] sm:$0xff]  }
 0x2d3   :  { %9169 = vmatprep.subr.bf16.mxu0 %v12757_v27  ;;  %v4988_v3 = vpack.c.b16 %v4987_v20, %v4987_v20 }
 0x2d4   :  { %8894 = vmatpush3.bf16.msra.mxu1 %v9756_v59  ;;  %v9773_v59 = vld [vmem:[%s12705_s3 + $0x548] sm:$0xff]  }
 0x2d5   :  { %8895 = vmatprep.subr.bf16.mxu1 %v12757_v27 }
 0x2d6   :  { %9170 = vmatpush3.bf16.msra.mxu0 %v9757_v33 }
 0x2d7   :  { %9171 = vmatprep.subr.bf16.mxu0 %v12757_v27 }
 0x2d8   :  { %8896 = vmatpush3.bf16.msra.mxu1 %v9758_v63 }
 0x2d9   :  { %8897 = vmatprep.subr.bf16.mxu1 %v12757_v27 }
 0x2da   :  { %9172 = vmatpush3.bf16.msra.mxu0 %v9759_v8 }
 0x2db   :  { %9173 = vmatprep.subr.bf16.mxu0 %v12757_v27 }
 0x2dc   :  { %8898 = vmatpush3.bf16.msra.mxu1 %v9760_v46 }
 0x2dd   :  { %8915 = vmatprep.subr.bf16.mxu1 %v12757_v27 }
 0x2de   :  { %9174 = vmatpush3.bf16.msra.mxu0 %v9761_v17 }
 0x2df   :  { %8900 = vmatmul.mubr.msk.bf16.vlgmr.msra.gmra.mrb[116].mxu1 %vm1455_vm1, %v2892_v9  ;;  %9191 = vmatprep.subr.bf16.mxu0 %v12757_v27  ;;  %v12809_v9 = vunpack.c.h.b16 %v11113_v26 }
 0x2e0   :  { %8916 = vmatpush3.bf16.msra.mxu1 %v9762_v51  ;;  %8923 = vmatprep.mubr.msk.bf16.mxu1 %vm9964_vm2, %v12757_v27 }
 0x2e1   :  { %9176 = vmatmul.mubr.msk.bf16.vlgmr.msra.gmra.mrb[180].mxu0 %vm1455_vm1, %v4821_v30  ;;  %8917 = vmatprep.subr.bf16.mxu1 %v12757_v27  ;;  %v9777_v30 = vld [vmem:[%s12705_s3 + $0x558] sm:$0xff]  }
 0x2e2   :  { %9192 = vmatpush3.bf16.msra.mxu0 %v9763_v48  ;;  %v1711_v47 = vpop.f32.mrb[64].mxu1  ;;  %9199 = vmatprep.mubr.msk.bf16.mxu0 %vm9964_vm2, %v12757_v27  ;;  %v5153_v48 = vrot.slane %v12809_v9, 1 }
 0x2e3   :  { %v8721_v36 = vpop.f32.mrb[65].mxu1  ;;  %9193 = vmatprep.subr.bf16.mxu0 %v12757_v27 }
 0x2e4   :  { %8918 = vmatpush3.bf16.msra.mxu1 %v9764_v39  ;;  %v1714_v41 = vpop.f32.mrb[66].mxu1  ;;  %v11751_v18 = vpop.f32.mrb[128].mxu0  ;;  %v12810_v39 = vld [vmem:[#allocation7_spill] sm:$0xff]  ;;  %v9778_v36 = vld [vmem:[%s12705_s3 + $0x2a0] sm:$0xff]  }
 0x2e5   :  { %v8722_v10 = vpop.f32.mrb[67].mxu1  ;;  %v8865_v25 = vpop.f32.mrb[129].mxu0  ;;  %8919 = vmatprep.subr.bf16.mxu1 %v12757_v27  ;;  %v12812_v41 = vld [vmem:[#allocation6_spill] sm:$0xff] }
 0x2e6   :  { %9194 = vmatpush3.bf16.msra.mxu0 %v9765_v55  ;;  %v2708_v12 = vpop.f32.mrb[130].mxu0  ;;  %v9779_v10 = vld [vmem:[%s12705_s3 + $0x580] sm:$0xff]  }
 0x2e7   :  { %v8866_v58 = vpop.f32.mrb[131].mxu0  ;;  %9195 = vmatprep.subr.bf16.mxu0 %v12757_v27  ;;  %v9780_v12 = vld [vmem:[%s12705_s3 + $0x2a8] sm:$0xff]  }
 0x2e8   :  { %8920 = vmatpush3.bf16.msra.mxu1 %v9766_v42  ;;  %v3226_v42 = vpack.c.b16 %v12812_v41, %v12812_v41  ;;  %v9781_v58 = vld [vmem:[%s12705_s3 + $0x588] sm:$0xff]  }
 0x2e9   :  { %8921 = vmatprep.subr.bf16.mxu1 %v12757_v27 }
 0x2ea   :  { %9196 = vmatpush3.bf16.msra.mxu0 %v9767_v50 }
 0x2eb   :  { %9197 = vmatprep.subr.bf16.mxu0 %v12757_v27 }
 0x2ec   :  { %8922 = vmatpush3.bf16.msra.mxu1 %v9768_v11 }
 0x2ed   :  { %8939 = vmatprep.subr.bf16.mxu1 %v12757_v27 }
 0x2ee   :  { %9198 = vmatpush3.bf16.msra.mxu0 %v9769_v4 }
 0x2ef   :  { %8924 = vmatmul.mubr.msk.bf16.vlgmr.msra.gmra.mrb[120].mxu1 %vm1455_vm1, %v3058_v5  ;;  %9215 = vmatprep.subr.bf16.mxu0 %v12757_v27 }
 0x2f0   :  { %8940 = vmatpush3.bf16.msra.mxu1 %v9770_v43  ;;  %8947 = vmatprep.mubr.msk.bf16.mxu1 %vm9964_vm2, %v12757_v27  ;;  %v9782_v43 = vld [vmem:[%s12705_s3 + $0x2b0] sm:$0xff]  }
 0x2f1   :  { %9200 = vmatmul.mubr.msk.bf16.vlgmr.msra.gmra.mrb[184].mxu0 %vm1455_vm1, %v4988_v3  ;;  %8941 = vmatprep.subr.bf16.mxu1 %v12757_v27 }
 0x2f2   :  { %v1781_v32 = vpop.f32.mrb[68].mxu1  ;;  %9216 = vmatpush3.bf16.msra.mxu0 %v9771_v21  ;;  %9223 = vmatprep.mubr.msk.bf16.mxu0 %vm9964_vm2, %v12757_v27  ;;  %v9783_v21 = vld [vmem:[%s12705_s3 + $0x590] sm:$0xff]  }
 0x2f3   :  { %v1782_v33 = vadd.f32 %v1781_v32, %v1711_v47  ;;  %v8733_v63 = vpop.f32.mrb[69].mxu1  ;;  %9217 = vmatprep.subr.bf16.mxu0 %v12757_v27  ;;  %v12811_v47 = vunpack.c.h.b16 %v12810_v39  ;;  %v12813_v32 = vunpack.c.h.b16 %v11132_v13 }
 0x2f4   :  { %v1784_v8 = vpop.f32.mrb[70].mxu1  ;;  %v11798_v46 = vpop.f32.mrb[132].mxu0  ;;  %8942 = vmatpush3.bf16.msra.mxu1 %v9772_v29  ;;  %v9784_v29 = vld [vmem:[%s12705_s3 + $0x2b8] sm:$0xff]  }
 0x2f5   :  { %v8734_v7 = vpop.f32.mrb[71].mxu1  ;;  %v8889_v17 = vpop.f32.mrb[133].mxu0  ;;  %8943 = vmatprep.subr.bf16.mxu1 %v12757_v27  ;;  %v5152_v55 = vrot.slane %v12811_v47, 2  ;;  %v12814_v63 = vld [vmem:[#allocation9_spill] sm:$0xff] }
 0x2f6   :  { %v2876_v34 = vpop.f32.mrb[134].mxu0  ;;  %9218 = vmatpush3.bf16.msra.mxu0 %v9773_v59  ;;  %v5321_v59 = vrot.slane %v12813_v32, 3  ;;  %v12815_v8 = vunpack.c.h.b16 %v12814_v63  ;;  %v9786_v7 = vld [vmem:[%s12705_s3 + $0x2e0] sm:$0xff]   ;;  %v12816_v17 = vld [vmem:[#allocation8_spill] sm:$0xff] }
 0x2f7   :  { %v8890_v51 = vpop.f32.mrb[135].mxu0  ;;  %9219 = vmatprep.subr.bf16.mxu0 %v12757_v27  ;;  %v5154_v26 = vsel %vm1647_vm3, %v5153_v48, %v5152_v55  ;;  %v3394_v34 = vpack.c.b16 %v12816_v17, %v12816_v17  ;;  %v9789_v48 = vld [vmem:[%s12705_s3 + $0x5c8] sm:$0xff]  }
 0x2f8   :  { %8944 = vmatpush3.bf16.msra.mxu1 %v9774_v0  ;;  %v5155_v25 = vpack.c.b16 %v5154_v26, %v5154_v26  ;;  %v5320_v0 = vrot.slane %v12815_v8, 4 }
 0x2f9   :  { %8945 = vmatprep.subr.bf16.mxu1 %v12757_v27 }
 0x2fa   :  { %9220 = vmatpush3.bf16.msra.mxu0 %v9775_v54  ;;  %v5322_v13 = vsel %vm1647_vm3, %v5321_v59, %v5320_v0  ;;  %v9787_v54 = vld [vmem:[%s12705_s3 + $0x5c0] sm:$0xff]   ;;  %v9797_v59 = vld [vmem:[%s12705_s3 + $0x608] sm:$0xff]  }
 0x2fb   :  { %9221 = vmatprep.subr.bf16.mxu0 %v12757_v27  ;;  %v5323_v51 = vpack.c.b16 %v5322_v13, %v5322_v13 }
 0x2fc   :  { %8946 = vmatpush3.bf16.msra.mxu1 %v9776_v28  ;;  %v9788_v28 = vld [vmem:[%s12705_s3 + $0x2e8] sm:$0xff]  }
 0x2fd   :  { %8963 = vmatprep.subr.bf16.mxu1 %v12757_v27 }
 0x2fe   :  { %9222 = vmatpush3.bf16.msra.mxu0 %v9777_v30 }
 0x2ff   :  { %8948 = vmatmul.mubr.msk.bf16.vlgmr.msra.gmra.mrb[124].mxu1 %vm1455_vm1, %v3226_v42  ;;  %9239 = vmatprep.subr.bf16.mxu0 %v12757_v27 }
 0x300   :  { %8964 = vmatpush3.bf16.msra.mxu1 %v9778_v36  ;;  %8971 = vmatprep.mubr.msk.bf16.mxu1 %vm9964_vm2, %v12757_v27  ;;  %v9790_v36 = vld [vmem:[%s12705_s3 + $0x2f0] sm:$0xff]  }
 0x301   :  { %9224 = vmatmul.mubr.msk.bf16.vlgmr.msra.gmra.mrb[188].mxu0 %vm1455_vm1, %v5155_v25  ;;  %8965 = vmatprep.subr.bf16.mxu1 %v12757_v27 }
 0x302   :  { %v1867_v50 = vpop.f32.mrb[72].mxu1  ;;  %9240 = vmatpush3.bf16.msra.mxu0 %v9779_v10  ;;  %9247 = vmatprep.mubr.msk.bf16.mxu0 %vm9964_vm2, %v12757_v27  ;;  %v9791_v10 = vld [vmem:[%s12705_s3 + $0x5d0] sm:$0xff]  }
 0x303   :  { %v1873_v11 = vadd.f32 %v1867_v50, %v1782_v33  ;;  %v8745_v52 = vpop.f32.mrb[73].mxu1  ;;  %9241 = vmatprep.subr.bf16.mxu0 %v12757_v27  ;;  %v9785_v33 = vld [vmem:[%s12705_s3 + $0x598] sm:$0xff]   ;;  %v12817_v50 = vunpack.c.h.b16 %v11134_v6 }
 0x304   :  { %v1870_v2 = vpop.f32.mrb[74].mxu1  ;;  %v11845_v4 = vpop.f32.mrb[136].mxu0  ;;  %8966 = vmatpush3.bf16.msra.mxu1 %v9780_v12  ;;  %v9792_v12 = vld [vmem:[%s12705_s3 + $0x2f8] sm:$0xff]   ;;  %v12818_v52 = vld [vmem:[#allocation11_spill] sm:$0xff] }
 0x305   :  { %v8746_v16 = vpop.f32.mrb[75].mxu1  ;;  %v8913_v20 = vpop.f32.mrb[137].mxu0  ;;  %8967 = vmatprep.subr.bf16.mxu1 %v12757_v27  ;;  %v12819_v2 = vunpack.c.h.b16 %v12818_v52 }
 0x306   :  { %v3043_v5 = vpop.f32.mrb[138].mxu0  ;;  %9242 = vmatpush3.bf16.msra.mxu0 %v9781_v58  ;;  %v5489_v58 = vrot.slane %v12817_v50, 5  ;;  %v9794_v16 = vld [vmem:[%s12705_s3 + $0x320] sm:$0xff]   ;;  %v9805_v50 = vld [vmem:[%s12705_s3 + $0x648] sm:$0xff]  }
 0x307   :  { %v8914_v3 = vpop.f32.mrb[139].mxu0  ;;  %9243 = vmatprep.subr.bf16.mxu0 %v12757_v27  ;;  %v12820_v20 = vld [vmem:[#allocation10_spill] sm:$0xff] }
 0x308   :  { %8968 = vmatpush3.bf16.msra.mxu1 %v9782_v43  ;;  %v5488_v43 = vrot.slane %v12819_v2, 6  ;;  %v3562_v5 = vpack.c.b16 %v12820_v20, %v12820_v20 }
 0x309   :  { %8969 = vmatprep.subr.bf16.mxu1 %v12757_v27 }
 0x30a   :  { %9244 = vmatpush3.bf16.msra.mxu0 %v9783_v21  ;;  %v5490_v6 = vsel %vm1647_vm3, %v5489_v58, %v5488_v43  ;;  %v9795_v21 = vld [vmem:[%s12705_s3 + $0x600] sm:$0xff]   ;;  %v9806_v43 = vld [vmem:[%s12705_s3 + $0x370] sm:$0xff]  }
 0x30b   :  { %9245 = vmatprep.subr.bf16.mxu0 %v12757_v27  ;;  %v5491_v3 = vpack.c.b16 %v5490_v6, %v5490_v6 }
 0x30c   :  { %8970 = vmatpush3.bf16.msra.mxu1 %v9784_v29  ;;  %v9796_v29 = vld [vmem:[%s12705_s3 + $0x328] sm:$0xff]  }
 0x30d   :  { %8987 = vmatprep.subr.bf16.mxu1 %v12757_v27 }
 0x30e   :  { %9246 = vmatpush3.bf16.msra.mxu0 %v9785_v33 }
 0x30f   :  { %8972 = vmatmul.mubr.msk.bf16.vlgmr.msra.gmra.mrb[128].mxu1 %vm1455_vm1, %v3394_v34  ;;  %9263 = vmatprep.subr.bf16.mxu0 %v12757_v27 }
 0x310   :  { %8988 = vmatpush3.bf16.msra.mxu1 %v9786_v7  ;;  %8995 = vmatprep.mubr.msk.bf16.mxu1 %vm9964_vm2, %v12757_v27  ;;  %v9798_v7 = vld [vmem:[%s12705_s3 + $0x330] sm:$0xff]  }
 0x311   :  { %9248 = vmatmul.mubr.msk.bf16.vlgmr.msra.gmra.mrb[192].mxu0 %vm1455_vm1, %v5323_v51  ;;  %8989 = vmatprep.subr.bf16.mxu1 %v12757_v27 }
 0x312   :  { %v1948_v9 = vpop.f32.mrb[76].mxu1  ;;  %9264 = vmatpush3.bf16.msra.mxu0 %v9787_v54  ;;  %9271 = vmatprep.mubr.msk.bf16.mxu0 %vm9964_vm2, %v12757_v27  ;;  %v9799_v54 = vld [vmem:[%s12705_s3 + $0x610] sm:$0xff]  }
 0x313   :  { %v1954_v30 = vadd.f32 %v1948_v9, %v1873_v11  ;;  %v8757_v39 = vpop.f32.mrb[77].mxu1  ;;  %9265 = vmatprep.subr.bf16.mxu0 %v12757_v27  ;;  %v9793_v11 = vld [vmem:[%s12705_s3 + $0x5d8] sm:$0xff]   ;;  %v12821_v9 = vunpack.c.l.b16 %v11143_v14 }
 0x314   :  { %v1951_v47 = vpop.f32.mrb[78].mxu1  ;;  %v11892_v55 = vpop.f32.mrb[140].mxu0  ;;  %8990 = vmatpush3.bf16.msra.mxu1 %v9788_v28  ;;  %v9800_v28 = vld [vmem:[%s12705_s3 + $0x338] sm:$0xff]   ;;  %v9802_v39 = vld [vmem:[%s12705_s3 + $0x360] sm:$0xff]  }
 0x315   :  { %v8758_v26 = vpop.f32.mrb[79].mxu1  ;;  %v8937_v41 = vpop.f32.mrb[141].mxu0  ;;  %8991 = vmatprep.subr.bf16.mxu1 %v12757_v27  ;;  %v12822_v47 = vld [vmem:[#allocation13_spill] sm:$0xff]  ;;  %v12824_v14 = vld [vmem:[#allocation12_spill] sm:$0xff] }
 0x316   :  { %v3210_v42 = vpop.f32.mrb[142].mxu0  ;;  %9266 = vmatpush3.bf16.msra.mxu0 %v9789_v48  ;;  %v5656_v48 = vrot.slane %v12821_v9, 7  ;;  %v3728_v41 = vpack.c.b16 %v12824_v14, %v12824_v14  ;;  %v9815_v14 = vld [vmem:[%s12705_s3 + $0x690] sm:$0xff]  }
 0x317   :  { %v8938_v25 = vpop.f32.mrb[143].mxu0  ;;  %9267 = vmatprep.subr.bf16.mxu0 %v12757_v27  ;;  %v9803_v42 = vld [vmem:[%s12705_s3 + $0x640] sm:$0xff]  }
 0x318   :  { %8992 = vmatpush3.bf16.msra.mxu1 %v9790_v36  ;;  %v12823_v36 = vunpack.c.l.b16 %v12822_v47  ;;  %v9804_v25 = vld [vmem:[%s12705_s3 + $0x368] sm:$0xff]  }
 0x319   :  { %8993 = vmatprep.subr.bf16.mxu1 %v12757_v27 }
 0x31a   :  { %9268 = vmatpush3.bf16.msra.mxu0 %v9791_v10  ;;  %v5657_v26 = vsel %vm1647_vm3, %v5656_v48, %v12823_v36 }
 0x31b   :  { %9269 = vmatprep.subr.bf16.mxu0 %v12757_v27  ;;  %v5658_v10 = vpack.c.b16 %v5657_v26, %v5657_v26 }
 0x31c   :  { %8994 = vmatpush3.bf16.msra.mxu1 %v9792_v12 }
 0x31d   :  { %9011 = vmatprep.subr.bf16.mxu1 %v12757_v27 }
 0x31e   :  { %9270 = vmatpush3.bf16.msra.mxu0 %v9793_v11 }
 0x31f   :  { %8996 = vmatmul.mubr.msk.bf16.vlgmr.msra.gmra.mrb[132].mxu1 %vm1455_vm1, %v3562_v5  ;;  %9287 = vmatprep.subr.bf16.mxu0 %v12757_v27  ;;  %v9807_v5 = vld [vmem:[%s12705_s3 + $0x650] sm:$0xff]  }
 0x320   :  { %9012 = vmatpush3.bf16.msra.mxu1 %v9794_v16  ;;  %9019 = vmatprep.mubr.msk.bf16.mxu1 %vm9964_vm2, %v12757_v27 }
 0x321   :  { %9272 = vmatmul.mubr.msk.bf16.vlgmr.msra.gmra.mrb[196].mxu0 %vm1455_vm1, %v5491_v3  ;;  %9013 = vmatprep.subr.bf16.mxu1 %v12757_v27  ;;  %v9808_v3 = vld [vmem:[%s12705_s3 + $0x378] sm:$0xff]  }
 0x322   :  { %v2035_v32 = vpop.f32.mrb[80].mxu1  ;;  %9288 = vmatpush3.bf16.msra.mxu0 %v9795_v21  ;;  %9295 = vmatprep.mubr.msk.bf16.mxu0 %vm9964_vm2, %v12757_v27 }
 0x323   :  { %v2041_v33 = vadd.f32 %v2035_v32, %v1954_v30  ;;  %v8769_v63 = vpop.f32.mrb[81].mxu1  ;;  %9289 = vmatprep.subr.bf16.mxu0 %v12757_v27  ;;  %v9801_v30 = vld [vmem:[%s12705_s3 + $0x618] sm:$0xff]  }
 0x324   :  { %v2038_v8 = vpop.f32.mrb[82].mxu1  ;;  %v11939_v0 = vpop.f32.mrb[144].mxu0  ;;  %9014 = vmatpush3.bf16.msra.mxu1 %v9796_v29  ;;  %v12825_v29 = vunpack.c.l.b16 %v11145_v19 }
 0x325   :  { %v8770_v13 = vpop.f32.mrb[83].mxu1  ;;  %v8961_v17 = vpop.f32.mrb[145].mxu0  ;;  %9015 = vmatprep.subr.bf16.mxu1 %v12757_v27  ;;  %v9810_v8 = vld [vmem:[%s12705_s3 + $0x3a0] sm:$0xff]  }
 0x326   :  { %v3378_v34 = vpop.f32.mrb[146].mxu0  ;;  %9290 = vmatpush3.bf16.msra.mxu0 %v9797_v59  ;;  %v5823_v32 = vrot.slane %v12825_v29, 1  ;;  %v9809_v59 = vld [vmem:[%s12705_s3 + $0x658] sm:$0xff]  }
 0x327   :  { %v8962_v51 = vpop.f32.mrb[147].mxu0  ;;  %9291 = vmatprep.subr.bf16.mxu0 %v12757_v27  ;;  %v9812_v34 = vld [vmem:[%s12705_s3 + $0x3a8] sm:$0xff]  }
 0x328   :  { %9016 = vmatpush3.bf16.msra.mxu1 %v9798_v7  ;;  %v12827_v7 = vld [vmem:[#allocation15_spill] sm:$0xff] }
 0x329   :  { %9017 = vmatprep.subr.bf16.mxu1 %v12757_v27  ;;  %v3896_v13 = vpack.c.b16 %v12827_v7, %v12827_v7  ;;  %v9813_v51 = vld [vmem:[%s12705_s3 + $0x688] sm:$0xff]  }
 0x32a   :  { %9292 = vmatpush3.bf16.msra.mxu0 %v9799_v54 }
 0x32b   :  { %9293 = vmatprep.subr.bf16.mxu0 %v12757_v27 }
 0x32c   :  { %9018 = vmatpush3.bf16.msra.mxu1 %v9800_v28 }
 0x32d   :  { %9035 = vmatprep.subr.bf16.mxu1 %v12757_v27 }
 0x32e   :  { %9294 = vmatpush3.bf16.msra.mxu0 %v9801_v30 }
 0x32f   :  { %9020 = vmatmul.mubr.msk.bf16.vlgmr.msra.gmra.mrb[136].mxu1 %vm1455_vm1, %v3728_v41  ;;  %9311 = vmatprep.subr.bf16.mxu0 %v12757_v27 }
 0x330   :  { %9036 = vmatpush3.bf16.msra.mxu1 %v9802_v39  ;;  %9043 = vmatprep.mubr.msk.bf16.mxu1 %vm9964_vm2, %v12757_v27  ;;  %v9814_v39 = vld [vmem:[%s12705_s3 + $0x3b0] sm:$0xff]  }
 0x331   :  { %9296 = vmatmul.mubr.msk.bf16.vlgmr.msra.gmra.mrb[200].mxu0 %vm1455_vm1, %v5658_v10  ;;  %9037 = vmatprep.subr.bf16.mxu1 %v12757_v27  ;;  %v12828_v10 = vunpack.c.l.b16 %v11159_v37 }
 0x332   :  { %v2116_v12 = vpop.f32.mrb[84].mxu1  ;;  %9312 = vmatpush3.bf16.msra.mxu0 %v9803_v42  ;;  %9319 = vmatprep.mubr.msk.bf16.mxu0 %vm9964_vm2, %v12757_v27  ;;  %v9816_v42 = vld [vmem:[%s12705_s3 + $0x3b8] sm:$0xff]  }
 0x333   :  { %v2122_v58 = vadd.f32 %v2116_v12, %v2041_v33  ;;  %v8781_v11 = vpop.f32.mrb[85].mxu1  ;;  %9313 = vmatprep.subr.bf16.mxu0 %v12757_v27  ;;  %v12826_v33 = vunpack.c.l.b16 %v11037_v1  ;;  %v9811_v1 = vld [vmem:[%s12705_s3 + $0x680] sm:$0xff]   ;;  %v9817_v12 = vld [vmem:[%s12705_s3 + $0x698] sm:$0xff]  }
 0x334   :  { %v2119_v52 = vpop.f32.mrb[86].mxu1  ;;  %v11986_v2 = vpop.f32.mrb[148].mxu0  ;;  %9038 = vmatpush3.bf16.msra.mxu1 %v9804_v25  ;;  %v5991_v25 = vrot.slane %v12828_v10, 3  ;;  %v9829_v10 = vld [vmem:[%s12705_s3 + $0x708] sm:$0xff]  }
 0x335   :  { %v8782_v16 = vpop.f32.mrb[87].mxu1  ;;  %v8985_v6 = vpop.f32.mrb[149].mxu0  ;;  %9039 = vmatprep.subr.bf16.mxu1 %v12757_v27  ;;  %v5822_v63 = vrot.slane %v12826_v33, 2  ;;  %v9818_v52 = vld [vmem:[%s12705_s3 + $0x3e0] sm:$0xff]  }
 0x336   :  { %v3546_v20 = vpop.f32.mrb[150].mxu0  ;;  %9314 = vmatpush3.bf16.msra.mxu0 %v9805_v50  ;;  %v12829_v50 = vld [vmem:[#allocation14_spill] sm:$0xff] }
 0x337   :  { %v8986_v21 = vpop.f32.mrb[151].mxu0  ;;  %9315 = vmatprep.subr.bf16.mxu0 %v12757_v27  ;;  %v5824_v19 = vsel %vm1647_vm3, %v5823_v32, %v5822_v63  ;;  %v9819_v6 = vld [vmem:[%s12705_s3 + $0x6c0] sm:$0xff]   ;;  %v9822_v63 = vld [vmem:[%s12705_s3 + $0x3f0] sm:$0xff]  }
 0x338   :  { %9040 = vmatpush3.bf16.msra.mxu1 %v9806_v43  ;;  %v5825_v17 = vpack.c.b16 %v5824_v19, %v5824_v19  ;;  %v12831_v43 = vld [vmem:[#allocation16_spill] sm:$0xff] }
 0x339   :  { %9041 = vmatprep.subr.bf16.mxu1 %v12757_v27  ;;  %v4064_v16 = vpack.c.b16 %v12831_v43, %v12831_v43 }
 0x33a   :  { %9316 = vmatpush3.bf16.msra.mxu0 %v9807_v5  ;;  %v9820_v5 = vld [vmem:[%s12705_s3 + $0x3e8] sm:$0xff]  }
 0x33b   :  { %9317 = vmatprep.subr.bf16.mxu0 %v12757_v27 }
 0x33c   :  { %9042 = vmatpush3.bf16.msra.mxu1 %v9808_v3  ;;  %v9821_v3 = vld [vmem:[%s12705_s3 + $0x6c8] sm:$0xff]  }
 0x33d   :  { %9059 = vmatprep.subr.bf16.mxu1 %v12757_v27 }
 0x33e   :  { %9318 = vmatpush3.bf16.msra.mxu0 %v9809_v59 }
 0x33f   :  { %9044 = vmatmul.mubr.msk.bf16.vlgmr.msra.gmra.mrb[140].mxu1 %vm1455_vm1, %v3896_v13  ;;  %9335 = vmatprep.subr.bf16.mxu0 %v12757_v27  ;;  %v9823_v13 = vld [vmem:[%s12705_s3 + $0x6d0] sm:$0xff]  }
 0x340   :  { %9060 = vmatpush3.bf16.msra.mxu1 %v9810_v8  ;;  %9067 = vmatprep.mubr.msk.bf16.mxu1 %vm9964_vm2, %v12757_v27 }
 0x341   :  { %9320 = vmatmul.mubr.msk.bf16.vlgmr.msra.gmra.mrb[204].mxu0 %vm1455_vm1, %v5825_v17  ;;  %9061 = vmatprep.subr.bf16.mxu1 %v12757_v27  ;;  %v9824_v17 = vld [vmem:[%s12705_s3 + $0x3f8] sm:$0xff]  }
 0x342   :  { %v2203_v54 = vpop.f32.mrb[88].mxu1  ;;  %9336 = vmatpush3.bf16.msra.mxu0 %v9811_v1  ;;  %9343 = vmatprep.mubr.msk.bf16.mxu0 %vm9964_vm2, %v12757_v27 }
 0x343   :  { %v2209_v28 = vadd.f32 %v2203_v54, %v2122_v58  ;;  %v8793_v9 = vpop.f32.mrb[89].mxu1  ;;  %9337 = vmatprep.subr.bf16.mxu0 %v12757_v27  ;;  %v12830_v58 = vunpack.c.l.b16 %v12829_v50 }
 0x344   :  { %v2206_v48 = vpop.f32.mrb[90].mxu1  ;;  %v12033_v30 = vpop.f32.mrb[152].mxu0  ;;  %9062 = vmatpush3.bf16.msra.mxu1 %v9812_v34  ;;  %v12832_v34 = vunpack.c.l.b16 %v11167_v56 }
 0x345   :  { %v8794_v47 = vpop.f32.mrb[91].mxu1  ;;  %v9009_v36 = vpop.f32.mrb[153].mxu0  ;;  %9063 = vmatprep.subr.bf16.mxu1 %v12757_v27  ;;  %v5990_v11 = vrot.slane %v12830_v58, 4 }
 0x346   :  { %v3713_v26 = vpop.f32.mrb[154].mxu0  ;;  %9338 = vmatpush3.bf16.msra.mxu0 %v9813_v51  ;;  %v6159_v54 = vrot.slane %v12832_v34, 5  ;;  %v9825_v51 = vld [vmem:[%s12705_s3 + $0x6d8] sm:$0xff]   ;;  %v12835_v47 = vld [vmem:[#allocation18_spill] sm:$0xff] }
 0x347   :  { %v9010_v41 = vpop.f32.mrb[155].mxu0  ;;  %9339 = vmatprep.subr.bf16.mxu0 %v12757_v27  ;;  %v5992_v37 = vsel %vm1647_vm3, %v5991_v25, %v5990_v11  ;;  %v4232_v36 = vpack.c.b16 %v12835_v47, %v12835_v47  ;;  %v9827_v26 = vld [vmem:[%s12705_s3 + $0x700] sm:$0xff]   ;;  %v9830_v11 = vld [vmem:[%s12705_s3 + $0x430] sm:$0xff]   ;;  %v9840_v47 = vld [vmem:[%s12705_s3 + $0x478] sm:$0xff]  }
 0x348   :  { %9064 = vmatpush3.bf16.msra.mxu1 %v9814_v39  ;;  %v5993_v20 = vpack.c.b16 %v5992_v37, %v5992_v37  ;;  %v9826_v39 = vld [vmem:[%s12705_s3 + $0x420] sm:$0xff]   ;;  %v9828_v41 = vld [vmem:[%s12705_s3 + $0x428] sm:$0xff]  }
 0x349   :  { %9065 = vmatprep.subr.bf16.mxu1 %v12757_v27 }
 0x34a   :  { %9340 = vmatpush3.bf16.msra.mxu0 %v9815_v14 }
 0x34b   :  { %9341 = vmatprep.subr.bf16.mxu0 %v12757_v27 }
 0x34c   :  { %9066 = vmatpush3.bf16.msra.mxu1 %v9816_v42 }
 0x34d   :  { %9083 = vmatprep.subr.bf16.mxu1 %v12757_v27 }
 0x34e   :  { %9342 = vmatpush3.bf16.msra.mxu0 %v9817_v12 }
 0x34f   :  { %9068 = vmatmul.mubr.msk.bf16.vlgmr.msra.gmra.mrb[144].mxu1 %vm1455_vm1, %v4064_v16  ;;  %9359 = vmatprep.subr.bf16.mxu0 %v12757_v27  ;;  %v9831_v16 = vld [vmem:[%s12705_s3 + $0x710] sm:$0xff]  }
 0x350   :  { %9084 = vmatpush3.bf16.msra.mxu1 %v9818_v52  ;;  %9091 = vmatprep.mubr.msk.bf16.mxu1 %vm9964_vm2, %v12757_v27 }
 0x351   :  { %9344 = vmatmul.mubr.msk.bf16.vlgmr.msra.gmra.mrb[208].mxu0 %vm1455_vm1, %v5993_v20  ;;  %9085 = vmatprep.subr.bf16.mxu1 %v12757_v27  ;;  %v9832_v20 = vld [vmem:[%s12705_s3 + $0x438] sm:$0xff]  }
 0x352   :  { %v2284_v21 = vpop.f32.mrb[92].mxu1  ;;  %9360 = vmatpush3.bf16.msra.mxu0 %v9819_v6  ;;  %9367 = vmatprep.mubr.msk.bf16.mxu0 %vm9964_vm2, %v12757_v27 }
 0x353   :  { %v2290_v29 = vadd.f32 %v2284_v21, %v2209_v28  ;;  %v8805_v32 = vpop.f32.mrb[93].mxu1  ;;  %9361 = vmatprep.subr.bf16.mxu0 %v12757_v27  ;;  %v12833_v28 = vld [vmem:[#allocation17_spill] sm:$0xff] }
 0x354   :  { %v2287_v59 = vpop.f32.mrb[94].mxu1  ;;  %v12080_v33 = vpop.f32.mrb[156].mxu0  ;;  %9086 = vmatpush3.bf16.msra.mxu1 %v9820_v5  ;;  %v12834_v9 = vunpack.c.l.b16 %v12833_v28  ;;  %v12836_v5 = vunpack.c.h.b16 %v11184_v45  ;;  %v12837_v32 = vunpack.c.h.b16 %v11090_v35  ;;  %v12838_v45 = vld [vmem:[#allocation19_spill] sm:$0xff] }
 0x355   :  { %v8806_v8 = vpop.f32.mrb[95].mxu1  ;;  %v9033_v19 = vpop.f32.mrb[157].mxu0  ;;  %9087 = vmatprep.subr.bf16.mxu1 %v12757_v27  ;;  %v9836_v35 = vld [vmem:[%s12705_s3 + $0x468] sm:$0xff]  }
 0x356   :  { %v3880_v7 = vpop.f32.mrb[158].mxu0  ;;  %9362 = vmatpush3.bf16.msra.mxu0 %v9821_v3  ;;  %v6158_v48 = vrot.slane %v12834_v9, 6  ;;  %v6326_v21 = vrot.slane %v12836_v5, 7  ;;  %v9833_v3 = vld [vmem:[%s12705_s3 + $0x718] sm:$0xff]   ;;  %v9835_v8 = vld [vmem:[%s12705_s3 + $0x740] sm:$0xff]   ;;  %v9846_v5 = vld [vmem:[%s12705_s3 + $0x4b0] sm:$0xff]  }
 0x357   :  { %v9034_v1 = vpop.f32.mrb[159].mxu0  ;;  %9363 = vmatprep.subr.bf16.mxu0 %v12757_v27 }
 0x358   :  { %9088 = vmatpush3.bf16.msra.mxu1 %v9822_v63  ;;  %v6160_v56 = vsel %vm1647_vm3, %v6159_v54, %v6158_v48  ;;  %v6327_v59 = vsel %vm1647_vm3, %v6326_v21, %v12837_v32  ;;  %v4398_v63 = vpack.c.b16 %v12838_v45, %v12838_v45  ;;  %v9847_v32 = vld [vmem:[%s12705_s3 + $0x790] sm:$0xff]   ;;  %v9848_v45 = vld [vmem:[%s12705_s3 + $0x4b8] sm:$0xff]  }
 0x359   :  { %9089 = vmatprep.subr.bf16.mxu1 %v12757_v27  ;;  %v6161_v14 = vpack.c.b16 %v6160_v56, %v6160_v56  ;;  %v6328_v19 = vpack.c.b16 %v6327_v59, %v6327_v59 }
 0x35a   :  { %9364 = vmatpush3.bf16.msra.mxu0 %v9823_v13  ;;  %v9837_v13 = vld [vmem:[%s12705_s3 + $0x748] sm:$0xff]  }
 0x35b   :  { %9365 = vmatprep.subr.bf16.mxu0 %v12757_v27 }
 0x35c   :  { %9090 = vmatpush3.bf16.msra.mxu1 %v9824_v17 }
 0x35d   :  { %9107 = vmatprep.subr.bf16.mxu1 %v12757_v27 }
 0x35e   :  { %9366 = vmatpush3.bf16.msra.mxu0 %v9825_v51  ;;  %v9838_v51 = vld [vmem:[%s12705_s3 + $0x470] sm:$0xff]  }
 0x35f   :  { %9092 = vmatmul.mubr.msk.bf16.vlgmr.msra.gmra.mrb[148].mxu1 %vm1455_vm1, %v4232_v36  ;;  %9383 = vmatprep.subr.bf16.mxu0 %v12757_v27  ;;  %v12839_v36 = vunpack.c.h.b16 %v11186_v15 }
 0x360   :  { %9108 = vmatpush3.bf16.msra.mxu1 %v9826_v39  ;;  %9115 = vmatprep.mubr.msk.bf16.mxu1 %vm9964_vm2, %v12757_v27  ;;  %v9839_v39 = vld [vmem:[%s12705_s3 + $0x750] sm:$0xff]  }
 0x361   :  { %9368 = vmatmul.mubr.msk.bf16.vlgmr.msra.gmra.mrb[212].mxu0 %vm1455_vm1, %v6161_v14  ;;  %9109 = vmatprep.subr.bf16.mxu1 %v12757_v27  ;;  %v9841_v14 = vld [vmem:[%s12705_s3 + $0x758] sm:$0xff]  }
 0x362   :  { %v2370_v42 = vpop.f32.mrb[96].mxu1  ;;  %9384 = vmatpush3.bf16.msra.mxu0 %v9827_v26  ;;  %9391 = vmatprep.mubr.msk.bf16.mxu0 %vm9964_vm2, %v12757_v27  ;;  %v6493_v26 = vrot.slane %v12839_v36, 1  ;;  %v9854_v36 = vld [vmem:[%s12705_s3 + $0x4f0] sm:$0xff]  }
 0x363   :  { %v2376_v25 = vadd.f32 %v2370_v42, %v2290_v29  ;;  %v8817_v12 = vpop.f32.mrb[97].mxu1  ;;  %9385 = vmatprep.subr.bf16.mxu0 %v12757_v27  ;;  %v9834_v29 = vld [vmem:[%s12705_s3 + $0x460] sm:$0xff]  }
 0x364   :  { %v2373_v50 = vpop.f32.mrb[98].mxu1  ;;  %v12127_v58 = vpop.f32.mrb[160].mxu0  ;;  %9110 = vmatpush3.bf16.msra.mxu1 %v9828_v41  ;;  %v12840_v41 = vunpack.c.h.b16 %v11092_v61  ;;  %v9843_v61 = vld [vmem:[%s12705_s3 + $0x780] sm:$0xff]  }
 0x365   :  { %v8818_v52 = vpop.f32.mrb[99].mxu1  ;;  %v9057_v37 = vpop.f32.mrb[161].mxu0  ;;  %9111 = vmatprep.subr.bf16.mxu1 %v12757_v27 }
 0x366   :  { %v4048_v43 = vpop.f32.mrb[162].mxu0  ;;  %9386 = vmatpush3.bf16.msra.mxu0 %v9829_v10  ;;  %v6492_v42 = vrot.slane %v12840_v41, 2  ;;  %v9842_v10 = vld [vmem:[%s12705_s3 + $0x4a0] sm:$0xff]   ;;  %v9845_v37 = vld [vmem:[%s12705_s3 + $0x788] sm:$0xff]  }
 0x367   :  { %v9058_v6 = vpop.f32.mrb[163].mxu0  ;;  %9387 = vmatprep.subr.bf16.mxu0 %v12757_v27 }
 0x368   :  { %9112 = vmatpush3.bf16.msra.mxu1 %v9830_v11  ;;  %v6494_v15 = vsel %vm1647_vm3, %v6493_v26, %v6492_v42  ;;  %v9844_v11 = vld [vmem:[%s12705_s3 + $0x4a8] sm:$0xff]  }
 0x369   :  { %9113 = vmatprep.subr.bf16.mxu1 %v12757_v27  ;;  %v6495_v50 = vpack.c.b16 %v6494_v15, %v6494_v15 }
 0x36a   :  { %9388 = vmatpush3.bf16.msra.mxu0 %v9831_v16 }
 0x36b   :  { %9389 = vmatprep.subr.bf16.mxu0 %v12757_v27 }
 0x36c   :  { %9114 = vmatpush3.bf16.msra.mxu1 %v9832_v20 }
 0x36d   :  { %9131 = vmatprep.subr.bf16.mxu1 %v12757_v27 }
 0x36e   :  { %9390 = vmatpush3.bf16.msra.mxu0 %v9833_v3 }
 0x36f   :  { %9116 = vmatmul.mubr.msk.bf16.vlgmr.msra.gmra.mrb[152].mxu1 %vm1455_vm1, %v4398_v63  ;;  %9407 = vmatprep.subr.bf16.mxu0 %v12757_v27  ;;  %v12842_v63 = vunpack.c.h.b16 %v11194_v38 }
 0x370   :  { %9132 = vmatpush3.bf16.msra.mxu1 %v9834_v29  ;;  %9139 = vmatprep.mubr.msk.bf16.mxu1 %vm9964_vm2, %v12757_v27 }
 0x371   :  { %9392 = vmatmul.mubr.msk.bf16.vlgmr.msra.gmra.mrb[216].mxu0 %vm1455_vm1, %v6328_v19  ;;  %9133 = vmatprep.subr.bf16.mxu1 %v12757_v27  ;;  %v9849_v19 = vld [vmem:[%s12705_s3 + $0x798] sm:$0xff]  }
 0x372   :  { %v2450_v7 = vpop.f32.mrb[100].mxu1  ;;  %9408 = vmatpush3.bf16.msra.mxu0 %v9835_v8  ;;  %9415 = vmatprep.mubr.msk.bf16.mxu0 %vm9964_vm2, %v12757_v27  ;;  %v6661_v8 = vrot.slane %v12842_v63, 3 }
 0x373   :  { %v2456_v1 = vadd.f32 %v2450_v7, %v2376_v25  ;;  %v8829_v17 = vpop.f32.mrb[101].mxu1  ;;  %9409 = vmatprep.subr.bf16.mxu0 %v12757_v27  ;;  %v12841_v25 = vld [vmem:[#allocation20_spill] sm:$0xff] }
 0x374   :  { %v2453_v34 = vpop.f32.mrb[102].mxu1  ;;  %v12174_v54 = vpop.f32.mrb[164].mxu0  ;;  %9134 = vmatpush3.bf16.msra.mxu1 %v9836_v35  ;;  %v4566_v12 = vpack.c.b16 %v12841_v25, %v12841_v25  ;;  %v12843_v35 = vunpack.c.h.b16 %v11103_v22  ;;  %v9851_v22 = vld [vmem:[%s12705_s3 + $0x7c0] sm:$0xff]   ;;  %v9856_v25 = vld [vmem:[%s12705_s3 + $0x4f8] sm:$0xff]  }
 0x375   :  { %v8830_v28 = vpop.f32.mrb[103].mxu1  ;;  %v9081_v9 = vpop.f32.mrb[165].mxu0  ;;  %9135 = vmatprep.subr.bf16.mxu1 %v12757_v27 }
 0x376   :  { %v4216_v48 = vpop.f32.mrb[166].mxu0  ;;  %9410 = vmatpush3.bf16.msra.mxu0 %v9837_v13  ;;  %v6660_v7 = vrot.slane %v12843_v35, 4  ;;  %v9850_v13 = vld [vmem:[%s12705_s3 + $0x4e0] sm:$0xff]   ;;  %v9853_v9 = vld [vmem:[%s12705_s3 + $0x7c8] sm:$0xff]  }
 0x377   :  { %v9082_v56 = vpop.f32.mrb[167].mxu0  ;;  %9411 = vmatprep.subr.bf16.mxu0 %v12757_v27 }
 0x378   :  { %9136 = vmatpush3.bf16.msra.mxu1 %v9838_v51  ;;  %v6662_v38 = vsel %vm1647_vm3, %v6661_v8, %v6660_v7  ;;  %v9852_v51 = vld [vmem:[%s12705_s3 + $0x4e8] sm:$0xff]   ;;  %v9861_v7 = vld [vmem:[%s12705_s3 + $0x538] sm:$0xff]  }
 0x379   :  { %9137 = vmatprep.subr.bf16.mxu1 %v12757_v27  ;;  %v6663_v34 = vpack.c.b16 %v6662_v38, %v6662_v38  ;;  %v12849_v38 = vld [vmem:[#allocation22_spill] sm:$0xff] }
 0x37a   :  { %9412 = vmatpush3.bf16.msra.mxu0 %v9839_v39 }
 0x37b   :  { %9413 = vmatprep.subr.bf16.mxu0 %v12757_v27 }
 0x37c   :  { %9138 = vmatpush3.bf16.msra.mxu1 %v9840_v47 }
 0x37d   :  { %9155 = vmatprep.subr.bf16.mxu1 %v12757_v27 }
 0x37e   :  { %9414 = vmatpush3.bf16.msra.mxu0 %v9841_v14 }
 0x37f   :  { %9140 = vmatmul.mubr.msk.bf16.vlgmr.msra.gmra.mrb[156].mxu1 %vm1455_vm1, %v4566_v12  ;;  %9431 = vmatprep.subr.bf16.mxu0 %v12757_v27  ;;  %v12845_v12 = vunpack.c.h.b16 %v11207_v44 }
 0x380   :  { %9156 = vmatpush3.bf16.msra.mxu1 %v9842_v10  ;;  %9163 = vmatprep.mubr.msk.bf16.mxu1 %vm9964_vm2, %v12757_v27  ;;  %v9855_v10 = vld [vmem:[%s12705_s3 + $0x7d0] sm:$0xff]  }
 0x381   :  { %9416 = vmatmul.mubr.msk.bf16.vlgmr.msra.gmra.mrb[220].mxu0 %vm1455_vm1, %v6495_v50  ;;  %9157 = vmatprep.subr.bf16.mxu1 %v12757_v27  ;;  %v12846_v50 = vunpack.c.h.b16 %v11105_v23  ;;  %v9859_v23 = vld [vmem:[%s12705_s3 + $0x528] sm:$0xff]  }
 0x382   :  { %v2537_v52 = vpop.f32.mrb[104].mxu1  ;;  %9432 = vmatpush3.bf16.msra.mxu0 %v9843_v61  ;;  %9439 = vmatprep.mubr.msk.bf16.mxu0 %vm9964_vm2, %v12757_v27  ;;  %v6829_v61 = vrot.slane %v12845_v12, 5 }
 0x383   :  { %v2543_v43 = vadd.f32 %v2537_v52, %v2456_v1  ;;  %v8841_v16 = vpop.f32.mrb[105].mxu1  ;;  %9433 = vmatprep.subr.bf16.mxu0 %v12757_v27  ;;  %v12844_v1 = vld [vmem:[#allocation21_spill] sm:$0xff] }
 0x384   :  { %v2540_v6 = vpop.f32.mrb[106].mxu1  ;;  %v12221_v20 = vpop.f32.mrb[168].mxu0  ;;  %9158 = vmatpush3.bf16.msra.mxu1 %v9844_v11  ;;  %v4734_v17 = vpack.c.b16 %v12844_v1, %v12844_v1  ;;  %v6828_v11 = vrot.slane %v12846_v50, 6  ;;  %v9858_v52 = vld [vmem:[%s12705_s3 + $0x520] sm:$0xff]   ;;  %v5068_v1 = vpack.c.b16 %v12849_v38, %v12849_v38 }
 0x385   :  { %v8842_v21 = vpop.f32.mrb[107].mxu1  ;;  %v9105_v3 = vpop.f32.mrb[169].mxu0  ;;  %9159 = vmatprep.subr.bf16.mxu1 %v12757_v27 }
 0x386   :  { %v4383_v29 = vpop.f32.mrb[170].mxu0  ;;  %9434 = vmatpush3.bf16.msra.mxu0 %v9845_v37  ;;  %v6830_v44 = vsel %vm1647_vm3, %v6829_v61, %v6828_v11  ;;  %v12847_v37 = vld [vmem:[#allocation23_spill] sm:$0xff] }
 0x387   :  { %v9106_v59 = vpop.f32.mrb[171].mxu0  ;;  %9435 = vmatprep.subr.bf16.mxu0 %v12757_v27  ;;  %v6831_v16 = vpack.c.b16 %v6830_v44, %v6830_v44 }
 0x388   :  { %9160 = vmatpush3.bf16.msra.mxu1 %v9846_v5  ;;  %v12848_v5 = vmov 0   ;;  %v9860_v59 = vld [vmem:[%s12705_s3 + $0x530] sm:$0xff]  }
 0x389   :  { %9161 = vmatprep.subr.bf16.mxu1 %v12757_v27 }
 0x38a   :  { %9436 = vmatpush3.bf16.msra.mxu0 %v9847_v32 }
 0x38b   :  { %9437 = vmatprep.subr.bf16.mxu0 %v12757_v27 }
 0x38c   :  { %9162 = vmatpush3.bf16.msra.mxu1 %v9848_v45 }
 0x38d   :  { %9179 = vmatprep.subr.bf16.mxu1 %v12757_v27 }
 0x38e   :  { %9438 = vmatpush3.bf16.msra.mxu0 %v9849_v19 }
 0x38f   :  { %9164 = vmatmul.mubr.msk.bf16.vlgmr.msra.gmra.mrb[160].mxu1 %vm1455_vm1, %v4734_v17  ;;  %9455 = vmatprep.subr.bf16.mxu0 %v12757_v27 }
 0x390   :  { %9180 = vmatpush3.bf16.msra.mxu1 %v9850_v13  ;;  %9187 = vmatprep.mubr.msk.bf16.mxu1 %vm9964_vm2, %v12757_v27  ;;  %v9862_v13 = vld [vmem:[%s12705_s3 + $0x560] sm:$0xff]  }
 0x391   :  { %9440 = vmatmul.mubr.msk.bf16.vlgmr.msra.gmra.mrb[224].mxu0 %vm1455_vm1, %v6663_v34  ;;  %9181 = vmatprep.subr.bf16.mxu1 %v12757_v27 }
 0x392   :  { %v2618_v28 = vpop.f32.mrb[108].mxu1  ;;  %9456 = vmatpush3.bf16.msra.mxu0 %v9851_v22  ;;  %9463 = vmatprep.mubr.msk.bf16.mxu0 %vm9964_vm2, %v12757_v27 }
 0x393   :  { %v2624_v48 = vadd.f32 %v2618_v28, %v2543_v43  ;;  %v8853_v39 = vpop.f32.mrb[109].mxu1  ;;  %9457 = vmatprep.subr.bf16.mxu0 %v12757_v27  ;;  %v4902_v43 = vpack.c.b16 %v12847_v37, %v12847_v37  ;;  %v9869_v37 = vld [vmem:[%s12705_s3 + $0x5b8] sm:$0xff]  }
 0x394   :  { %v2621_v56 = vpop.f32.mrb[110].mxu1  ;;  %v12268_v47 = vpop.f32.mrb[172].mxu0  ;;  %9182 = vmatpush3.bf16.msra.mxu1 %v9852_v51 }
 0x395   :  { %v8854_v26 = vpop.f32.mrb[111].mxu1  ;;  %v9129_v14 = vpop.f32.mrb[173].mxu0  ;;  %9183 = vmatprep.subr.bf16.mxu1 %v12757_v27  ;;  %v2711_v41 = vadd.f32 %v11751_v18, %v2624_v48  ;;  %v9857_v18 = vld [vmem:[%s12705_s3 + $0x7d8] sm:$0xff]  }
 0x396   :  { %v4550_v42 = vpop.f32.mrb[174].mxu0  ;;  %9458 = vmatpush3.bf16.msra.mxu0 %v9853_v9  ;;  %v9864_v9 = vld [vmem:[%s12705_s3 + $0x570] sm:$0xff]   ;;  %v9865_v14 = vld [vmem:[%s12705_s3 + $0x578] sm:$0xff]  }
 0x397   :  { %v9130_v15 = vpop.f32.mrb[175].mxu0  ;;  %9459 = vmatprep.subr.bf16.mxu0 %v12757_v27  ;;  %v5236_v42 = vpack.c.b16 %v11237_v57, %v11237_v57  ;;  %v9868_v57 = vld [vmem:[%s12705_s3 + $0x5b0] sm:$0xff]  }
 0x398   :  { %9184 = vmatpush3.bf16.msra.mxu1 %v9854_v36 }
 0x399   :  { %9185 = vmatprep.subr.bf16.mxu1 %v12757_v27 }
 0x39a   :  { %9460 = vmatpush3.bf16.msra.mxu0 %v9855_v10 }
 0x39b   :  { %9461 = vmatprep.subr.bf16.mxu0 %v12757_v27 }
 0x39c   :  { %9186 = vmatpush3.bf16.msra.mxu1 %v9856_v25 }
 0x39d   :  { %9203 = vmatprep.subr.bf16.mxu1 %v12757_v27 }
 0x39e   :  { %9462 = vmatpush3.bf16.msra.mxu0 %v9857_v18 }
 0x39f   :  { %9188 = vmatmul.mubr.msk.bf16.vlgmr.msra.gmra.mrb[164].mxu1 %vm1455_vm1, %v4902_v43  ;;  %v9870_v43 = vld [vmem:[%s12705_s3 + $0x5e0] sm:$0xff]  }
 0x3a0   :  { %9204 = vmatpush3.bf16.msra.mxu1 %v9858_v52  ;;  %9211 = vmatprep.mubr.msk.bf16.mxu1 %vm9964_vm2, %v12757_v27 }
 0x3a1   :  { %9464 = vmatmul.mubr.msk.bf16.vlgmr.msra.gmra.mrb[228].mxu0 %vm1455_vm1, %v6831_v16  ;;  %9205 = vmatprep.subr.bf16.mxu1 %v12757_v27  ;;  %v5404_v16 = vpack.c.b16 %v11241_v60, %v11241_v60  ;;  %v9872_v60 = vld [vmem:[%s12705_s3 + $0x5f0] sm:$0xff]  }
 0x3a2   :  { %v2786_v6 = vpop.f32.mrb[112].mxu1  ;;  %7200 = vmatprep.mubr.bf16.mxu0 %v12848_v5 }
 0x3a3   :  { %v2792_v21 = vadd.f32 %v2786_v6, %v2711_v41  ;;  %v8877_v3 = vpop.f32.mrb[113].mxu1  ;;  %v9866_v41 = vld [vmem:[%s12705_s3 + $0x5a0] sm:$0xff]  }
 0x3a4   :  { %v2789_v29 = vpop.f32.mrb[114].mxu1  ;;  %v12307_v32 = vpop.f32.mrb[176].mxu0  ;;  %9206 = vmatpush3.bf16.msra.mxu1 %v9859_v23 }
 0x3a5   :  { %v8878_v45 = vpop.f32.mrb[115].mxu1  ;;  %v9153_v63 = vpop.f32.mrb[177].mxu0  ;;  %9207 = vmatprep.subr.bf16.mxu1 %v12757_v27  ;;  %v2879_v8 = vadd.f32 %v11798_v46, %v2792_v21  ;;  %v9863_v46 = vld [vmem:[%s12705_s3 + $0x568] sm:$0xff]  }
 0x3a6   :  { %v4718_v19 = vpop.f32.mrb[178].mxu0 }
 0x3a7   :  { %v9154_v35 = vpop.f32.mrb[179].mxu0  ;;  %v9873_v19 = vld [vmem:[%s12705_s3 + $0x5f8] sm:$0xff]  }
 0x3a8   :  { %9208 = vmatpush3.bf16.msra.mxu1 %v9860_v59  ;;  %v9874_v35 = vld [vmem:[%s12705_s3 + $0x620] sm:$0xff]  }
 0x3a9   :  { %9209 = vmatprep.subr.bf16.mxu1 %v12757_v27 }
 0x3ac   :  { %9210 = vmatpush3.bf16.msra.mxu1 %v9861_v7  ;;  %v5572_v7 = vpack.c.b16 %v11251_v49, %v11251_v49  ;;  %v9876_v49 = vld [vmem:[%s12705_s3 + $0x630] sm:$0xff]  }
 0x3ad   :  { %9227 = vmatprep.subr.bf16.mxu1 %v12757_v27 }
 0x3af   :  { %9212 = vmatmul.mubr.msk.bf16.vlgmr.msra.gmra.mrb[168].mxu1 %vm1455_vm1, %v5068_v1 }
 0x3b0   :  { %9228 = vmatpush3.bf16.msra.mxu1 %v9862_v13  ;;  %9235 = vmatprep.mubr.msk.bf16.mxu1 %vm9964_vm2, %v12757_v27 }
 0x3b1   :  { %9229 = vmatprep.subr.bf16.mxu1 %v12757_v27 }
 0x3b2   :  { %v2954_v17 = vpop.f32.mrb[116].mxu1 }
 0x3b3   :  { %v2960_v22 = vadd.f32 %v2954_v17, %v2879_v8  ;;  %v8901_v34 = vpop.f32.mrb[117].mxu1 }
 0x3b4   :  { %v2957_v51 = vpop.f32.mrb[118].mxu1  ;;  %v12331_v28 = vpop.f32.mrb[180].mxu0  ;;  %9230 = vmatpush3.bf16.msra.mxu1 %v9863_v46 }
 0x3b5   :  { %v8902_v48 = vpop.f32.mrb[119].mxu1  ;;  %v9177_v39 = vpop.f32.mrb[181].mxu0  ;;  %9231 = vmatprep.subr.bf16.mxu1 %v12757_v27  ;;  %v3046_v56 = vadd.f32 %v11845_v4, %v2960_v22  ;;  %v9867_v4 = vld [vmem:[%s12705_s3 + $0x5a8] sm:$0xff]  }
 0x3b6   :  { %v4886_v36 = vpop.f32.mrb[182].mxu0  ;;  %v9877_v39 = vld [vmem:[%s12705_s3 + $0x638] sm:$0xff]  }
 0x3b7   :  { %v9178_v26 = vpop.f32.mrb[183].mxu0  ;;  %v12850_v36 = vld [vmem:[#allocation24_spill] sm:$0xff] }
 0x3b8   :  { %9232 = vmatpush3.bf16.msra.mxu1 %v9864_v9  ;;  %v5738_v26 = vpack.c.b16 %v12850_v36, %v12850_v36 }
 0x3b9   :  { %9233 = vmatprep.subr.bf16.mxu1 %v12757_v27 }
 0x3bc   :  { %9234 = vmatpush3.bf16.msra.mxu1 %v9865_v14 }
 0x3bd   :  { %9251 = vmatprep.subr.bf16.mxu1 %v12757_v27 }
 0x3bf   :  { %9236 = vmatmul.mubr.msk.bf16.vlgmr.msra.gmra.mrb[172].mxu1 %vm1455_vm1, %v5236_v42 }
 0x3c0   :  { %9252 = vmatpush3.bf16.msra.mxu1 %v9866_v41  ;;  %9259 = vmatprep.mubr.msk.bf16.mxu1 %vm9964_vm2, %v12757_v27 }
 0x3c1   :  { %9253 = vmatprep.subr.bf16.mxu1 %v12757_v27 }
 0x3c2   :  { %v3120_v10 = vpop.f32.mrb[120].mxu1 }
 0x3c3   :  { %v3126_v15 = vadd.f32 %v3120_v10, %v3046_v56  ;;  %v8925_v25 = vpop.f32.mrb[121].mxu1  ;;  %v9878_v56 = vld [vmem:[%s12705_s3 + $0x660] sm:$0xff]  }
 0x3c4   :  { %v3123_v12 = vpop.f32.mrb[122].mxu1  ;;  %v12355_v61 = vpop.f32.mrb[184].mxu0  ;;  %9254 = vmatpush3.bf16.msra.mxu1 %v9867_v4 }
 0x3c5   :  { %v8926_v18 = vpop.f32.mrb[123].mxu1  ;;  %v9201_v50 = vpop.f32.mrb[185].mxu0  ;;  %9255 = vmatprep.subr.bf16.mxu1 %v12757_v27  ;;  %v3213_v11 = vadd.f32 %v11892_v55, %v3126_v15  ;;  %v9871_v55 = vld [vmem:[%s12705_s3 + $0x5e8] sm:$0xff]   ;;  %v9880_v15 = vld [vmem:[%s12705_s3 + $0x670] sm:$0xff]  }
 0x3c6   :  { %v5053_v52 = vpop.f32.mrb[186].mxu0 }
 0x3c7   :  { %v9202_v44 = vpop.f32.mrb[187].mxu0  ;;  %v9882_v52 = vld [vmem:[%s12705_s3 + $0x6a0] sm:$0xff]  }
 0x3c8   :  { %9256 = vmatpush3.bf16.msra.mxu1 %v9868_v57  ;;  %v5906_v44 = vpack.c.b16 %v11263_v40, %v11263_v40  ;;  %v9884_v40 = vld [vmem:[%s12705_s3 + $0x6b0] sm:$0xff]  }
 0x3c9   :  { %9257 = vmatprep.subr.bf16.mxu1 %v12757_v27 }
 0x3cc   :  { %9258 = vmatpush3.bf16.msra.mxu1 %v9869_v37 }
 0x3cd   :  { %9275 = vmatprep.subr.bf16.mxu1 %v12757_v27 }
 0x3cf   :  { %9260 = vmatmul.mubr.msk.bf16.vlgmr.msra.gmra.mrb[176].mxu1 %vm1455_vm1, %v5404_v16 }
 0x3d0   :  { %9276 = vmatpush3.bf16.msra.mxu1 %v9870_v43  ;;  %9283 = vmatprep.mubr.msk.bf16.mxu1 %vm9964_vm2, %v12757_v27 }
 0x3d1   :  { %9277 = vmatprep.subr.bf16.mxu1 %v12757_v27 }
 0x3d2   :  { %v3288_v23 = vpop.f32.mrb[124].mxu1 }
 0x3d3   :  { %v3294_v6 = vadd.f32 %v3288_v23, %v3213_v11  ;;  %v8949_v5 = vpop.f32.mrb[125].mxu1  ;;  %v9881_v11 = vld [vmem:[%s12705_s3 + $0x678] sm:$0xff]  }
 0x3d4   :  { %v3291_v21 = vpop.f32.mrb[126].mxu1  ;;  %v12379_v3 = vpop.f32.mrb[188].mxu0  ;;  %9278 = vmatpush3.bf16.msra.mxu1 %v9871_v55 }
 0x3d5   :  { %v8950_v29 = vpop.f32.mrb[127].mxu1  ;;  %v9225_v59 = vpop.f32.mrb[189].mxu0  ;;  %9279 = vmatprep.subr.bf16.mxu1 %v12757_v27  ;;  %v3381_v45 = vadd.f32 %v11939_v0, %v3294_v6  ;;  %v9875_v0 = vld [vmem:[%s12705_s3 + $0x628] sm:$0xff]  }
 0x3d6   :  { %v5220_v63 = vpop.f32.mrb[190].mxu0  ;;  %v9885_v59 = vld [vmem:[%s12705_s3 + $0x6b8] sm:$0xff]  }
 0x3d7   :  { %v9226_v8 = vpop.f32.mrb[191].mxu0  ;;  %v12851_v63 = vld [vmem:[#allocation25_spill] sm:$0xff] }
 0x3d8   :  { %9280 = vmatpush3.bf16.msra.mxu1 %v9872_v60  ;;  %v6074_v8 = vpack.c.b16 %v12851_v63, %v12851_v63 }
 0x3d9   :  { %9281 = vmatprep.subr.bf16.mxu1 %v12757_v27 }
 0x3dc   :  { %9282 = vmatpush3.bf16.msra.mxu1 %v9873_v19 }
 0x3dd   :  { %9299 = vmatprep.subr.bf16.mxu1 %v12757_v27 }
 0x3df   :  { %9284 = vmatmul.mubr.msk.bf16.vlgmr.msra.gmra.mrb[180].mxu1 %vm1455_vm1, %v5572_v7 }
 0x3e0   :  { %9300 = vmatpush3.bf16.msra.mxu1 %v9874_v35  ;;  %9307 = vmatprep.mubr.msk.bf16.mxu1 %vm9964_vm2, %v12757_v27 }
 0x3e1   :  { %9301 = vmatprep.subr.bf16.mxu1 %v12757_v27 }
 0x3e2   :  { %v3456_v13 = vpop.f32.mrb[128].mxu1 }
 0x3e3   :  { %v3462_v38 = vadd.f32 %v3456_v13, %v3381_v45  ;;  %v8973_v1 = vpop.f32.mrb[129].mxu1  ;;  %v9886_v45 = vld [vmem:[%s12705_s3 + $0x6e0] sm:$0xff]  }
 0x3e4   :  { %v3459_v46 = vpop.f32.mrb[130].mxu1  ;;  %v12403_v17 = vpop.f32.mrb[192].mxu0  ;;  %9302 = vmatpush3.bf16.msra.mxu1 %v9875_v0 }
 0x3e5   :  { %v8974_v22 = vpop.f32.mrb[131].mxu1  ;;  %v9249_v34 = vpop.f32.mrb[193].mxu0  ;;  %9303 = vmatprep.subr.bf16.mxu1 %v12757_v27  ;;  %v3549_v51 = vadd.f32 %v11986_v2, %v3462_v38  ;;  %v9879_v2 = vld [vmem:[%s12705_s3 + $0x668] sm:$0xff]   ;;  %v9888_v38 = vld [vmem:[%s12705_s3 + $0x6f0] sm:$0xff]  }
 0x3e6   :  { %v5388_v9 = vpop.f32.mrb[194].mxu0 }
 0x3e7   :  { %v9250_v48 = vpop.f32.mrb[195].mxu0  ;;  %v9890_v9 = vld [vmem:[%s12705_s3 + $0x720] sm:$0xff]  }
 0x3e8   :  { %9304 = vmatpush3.bf16.msra.mxu1 %v9876_v49  ;;  %v12852_v48 = vld [vmem:[#allocation26_spill] sm:$0xff] }
 0x3e9   :  { %9305 = vmatprep.subr.bf16.mxu1 %v12757_v27 }
 0x3ec   :  { %9306 = vmatpush3.bf16.msra.mxu1 %v9877_v39  ;;  %v6242_v39 = vpack.c.b16 %v12852_v48, %v12852_v48 }
 0x3ed   :  { %9323 = vmatprep.subr.bf16.mxu1 %v12757_v27 }
 0x3ef   :  { %9308 = vmatmul.mubr.msk.bf16.vlgmr.msra.gmra.mrb[184].mxu1 %vm1455_vm1, %v5738_v26 }
 0x3f0   :  { %9324 = vmatpush3.bf16.msra.mxu1 %v9878_v56  ;;  %9331 = vmatprep.mubr.msk.bf16.mxu1 %vm9964_vm2, %v12757_v27 }
 0x3f1   :  { %9325 = vmatprep.subr.bf16.mxu1 %v12757_v27 }
 0x3f2   :  { %v3624_v14 = vpop.f32.mrb[132].mxu1 }
 0x3f3   :  { %v3630_v41 = vadd.f32 %v3624_v14, %v3549_v51  ;;  %v8997_v42 = vpop.f32.mrb[133].mxu1  ;;  %v9889_v51 = vld [vmem:[%s12705_s3 + $0x6f8] sm:$0xff]  }
 0x3f4   :  { %v3627_v4 = vpop.f32.mrb[134].mxu1  ;;  %v12427_v10 = vpop.f32.mrb[196].mxu0  ;;  %9326 = vmatpush3.bf16.msra.mxu1 %v9879_v2 }
 0x3f5   :  { %v8998_v25 = vpop.f32.mrb[135].mxu1  ;;  %v9273_v12 = vpop.f32.mrb[197].mxu0  ;;  %9327 = vmatprep.subr.bf16.mxu1 %v12757_v27  ;;  %v3716_v57 = vadd.f32 %v12033_v30, %v3630_v41  ;;  %v9883_v30 = vld [vmem:[%s12705_s3 + $0x6a8] sm:$0xff]   ;;  %v9892_v41 = vld [vmem:[%s12705_s3 + $0x730] sm:$0xff]  }
 0x3f6   :  { %v5556_v18 = vpop.f32.mrb[198].mxu0 }
 0x3f7   :  { %v9274_v50 = vpop.f32.mrb[199].mxu0  ;;  %v9894_v18 = vld [vmem:[%s12705_s3 + $0x760] sm:$0xff]  }
 0x3f8   :  { %9328 = vmatpush3.bf16.msra.mxu1 %v9880_v15  ;;  %v6408_v50 = vpack.c.b16 %v11292_v62, %v11292_v62  ;;  %v9896_v62 = vld [vmem:[%s12705_s3 + $0x770] sm:$0xff]  }
 0x3f9   :  { %9329 = vmatprep.subr.bf16.mxu1 %v12757_v27 }
 0x3fc   :  { %9330 = vmatpush3.bf16.msra.mxu1 %v9881_v11 }
 0x3fd   :  { %9347 = vmatprep.subr.bf16.mxu1 %v12757_v27 }
 0x3ff   :  { %9332 = vmatmul.mubr.msk.bf16.vlgmr.msra.gmra.mrb[188].mxu1 %vm1455_vm1, %v5906_v44 }
 0x400   :  { %9348 = vmatpush3.bf16.msra.mxu1 %v9882_v52  ;;  %9355 = vmatprep.mubr.msk.bf16.mxu1 %vm9964_vm2, %v12757_v27 }
 0x401   :  { %9349 = vmatprep.subr.bf16.mxu1 %v12757_v27 }
 0x402   :  { %v3790_v37 = vpop.f32.mrb[136].mxu1 }
 0x403   :  { %v3796_v43 = vadd.f32 %v3790_v37, %v3716_v57  ;;  %v9021_v16 = vpop.f32.mrb[137].mxu1  ;;  %v9893_v57 = vld [vmem:[%s12705_s3 + $0x738] sm:$0xff]  }
 0x404   :  { %v3793_v55 = vpop.f32.mrb[138].mxu1  ;;  %v12451_v23 = vpop.f32.mrb[200].mxu0  ;;  %9350 = vmatpush3.bf16.msra.mxu1 %v9883_v30 }
 0x405   :  { %v9022_v6 = vpop.f32.mrb[139].mxu1  ;;  %v9297_v5 = vpop.f32.mrb[201].mxu0  ;;  %9351 = vmatprep.subr.bf16.mxu1 %v12757_v27  ;;  %v3883_v21 = vadd.f32 %v12080_v33, %v3796_v43  ;;  %v9887_v33 = vld [vmem:[%s12705_s3 + $0x6e8] sm:$0xff]  }
 0x406   :  { %v5723_v60 = vpop.f32.mrb[202].mxu0  ;;  %v9897_v5 = vld [vmem:[%s12705_s3 + $0x778] sm:$0xff]  }
 0x407   :  { %v9298_v29 = vpop.f32.mrb[203].mxu0  ;;  %v6576_v60 = vpack.c.b16 %v11295_v31, %v11295_v31  ;;  %v9900_v31 = vld [vmem:[%s12705_s3 + $0x7b0] sm:$0xff]  }
 0x408   :  { %9352 = vmatpush3.bf16.msra.mxu1 %v9884_v40 }
 0x409   :  { %9353 = vmatprep.subr.bf16.mxu1 %v12757_v27 }
 0x40c   :  { %9354 = vmatpush3.bf16.msra.mxu1 %v9885_v59 }
 0x40d   :  { %9371 = vmatprep.subr.bf16.mxu1 %v12757_v27 }
 0x40f   :  { %9356 = vmatmul.mubr.msk.bf16.vlgmr.msra.gmra.mrb[192].mxu1 %vm1455_vm1, %v6074_v8 }
 0x410   :  { %9372 = vmatpush3.bf16.msra.mxu1 %v9886_v45  ;;  %9379 = vmatprep.mubr.msk.bf16.mxu1 %vm9964_vm2, %v12757_v27 }
 0x411   :  { %9373 = vmatprep.subr.bf16.mxu1 %v12757_v27 }
 0x412   :  { %v3958_v19 = vpop.f32.mrb[140].mxu1 }
 0x413   :  { %v3964_v35 = vadd.f32 %v3958_v19, %v3883_v21  ;;  %v9045_v7 = vpop.f32.mrb[141].mxu1  ;;  %v9898_v21 = vld [vmem:[%s12705_s3 + $0x7a0] sm:$0xff]  }
 0x414   :  { %v3961_v0 = vpop.f32.mrb[142].mxu1  ;;  %v12475_v13 = vpop.f32.mrb[204].mxu0  ;;  %9374 = vmatpush3.bf16.msra.mxu1 %v9887_v33 }
 0x415   :  { %v9046_v1 = vpop.f32.mrb[143].mxu1  ;;  %v9321_v46 = vpop.f32.mrb[205].mxu0  ;;  %9375 = vmatprep.subr.bf16.mxu1 %v12757_v27  ;;  %v4051_v49 = vadd.f32 %v12127_v58, %v3964_v35  ;;  %v9891_v58 = vld [vmem:[%s12705_s3 + $0x728] sm:$0xff]  }
 0x416   :  { %v5890_v22 = vpop.f32.mrb[206].mxu0  ;;  %v9902_v1 = vld [vmem:[%s12705_s3 + $0x7e0] sm:$0xff]   ;;  %v6744_v46 = vpack.c.b16 %v11301_v53, %v11301_v53  ;;  %v9904_v53 = vld [vmem:[%s12705_s3 + $0x7f0] sm:$0xff]  }
 0x417   :  { %v9322_v34 = vpop.f32.mrb[207].mxu0 }
 0x418   :  { %9376 = vmatpush3.bf16.msra.mxu1 %v9888_v38  ;;  %v9901_v38 = vld [vmem:[%s12705_s3 + $0x7b8] sm:$0xff]  }
 0x419   :  { %9377 = vmatprep.subr.bf16.mxu1 %v12757_v27 }
 0x41c   :  { %9378 = vmatpush3.bf16.msra.mxu1 %v9889_v51 }
 0x41d   :  { %9395 = vmatprep.subr.bf16.mxu1 %v12757_v27 }
 0x41f   :  { %9380 = vmatmul.mubr.msk.bf16.vlgmr.msra.gmra.mrb[196].mxu1 %vm1455_vm1, %v6242_v39 }
 0x420   :  { %9396 = vmatpush3.bf16.msra.mxu1 %v9890_v9  ;;  %9403 = vmatprep.mubr.msk.bf16.mxu1 %vm9964_vm2, %v12757_v27 }
 0x421   :  { %9397 = vmatprep.subr.bf16.mxu1 %v12757_v27 }
 0x422   :  { %v4126_v56 = vpop.f32.mrb[144].mxu1 }
 0x423   :  { %v4132_v36 = vadd.f32 %v4126_v56, %v4051_v49  ;;  %v9069_v26 = vpop.f32.mrb[145].mxu1 }
 0x424   :  { %v4129_v2 = vpop.f32.mrb[146].mxu1  ;;  %v12499_v14 = vpop.f32.mrb[208].mxu0  ;;  %9398 = vmatpush3.bf16.msra.mxu1 %v9891_v58  ;;  %v9905_v26 = vld [vmem:[%s12705_s3 + $0x7f8] sm:$0xff]  }
 0x425   :  { %v9070_v42 = vpop.f32.mrb[147].mxu1  ;;  %v9345_v4 = vpop.f32.mrb[209].mxu0  ;;  %9399 = vmatprep.subr.bf16.mxu1 %v12757_v27  ;;  %v4219_v15 = vadd.f32 %v12174_v54, %v4132_v36  ;;  %v9895_v54 = vld [vmem:[%s12705_s3 + $0x768] sm:$0xff]   ;;  %v6912_v2 = vpack.c.b16 %v11307_v24, %v11307_v24 }
 0x426   :  { %v6058_v25 = vpop.f32.mrb[210].mxu0 }
 0x427   :  { %v9346_v12 = vpop.f32.mrb[211].mxu0 }
 0x428   :  { %9400 = vmatpush3.bf16.msra.mxu1 %v9892_v41 }
 0x429   :  { %9401 = vmatprep.subr.bf16.mxu1 %v12757_v27 }
 0x42c   :  { %9402 = vmatpush3.bf16.msra.mxu1 %v9893_v57 }
 0x42d   :  { %9419 = vmatprep.subr.bf16.mxu1 %v12757_v27 }
 0x42f   :  { %9404 = vmatmul.mubr.msk.bf16.vlgmr.msra.gmra.mrb[200].mxu1 %vm1455_vm1, %v6408_v50 }
 0x430   :  { %9420 = vmatpush3.bf16.msra.mxu1 %v9894_v18  ;;  %9427 = vmatprep.mubr.msk.bf16.mxu1 %vm9964_vm2, %v12757_v27 }
 0x431   :  { %9421 = vmatprep.subr.bf16.mxu1 %v12757_v27 }
 0x432   :  { %v4294_v11 = vpop.f32.mrb[148].mxu1 }
 0x433   :  { %v4300_v52 = vadd.f32 %v4294_v11, %v4219_v15  ;;  %v9093_v44 = vpop.f32.mrb[149].mxu1 }
 0x434   :  { %v4297_v30 = vpop.f32.mrb[150].mxu1  ;;  %v12523_v37 = vpop.f32.mrb[212].mxu0  ;;  %9422 = vmatpush3.bf16.msra.mxu1 %v9895_v54 }
 0x435   :  { %v9094_v43 = vpop.f32.mrb[151].mxu1  ;;  %v9369_v16 = vpop.f32.mrb[213].mxu0  ;;  %9423 = vmatprep.subr.bf16.mxu1 %v12757_v27  ;;  %v4386_v55 = vadd.f32 %v12221_v20, %v4300_v52  ;;  %v9899_v20 = vld [vmem:[%s12705_s3 + $0x7a8] sm:$0xff]  }
 0x436   :  { %v6226_v40 = vpop.f32.mrb[214].mxu0 }
 0x437   :  { %v9370_v6 = vpop.f32.mrb[215].mxu0 }
 0x438   :  { %9424 = vmatpush3.bf16.msra.mxu1 %v9896_v62 }
 0x439   :  { %9425 = vmatprep.subr.bf16.mxu1 %v12757_v27 }
 0x43c   :  { %9426 = vmatpush3.bf16.msra.mxu1 %v9897_v5 }
 0x43d   :  { %9443 = vmatprep.subr.bf16.mxu1 %v12757_v27 }
 0x43f   :  { %9428 = vmatmul.mubr.msk.bf16.vlgmr.msra.gmra.mrb[204].mxu1 %vm1455_vm1, %v6576_v60 }
 0x440   :  { %9444 = vmatpush3.bf16.msra.mxu1 %v9898_v21  ;;  %9451 = vmatprep.mubr.msk.bf16.mxu1 %vm9964_vm2, %v12757_v27 }
 0x441   :  { %9445 = vmatprep.subr.bf16.mxu1 %v12757_v27 }
 0x442   :  { %v4460_v29 = vpop.f32.mrb[152].mxu1 }
 0x443   :  { %v4466_v59 = vadd.f32 %v4460_v29, %v4386_v55  ;;  %v9117_v45 = vpop.f32.mrb[153].mxu1 }
 0x444   :  { %v4463_v63 = vpop.f32.mrb[154].mxu1  ;;  %v12547_v8 = vpop.f32.mrb[216].mxu0  ;;  %9446 = vmatpush3.bf16.msra.mxu1 %v9899_v20 }
 0x445   :  { %v9118_v33 = vpop.f32.mrb[155].mxu1  ;;  %v9393_v19 = vpop.f32.mrb[217].mxu0  ;;  %9447 = vmatprep.subr.bf16.mxu1 %v12757_v27  ;;  %v4553_v35 = vadd.f32 %v12268_v47, %v4466_v59  ;;  %v9903_v47 = vld [vmem:[%s12705_s3 + $0x7e8] sm:$0xff]  }
 0x446   :  { %v6393_v7 = vpop.f32.mrb[218].mxu0  ;;  %v9908_v33 = vld [vmem:[%s12707_s5 + $0x4] ss:$12 sps:$4 sm:$0xff]   ;;  %v9909_v19 = vld [vmem:[%s12707_s5 + $0x8] ss:$12 sps:$4 sm:$0xff]  }
 0x447   :  { %v9394_v0 = vpop.f32.mrb[219].mxu0  ;;  %7168 = vmatprep.subr.bf16.mxu0 %v9908_v33 }
 0x448   :  { %9448 = vmatpush3.bf16.msra.mxu1 %v9900_v31 }
 0x449   :  { %9449 = vmatprep.subr.bf16.mxu1 %v12757_v27 }
 0x44c   :  { %9450 = vmatpush3.bf16.msra.mxu1 %v9901_v38 }
 0x44d   :  { %9467 = vmatprep.subr.bf16.mxu1 %v12757_v27 }
 0x44f   :  { %9452 = vmatmul.mubr.msk.bf16.vlgmr.msra.gmra.mrb[208].mxu1 %vm1455_vm1, %v6744_v46  ;;  %v9916_v46 = vld [vmem:[%s12707_s5 + $0x34] ss:$12 sps:$4 sm:$0xff]  }
 0x450   :  { %9468 = vmatpush3.bf16.msra.mxu1 %v9902_v1  ;;  %9475 = vmatprep.mubr.msk.bf16.mxu1 %vm9964_vm2, %v12757_v27  ;;  %v9914_v1 = vld [vmem:[%s12707_s5 + $0x30] ss:$12 sps:$4 sm:$0xff]  }
 0x451   :  { %9469 = vmatprep.subr.bf16.mxu1 %v12757_v27 }
 0x452   :  { %v4628_v49 = vpop.f32.mrb[156].mxu1 }
 0x453   :  { %v4634_v22 = vadd.f32 %v4628_v49, %v4553_v35  ;;  %v9141_v34 = vpop.f32.mrb[157].mxu1  ;;  %v9913_v35 = vld [vmem:[%s12707_s5 + $0x20] ss:$12 sps:$4 sm:$0xff]   ;;  %v9917_v49 = vld [vmem:[%s12707_s5 + $0x38] ss:$12 sps:$4 sm:$0xff]  }
 0x454   :  { %v4631_v51 = vpop.f32.mrb[158].mxu1  ;;  %v12571_v9 = vpop.f32.mrb[220].mxu0  ;;  %9470 = vmatpush3.bf16.msra.mxu1 %v9903_v47 }
 0x455   :  { %v9142_v48 = vpop.f32.mrb[159].mxu1  ;;  %v9417_v39 = vpop.f32.mrb[221].mxu0  ;;  %9471 = vmatprep.subr.bf16.mxu1 %v12757_v27  ;;  %v4721_v58 = vadd.f32 %v12307_v32, %v4634_v22  ;;  %v9920_v51 = vld [vmem:[%s12707_s5 + $0x4c] ss:$12 sps:$4 sm:$0xff]  }
 0x456   :  { %v6560_v56 = vpop.f32.mrb[222].mxu0  ;;  %v9921_v48 = vld [vmem:[%s12707_s5 + $0x50] ss:$12 sps:$4 sm:$0xff]   ;;  %v9922_v39 = vld [vmem:[%s12707_s5 + $0x60] ss:$12 sps:$4 sm:$0xff]  }
 0x457   :  { %v9418_v36 = vpop.f32.mrb[223].mxu0  ;;  %v9928_v56 = vld [vmem:[%s12707_s5 + $0x7c] ss:$12 sps:$4 sm:$0xff]  }
 0x458   :  { %9472 = vmatpush3.bf16.msra.mxu1 %v9904_v53  ;;  %v9918_v53 = vld [vmem:[%s12707_s5 + $0x48] ss:$12 sps:$4 sm:$0xff]   ;;  %v9926_v36 = vld [vmem:[%s12707_s5 + $0x78] ss:$12 sps:$4 sm:$0xff]  }
 0x459   :  { %9473 = vmatprep.subr.bf16.mxu1 %v12757_v27 }
 0x45c   :  { %9474 = vmatpush3.bf16.msra.mxu1 %v9905_v26  ;;  %v9929_v26 = vld [vmem:[%s12707_s5 + $0x80] ss:$12 sps:$4 sm:$0xff]  }
 0x45d   :  { %9479 = vmatprep.subr.bf16.mxu1 %v12757_v27 }
 0x45f   :  { %9476 = vmatmul.mubr.msk.bf16.vlgmr.msra.gmra.mrb[212].mxu1 %vm1455_vm1, %v6912_v2 }
 0x460   :  { %9495 = vmatprep.mubr.msk.bf16.mxu1 %vm9964_vm2, %v12757_v27  ;;  %9480 = vmatpush3.bf16.msra.mxu1 %v9909_v19 }
 0x461   :  { %9481 = vmatprep.subr.bf16.mxu1 %v12757_v27 }
 0x462   :  { %v4796_v32 = vpop.f32.mrb[160].mxu1 }
 0x463   :  { %v4802_v41 = vadd.f32 %v4796_v32, %v4721_v58  ;;  %v9165_v42 = vpop.f32.mrb[161].mxu1  ;;  %v9925_v58 = vld [vmem:[%s12707_s5 + $0x68] ss:$12 sps:$4 sm:$0xff]  }
 0x464   :  { %v4799_v4 = vpop.f32.mrb[162].mxu1  ;;  %v12588_v15 = vpop.f32.mrb[224].mxu0  ;;  %9482 = vmatpush3.bf16.msra.mxu1 %v9913_v35 }
 0x465   :  { %v9166_v25 = vpop.f32.mrb[163].mxu1  ;;  %v9441_v12 = vpop.f32.mrb[225].mxu0  ;;  %v4889_v57 = vadd.f32 %v12331_v28, %v4802_v41  ;;  %9483 = vmatprep.subr.bf16.mxu1 %v12757_v27 }
 0x466   :  { %v6728_v18 = vpop.f32.mrb[226].mxu0  ;;  %v9930_v12 = vld [vmem:[%s12707_s5 + $0x90] ss:$12 sps:$4 sm:$0xff]  }
 0x467   :  { %v9442_v50 = vpop.f32.mrb[227].mxu0  ;;  %v9933_v18 = vld [vmem:[%s12707_s5 + $0x98] ss:$12 sps:$4 sm:$0xff]  }
 0x468   :  { %9484 = vmatpush3.bf16.msra.mxu1 %v9917_v49  ;;  %v9936_v50 = vld [vmem:[%s12707_s5 + $0xac] ss:$12 sps:$4 sm:$0xff]  }
 0x469   :  { %9485 = vmatprep.subr.bf16.mxu1 %v12757_v27 }
 0x46c   :  { %9486 = vmatpush3.bf16.msra.mxu1 %v9921_v48 }
 0x46d   :  { %9487 = vmatprep.subr.bf16.mxu1 %v12757_v27 }
 0x470   :  { %9488 = vmatpush3.bf16.msra.mxu1 %v9925_v58 }
 0x471   :  { %9489 = vmatprep.subr.bf16.mxu1 %v12757_v27 }
 0x472   :  { %v4964_v24 = vpop.f32.mrb[164].mxu1 }
 0x473   :  { %v4970_v54 = vadd.f32 %v4964_v24, %v4889_v57  ;;  %v9189_v11 = vpop.f32.mrb[165].mxu1  ;;  %v9932_v57 = vld [vmem:[%s12707_s5 + $0x94] ss:$12 sps:$4 sm:$0xff]  }
 0x474   :  { %v4967_v52 = vpop.f32.mrb[166].mxu1  ;;  %v12591_v44 = vpop.f32.mrb[228].mxu0  ;;  %9490 = vmatpush3.bf16.msra.mxu1 %v9929_v26  ;;  %v9934_v24 = vld [vmem:[%s12707_s5 + $0xa8] ss:$12 sps:$4 sm:$0xff]  }
 0x475   :  { %v9190_v30 = vpop.f32.mrb[167].mxu1  ;;  %v9465_v62 = vpop.f32.mrb[229].mxu0  ;;  %v5056_v43 = vadd.f32 %v12355_v61, %v4970_v54  ;;  %v9906_v61 = vld [vmem:[%s12707_s5] ss:$12 sps:$4 sm:$0xff]   ;;  %9491 = vmatprep.subr.bf16.mxu1 %v12757_v27 }
 0x476   :  { %v6896_v16 = vpop.f32.mrb[230].mxu0  ;;  %7169 = vmatpush1.bf16.msra.mxu0 %v9906_v61 }
 0x477   :  { %v9466_v55 = vpop.f32.mrb[231].mxu0 }
 0x478   :  { %9492 = vmatpush3.bf16.msra.mxu1 %v9933_v18 }
 0x479   :  { %9493 = vmatprep.subr.bf16.mxu1 %v12757_v27 }
 0x482   :  { %v5130_v40 = vpop.f32.mrb[168].mxu1 }
 0x483   :  { %v5136_v6 = vadd.f32 %v5130_v40, %v5056_v43  ;;  %v9213_v5 = vpop.f32.mrb[169].mxu1 }
 0x484   :  { %v5133_v21 = vpop.f32.mrb[170].mxu1 }
 0x485   :  { %v9214_v60 = vpop.f32.mrb[171].mxu1  ;;  %v5223_v28 = vadd.f32 %v12379_v3, %v5136_v6  ;;  %v9912_v3 = vld [vmem:[%s12707_s5 + $0x1c] ss:$12 sps:$4 sm:$0xff]  }
 0x486   :  { %7170 = vmatprep.subr.bf16.mxu0 %v9912_v3 }
 0x492   :  { %v5298_v20 = vpop.f32.mrb[172].mxu1 }
 0x493   :  { %v5304_v29 = vadd.f32 %v5298_v20, %v5223_v28  ;;  %v9237_v59 = vpop.f32.mrb[173].mxu1 }
 0x494   :  { %v5301_v45 = vpop.f32.mrb[174].mxu1 }
 0x495   :  { %v9238_v63 = vpop.f32.mrb[175].mxu1  ;;  %v5391_v31 = vadd.f32 %v12403_v17, %v5304_v29  ;;  %v9910_v17 = vld [vmem:[%s12707_s5 + $0x18] ss:$12 sps:$4 sm:$0xff]  }
 0x496   :  { %7171 = vmatpush1.bf16.msra.mxu0 %v9910_v17 }
 0x497   :  { %7172 = vmatprep.subr.bf16.mxu0 %v9916_v46 }
 0x49a   :  { %7173 = vmatpush1.bf16.msra.mxu0 %v9914_v1 }
 0x49b   :  { %7174 = vmatprep.subr.bf16.mxu0 %v9920_v51 }
 0x49e   :  { %7175 = vmatpush1.bf16.msra.mxu0 %v9918_v53 }
 0x4a2   :  { %v5466_v7 = vpop.f32.mrb[176].mxu1 }
 0x4a3   :  { %v5472_v0 = vadd.f32 %v5466_v7, %v5391_v31  ;;  %v9261_v38 = vpop.f32.mrb[177].mxu1 }
 0x4a4   :  { %v5469_v47 = vpop.f32.mrb[178].mxu1 }
 0x4a5   :  { %v9262_v22 = vpop.f32.mrb[179].mxu1  ;;  %v5559_v34 = vadd.f32 %v12427_v10, %v5472_v0  ;;  %v9924_v10 = vld [vmem:[%s12707_s5 + $0x64] ss:$12 sps:$4 sm:$0xff]  }
 0x4a6   :  { %7176 = vmatprep.subr.bf16.mxu0 %v9924_v10  ;;  %v8255_v10 = vld [vmem:[%s12706_s4] ss:$0 sm:$0xff]  ;;  %s9966_s4 = smov [#allocation3]  }
 0x4a7   :  { %7177 = vmatpush1.bf16.msra.mxu0 %v9922_v39 }
 0x4a8   :  { %7178 = vmatprep.subr.bf16.mxu0 %v9928_v56 }
 0x4ab   :  { %7179 = vmatpush1.bf16.msra.mxu0 %v9926_v36 }
 0x4ac   :  { %7180 = vmatprep.subr.bf16.mxu0 %v9932_v57 }
 0x4af   :  { %7181 = vmatpush1.bf16.msra.mxu0 %v9930_v12 }
 0x4b0   :  { %7182 = vmatprep.subr.bf16.mxu0 %v9936_v50 }
 0x4b2   :  { %v5634_v2 = vpop.f32.mrb[180].mxu1 }
 0x4b3   :  { %v5640_v32 = vadd.f32 %v5634_v2, %v5559_v34  ;;  %v9285_v41 = vpop.f32.mrb[181].mxu1  ;;  %7183 = vmatpush1.bf16.msra.mxu0 %v9934_v24 }
 0x4b4   :  { %v5637_v42 = vpop.f32.mrb[182].mxu1 }
 0x4b5   :  { %v9286_v4 = vpop.f32.mrb[183].mxu1  ;;  %v5726_v25 = vadd.f32 %v12451_v23, %v5640_v32  ;;  %v9937_v23 = vld [vmem:[%s12707_s5 + $0xb0] ss:$12 sps:$4 sm:$0xff]  }
 0x4b6   :  { %9494 = vmatpush3.bf16.msra.mxu1 %v9937_v23  ;;  %v9965_v4 = vmov 1983009808  }
 0x4c2   :  { %v5800_v54 = vpop.f32.mrb[184].mxu1 }
 0x4c3   :  { %v5806_v11 = vadd.f32 %v5800_v54, %v5726_v25  ;;  %v9309_v52 = vpop.f32.mrb[185].mxu1  ;;  %v7254_v25 = vunpack.c.l.s4 %v9965_v4 }
 0x4c4   :  { %v5803_v30 = vpop.f32.mrb[186].mxu1 }
 0x4c5   :  { %v9310_v62 = vpop.f32.mrb[187].mxu1  ;;  %v5893_v43 = vadd.f32 %v12475_v13, %v5806_v11  ;;  %v7255_v50 = vunpack.c.0.s8 %v7254_v25 }
 0x4d2   :  { %v5968_v16 = vpop.f32.mrb[188].mxu1 }
 0x4d3   :  { %v5974_v55 = vadd.f32 %v5968_v16, %v5893_v43  ;;  %v9333_v40 = vpop.f32.mrb[189].mxu1 }
 0x4d4   :  { %v5971_v6 = vpop.f32.mrb[190].mxu1 }
 0x4d5   :  { %v9334_v5 = vpop.f32.mrb[191].mxu1  ;;  %v6061_v21 = vadd.f32 %v12499_v14, %v5974_v55 }
 0x4e2   :  { %v6136_v60 = vpop.f32.mrb[192].mxu1 }
 0x4e3   :  { %v6142_v28 = vadd.f32 %v6136_v60, %v6061_v21  ;;  %v9357_v27 = vpop.f32.mrb[193].mxu1 }
 0x4e4   :  { %v6139_v20 = vpop.f32.mrb[194].mxu1 }
 0x4e5   :  { %v9358_v29 = vpop.f32.mrb[195].mxu1  ;;  %v6229_v59 = vadd.f32 %v12523_v37, %v6142_v28 }
 0x4f2   :  { %v6304_v45 = vpop.f32.mrb[196].mxu1 }
 0x4f3   :  { %v6310_v63 = vadd.f32 %v6304_v45, %v6229_v59  ;;  %v9381_v31 = vpop.f32.mrb[197].mxu1 }
 0x4f4   :  { %v6307_v61 = vpop.f32.mrb[198].mxu1 }
 0x4f5   :  { %v9382_v33 = vpop.f32.mrb[199].mxu1  ;;  %v6396_v13 = vadd.f32 %v12547_v8, %v6310_v63 }
 0x502   :  { %v6470_v19 = vpop.f32.mrb[200].mxu1 }
 0x503   :  { %v6476_v3 = vadd.f32 %v6470_v19, %v6396_v13  ;;  %v9405_v17 = vpop.f32.mrb[201].mxu1 }
 0x504   :  { %v6473_v35 = vpop.f32.mrb[202].mxu1 }
 0x505   :  { %v9406_v7 = vpop.f32.mrb[203].mxu1  ;;  %v6563_v14 = vadd.f32 %v12571_v9, %v6476_v3 }
 0x512   :  { %v6638_v0 = vpop.f32.mrb[204].mxu1 }
 0x513   :  { %v6644_v38 = vadd.f32 %v6638_v0, %v6563_v14  ;;  %v9429_v1 = vpop.f32.mrb[205].mxu1 }
 0x514   :  { %v6641_v46 = vpop.f32.mrb[206].mxu1 }
 0x515   :  { %v9430_v47 = vpop.f32.mrb[207].mxu1  ;;  %v6731_v37 = vadd.f32 %v12588_v15, %v6644_v38  ;;  %v7025_v15 = vlaneseq }
 0x517   :  { %v7026_v32 = vshrl.u32 %v7025_v15, 7 }
 0x519   :  { %v7027_v41 = vsub.s32 0, %v7026_v32  ;;  %v7035_v42 = vsub.s32 2, %v7026_v32  ;;  %v7031_v12 = vsub.s32 1, %v7026_v32  ;;  %v7258_v43 = vsub.s32 %v7255_v50, %v7026_v32 }
 0x522   :  { %v6806_v49 = vpop.f32.mrb[208].mxu1 }
 0x523   :  { %v6812_v22 = vadd.f32 %v6806_v49, %v6731_v37  ;;  %v9453_v34 = vpop.f32.mrb[209].mxu1 }
 0x524   :  { %v6809_v51 = vpop.f32.mrb[210].mxu1 }
 0x525   :  { %v9454_v53 = vpop.f32.mrb[211].mxu1  ;;  %v6899_v8 = vadd.f32 %v12591_v44, %v6812_v22  ;;  %v7023_v44 = vld [vmem:[%s12708_s6] sm:$0x7]  ;;  %s7276_s6 = sshll.u32 %s9966_s4, 4  ;;  %s7277_s6 = int_to_ptr.vmem [resolvable:$true] %s7276_s6 }
 0x526   :  { %v7028_v57 = vrot.slane %v7023_v44, %v7027_v41  ;;  %v7036_v18 = vrot.slane %v7023_v44, %v7035_v42  ;;  %v7032_v23 = vrot.slane %v7023_v44, %v7031_v12  ;;  %s9938_s29 = scalar_lea.vmem %s7277_s6, 96  ;;  %p9943_p1 = scmp.lt.s32.totalorder %s7277_s6, %s7277_s6 }
 0x527   :  { %p9939_p0 = scmp.ne.s32.totalorder %s7277_s6, %s9938_s29  ;;  %p9944_p2 = scmp.lt.s32.totalorder %s9938_s29, %s9938_s29 }
 0x529   :  { %p9945_p3 = por %p9944_p2, %p9943_p1 }
 0x52b   :  { %p9946_p4 = pnand %p9945_p3, %p9939_p0 }
 0x532   :  { %v6974_v48 = vpop.f32.mrb[212].mxu1 }
 0x533   :  { %v6980_v9 = vadd.f32 %v6974_v48, %v6899_v8  ;;  %v9477_v39 = vpop.f32.mrb[213].mxu1 }
 0x534   :  { %v6977_v58 = vpop.f32.mrb[214].mxu1 }
 0x535   :  { %v6988_v56 = vadd.f32 %v8255_v10, %v6980_v9  ;;  %v9478_v36 = vpop.f32.mrb[215].mxu1 }
 0x537   :  { %v6989_v26 = vmax.f32 %v6988_v56, 0.0 }
 0x539   :  { %v6990_v2 = vpack.c.bf16 %v6989_v26, %v6989_v26 }
 0x53b   :  { %7201 = vmatmul.mubr.bf16.vlgmr.msra.gmra.mrb[232].mxu0 %v6990_v2  ;;  %9496 = vmatmul.mubr.bf16.vlgmr.msra.gmra.mrb[216].mxu1 %v6990_v2 }
 0x60e   :  { %v7202_v24 = vpop.f32.mrb[232].mxu0  ;;  %v7243_v54 = vpop.f32.mrb[216].mxu1 }
 0x60f   :  { %v7203_v11 = vadd.f32 %v7202_v24, %v7028_v57  ;;  %v7204_v52 = vpop.f32.mrb[233].mxu0  ;;  %v9497_v30 = vpop.f32.mrb[217].mxu1  ;;  %v7244_v62 = vadd.f32 %v7243_v54, %v7036_v18 }
 0x610   :  { %v7205_v16 = vadd.f32 %v7204_v52, %v7032_v23  ;;  %v7206_v55 = vpop.f32.mrb[234].mxu0  ;;  %v7246_v40 = vpop.f32.mrb[218].mxu1 }
 0x611   :  { %v7207_v6 = vpop.f32.mrb[235].mxu0  ;;  %v9498_v5 = vpop.f32.mrb[219].mxu1  ;;  %v7266_v60 = vrot.slane %v7244_v62, %v7258_v43 }
 0x612   :  { %v7252_v21 = vcombine.low %v7203_v11, %v7205_v16 }
 0x614   :  { %v7259_v28 = vrot.slane %v7252_v21, %v7258_v43 }
 0x616   :  { %v7267_v27 = vcombine.low %v7259_v28, %v7266_v60 }
 0x618   :  { %7269 = vst [vmem:[#allocation3] sm:$0x3f] %v7267_v27 }
 0x619   :  { %9949 = shalt.err (!%p9946_p4)
}
 0x61a   :  { %s9950_s3 = scalar_lea.hbm %s12709_s7, 96 }
 0x61b   :  { %p9951_p5 = scmp.ne.s32.totalorder %s12709_s7, %s9950_s3  ;;  %p9954_p6 = scmp.lt.u32.totalorder %s9950_s3, %s12709_s7 }
 0x61d   :  { %p9956_p7 = pnand %p9954_p6, %p9951_p5 }
 0x61f   :  { %9959 = shalt.err (!%p9956_p7)
}
 0x620   :  { %7279 = dma.vmem_to_hbm [thread:$0]  %s7277_s6, 96, %s12709_s7, [#allocation4]  }
 0x621   :  { %9960 = dma.done.wait [#allocation4], 96  }
 0x622   :  { %9961 = vsyncadd [#allocation4], 4294967200 }
 0x623   :  { %7283 = vsyncpa [#allocation4], 1 }

</bundles_post_ra>
